<compile_context>
chip_gen: v7x
topology: tpu7x:2x2x1
jax: 0.10.0
libtpu: 0.0.40
codegen_flags: <defaults>
</compile_context>

<pallas_src>
import functools

import jax
import jax.numpy as jnp
from jax.experimental import pallas as pl
from jax.experimental.pallas import tpu as pltpu


def _pack_factor(channels, hw):
    """Channels packed per 128-wide lane row by a free reshape of contiguous NCHW."""
    if hw <= 128 and 128 % hw == 0 and channels % (128 // hw) == 0:
        return 128 // hw
    return 1


def _channel_perm(channels, k):
    """Channel order produced by summing the k HW-segments of a packed row, segment-major.

    Position s * (channels // k) + r holds original channel r * k + s.
    For k == 2 this is (even channels, odd channels), as required by the lane-dense layout.
    """
    return jnp.asarray(
        [r * k + s for s in range(k) for r in range(channels // k)], dtype=jnp.int32)


def _r50_d2vfm_kernel(x_ref, w1_ref, w2_ref, bias_ref, wp_hbm_ref, out_ref,
                      wp_vmem, wp_sem, *, hw, k, hidden, channels, out_dim, batch):
    # Start the Wp HBM->VMEM transfer immediately; it is only needed by the final proj matmul,
    # so pool / fc1 / fc2 execute under this DMA.
    wp_copy = pltpu.make_async_copy(wp_hbm_ref, wp_vmem, wp_sem)
    wp_copy.start()

    inv_hw = 1.0 / hw

    # AdaptiveAvgPool2d(1): per-channel mean over HW. Each lane-axis reduce keeps its natural
    # channel-on-sublanes [.,1] column layout; columns are stacked into a [C, B] matrix in the
    # same packed (segment-major) channel order the weights were re-ordered with at init.
    def pool_batch(b):
        xb = x_ref[b].astype(jnp.float32)                                     # [C//k, k*HW]
        segs = [jnp.sum(xb[:, s * hw:(s + 1) * hw], axis=-1, keepdims=True)   # [C//k, 1]
                for s in range(k)]
        return segs[0] if k == 1 else jnp.concatenate(segs, axis=0)           # [C, 1]

    pooled_t = jnp.concatenate([pool_batch(b) for b in range(batch)], axis=1) * inv_hw  # [C, B] f32

    # Packed bias column: [hidden | C | out_dim] x 1, f32; static sublane slices (8-aligned).
    b1 = bias_ref[0:hidden, :]                                                # [hidden, 1]
    b2 = bias_ref[hidden:hidden + channels, :]                                # [C, 1]
    bp = bias_ref[hidden + channels:hidden + channels + out_dim, :]           # [out_dim, 1]

    # Adapter_MP with skip_connect=True ('mpa'), transposed dataflow.
    # bf16 matmul operands; f32 accumulation, bias adds and skip-add.
    a_t = jnp.maximum(pooled_t, 0.0).astype(jnp.bfloat16)                            # act(x)   [C, B]
    h_t = jnp.dot(w1_ref[...], a_t, preferred_element_type=jnp.float32) + b1         # mlp_fc1  [H, B]
    h_t = jnp.maximum(h_t, 0.0).astype(jnp.bfloat16)                                 # act(xs)
    xs_t = jnp.dot(w2_ref[...], h_t, preferred_element_type=jnp.float32) + b2        # mlp_fc2  [C, B]
    y_t = jnp.maximum(pooled_t + xs_t, 0.0).astype(jnp.bfloat16)                     # act(x+xs)

    wp_copy.wait()                                                                   # Wp now in VMEM
    out_ref[...] = jnp.dot(wp_vmem[...], y_t, preferred_element_type=jnp.float32) + bp  # proj [OUT, B]


def r50_d2vfm_forward(src_t_nchw, params):
    """src_t_nchw: [B, C, H, W] feature map (needle level). Returns adapted_feat [B, out_dim] f32."""
    B, C, H, W = src_t_nchw.shape
    HW = H * W
    k = _pack_factor(C, HW)
    w1, w2, wp, bias = params
    hidden = w1.shape[0]
    out_dim = wp.shape[0]
    assert w1.shape == (hidden, C) and w2.shape == (C, hidden) and wp.shape == (out_dim, C)
    assert bias.shape == (hidden + C + out_dim, 1)

    # Free reshape of contiguous NCHW into 128-wide lane rows; bf16 feed (in the full model the
    # backbone tail emits bf16 directly, making this cast disappear).
    x = src_t_nchw.reshape(B, C // k, k * HW).astype(jnp.bfloat16)

    kernel = functools.partial(
        _r50_d2vfm_kernel,
        hw=HW, k=k, hidden=hidden, channels=C, out_dim=out_dim, batch=B)

    flops = 2 * B * (C * hidden + hidden * C + C * out_dim)
    bytes_accessed = (
        x.size * 2                            # bf16 feature map
        + (w1.size + w2.size + wp.size) * 2   # bf16 weights
        + bias.size * 4                       # f32 packed biases
        + B * out_dim * 4                     # f32 output
    )

    vspec = pl.BlockSpec(memory_space=pltpu.MemorySpace.VMEM)
    out_t = pl.pallas_call(
        kernel,
        out_shape=jax.ShapeDtypeStruct((out_dim, B), jnp.float32),
        in_specs=[vspec, vspec, vspec, vspec,
                  pl.BlockSpec(memory_space=pl.ANY)],         # Wp: stays in HBM, manual DMA
        out_specs=vspec,
        scratch_shapes=[
            pltpu.VMEM((out_dim, C), jnp.bfloat16),           # Wp staging buffer
            pltpu.SemaphoreType.DMA,                          # its completion semaphore
        ],
        compiler_params=pltpu.CompilerParams(vmem_limit_bytes=32 * 1024 * 1024),
        cost_estimate=pl.CostEstimate(
            flops=flops, transcendentals=0, bytes_accessed=bytes_accessed),
    )(x, w1, w2, bias, wp)
    return out_t.T                                            # [B, out_dim]; 6 KiB transpose in XLA


def kaiming_uniform(key, out_dim, in_dim):
    # nn.init.kaiming_uniform_(mode='fan_in', nonlinearity='relu'):
    # gain = sqrt(2), bound = gain * sqrt(3 / fan_in) = sqrt(6 / fan_in)
    bound = (6.0 / in_dim) ** 0.5
    return jax.random.uniform(key, (out_dim, in_dim), jnp.float32, -bound, bound)


def init_params(key, input_dim, out_dim, hw, mlp_ratio=0.25):
    """Adapter_MP params in PyTorch [out, in] layout; kernel copies are bf16 and channel-permuted
    once (offline) to match the packed lane-dense feature layout. Returns (kernel_params, ref_params)."""
    hidden = int(input_dim * mlp_ratio)
    k1, k2, k3 = jax.random.split(key, 3)
    w1 = kaiming_uniform(k1, hidden, input_dim)      # mlp_fc1.weight [hidden, C]
    w2 = kaiming_uniform(k2, input_dim, hidden)      # mlp_fc2.weight [C, hidden]
    wp = kaiming_uniform(k3, out_dim, input_dim)     # proj.weight    [out, C]
    b1 = jnp.zeros((hidden,), jnp.float32)           # nn.init.constant_(bias, 0)
    b2 = jnp.zeros((input_dim,), jnp.float32)
    bp = jnp.zeros((out_dim,), jnp.float32)

    k = _pack_factor(input_dim, hw)
    perm = _channel_perm(input_dim, k)
    w1p = w1[:, perm].astype(jnp.bfloat16)            # permute fc1 input columns
    w2p = w2[perm, :].astype(jnp.bfloat16)            # permute fc2 output rows
    wpp = wp[:, perm].astype(jnp.bfloat16)            # permute proj input columns
    bias = jnp.concatenate([b1, b2[perm], bp]).reshape(-1, 1).astype(jnp.float32)

    kernel_params = (w1p, w2p, wpp, bias)
    ref_params = (w1, b1, w2, b2, wp, bp)             # exact f32 copies for the reference
    return kernel_params, ref_params


def reference_forward(src_t_nchw, ref_params):
    """Pure-JAX f32 reference of the module math: avgpool(1) -> Adapter_MP (skip_connect=True)."""
    w1, b1, w2, b2, wp, bp = ref_params
    pooled = jnp.mean(src_t_nchw, axis=(2, 3))        # [B, C]
    a = jax.nn.relu(pooled)
    h = jax.nn.relu(a @ w1.T + b1)
    xs = h @ w2.T + b2
    y = jax.nn.relu(pooled + xs)
    return y @ wp.T + bp


if __name__ == "__main__":
    # needle=1 -> input_dim = 1024, out_feat_dim = 768, hidden = 256 (mlp_ratio=0.25)
    B, C, H, W = 2, 1024, 8, 8
    OUT_DIM = 768

    key = jax.random.PRNGKey(0)
    k_x, k_p = jax.random.split(key)
    src_t = jax.random.normal(k_x, (B, C, H, W), jnp.float32)   # backbone feature map (NCHW)
    params, ref_params = init_params(k_p, C, OUT_DIM, hw=H * W)

    out = r50_d2vfm_forward(src_t, params)
    out = jax.block_until_ready(out)

    ref = reference_forward(src_t, ref_params)
    assert out.shape == (B, OUT_DIM)
    # bf16 feature map + bf16 matmul operands vs the exact-f32 module math -> relaxed tolerance.
    # (Error budget: ~1-2% relative through three bf16 matmuls; confirm acceptable downstream.)
    assert jnp.allclose(out, ref, atol=2e-2, rtol=2e-2), "mismatch vs pure-JAX f32 reference"

    print("KERNEL_OK")
</pallas_src>

<mosaic_0001>
module attributes {stable_mosaic.version = 11 : i64} {
  func.func @_r50_d2vfm_kernel(%arg0: memref<2x512x128xbf16, #tpu.memory_space<vmem>>, %arg1: memref<256x1024xbf16, #tpu.memory_space<vmem>>, %arg2: memref<1024x256xbf16, #tpu.memory_space<vmem>>, %arg3: memref<2048x1xf32, #tpu.memory_space<vmem>>, %arg4: memref<768x1024xbf16, #tpu.memory_space<any>>, %arg5: memref<768x2xf32, #tpu.memory_space<vmem>>, %arg6: memref<768x1024xbf16, #tpu.memory_space<vmem>>, %arg7: memref<!tpu.dma_semaphore, #tpu.memory_space<semaphore_mem>>) attributes {dimension_semantics = [], scalar_prefetch = 0 : i64, scratch_operands = 2 : i64, tpu.core_type = #tpu.core_type<tc>} {
    tpu.enqueue_dma source(%arg4 : memref<768x1024xbf16, #tpu.memory_space<any>>) target(%arg6 : memref<768x1024xbf16, #tpu.memory_space<vmem>>) target_semaphore(%arg7 : memref<!tpu.dma_semaphore, #tpu.memory_space<semaphore_mem>>)
    %c0 = arith.constant 0 : index
    %c0_0 = arith.constant 0 : index
    %c0_1 = arith.constant 0 : index
    %0 = vector.load %arg0[%c0, %c0_0, %c0_1] : memref<2x512x128xbf16, #tpu.memory_space<vmem>>, vector<1x512x128xbf16>
    %1 = vector.shape_cast %0 : vector<1x512x128xbf16> to vector<512x128xbf16>
    %2 = arith.extf %1 : vector<512x128xbf16> to vector<512x128xf32>
    %3 = vector.extract_strided_slice %2 {offsets = [0, 0], sizes = [512, 64], strides = [1, 1]} : vector<512x128xf32> to vector<512x64xf32>
    %cst = arith.constant dense<0.000000e+00> : vector<512xf32>
    %4 = vector.multi_reduction <add>, %3, %cst [1] : vector<512x64xf32> to vector<512xf32>
    %5 = vector.shape_cast %4 : vector<512xf32> to vector<512x1xf32>
    %6 = vector.extract_strided_slice %2 {offsets = [0, 64], sizes = [512, 64], strides = [1, 1]} : vector<512x128xf32> to vector<512x64xf32>
    %cst_2 = arith.constant dense<0.000000e+00> : vector<512xf32>
    %7 = vector.multi_reduction <add>, %6, %cst_2 [1] : vector<512x64xf32> to vector<512xf32>
    %8 = vector.shape_cast %7 : vector<512xf32> to vector<512x1xf32>
    %9 = tpu.concatenate %5, %8 in 0 : vector<512x1xf32>, vector<512x1xf32> -> vector<1024x1xf32>
    %c1 = arith.constant 1 : index
    %c0_3 = arith.constant 0 : index
    %c0_4 = arith.constant 0 : index
    %10 = vector.load %arg0[%c1, %c0_3, %c0_4] : memref<2x512x128xbf16, #tpu.memory_space<vmem>>, vector<1x512x128xbf16>
    %11 = vector.shape_cast %10 : vector<1x512x128xbf16> to vector<512x128xbf16>
    %12 = arith.extf %11 : vector<512x128xbf16> to vector<512x128xf32>
    %13 = vector.extract_strided_slice %12 {offsets = [0, 0], sizes = [512, 64], strides = [1, 1]} : vector<512x128xf32> to vector<512x64xf32>
    %cst_5 = arith.constant dense<0.000000e+00> : vector<512xf32>
    %14 = vector.multi_reduction <add>, %13, %cst_5 [1] : vector<512x64xf32> to vector<512xf32>
    %15 = vector.shape_cast %14 : vector<512xf32> to vector<512x1xf32>
    %16 = vector.extract_strided_slice %12 {offsets = [0, 64], sizes = [512, 64], strides = [1, 1]} : vector<512x128xf32> to vector<512x64xf32>
    %cst_6 = arith.constant dense<0.000000e+00> : vector<512xf32>
    %17 = vector.multi_reduction <add>, %16, %cst_6 [1] : vector<512x64xf32> to vector<512xf32>
    %18 = vector.shape_cast %17 : vector<512xf32> to vector<512x1xf32>
    %19 = tpu.concatenate %15, %18 in 0 : vector<512x1xf32>, vector<512x1xf32> -> vector<1024x1xf32>
    %20 = tpu.concatenate %9, %19 in 1 : vector<1024x1xf32>, vector<1024x1xf32> -> vector<1024x2xf32>
    %cst_7 = arith.constant 1.562500e-02 : f32
    %21 = vector.broadcast %cst_7 : f32 to vector<1024x2xf32>
    %22 = arith.mulf %20, %21 : vector<1024x2xf32>
    %c0_8 = arith.constant 0 : index
    %c0_9 = arith.constant 0 : index
    %23 = vector.load %arg3[%c0_8, %c0_9] : memref<2048x1xf32, #tpu.memory_space<vmem>>, vector<256x1xf32>
    %c256 = arith.constant 256 : index
    %c0_10 = arith.constant 0 : index
    %24 = vector.load %arg3[%c256, %c0_10] : memref<2048x1xf32, #tpu.memory_space<vmem>>, vector<1024x1xf32>
    %c1280 = arith.constant 1280 : index
    %c0_11 = arith.constant 0 : index
    %25 = vector.load %arg3[%c1280, %c0_11] : memref<2048x1xf32, #tpu.memory_space<vmem>>, vector<768x1xf32>
    %cst_12 = arith.constant 0.000000e+00 : f32
    %26 = vector.broadcast %cst_12 : f32 to vector<1024x2xf32>
    %27 = arith.maximumf %22, %26 : vector<1024x2xf32>
    %28 = arith.truncf %27 : vector<1024x2xf32> to vector<1024x2xbf16>
    %c0_13 = arith.constant 0 : index
    %c0_14 = arith.constant 0 : index
    %29 = vector.load %arg1[%c0_13, %c0_14] : memref<256x1024xbf16, #tpu.memory_space<vmem>>, vector<256x1024xbf16>
    %cst_15 = arith.constant dense<0.000000e+00> : vector<256x2xf32>
    %30 = tpu.matmul %29, %28, %cst_15 {dimension_numbers = #tpu.dot_dimension_numbers<[1], [0], [0], [1], [0, 0, 1, 1], [], []>} : vector<256x1024xbf16>, vector<1024x2xbf16>, vector<256x2xf32> -> vector<256x2xf32>
    %31 = vector.broadcast %23 : vector<256x1xf32> to vector<256x2xf32>
    %32 = arith.addf %30, %31 : vector<256x2xf32>
    %cst_16 = arith.constant 0.000000e+00 : f32
    %33 = vector.broadcast %cst_16 : f32 to vector<256x2xf32>
    %34 = arith.maximumf %32, %33 : vector<256x2xf32>
    %35 = arith.truncf %34 : vector<256x2xf32> to vector<256x2xbf16>
    %c0_17 = arith.constant 0 : index
    %c0_18 = arith.constant 0 : index
    %36 = vector.load %arg2[%c0_17, %c0_18] : memref<1024x256xbf16, #tpu.memory_space<vmem>>, vector<1024x256xbf16>
    %cst_19 = arith.constant dense<0.000000e+00> : vector<1024x2xf32>
    %37 = tpu.matmul %36, %35, %cst_19 {dimension_numbers = #tpu.dot_dimension_numbers<[1], [0], [0], [1], [0, 0, 1, 1], [], []>} : vector<1024x256xbf16>, vector<256x2xbf16>, vector<1024x2xf32> -> vector<1024x2xf32>
    %38 = vector.broadcast %24 : vector<1024x1xf32> to vector<1024x2xf32>
    %39 = arith.addf %37, %38 : vector<1024x2xf32>
    %40 = arith.addf %22, %39 : vector<1024x2xf32>
    %cst_20 = arith.constant 0.000000e+00 : f32
    %41 = vector.broadcast %cst_20 : f32 to vector<1024x2xf32>
    %42 = arith.maximumf %40, %41 : vector<1024x2xf32>
    %43 = arith.truncf %42 : vector<1024x2xf32> to vector<1024x2xbf16>
    tpu.wait_dma2 semaphore(%arg7 : memref<!tpu.dma_semaphore, #tpu.memory_space<semaphore_mem>>) src(%arg4 : memref<768x1024xbf16, #tpu.memory_space<any>>) dst(%arg6 : memref<768x1024xbf16, #tpu.memory_space<vmem>>)
    %c0_21 = arith.constant 0 : index
    %c0_22 = arith.constant 0 : index
    %44 = vector.load %arg6[%c0_21, %c0_22] : memref<768x1024xbf16, #tpu.memory_space<vmem>>, vector<768x1024xbf16>
    %cst_23 = arith.constant dense<0.000000e+00> : vector<768x2xf32>
    %45 = tpu.matmul %44, %43, %cst_23 {dimension_numbers = #tpu.dot_dimension_numbers<[1], [0], [0], [1], [0, 0, 1, 1], [], []>} : vector<768x1024xbf16>, vector<1024x2xbf16>, vector<768x2xf32> -> vector<768x2xf32>
    %46 = vector.broadcast %25 : vector<768x1xf32> to vector<768x2xf32>
    %47 = arith.addf %45, %46 : vector<768x2xf32>
    %c0_24 = arith.constant 0 : index
    %c0_25 = arith.constant 0 : index
    %48 = vector.load %arg5[%c0_24, %c0_25] : memref<768x2xf32, #tpu.memory_space<vmem>>, vector<768x2xf32>
    tpu.vector_store %arg5[%c0_24, %c0_25], %47 {strides = array<i32>} : memref<768x2xf32, #tpu.memory_space<vmem>>, vector<768x2xf32>,
    return
  }
}

</mosaic_0001>

<bundles_post_ra>
// kernel: tpu_custom_call.1
= control target key start
LH: loop header
LB: loop body
LE: loop exit
PB: predicated region body
PF: predicated region fallthrough
CT: control target
= control target key end

     0   :  { %10 = vsyncpa [#allocation5], 0  ;;  %s16602_s0 = inlined_call_operand.hbm [shape: bf16[2,512,128], index: 0, kind: input, shape index: {}]   ;;  %s16603_s1 = inlined_call_operand.hbm [shape: bf16[256,1024], index: 1, kind: input, shape index: {}]   ;;  %s16604_s2 = inlined_call_operand.hbm [shape: bf16[1024,256], index: 2, kind: input, shape index: {}]   ;;  %s16605_s3 = inlined_call_operand.vmem [shape: f32[2048,1], index: 3, kind: input, shape index: {}]   ;;  %s16606_s4 = inlined_call_operand.hbm [shape: bf16[768,1024], index: 4, kind: input, shape index: {}]   ;;  %s16607_s5 = inlined_call_operand.vmem [shape: f32[768,2], index: 5, kind: output, shape index: {}]  }
   0x1   :  { %11 = vsyncpa [#allocation7], 0  ;;  %s11593_s18 = smov [#allocation6]   ;;  %s11521_s22 = scalar_lea.hbm %s16603_s1, 16384 }
   0x2   :  { %s29_s19 = sshll.u32 %s11593_s18, 4  ;;  %p11522_p0 = scmp.ne.s32.totalorder %s16603_s1, %s11521_s22  ;;  %s30_s19 = int_to_ptr.vmem [resolvable:$true] %s29_s19 }
   0x3   :  { %p11525_p1 = scmp.lt.u32.totalorder %s11521_s22, %s16603_s1 }
   0x5   :  { %p11527_p2 = pnand %p11525_p1, %p11522_p0 }
   0x7   :  { %11530 = shalt.err (!%p11527_p2)
}
   0x8   :  { %s11531_s27 = scalar_lea.vmem %s30_s19, 16384  ;;  %p11536_p4 = scmp.lt.s32.totalorder %s30_s19, %s30_s19 }
   0x9   :  { %p11532_p3 = scmp.ne.s32.totalorder %s30_s19, %s11531_s27  ;;  %p11537_p5 = scmp.lt.s32.totalorder %s11531_s27, %s11531_s27 }
   0xb   :  { %p11538_p6 = por %p11537_p5, %p11536_p4 }
   0xd   :  { %p11539_p7 = pnand %p11538_p6, %p11532_p3 }
   0xf   :  { %11542 = shalt.err (!%p11539_p7)
}
  0x10   :  { %s11594_s28 = smov 512   ;;  %s11595_s29 = smov 32  }
  0x11   :  { %35 = dma.hbm_to_vmem [thread:$0]  %s16603_s1, 16384, %s30_s19, [#allocation7], %s11594_s28, %s11594_s28, %s11595_s29  }
  0x12   :  { %s11596_s7 = smov [#allocation4]   ;;  %s11543_s11 = scalar_lea.hbm %s16602_s0, 8192 }
  0x13   :  { %s17_s8 = sshll.u32 %s11596_s7, 4  ;;  %p11544_p8 = scmp.ne.s32.totalorder %s16602_s0, %s11543_s11  ;;  %s18_s8 = int_to_ptr.vmem [resolvable:$true] %s17_s8 }
  0x14   :  { %p11547_p9 = scmp.lt.u32.totalorder %s11543_s11, %s16602_s0 }
  0x16   :  { %p11549_p10 = pnand %p11547_p9, %p11544_p8 }
  0x18   :  { %11552 = shalt.err (!%p11549_p10)
}
  0x19   :  { %s11553_s16 = scalar_lea.vmem %s18_s8, 8192  ;;  %p11558_p12 = scmp.lt.s32.totalorder %s18_s8, %s18_s8 }
  0x1a   :  { %p11554_p11 = scmp.ne.s32.totalorder %s18_s8, %s11553_s16  ;;  %p11559_p13 = scmp.lt.s32.totalorder %s11553_s16, %s11553_s16 }
  0x1c   :  { %p11560_p0 = por %p11559_p13, %p11558_p12 }
  0x1e   :  { %p11561_p1 = pnand %p11560_p0, %p11554_p11 }
  0x20   :  { %11564 = shalt.err (!%p11561_p1)
}
  0x21   :  { %s11597_s1 = smov 64   ;;  %s11598_s17 = smov 4  }
  0x22   :  { %23 = dma.hbm_to_vmem [thread:$0]  %s16602_s0, 8192, %s18_s8, [#allocation5], %s11597_s1, %s11597_s1, %s11598_s17  }
  0x23   :  { %s11599_s20 = smov [#allocation8]   ;;  %s11565_s24 = scalar_lea.hbm %s16604_s2, 16384 }
  0x24   :  { %s41_s21 = sshll.u32 %s11599_s20, 4  ;;  %p11566_p2 = scmp.ne.s32.totalorder %s16604_s2, %s11565_s24  ;;  %s42_s21 = int_to_ptr.vmem [resolvable:$true] %s41_s21 }
  0x25   :  { %p11569_p3 = scmp.lt.u32.totalorder %s11565_s24, %s16604_s2 }
  0x27   :  { %p11571_p4 = pnand %p11569_p3, %p11566_p2 }
  0x29   :  { %11574 = shalt.err (!%p11571_p4)
}
  0x2a   :  { %s11575_s30 = scalar_lea.vmem %s42_s21, 16384  ;;  %p11580_p6 = scmp.lt.s32.totalorder %s42_s21, %s42_s21 }
  0x2b   :  { %p11576_p5 = scmp.ne.s32.totalorder %s42_s21, %s11575_s30  ;;  %p11581_p7 = scmp.lt.s32.totalorder %s11575_s30, %s11575_s30 }
  0x2d   :  { %p11582_p8 = por %p11581_p7, %p11580_p6 }
  0x2f   :  { %p11583_p9 = pnand %p11582_p8, %p11576_p5 }
  0x31   :  { %11586 = shalt.err (!%p11583_p9)
}
  0x32   :  { %s11600_s0 = smov 128   ;;  %s11601_s6 = smov 8  }
  0x33   :  { %47 = dma.hbm_to_vmem [thread:$0]  %s16604_s2, 16384, %s42_s21, [#allocation7], %s11600_s0, %s11600_s0, %s11601_s6  }
  0x34   :  { %11587 = dma.done.wait [#allocation5], 8192  }
  0x35   :  { %11588 = vsyncadd [#allocation5], 4294959104 }
  0x36   :  { %11589 = dma.done.wait [#allocation7], 32768  }
  0x37   :  { %11590 = vsyncadd [#allocation7], 4294934528  ;;  %s64_s9 = sld [smem:[#allocation0]]   ;;  %s11602_s10 = smov 1024   ;;  %vm223_vm0 = vcmask 523264   ;;  %vm2145_vm1 = vcmask 7168  }
  0x38   :  { %76 = sst [smem:[#allocation10]] %s11602_s10  ;;  %s11603_s11 = smov [#allocation2]  }
  0x39   :  { %78 = sst [smem:[#allocation10 + $0x1]] %s11602_s10  ;;  %s72_s12 = sshll.u32 %s11603_s11, 4  ;;  %s73_s12 = int_to_ptr.vmem [resolvable:$true] %s72_s12 }
  0x3a   :  { %80 = sst [smem:[#allocation10 + $0x2]] %s11601_s6  ;;  %s11604_s13 = smov 2  }
  0x3b   :  { %82 = sst [smem:[#allocation10 + $0x3]] %s11597_s1  ;;  %s11605_s15 = smov [#allocation3]  }
  0x3c   :  { %84 = sst [smem:[#allocation10 + $0x4]] %s11600_s0  ;;  %s11606_s16 = smov [#allocation9]  }
  0x3d   :  { %86 = sst [smem:[#allocation10 + $0x5]] %s11604_s13  ;;  %s9388_s14 = sshll.u32 %s64_s9, 26 }
  0x3e   :  { %88 = sst [smem:[#allocation10 + $0x6]] %s11594_s28  ;;  %s9389_s2 = sadd.s32 134217728, %s9388_s14 }
  0x3f   :  { %90 = sst [smem:[#allocation10 + $0x7]] %s11597_s1 }
  0x40   :  { %92 = sst [smem:[#allocation10 + $0x8]] %s11598_s17 }
  0x41   :  { %94 = dma.general %s16606_s4, 49152, %s73_s12, %s11605_s15, %s11606_s16, [#allocation10], %s9389_s2, 0  }
  0x42   :  { %v11690_v0 = vld [vmem:[%s16605_s3 + $0x500] sm:$0xff]  ;;  %v11695_v1 = vld [vmem:[%s16605_s3 + $0x508] sm:$0xff]  ;;  %v11700_v2 = vld [vmem:[%s16605_s3 + $0x510] sm:$0xff]  ;;  %s11607_s15 = smov 1  }
  0x43   :  { %16881 = vst [vmem:[#allocation14_spill] sm:$0xff] %v11690_v0  ;;  %16882 = vst [vmem:[#allocation15_spill] sm:$0xff] %v11695_v1  ;;  %v11705_v3 = vld [vmem:[%s16605_s3 + $0x518] sm:$0xff]  ;;  %v11710_v4 = vld [vmem:[%s16605_s3 + $0x520] sm:$0xff] }
  0x44   :  { %16883 = vst [vmem:[#allocation16_spill] sm:$0xff] %v11700_v2  ;;  %16884 = vst [vmem:[#allocation17_spill] sm:$0xff] %v11705_v3  ;;  %v11715_v5 = vld [vmem:[%s16605_s3 + $0x528] sm:$0xff]  ;;  %v11720_v6 = vld [vmem:[%s16605_s3 + $0x530] sm:$0xff] }
  0x45   :  { %16885 = vst [vmem:[#allocation18_spill] sm:$0xff] %v11710_v4  ;;  %16886 = vst [vmem:[#allocation19_spill] sm:$0xff] %v11715_v5  ;;  %v11725_v7 = vld [vmem:[%s16605_s3 + $0x538] sm:$0xff]  ;;  %v11730_v8 = vld [vmem:[%s16605_s3 + $0x540] sm:$0xff] }
  0x46   :  { %16887 = vst [vmem:[#allocation20_spill] sm:$0xff] %v11720_v6  ;;  %16888 = vst [vmem:[#allocation21_spill] sm:$0xff] %v11725_v7  ;;  %v11735_v9 = vld [vmem:[%s16605_s3 + $0x548] sm:$0xff]  ;;  %v11740_v10 = vld [vmem:[%s16605_s3 + $0x550] sm:$0xff] }
  0x47   :  { %16889 = vst [vmem:[#allocation22_spill] sm:$0xff] %v11730_v8  ;;  %16890 = vst [vmem:[#allocation23_spill] sm:$0xff] %v11735_v9  ;;  %v11745_v11 = vld [vmem:[%s16605_s3 + $0x558] sm:$0xff]  ;;  %v11750_v12 = vld [vmem:[%s16605_s3 + $0x560] sm:$0xff] }
  0x48   :  { %16891 = vst [vmem:[#allocation24_spill] sm:$0xff] %v11740_v10  ;;  %16892 = vst [vmem:[#allocation25_spill] sm:$0xff] %v11745_v11  ;;  %v11755_v13 = vld [vmem:[%s16605_s3 + $0x568] sm:$0xff]  ;;  %v11760_v14 = vld [vmem:[%s16605_s3 + $0x570] sm:$0xff] }
  0x49   :  { %16893 = vst [vmem:[#allocation26_spill] sm:$0xff] %v11750_v12  ;;  %16894 = vst [vmem:[#allocation27_spill] sm:$0xff] %v11755_v13  ;;  %v11765_v15 = vld [vmem:[%s16605_s3 + $0x578] sm:$0xff]  ;;  %v11770_v16 = vld [vmem:[%s16605_s3 + $0x580] sm:$0xff] }
  0x4a   :  { %16895 = vst [vmem:[#allocation28_spill] sm:$0xff] %v11760_v14  ;;  %16896 = vst [vmem:[#allocation29_spill] sm:$0xff] %v11765_v15  ;;  %v11775_v17 = vld [vmem:[%s16605_s3 + $0x588] sm:$0xff]  ;;  %v11780_v18 = vld [vmem:[%s16605_s3 + $0x590] sm:$0xff] }
  0x4b   :  { %16897 = vst [vmem:[#allocation30_spill] sm:$0xff] %v11770_v16  ;;  %16898 = vst [vmem:[#allocation31_spill] sm:$0xff] %v11775_v17  ;;  %v11785_v19 = vld [vmem:[%s16605_s3 + $0x598] sm:$0xff]  ;;  %v11790_v20 = vld [vmem:[%s16605_s3 + $0x5a0] sm:$0xff] }
  0x4c   :  { %16899 = vst [vmem:[#allocation32_spill] sm:$0xff] %v11780_v18  ;;  %16900 = vst [vmem:[#allocation33_spill] sm:$0xff] %v11785_v19  ;;  %v11795_v21 = vld [vmem:[%s16605_s3 + $0x5a8] sm:$0xff]  ;;  %v11800_v22 = vld [vmem:[%s16605_s3 + $0x5b0] sm:$0xff] }
  0x4d   :  { %16901 = vst [vmem:[#allocation34_spill] sm:$0xff] %v11790_v20  ;;  %16902 = vst [vmem:[#allocation35_spill] sm:$0xff] %v11795_v21  ;;  %v11805_v23 = vld [vmem:[%s16605_s3 + $0x5b8] sm:$0xff]  ;;  %v11810_v24 = vld [vmem:[%s16605_s3 + $0x5c0] sm:$0xff] }
  0x4e   :  { %16903 = vst [vmem:[#allocation36_spill] sm:$0xff] %v11800_v22  ;;  %16904 = vst [vmem:[#allocation37_spill] sm:$0xff] %v11805_v23  ;;  %v11815_v25 = vld [vmem:[%s16605_s3 + $0x5c8] sm:$0xff]  ;;  %v11820_v26 = vld [vmem:[%s16605_s3 + $0x5d0] sm:$0xff] }
  0x4f   :  { %16905 = vst [vmem:[#allocation38_spill] sm:$0xff] %v11810_v24  ;;  %16906 = vst [vmem:[#allocation39_spill] sm:$0xff] %v11815_v25  ;;  %v11825_v27 = vld [vmem:[%s16605_s3 + $0x5d8] sm:$0xff]  ;;  %v11830_v28 = vld [vmem:[%s16605_s3 + $0x5e0] sm:$0xff] }
  0x50   :  { %16907 = vst [vmem:[#allocation40_spill] sm:$0xff] %v11820_v26  ;;  %16908 = vst [vmem:[#allocation41_spill] sm:$0xff] %v11825_v27  ;;  %v11835_v29 = vld [vmem:[%s16605_s3 + $0x5e8] sm:$0xff]  ;;  %v11840_v30 = vld [vmem:[%s16605_s3 + $0x5f0] sm:$0xff] }
  0x51   :  { %16909 = vst [vmem:[#allocation42_spill] sm:$0xff] %v11830_v28  ;;  %16910 = vst [vmem:[#allocation43_spill] sm:$0xff] %v11835_v29  ;;  %v11845_v31 = vld [vmem:[%s16605_s3 + $0x5f8] sm:$0xff]  ;;  %v11850_v32 = vld [vmem:[%s16605_s3 + $0x600] sm:$0xff] }
  0x52   :  { %16911 = vst [vmem:[#allocation44_spill] sm:$0xff] %v11840_v30  ;;  %16912 = vst [vmem:[#allocation45_spill] sm:$0xff] %v11845_v31  ;;  %v11855_v33 = vld [vmem:[%s16605_s3 + $0x608] sm:$0xff]  ;;  %v11860_v34 = vld [vmem:[%s16605_s3 + $0x610] sm:$0xff] }
  0x53   :  { %16913 = vst [vmem:[#allocation46_spill] sm:$0xff] %v11850_v32  ;;  %16914 = vst [vmem:[#allocation47_spill] sm:$0xff] %v11855_v33  ;;  %v11865_v35 = vld [vmem:[%s16605_s3 + $0x618] sm:$0xff]  ;;  %v11870_v36 = vld [vmem:[%s16605_s3 + $0x620] sm:$0xff] }
  0x54   :  { %16915 = vst [vmem:[#allocation48_spill] sm:$0xff] %v11860_v34  ;;  %16916 = vst [vmem:[#allocation49_spill] sm:$0xff] %v11865_v35  ;;  %v11875_v37 = vld [vmem:[%s16605_s3 + $0x628] sm:$0xff]  ;;  %v11880_v38 = vld [vmem:[%s16605_s3 + $0x630] sm:$0xff] }
  0x55   :  { %16917 = vst [vmem:[#allocation50_spill] sm:$0xff] %v11870_v36  ;;  %16918 = vst [vmem:[#allocation51_spill] sm:$0xff] %v11875_v37  ;;  %v11885_v39 = vld [vmem:[%s16605_s3 + $0x638] sm:$0xff]  ;;  %v11890_v40 = vld [vmem:[%s16605_s3 + $0x640] sm:$0xff] }
  0x56   :  { %16919 = vst [vmem:[#allocation52_spill] sm:$0xff] %v11880_v38  ;;  %16920 = vst [vmem:[#allocation53_spill] sm:$0xff] %v11885_v39  ;;  %v11895_v41 = vld [vmem:[%s16605_s3 + $0x648] sm:$0xff]  ;;  %v11900_v42 = vld [vmem:[%s16605_s3 + $0x650] sm:$0xff] }
  0x57   :  { %16921 = vst [vmem:[#allocation54_spill] sm:$0xff] %v11890_v40  ;;  %16922 = vst [vmem:[#allocation55_spill] sm:$0xff] %v11895_v41  ;;  %v11905_v43 = vld [vmem:[%s16605_s3 + $0x658] sm:$0xff]  ;;  %v11910_v44 = vld [vmem:[%s16605_s3 + $0x660] sm:$0xff] }
  0x58   :  { %16923 = vst [vmem:[#allocation56_spill] sm:$0xff] %v11900_v42  ;;  %16924 = vst [vmem:[#allocation57_spill] sm:$0xff] %v11905_v43  ;;  %v11915_v45 = vld [vmem:[%s16605_s3 + $0x668] sm:$0xff]  ;;  %v11920_v46 = vld [vmem:[%s16605_s3 + $0x670] sm:$0xff] }
  0x59   :  { %16925 = vst [vmem:[#allocation58_spill] sm:$0xff] %v11910_v44  ;;  %16926 = vst [vmem:[#allocation59_spill] sm:$0xff] %v11915_v45  ;;  %v11925_v47 = vld [vmem:[%s16605_s3 + $0x678] sm:$0xff]  ;;  %v11930_v48 = vld [vmem:[%s16605_s3 + $0x680] sm:$0xff] }
  0x5a   :  { %16927 = vst [vmem:[#allocation60_spill] sm:$0xff] %v11920_v46  ;;  %16928 = vst [vmem:[#allocation61_spill] sm:$0xff] %v11925_v47  ;;  %v11935_v49 = vld [vmem:[%s16605_s3 + $0x688] sm:$0xff]  ;;  %v11940_v50 = vld [vmem:[%s16605_s3 + $0x690] sm:$0xff] }
  0x5b   :  { %16929 = vst [vmem:[#allocation62_spill] sm:$0xff] %v11930_v48  ;;  %16930 = vst [vmem:[#allocation63_spill] sm:$0xff] %v11935_v49  ;;  %v11945_v51 = vld [vmem:[%s16605_s3 + $0x698] sm:$0xff]  ;;  %v11950_v52 = vld [vmem:[%s16605_s3 + $0x6a0] sm:$0xff] }
  0x5c   :  { %16931 = vst [vmem:[#allocation64_spill] sm:$0xff] %v11940_v50  ;;  %16932 = vst [vmem:[#allocation65_spill] sm:$0xff] %v11945_v51  ;;  %v11955_v53 = vld [vmem:[%s16605_s3 + $0x6a8] sm:$0xff]  ;;  %v11960_v54 = vld [vmem:[%s16605_s3 + $0x6b0] sm:$0xff] }
  0x5d   :  { %16933 = vst [vmem:[#allocation66_spill] sm:$0xff] %v11950_v52  ;;  %16934 = vst [vmem:[#allocation67_spill] sm:$0xff] %v11955_v53  ;;  %v11965_v55 = vld [vmem:[%s16605_s3 + $0x6b8] sm:$0xff]  ;;  %v11970_v56 = vld [vmem:[%s16605_s3 + $0x6c0] sm:$0xff] }
  0x5e   :  { %16935 = vst [vmem:[#allocation68_spill] sm:$0xff] %v11960_v54  ;;  %16936 = vst [vmem:[#allocation69_spill] sm:$0xff] %v11965_v55  ;;  %v11975_v57 = vld [vmem:[%s16605_s3 + $0x6c8] sm:$0xff]  ;;  %v11980_v58 = vld [vmem:[%s16605_s3 + $0x6d0] sm:$0xff] }
  0x5f   :  { %16937 = vst [vmem:[#allocation70_spill] sm:$0xff] %v11970_v56  ;;  %16938 = vst [vmem:[#allocation71_spill] sm:$0xff] %v11975_v57  ;;  %v11985_v59 = vld [vmem:[%s16605_s3 + $0x6d8] sm:$0xff]  ;;  %v11990_v60 = vld [vmem:[%s16605_s3 + $0x6e0] sm:$0xff] }
  0x60   :  { %16939 = vst [vmem:[#allocation72_spill] sm:$0xff] %v11980_v58  ;;  %16940 = vst [vmem:[#allocation73_spill] sm:$0xff] %v11985_v59  ;;  %v11995_v61 = vld [vmem:[%s16605_s3 + $0x6e8] sm:$0xff]  ;;  %v12000_v62 = vld [vmem:[%s16605_s3 + $0x6f0] sm:$0xff] }
  0x61   :  { %16941 = vst [vmem:[#allocation74_spill] sm:$0xff] %v11990_v60  ;;  %16942 = vst [vmem:[#allocation75_spill] sm:$0xff] %v11995_v61  ;;  %v12005_v63 = vld [vmem:[%s16605_s3 + $0x6f8] sm:$0xff]  ;;  %v12010_v59 = vld [vmem:[%s16605_s3 + $0x700] sm:$0xff] }
  0x62   :  { %16943 = vst [vmem:[#allocation76_spill] sm:$0xff] %v12000_v62  ;;  %16944 = vst [vmem:[#allocation77_spill] sm:$0xff] %v12005_v63  ;;  %v12015_v60 = vld [vmem:[%s16605_s3 + $0x708] sm:$0xff]  ;;  %v12020_v61 = vld [vmem:[%s16605_s3 + $0x710] sm:$0xff] }
  0x63   :  { %16945 = vst [vmem:[#allocation78_spill] sm:$0xff] %v12010_v59  ;;  %16946 = vst [vmem:[#allocation79_spill] sm:$0xff] %v12015_v60  ;;  %v12025_v62 = vld [vmem:[%s16605_s3 + $0x718] sm:$0xff]  ;;  %v12030_v63 = vld [vmem:[%s16605_s3 + $0x720] sm:$0xff] }
  0x64   :  { %16947 = vst [vmem:[#allocation80_spill] sm:$0xff] %v12020_v61  ;;  %16948 = vst [vmem:[#allocation81_spill] sm:$0xff] %v12025_v62  ;;  %v12035_v59 = vld [vmem:[%s16605_s3 + $0x728] sm:$0xff]  ;;  %v12040_v60 = vld [vmem:[%s16605_s3 + $0x730] sm:$0xff] }
  0x65   :  { %16949 = vst [vmem:[#allocation82_spill] sm:$0xff] %v12030_v63  ;;  %16950 = vst [vmem:[#allocation83_spill] sm:$0xff] %v12035_v59  ;;  %v12045_v61 = vld [vmem:[%s16605_s3 + $0x738] sm:$0xff]  ;;  %v12050_v62 = vld [vmem:[%s16605_s3 + $0x740] sm:$0xff] }
  0x66   :  { %16951 = vst [vmem:[#allocation84_spill] sm:$0xff] %v12040_v60  ;;  %16952 = vst [vmem:[#allocation85_spill] sm:$0xff] %v12045_v61  ;;  %v12055_v63 = vld [vmem:[%s16605_s3 + $0x748] sm:$0xff]  ;;  %v12060_v59 = vld [vmem:[%s16605_s3 + $0x750] sm:$0xff] }
  0x67   :  { %16953 = vst [vmem:[#allocation86_spill] sm:$0xff] %v12050_v62  ;;  %16954 = vst [vmem:[#allocation87_spill] sm:$0xff] %v12055_v63  ;;  %v12065_v60 = vld [vmem:[%s16605_s3 + $0x758] sm:$0xff]  ;;  %v12070_v61 = vld [vmem:[%s16605_s3 + $0x760] sm:$0xff] }
  0x68   :  { %16955 = vst [vmem:[#allocation88_spill] sm:$0xff] %v12060_v59  ;;  %16956 = vst [vmem:[#allocation89_spill] sm:$0xff] %v12065_v60  ;;  %v12075_v62 = vld [vmem:[%s16605_s3 + $0x768] sm:$0xff]  ;;  %v12080_v63 = vld [vmem:[%s16605_s3 + $0x770] sm:$0xff] }
  0x69   :  { %16957 = vst [vmem:[#allocation90_spill] sm:$0xff] %v12070_v61  ;;  %16958 = vst [vmem:[#allocation91_spill] sm:$0xff] %v12075_v62  ;;  %v12085_v59 = vld [vmem:[%s16605_s3 + $0x778] sm:$0xff]  ;;  %v12090_v60 = vld [vmem:[%s16605_s3 + $0x780] sm:$0xff] }
  0x6a   :  { %16959 = vst [vmem:[#allocation92_spill] sm:$0xff] %v12080_v63  ;;  %16960 = vst [vmem:[#allocation93_spill] sm:$0xff] %v12085_v59  ;;  %v12095_v61 = vld [vmem:[%s16605_s3 + $0x788] sm:$0xff]  ;;  %v12100_v62 = vld [vmem:[%s16605_s3 + $0x790] sm:$0xff] }
  0x6b   :  { %16961 = vst [vmem:[#allocation94_spill] sm:$0xff] %v12090_v60  ;;  %16962 = vst [vmem:[#allocation95_spill] sm:$0xff] %v12095_v61  ;;  %v12105_v63 = vld [vmem:[%s16605_s3 + $0x798] sm:$0xff]  ;;  %v12110_v59 = vld [vmem:[%s16605_s3 + $0x7a0] sm:$0xff] }
  0x6c   :  { %16963 = vst [vmem:[#allocation96_spill] sm:$0xff] %v12100_v62  ;;  %16964 = vst [vmem:[#allocation97_spill] sm:$0xff] %v12105_v63  ;;  %v12115_v60 = vld [vmem:[%s16605_s3 + $0x7a8] sm:$0xff]  ;;  %v12120_v61 = vld [vmem:[%s16605_s3 + $0x7b0] sm:$0xff] }
  0x6d   :  { %16965 = vst [vmem:[#allocation98_spill] sm:$0xff] %v12110_v59  ;;  %16966 = vst [vmem:[#allocation99_spill] sm:$0xff] %v12115_v60  ;;  %v12125_v62 = vld [vmem:[%s16605_s3 + $0x7b8] sm:$0xff]  ;;  %v12130_v63 = vld [vmem:[%s16605_s3 + $0x7c0] sm:$0xff] }
  0x6e   :  { %16967 = vst [vmem:[#allocation100_spill] sm:$0xff] %v12120_v61  ;;  %16968 = vst [vmem:[#allocation101_spill] sm:$0xff] %v12125_v62  ;;  %v12135_v59 = vld [vmem:[%s16605_s3 + $0x7c8] sm:$0xff]  ;;  %v12140_v60 = vld [vmem:[%s16605_s3 + $0x7d0] sm:$0xff] }
  0x6f   :  { %16969 = vst [vmem:[#allocation102_spill] sm:$0xff] %v12130_v63  ;;  %16970 = vst [vmem:[#allocation103_spill] sm:$0xff] %v12135_v59  ;;  %v12145_v61 = vld [vmem:[%s16605_s3 + $0x7d8] sm:$0xff]  ;;  %v12150_v62 = vld [vmem:[%s16605_s3 + $0x7e0] sm:$0xff] }
  0x70   :  { %16971 = vst [vmem:[#allocation104_spill] sm:$0xff] %v12140_v60  ;;  %16972 = vst [vmem:[#allocation105_spill] sm:$0xff] %v12145_v61  ;;  %v12155_v63 = vld [vmem:[%s16605_s3 + $0x7e8] sm:$0xff]  ;;  %v12160_v59 = vld [vmem:[%s16605_s3 + $0x7f0] sm:$0xff] }
  0x71   :  { %16973 = vst [vmem:[#allocation106_spill] sm:$0xff] %v12150_v62  ;;  %16974 = vst [vmem:[#allocation107_spill] sm:$0xff] %v12155_v63  ;;  %v12165_v60 = vld [vmem:[%s16605_s3 + $0x7f8] sm:$0xff]  ;;  %v12167_v61 = vld [vmem:[#allocation4 + $0x8] sm:$0xff]  }
  0x72   :  { %16975 = vst [vmem:[#allocation108_spill] sm:$0xff] %v12160_v59  ;;  %16976 = vst [vmem:[#allocation109_spill] sm:$0xff] %v12165_v60  ;;  %v12169_v58 = vld [vmem:[#allocation4] sm:$0xff]   ;;  %v16608_v62 = vunpack.c.l.bf16 %v12167_v61  ;;  %v16610_v63 = vunpack.c.h.bf16 %v12167_v61  ;;  %v12175_v55 = vld [vmem:[#allocation4 + $0x10] sm:$0xff]  }
  0x73   :  { %v16609_v57 = vunpack.c.l.bf16 %v12169_v58  ;;  %v16611_v56 = vunpack.c.h.bf16 %v12169_v58  ;;  %v9658_v52 = vunpack.c.h.bf16 %v12175_v55  ;;  %v9657_v51 = vunpack.c.l.bf16 %v12175_v55  ;;  %v9905_v50 = vld [vmem:[#allocation4 + $0x18] sm:$0xff]   ;;  %v9906_v49 = vld [vmem:[#allocation4 + $0x20] sm:$0xff]   ;;  %v9911_v39 = vld [vmem:[#allocation4 + $0x48] sm:$0xff]  }
  0x74   :  { %v230_v59 = vsel %vm223_vm0, %v16608_v62, 0.0  ;;  %v233_v54 = vsel %vm223_vm0, %v16610_v63, 0.0  ;;  %v9907_v63 = vld [vmem:[#allocation4 + $0x28] sm:$0xff]   ;;  %v9666_v47 = vunpack.c.h.bf16 %v9906_v49  ;;  %v9665_v46 = vunpack.c.l.bf16 %v9906_v49  ;;  %v9913_v34 = vld [vmem:[#allocation4 + $0x58] sm:$0xff]   ;;  %v9922_v24 = vld [vmem:[#allocation4 + $0xa0] sm:$0xff]  }
  0x75   :  { %v224_v60 = vsel %vm223_vm0, %v16609_v57, 0.0  ;;  %231 = vadd.xlane.f32.xlu1 %v230_v59  ;;  %v227_v53 = vsel %vm223_vm0, %v16611_v56, 0.0  ;;  %v239_v62 = vsel %vm223_vm0, %v9658_v52, 0.0  ;;  %v236_v59 = vsel %vm223_vm0, %v9657_v51, 0.0  ;;  %v9921_v26 = vld [vmem:[#allocation4 + $0x98] sm:$0xff]   ;;  %v12505_v16 = vld [vmem:[#allocation4 + $0x100] sm:$0xff]  }
  0x76   :  { %225 = vadd.xlane.f32.xlu0 %v224_v60  ;;  %v9662_v60 = vunpack.c.h.bf16 %v9905_v50  ;;  %v9661_v57 = vunpack.c.l.bf16 %v9905_v50  ;;  %v248_v55 = vsel %vm223_vm0, %v9665_v46, 0.0  ;;  %v9670_v45 = vunpack.c.h.bf16 %v9907_v63  ;;  %v9909_v50 = vld [vmem:[#allocation4 + $0x38] sm:$0xff]   ;;  %v12522_v6 = vld [vmem:[#allocation4 + $0x148] sm:$0xff]  }
  0x77   :  { %v9669_v44 = vunpack.c.l.bf16 %v9907_v63  ;;  %v9678_v41 = vunpack.c.h.bf16 %v9909_v50  ;;  %v9677_v40 = vunpack.c.l.bf16 %v9909_v50  ;;  %v12211_v32 = vpack.i.bf16 %v9658_v52, %v9657_v51  ;;  %v12536_v1 = vld [vmem:[#allocation4 + $0x108] sm:$0xff]  }
  0x78   :  { %v245_v48 = vsel %vm223_vm0, %v9662_v60, 0.0  ;;  %v242_v56 = vsel %vm223_vm0, %v9661_v57, 0.0  ;;  %v12219_v31 = vpack.i.bf16 %v9662_v60, %v9661_v57  ;;  %v12221_v30 = vpack.i.bf16 %v9666_v47, %v9665_v46 }
  0x79   :  { %234 = vadd.xlane.f32.xlu1 %v233_v54  ;;  %v9908_v54 = vld [vmem:[#allocation4 + $0x30] sm:$0xff]   ;;  %v269_v38 = vsel %vm223_vm0, %v9678_v41, 0.0  ;;  %v266_v37 = vsel %vm223_vm0, %v9677_v40, 0.0  ;;  %v12227_v28 = vpack.i.bf16 %v9678_v41, %v9677_v40  ;;  %v9694_v52 = vunpack.c.h.bf16 %v9913_v34  ;;  %v9917_v41 = vld [vmem:[#allocation4 + $0x78] sm:$0xff]  }
  0x7a   :  { %228 = vadd.xlane.f32.xlu0 %v227_v53  ;;  %v251_v53 = vsel %vm223_vm0, %v9666_v47, 0.0  ;;  %v9674_v43 = vunpack.c.h.bf16 %v9908_v54  ;;  %v9673_v42 = vunpack.c.l.bf16 %v9908_v54  ;;  %v9686_v54 = vunpack.c.h.bf16 %v9911_v39 }
  0x7b   :  { %v9725_v22 = vunpack.c.l.bf16 %v9921_v26  ;;  %v9729_v20 = vunpack.c.l.bf16 %v9922_v24  ;;  %v16633_v12 = vunpack.c.l.bf16 %v12505_v16  ;;  %v16635_v7 = vunpack.c.h.bf16 %v12505_v16 }
  0x7c   :  { %v263_v49 = vsel %vm223_vm0, %v9674_v43, 0.0  ;;  %v12225_v29 = vpack.i.bf16 %v9674_v43, %v9673_v42  ;;  %v281_v46 = vsel %vm223_vm0, %v9686_v54, 0.0  ;;  %v16641_v3 = vunpack.c.h.bf16 %v12522_v6 }
  0x7d   :  { %240 = vadd.xlane.f32.xlu1 %v239_v62  ;;  %v257_v62 = vsel %vm223_vm0, %v9670_v45, 0.0  ;;  %v993_v9 = vsel %vm223_vm0, %v16633_v12, 0.0  ;;  %v996_v4 = vsel %vm223_vm0, %v16635_v7, 0.0  ;;  %v16640_v12 = vunpack.c.l.bf16 %v12522_v6 }
  0x7e   :  { %237 = vadd.xlane.f32.xlu0 %v236_v59  ;;  %v254_v59 = vsel %vm223_vm0, %v9669_v44, 0.0  ;;  %v1050_v7 = vsel %vm223_vm0, %v16641_v3, 0.0  ;;  %v16648_v0 = vunpack.c.h.bf16 %v12536_v1 }
  0x80   :  { %v1002_v3 = vsel %vm223_vm0, %v16648_v0, 0.0 }
  0x81   :  { %246 = vadd.xlane.f32.xlu1 %v245_v48  ;;  %v9910_v48 = vld [vmem:[#allocation4 + $0x40] sm:$0xff]  }
  0x82   :  { %243 = vadd.xlane.f32.xlu0 %v242_v56  ;;  %v260_v56 = vsel %vm223_vm0, %v9673_v42, 0.0  ;;  %v9682_v63 = vunpack.c.h.bf16 %v9910_v48 }
  0x85   :  { %252 = vadd.xlane.f32.xlu1 %v251_v53  ;;  %v9681_v53 = vunpack.c.l.bf16 %v9910_v48  ;;  %v16978_v48 = vunpack.c.h.bf16 %v12167_v61 }
  0x86   :  { %249 = vadd.xlane.f32.xlu0 %v248_v55  ;;  %v9912_v55 = vld [vmem:[#allocation4 + $0x50] sm:$0xff]  }
  0x87   :  { %v272_v36 = vsel %vm223_vm0, %v9681_v53, 0.0  ;;  %v9690_v35 = vunpack.c.h.bf16 %v9912_v55  ;;  %v9689_v50 = vunpack.c.l.bf16 %v9912_v55  ;;  %v12223_v55 = vpack.i.bf16 %v9670_v45, %v9669_v44  ;;  %v9916_v45 = vld [vmem:[#allocation4 + $0x70] sm:$0xff]  }
  0x89   :  { %258 = vadd.xlane.f32.xlu1 %v257_v62  ;;  %v9685_v62 = vunpack.c.l.bf16 %v9911_v39  ;;  %v16979_v39 = vunpack.c.l.bf16 %v12169_v58 }
  0x8a   :  { %255 = vadd.xlane.f32.xlu0 %v254_v59  ;;  %v275_v59 = vsel %vm223_vm0, %v9682_v63, 0.0 }
  0x8b   :  { %v12231_v51 = vpack.i.bf16 %v9686_v54, %v9685_v62  ;;  %v278_v44 = vsel %vm223_vm0, %v9685_v62, 0.0  ;;  %v9705_v54 = vunpack.c.l.bf16 %v9916_v45 }
  0x8d   :  { %264 = vadd.xlane.f32.xlu1 %v263_v49  ;;  %v9914_v49 = vld [vmem:[#allocation4 + $0x60] sm:$0xff]  }
  0x8e   :  { %261 = vadd.xlane.f32.xlu0 %v260_v56  ;;  %v16977_v56 = vunpack.c.l.bf16 %v12167_v61  ;;  %v9915_v61 = vld [vmem:[#allocation4 + $0x68] sm:$0xff]   ;;  %v9698_v42 = vunpack.c.h.bf16 %v9914_v49  ;;  %v9697_v43 = vunpack.c.l.bf16 %v9914_v49  ;;  %v9710_v49 = vunpack.c.h.bf16 %v9917_v41 }
  0x8f   :  { %v9702_v47 = vunpack.c.h.bf16 %v9915_v61  ;;  %v9701_v57 = vunpack.c.l.bf16 %v9915_v61  ;;  %v293_v61 = vsel %vm223_vm0, %v9694_v52, 0.0 }
  0x90   :  { %v12209_v33 = vpack.i.bf16 %v16978_v48, %v16977_v56  ;;  %v12229_v56 = vpack.i.bf16 %v9682_v63, %v9681_v53  ;;  %v12233_v48 = vpack.i.bf16 %v9690_v35, %v9689_v50  ;;  %v12239_v60 = vpack.i.bf16 %v9698_v42, %v9697_v43  ;;  %v9918_v63 = vld [vmem:[#allocation4 + $0x80] sm:$0xff]  }
  0x91   :  { %270 = vadd.xlane.f32.xlu1 %v269_v38  ;;  %v9706_v53 = vunpack.c.h.bf16 %v9916_v45  ;;  %v12243_v62 = vpack.i.bf16 %v9702_v47, %v9701_v57  ;;  %v9713_v27 = vunpack.c.l.bf16 %v9918_v63 }
  0x92   :  { %267 = vadd.xlane.f32.xlu0 %v266_v37  ;;  %v16980_v37 = vunpack.c.h.bf16 %v12169_v58  ;;  %v9693_v58 = vunpack.c.l.bf16 %v9913_v34  ;;  %v287_v34 = vsel %vm223_vm0, %v9690_v35, 0.0  ;;  %v9714_v35 = vunpack.c.h.bf16 %v9918_v63 }
  0x93   :  { %v9726_v63 = vunpack.c.h.bf16 %v9921_v26  ;;  %v317_v26 = vsel %vm223_vm0, %v9710_v49, 0.0 }
  0x94   :  { %v12217_v38 = vpack.i.bf16 %v16980_v37, %v16979_v39  ;;  %v12237_v40 = vpack.i.bf16 %v9694_v52, %v9693_v58  ;;  %v9709_v39 = vunpack.c.l.bf16 %v9917_v41  ;;  %v12245_v37 = vpack.i.bf16 %v9706_v53, %v9705_v54 }
  0x95   :  { %276 = vadd.xlane.f32.xlu1 %v275_v59  ;;  %v9919_v59 = vld [vmem:[#allocation4 + $0x88] sm:$0xff]   ;;  %v299_v41 = vsel %vm223_vm0, %v9698_v42, 0.0  ;;  %v12261_v42 = vpack.i.bf16 %v9726_v63, %v9725_v22 }
  0x96   :  { %273 = vadd.xlane.f32.xlu0 %v272_v36  ;;  %v284_v36 = vsel %vm223_vm0, %v9689_v50, 0.0  ;;  %v12249_v50 = vpack.i.bf16 %v9710_v49, %v9709_v39  ;;  %v9718_v45 = vunpack.c.h.bf16 %v9919_v59  ;;  %v9717_v25 = vunpack.c.l.bf16 %v9919_v59 }
  0x97   :  { %v302_v59 = vsel %vm223_vm0, %v9701_v57, 0.0  ;;  %v320_v57 = vsel %vm223_vm0, %v9713_v27, 0.0 }
  0x99   :  { %282 = vadd.xlane.f32.xlu1 %v281_v46  ;;  %v290_v46 = vsel %vm223_vm0, %v9693_v58, 0.0  ;;  %v12255_v58 = vpack.i.bf16 %v9718_v45, %v9717_v25 }
  0x9a   :  { %279 = vadd.xlane.f32.xlu0 %v278_v44  ;;  %v9920_v44 = vld [vmem:[#allocation4 + $0x90] sm:$0xff]  }
  0x9b   :  { %v9722_v52 = vunpack.c.h.bf16 %v9920_v44  ;;  %v9721_v23 = vunpack.c.l.bf16 %v9920_v44  ;;  %v311_v44 = vsel %vm223_vm0, %v9706_v53, 0.0  ;;  %v326_v53 = vsel %vm223_vm0, %v9717_v25, 0.0 }
  0x9c   :  { %v344_v25 = vsel %vm223_vm0, %v9729_v20, 0.0 }
  0x9d   :  { %288 = vadd.xlane.f32.xlu1 %v287_v34  ;;  %v12251_v34 = vpack.i.bf16 %v9714_v35, %v9713_v27  ;;  %v12257_v21 = vpack.i.bf16 %v9722_v52, %v9721_v23  ;;  %v332_v49 = vsel %vm223_vm0, %v9721_v23, 0.0 }
  0x9e   :  { %285 = vadd.xlane.f32.xlu0 %v284_v36  ;;  %v296_v36 = vsel %vm223_vm0, %v9697_v43, 0.0 }
  0xa1   :  { %294 = vadd.xlane.f32.xlu1 %v293_v61  ;;  %v305_v61 = vsel %vm223_vm0, %v9702_v47, 0.0  ;;  %v314_v47 = vsel %vm223_vm0, %v9709_v39, 0.0  ;;  %v341_v39 = vsel %vm223_vm0, %v9726_v63, 0.0 }
  0xa2   :  { %291 = vadd.xlane.f32.xlu0 %v290_v46  ;;  %v9730_v46 = vunpack.c.h.bf16 %v9922_v24  ;;  %v323_v24 = vsel %vm223_vm0, %v9714_v35, 0.0  ;;  %v338_v35 = vsel %vm223_vm0, %v9725_v22, 0.0 }
  0xa4   :  { %v12263_v43 = vpack.i.bf16 %v9730_v46, %v9729_v20  ;;  %v347_v27 = vsel %vm223_vm0, %v9730_v46, 0.0  ;;  %v12293_v46 = vld [vmem:[#allocation4 + $0xb8] sm:$0xff]  }
  0xa5   :  { %300 = vadd.xlane.f32.xlu1 %v299_v41  ;;  %v308_v41 = vsel %vm223_vm0, %v9705_v54, 0.0  ;;  %v335_v54 = vsel %vm223_vm0, %v9722_v52, 0.0  ;;  %16983 = vst [vmem:[#allocation112_spill] sm:$0xff] %v12293_v46 }
  0xa6   :  { %297 = vadd.xlane.f32.xlu0 %v296_v36  ;;  %v329_v36 = vsel %vm223_vm0, %v9718_v45, 0.0 }
  0xa9   :  { %306 = vadd.xlane.f32.xlu1 %v305_v61  ;;  %v12277_v61 = vld [vmem:[#allocation4 + $0xa8] sm:$0xff]  }
  0xaa   :  { %303 = vadd.xlane.f32.xlu0 %v302_v59  ;;  %16981 = vst [vmem:[#allocation110_spill] sm:$0xff] %v12277_v61  ;;  %v16616_v45 = vunpack.c.h.bf16 %v12277_v61  ;;  %v9733_v52 = vunpack.c.l.bf16 %v12277_v61  ;;  %v12283_v59 = vld [vmem:[#allocation4 + $0xb0] sm:$0xff]  }
  0xab   :  { %16982 = vst [vmem:[#allocation111_spill] sm:$0xff] %v12283_v59  ;;  %v16614_v63 = vunpack.c.h.bf16 %v12283_v59  ;;  %v16615_v20 = vunpack.c.l.bf16 %v12283_v59 }
  0xac   :  { %v353_v22 = vsel %vm223_vm0, %v16616_v45, 0.0  ;;  %v350_v23 = vsel %vm223_vm0, %v9733_v52, 0.0 }
  0xad   :  { %312 = vadd.xlane.f32.xlu1 %v311_v44  ;;  %v359_v44 = vsel %vm223_vm0, %v16614_v63, 0.0  ;;  %v12343_v63 = vld [vmem:[#allocation4 + $0xe0] sm:$0xff]  }
  0xae   :  { %309 = vadd.xlane.f32.xlu0 %v308_v41  ;;  %v356_v41 = vsel %vm223_vm0, %v16615_v20, 0.0  ;;  %16988 = vst [vmem:[#allocation117_spill] sm:$0xff] %v12343_v63  ;;  %v16621_v20 = vunpack.c.h.bf16 %v12343_v63  ;;  %v16622_v45 = vunpack.c.l.bf16 %v12343_v63 }
  0xb1   :  { %318 = vadd.xlane.f32.xlu1 %v317_v26  ;;  %v16612_v26 = vunpack.c.h.bf16 %v12293_v46 }
  0xb2   :  { %315 = vadd.xlane.f32.xlu0 %v314_v47  ;;  %v16613_v47 = vunpack.c.l.bf16 %v12293_v46  ;;  %v12548_v46 = vld [vmem:[#allocation4 + $0x150] sm:$0xff]  }
  0xb3   :  { %v16654_v59 = vunpack.c.h.bf16 %v12548_v46 }
  0xb5   :  { %324 = vadd.xlane.f32.xlu1 %v323_v24  ;;  %v12303_v24 = vld [vmem:[#allocation4 + $0xc0] sm:$0xff]   ;;  %v1056_v61 = vsel %vm223_vm0, %v16654_v59, 0.0 }
  0xb6   :  { %321 = vadd.xlane.f32.xlu0 %v320_v57  ;;  %16984 = vst [vmem:[#allocation113_spill] sm:$0xff] %v12303_v24  ;;  %v365_v57 = vsel %vm223_vm0, %v16612_v26, 0.0 }
  0xb9   :  { %330 = vadd.xlane.f32.xlu1 %v329_v36  ;;  %v362_v36 = vsel %vm223_vm0, %v16613_v47, 0.0 }
  0xba   :  { %327 = vadd.xlane.f32.xlu0 %v326_v53  ;;  %v16631_v53 = vunpack.c.h.bf16 %v12303_v24 }
  0xbd   :  { %336 = vadd.xlane.f32.xlu1 %v335_v54  ;;  %v16632_v54 = vunpack.c.l.bf16 %v12303_v24  ;;  %v12846_v24 = vld [vmem:[#allocation4 + $0x1d8] sm:$0xff]  }
  0xbe   :  { %333 = vadd.xlane.f32.xlu0 %v332_v49  ;;  %v12313_v49 = vld [vmem:[#allocation4 + $0xc8] sm:$0xff]  }
  0xbf   :  { %16985 = vst [vmem:[#allocation114_spill] sm:$0xff] %v12313_v49 }
  0xc1   :  { %342 = vadd.xlane.f32.xlu1 %v341_v39  ;;  %v371_v39 = vsel %vm223_vm0, %v16631_v53, 0.0 }
  0xc2   :  { %339 = vadd.xlane.f32.xlu0 %v338_v35  ;;  %v368_v35 = vsel %vm223_vm0, %v16632_v54, 0.0 }
  0xc5   :  { %348 = vadd.xlane.f32.xlu1 %v347_v27  ;;  %v16623_v27 = vunpack.c.h.bf16 %v12313_v49 }
  0xc6   :  { %345 = vadd.xlane.f32.xlu0 %v344_v25  ;;  %v16626_v25 = vunpack.c.l.bf16 %v12313_v49  ;;  %v12650_v49 = vld [vmem:[#allocation4 + $0x170] sm:$0xff]  }
  0xc7   :  { %17015 = vst [vmem:[#allocation144_spill] sm:$0xff] %v12650_v49 }
  0xc9   :  { %354 = vadd.xlane.f32.xlu1 %v353_v22  ;;  %v12323_v22 = vld [vmem:[#allocation4 + $0xd0] sm:$0xff]  }
  0xca   :  { %351 = vadd.xlane.f32.xlu0 %v350_v23  ;;  %16986 = vst [vmem:[#allocation115_spill] sm:$0xff] %v12323_v22  ;;  %v377_v23 = vsel %vm223_vm0, %v16623_v27, 0.0  ;;  %v12373_v27 = vld [vmem:[#allocation4 + $0xf8] sm:$0xff]  }
  0xcb   :  { %16991 = vst [vmem:[#allocation120_spill] sm:$0xff] %v12373_v27 }
  0xcd   :  { %360 = vadd.xlane.f32.xlu1 %v359_v44  ;;  %v374_v44 = vsel %vm223_vm0, %v16626_v25, 0.0 }
  0xce   :  { %357 = vadd.xlane.f32.xlu0 %v356_v41  ;;  %v16617_v41 = vunpack.c.h.bf16 %v12323_v22 }
  0xd1   :  { %366 = vadd.xlane.f32.xlu1 %v365_v57  ;;  %v16620_v57 = vunpack.c.l.bf16 %v12323_v22 }
  0xd2   :  { %363 = vadd.xlane.f32.xlu0 %v362_v36  ;;  %v12333_v36 = vld [vmem:[#allocation4 + $0xd8] sm:$0xff]  }
  0xd3   :  { %16987 = vst [vmem:[#allocation116_spill] sm:$0xff] %v12333_v36  ;;  %v16618_v26 = vunpack.c.h.bf16 %v12333_v36  ;;  %v16619_v47 = vunpack.c.l.bf16 %v12333_v36  ;;  %v12586_v36 = vld [vmem:[#allocation4 + $0x118] sm:$0xff]  }
  0xd5   :  { %372 = vadd.xlane.f32.xlu1 %v371_v39  ;;  %v383_v39 = vsel %vm223_vm0, %v16617_v41, 0.0  ;;  %v12353_v41 = vld [vmem:[#allocation4 + $0xe8] sm:$0xff]  }
  0xd6   :  { %369 = vadd.xlane.f32.xlu0 %v368_v35  ;;  %v380_v35 = vsel %vm223_vm0, %v16620_v57, 0.0  ;;  %16989 = vst [vmem:[#allocation118_spill] sm:$0xff] %v12353_v41  ;;  %v12363_v57 = vld [vmem:[#allocation4 + $0xf0] sm:$0xff]  }
  0xd7   :  { %16990 = vst [vmem:[#allocation119_spill] sm:$0xff] %v12363_v57 }
  0xd9   :  { %378 = vadd.xlane.f32.xlu1 %v377_v23  ;;  %v389_v23 = vsel %vm223_vm0, %v16618_v26, 0.0  ;;  %v16624_v26 = vunpack.c.h.bf16 %v12353_v41 }
  0xda   :  { %375 = vadd.xlane.f32.xlu0 %v374_v44  ;;  %v386_v44 = vsel %vm223_vm0, %v16619_v47, 0.0  ;;  %v16625_v47 = vunpack.c.l.bf16 %v12353_v41  ;;  %v12574_v41 = vld [vmem:[#allocation4 + $0x158] sm:$0xff]  }
  0xdb   :  { %v16660_v59 = vunpack.c.h.bf16 %v12574_v41 }
  0xdd   :  { %384 = vadd.xlane.f32.xlu1 %v383_v39  ;;  %v395_v39 = vsel %vm223_vm0, %v16621_v20, 0.0  ;;  %v16627_v20 = vunpack.c.h.bf16 %v12363_v57 }
  0xde   :  { %381 = vadd.xlane.f32.xlu0 %v380_v35  ;;  %v392_v35 = vsel %vm223_vm0, %v16622_v45, 0.0  ;;  %v16630_v45 = vunpack.c.l.bf16 %v12363_v57  ;;  %v12562_v57 = vld [vmem:[#allocation4 + $0x110] sm:$0xff]  }
  0xdf   :  { %v16658_v0 = vunpack.c.h.bf16 %v12562_v57 }
  0xe1   :  { %390 = vadd.xlane.f32.xlu1 %v389_v23  ;;  %v401_v23 = vsel %vm223_vm0, %v16624_v26, 0.0  ;;  %v16628_v26 = vunpack.c.h.bf16 %v12373_v27 }
  0xe2   :  { %387 = vadd.xlane.f32.xlu0 %v386_v44  ;;  %v398_v44 = vsel %vm223_vm0, %v16625_v47, 0.0  ;;  %v16629_v47 = vunpack.c.l.bf16 %v12373_v27 }
  0xe3   :  { %v413_v25 = vsel %vm223_vm0, %v16628_v26, 0.0 }
  0xe5   :  { %396 = vadd.xlane.f32.xlu1 %v395_v39  ;;  %v407_v39 = vsel %vm223_vm0, %v16627_v20, 0.0 }
  0xe6   :  { %393 = vadd.xlane.f32.xlu0 %v392_v35  ;;  %v404_v35 = vsel %vm223_vm0, %v16630_v45, 0.0 }
  0xe9   :  { %402 = vadd.xlane.f32.xlu1 %v401_v23  ;;  %v410_v23 = vsel %vm223_vm0, %v16629_v47, 0.0 }
  0xea   :  { %399 = vadd.xlane.f32.xlu0 %v398_v44 }
  0xed   :  { %408 = vadd.xlane.f32.xlu1 %v407_v39 }
  0xee   :  { %405 = vadd.xlane.f32.xlu0 %v404_v35 }
  0xf1   :  { %414 = vadd.xlane.f32.xlu1 %v413_v25 }
  0xf2   :  { %411 = vadd.xlane.f32.xlu0 %v410_v23 }
 0x102   :  { %11011 = vrot.lane.b32.xlu1 %v12209_v33, %s11597_s1  ;;  %v12391_v44 = vpop.xlane.xlu1 %231 }
 0x103   :  { %v12393_v20 = vpop.xlane.xlu0 %225 }
 0x106   :  { %11016 = vrot.lane.b32.xlu1 %v12211_v32, %s11597_s1  ;;  %v12397_v39 = vpop.xlane.xlu1 %234 }
 0x107   :  { %v12399_v35 = vpop.xlane.xlu0 %228 }
 0x108   :  { %11006 = vrot.lane.b32.xlu0 %v12217_v38, %s11597_s1 }
 0x10a   :  { %11021 = vrot.lane.b32.xlu1 %v12219_v31, %s11597_s1  ;;  %v12405_v25 = vpop.xlane.xlu1 %240 }
 0x10b   :  { %v12407_v33 = vpop.xlane.xlu0 %237 }
 0x10c   :  { %11026 = vrot.lane.b32.xlu0 %v12221_v30, %s11597_s1 }
 0x10e   :  { %11031 = vrot.lane.b32.xlu1 %v12223_v55, %s11597_s1  ;;  %v12413_v32 = vpop.xlane.xlu1 %246 }
 0x10f   :  { %v12415_v23 = vpop.xlane.xlu0 %243 }
 0x110   :  { %11036 = vrot.lane.b32.xlu0 %v12225_v29, %s11597_s1 }
 0x112   :  { %11041 = vrot.lane.b32.xlu1 %v12227_v28, %s11597_s1  ;;  %v12421_v31 = vpop.xlane.xlu1 %252 }
 0x113   :  { %v12423_v38 = vpop.xlane.xlu0 %249 }
 0x114   :  { %11046 = vrot.lane.b32.xlu0 %v12229_v56, %s11597_s1 }
 0x116   :  { %11051 = vrot.lane.b32.xlu1 %v12231_v51, %s11597_s1  ;;  %v12429_v30 = vpop.xlane.xlu1 %258 }
 0x117   :  { %v12431_v55 = vpop.xlane.xlu0 %255 }
 0x118   :  { %11056 = vrot.lane.b32.xlu0 %v12233_v48, %s11597_s1 }
 0x11a   :  { %11061 = vrot.lane.b32.xlu1 %v12237_v40, %s11597_s1  ;;  %v12437_v28 = vpop.xlane.xlu1 %264 }
 0x11b   :  { %v12439_v29 = vpop.xlane.xlu0 %261 }
 0x11c   :  { %11066 = vrot.lane.b32.xlu0 %v12239_v60, %s11597_s1  ;;  %v12459_v60 = vld [vmem:[#allocation4 + $0x140] sm:$0xff]  }
 0x11d   :  { %v16634_v8 = vunpack.c.h.bf16 %v12459_v60 }
 0x11e   :  { %11071 = vrot.lane.b32.xlu1 %v12243_v62, %s11597_s1  ;;  %v12445_v56 = vpop.xlane.xlu1 %270 }
 0x11f   :  { %v12447_v51 = vpop.xlane.xlu0 %267 }
 0x120   :  { %11076 = vrot.lane.b32.xlu0 %v12245_v37, %s11597_s1  ;;  %v9809_v37 = vunpack.c.l.bf16 %v12459_v60 }
 0x122   :  { %11081 = vrot.lane.b32.xlu1 %v12249_v50, %s11597_s1  ;;  %v12453_v48 = vpop.xlane.xlu1 %276  ;;  %v11110_v47 = vpack.i.bf16 %v9809_v37, %v9733_v52  ;;  %v1041_v13 = vsel %vm223_vm0, %v9809_v37, 0.0 }
 0x123   :  { %v12455_v40 = vpop.xlane.xlu0 %273 }
 0x124   :  { %11086 = vrot.lane.b32.xlu0 %v12251_v34, %s11597_s1 }
 0x126   :  { %11091 = vrot.lane.b32.xlu1 %v12255_v58, %s11597_s1  ;;  %v12463_v62 = vpop.xlane.xlu1 %282 }
 0x127   :  { %v12465_v26 = vpop.xlane.xlu0 %279 }
 0x128   :  { %11096 = vrot.lane.b32.xlu0 %v12257_v21, %s11597_s1 }
 0x12a   :  { %11101 = vrot.lane.b32.xlu1 %v12261_v42, %s11597_s1  ;;  %v12472_v50 = vpop.xlane.xlu1 %288 }
 0x12b   :  { %v12474_v34 = vpop.xlane.xlu0 %285 }
 0x12c   :  { %11106 = vrot.lane.b32.xlu0 %v12263_v43, %s11597_s1 }
 0x12e   :  { %11111 = vrot.lane.b32.xlu1 %v11110_v47, %s11597_s1  ;;  %v12481_v58 = vpop.xlane.xlu1 %294 }
 0x12f   :  { %v12483_v45 = vpop.xlane.xlu0 %291 }
 0x132   :  { %v12485_v21 = vpop.xlane.xlu1 %300 }
 0x133   :  { %v12487_v53 = vpop.xlane.xlu0 %297 }
 0x136   :  { %v12489_v42 = vpop.xlane.xlu1 %306 }
 0x137   :  { %v12491_v54 = vpop.xlane.xlu0 %303 }
 0x13a   :  { %v12493_v19 = vpop.xlane.xlu1 %312 }
 0x13b   :  { %v12495_v52 = vpop.xlane.xlu0 %309 }
 0x13e   :  { %v12497_v18 = vpop.xlane.xlu1 %318 }
 0x13f   :  { %v12499_v43 = vpop.xlane.xlu0 %315 }
 0x142   :  { %v12501_v47 = vpop.xlane.xlu1 %324 }
 0x143   :  { %16992 = vst [vmem:[#allocation121_spill] sm:$0xff] %v12501_v47  ;;  %v12503_v17 = vpop.xlane.xlu0 %321 }
 0x144   :  { %16993 = vst [vmem:[#allocation122_spill] sm:$0xff] %v12503_v17 }
 0x146   :  { %v12507_v15 = vpop.xlane.xlu1 %330 }
 0x147   :  { %16994 = vst [vmem:[#allocation123_spill] sm:$0xff] %v12507_v15  ;;  %v12509_v14 = vpop.xlane.xlu0 %327 }
 0x148   :  { %16995 = vst [vmem:[#allocation124_spill] sm:$0xff] %v12509_v14 }
 0x14a   :  { %v12513_v11 = vpop.xlane.xlu1 %336 }
 0x14b   :  { %16996 = vst [vmem:[#allocation125_spill] sm:$0xff] %v12513_v11  ;;  %1042 = vadd.xlane.f32.xlu0 %v1041_v13  ;;  %v12515_v10 = vpop.xlane.xlu0 %333  ;;  %v1044_v13 = vsel %vm223_vm0, %v16634_v8, 0.0  ;;  %v16646_v8 = vunpack.c.l.bf16 %v12536_v1  ;;  %v12662_v11 = vld [vmem:[#allocation4 + $0x130] sm:$0xff]  }
 0x14c   :  { %16997 = vst [vmem:[#allocation126_spill] sm:$0xff] %v12515_v10  ;;  %17017 = vst [vmem:[#allocation146_spill] sm:$0xff] %v12662_v11 }
 0x14e   :  { %v12524_v5 = vpop.xlane.xlu1 %342 }
 0x14f   :  { %16998 = vst [vmem:[#allocation127_spill] sm:$0xff] %v12524_v5  ;;  %994 = vadd.xlane.f32.xlu0 %v993_v9  ;;  %v12526_v37 = vpop.xlane.xlu0 %339  ;;  %v1047_v9 = vsel %vm223_vm0, %v16640_v12, 0.0  ;;  %v16653_v12 = vunpack.c.l.bf16 %v12548_v46 }
 0x150   :  { %16999 = vst [vmem:[#allocation128_spill] sm:$0xff] %v12526_v37  ;;  %v12638_v37 = vld [vmem:[#allocation4 + $0x128] sm:$0xff]  }
 0x151   :  { %17013 = vst [vmem:[#allocation142_spill] sm:$0xff] %v12638_v37 }
 0x152   :  { %1045 = vadd.xlane.f32.xlu1 %v1044_v13  ;;  %v12538_v2 = vpop.xlane.xlu1 %348 }
 0x153   :  { %17000 = vst [vmem:[#allocation129_spill] sm:$0xff] %v12538_v2  ;;  %997 = vadd.xlane.f32.xlu0 %v996_v4  ;;  %v12550_v27 = vpop.xlane.xlu0 %345  ;;  %v999_v4 = vsel %vm223_vm0, %v16646_v8, 0.0  ;;  %v16657_v8 = vunpack.c.l.bf16 %v12562_v57 }
 0x154   :  { %17001 = vst [vmem:[#allocation130_spill] sm:$0xff] %v12550_v27 }
 0x156   :  { %1051 = vadd.xlane.f32.xlu1 %v1050_v7  ;;  %v12552_v13 = vpop.xlane.xlu1 %354  ;;  %v1053_v7 = vsel %vm223_vm0, %v16653_v12, 0.0  ;;  %v1008_v12 = vsel %vm223_vm0, %v16658_v0, 0.0  ;;  %v1062_v0 = vsel %vm223_vm0, %v16660_v59, 0.0 }
 0x157   :  { %1048 = vadd.xlane.f32.xlu0 %v1047_v9  ;;  %17002 = vst [vmem:[#allocation131_spill] sm:$0xff] %v12552_v13  ;;  %v12564_v9 = vpop.xlane.xlu0 %351  ;;  %v12600_v13 = vld [vmem:[#allocation4 + $0x160] sm:$0xff]  }
 0x158   :  { %17003 = vst [vmem:[#allocation132_spill] sm:$0xff] %v12564_v9  ;;  %v16666_v59 = vunpack.c.h.bf16 %v12600_v13 }
 0x15a   :  { %1003 = vadd.xlane.f32.xlu1 %v1002_v3  ;;  %v12576_v63 = vpop.xlane.xlu1 %360  ;;  %v1005_v3 = vsel %vm223_vm0, %v16657_v8, 0.0  ;;  %v16663_v8 = vunpack.c.l.bf16 %v12586_v36 }
 0x15b   :  { %1000 = vadd.xlane.f32.xlu0 %v999_v4  ;;  %17004 = vst [vmem:[#allocation133_spill] sm:$0xff] %v12576_v63  ;;  %v16659_v4 = vunpack.c.l.bf16 %v12574_v41  ;;  %v12588_v9 = vpop.xlane.xlu0 %357  ;;  %v16664_v63 = vunpack.c.h.bf16 %v12586_v36 }
 0x15c   :  { %17005 = vst [vmem:[#allocation134_spill] sm:$0xff] %v12588_v9  ;;  %v12612_v9 = vld [vmem:[#allocation4 + $0x120] sm:$0xff]  }
 0x15d   :  { %17008 = vst [vmem:[#allocation137_spill] sm:$0xff] %v12612_v9 }
 0x15e   :  { %1057 = vadd.xlane.f32.xlu1 %v1056_v61  ;;  %v1059_v61 = vsel %vm223_vm0, %v16659_v4, 0.0  ;;  %v16665_v4 = vunpack.c.l.bf16 %v12600_v13 }
 0x15f   :  { %1054 = vadd.xlane.f32.xlu0 %v1053_v7  ;;  %v12590_v7 = vpop.xlane.xlu1 %366 }
 0x160   :  { %17006 = vst [vmem:[#allocation135_spill] sm:$0xff] %v12590_v7  ;;  %v1014_v7 = vsel %vm223_vm0, %v16664_v63, 0.0  ;;  %v16668_v63 = vunpack.c.h.bf16 %v12612_v9 }
 0x162   :  { %1009 = vadd.xlane.f32.xlu1 %v1008_v12  ;;  %v1011_v12 = vsel %vm223_vm0, %v16663_v8, 0.0  ;;  %v1068_v8 = vsel %vm223_vm0, %v16666_v59, 0.0  ;;  %v1020_v59 = vsel %vm223_vm0, %v16668_v63, 0.0  ;;  %v16674_v63 = vunpack.c.h.bf16 %v12638_v37 }
 0x163   :  { %1006 = vadd.xlane.f32.xlu0 %v1005_v3  ;;  %v12602_v3 = vpop.xlane.xlu0 %363  ;;  %v12614_v22 = vpop.xlane.xlu1 %372 }
 0x164   :  { %17007 = vst [vmem:[#allocation136_spill] sm:$0xff] %v12602_v3  ;;  %17009 = vst [vmem:[#allocation138_spill] sm:$0xff] %v12614_v22  ;;  %v12624_v3 = vld [vmem:[#allocation4 + $0x168] sm:$0xff]  }
 0x165   :  { %17010 = vst [vmem:[#allocation139_spill] sm:$0xff] %v12624_v3  ;;  %v16672_v2 = vunpack.c.h.bf16 %v12624_v3 }
 0x166   :  { %1063 = vadd.xlane.f32.xlu1 %v1062_v0  ;;  %v1065_v0 = vsel %vm223_vm0, %v16665_v4, 0.0  ;;  %v16671_v4 = vunpack.c.l.bf16 %v12624_v3 }
 0x167   :  { %1060 = vadd.xlane.f32.xlu0 %v1059_v61  ;;  %v16667_v61 = vunpack.c.l.bf16 %v12612_v9  ;;  %v12626_v27 = vpop.xlane.xlu0 %369  ;;  %v1074_v5 = vsel %vm223_vm0, %v16672_v2, 0.0  ;;  %v16676_v2 = vunpack.c.h.bf16 %v12650_v49  ;;  %v12898_v9 = vld [vmem:[#allocation4 + $0x1e8] sm:$0xff]  }
 0x168   :  { %17011 = vst [vmem:[#allocation140_spill] sm:$0xff] %v12626_v27 }
 0x16a   :  { %1015 = vadd.xlane.f32.xlu1 %v1014_v7  ;;  %v1017_v7 = vsel %vm223_vm0, %v16667_v61, 0.0  ;;  %v16673_v61 = vunpack.c.l.bf16 %v12638_v37 }
 0x16b   :  { %1012 = vadd.xlane.f32.xlu0 %v1011_v12  ;;  %v12628_v12 = vpop.xlane.xlu1 %378 }
 0x16c   :  { %17012 = vst [vmem:[#allocation141_spill] sm:$0xff] %v12628_v12  ;;  %v12676_v12 = vld [vmem:[#allocation4 + $0x178] sm:$0xff]  }
 0x16d   :  { %17020 = vst [vmem:[#allocation149_spill] sm:$0xff] %v12676_v12 }
 0x16e   :  { %1069 = vadd.xlane.f32.xlu1 %v1068_v8  ;;  %v1071_v8 = vsel %vm223_vm0, %v16671_v4, 0.0  ;;  %v1026_v4 = vsel %vm223_vm0, %v16674_v63, 0.0  ;;  %v1080_v63 = vsel %vm223_vm0, %v16676_v2, 0.0  ;;  %v16680_v2 = vunpack.c.h.bf16 %v12676_v12 }
 0x16f   :  { %1066 = vadd.xlane.f32.xlu0 %v1065_v0  ;;  %v12640_v0 = vpop.xlane.xlu0 %375  ;;  %v12652_v10 = vpop.xlane.xlu1 %384 }
 0x170   :  { %17014 = vst [vmem:[#allocation143_spill] sm:$0xff] %v12640_v0  ;;  %17016 = vst [vmem:[#allocation145_spill] sm:$0xff] %v12652_v10  ;;  %v16678_v10 = vunpack.c.h.bf16 %v12662_v11 }
 0x172   :  { %1021 = vadd.xlane.f32.xlu1 %v1020_v59  ;;  %v1023_v59 = vsel %vm223_vm0, %v16673_v61, 0.0  ;;  %v16677_v61 = vunpack.c.l.bf16 %v12662_v11  ;;  %v12868_v11 = vld [vmem:[#allocation4 + $0x1e0] sm:$0xff]  }
 0x173   :  { %1018 = vadd.xlane.f32.xlu0 %v1017_v7  ;;  %v16675_v7 = vunpack.c.l.bf16 %v12650_v49  ;;  %v12664_v14 = vpop.xlane.xlu0 %381 }
 0x174   :  { %17018 = vst [vmem:[#allocation147_spill] sm:$0xff] %v12664_v14  ;;  %v12688_v14 = vld [vmem:[#allocation4 + $0x138] sm:$0xff]  }
 0x175   :  { %17022 = vst [vmem:[#allocation151_spill] sm:$0xff] %v12688_v14 }
 0x176   :  { %1075 = vadd.xlane.f32.xlu1 %v1074_v5  ;;  %v1077_v5 = vsel %vm223_vm0, %v16675_v7, 0.0  ;;  %v16679_v7 = vunpack.c.l.bf16 %v12676_v12 }
 0x177   :  { %1072 = vadd.xlane.f32.xlu0 %v1071_v8  ;;  %v12666_v8 = vpop.xlane.xlu1 %390 }
 0x178   :  { %17019 = vst [vmem:[#allocation148_spill] sm:$0xff] %v12666_v8  ;;  %v1032_v8 = vsel %vm223_vm0, %v16678_v10, 0.0  ;;  %v16682_v10 = vunpack.c.h.bf16 %v12688_v14 }
 0x17a   :  { %1027 = vadd.xlane.f32.xlu1 %v1026_v4  ;;  %v1029_v4 = vsel %vm223_vm0, %v16677_v61, 0.0  ;;  %v1086_v61 = vsel %vm223_vm0, %v16680_v2, 0.0 }
 0x17b   :  { %1024 = vadd.xlane.f32.xlu0 %v1023_v59  ;;  %v12678_v59 = vpop.xlane.xlu0 %387  ;;  %v12690_v15 = vpop.xlane.xlu1 %396 }
 0x17c   :  { %17021 = vst [vmem:[#allocation150_spill] sm:$0xff] %v12678_v59  ;;  %17023 = vst [vmem:[#allocation152_spill] sm:$0xff] %v12690_v15 }
 0x17e   :  { %1081 = vadd.xlane.f32.xlu1 %v1080_v63  ;;  %v1083_v63 = vsel %vm223_vm0, %v16679_v7, 0.0 }
 0x17f   :  { %1078 = vadd.xlane.f32.xlu0 %v1077_v5  ;;  %v16681_v5 = vunpack.c.l.bf16 %v12688_v14  ;;  %v12700_v59 = vpop.xlane.xlu0 %393  ;;  %v12702_v0 = vpop.xlane.xlu1 %402 }
 0x180   :  { %17024 = vst [vmem:[#allocation153_spill] sm:$0xff] %v12700_v59  ;;  %17025 = vst [vmem:[#allocation154_spill] sm:$0xff] %v12702_v0 }
 0x182   :  { %1033 = vadd.xlane.f32.xlu1 %v1032_v8  ;;  %v1035_v8 = vsel %vm223_vm0, %v16681_v5, 0.0 }
 0x183   :  { %1030 = vadd.xlane.f32.xlu0 %v1029_v4  ;;  %v1038_v4 = vsel %vm223_vm0, %v16682_v10, 0.0  ;;  %v12710_v7 = vpop.xlane.xlu0 %399  ;;  %v12712_v2 = vpop.xlane.xlu1 %408 }
 0x184   :  { %17026 = vst [vmem:[#allocation155_spill] sm:$0xff] %v12710_v7  ;;  %17027 = vst [vmem:[#allocation156_spill] sm:$0xff] %v12712_v2  ;;  %v12816_v7 = vld [vmem:[#allocation4 + $0x188] sm:$0xff]  }
 0x185   :  { %v16715_v47 = vunpack.c.h.bf16 %v12816_v7 }
 0x186   :  { %1087 = vadd.xlane.f32.xlu1 %v1086_v61 }
 0x187   :  { %1084 = vadd.xlane.f32.xlu0 %v1083_v63  ;;  %v12714_v15 = vpop.xlane.xlu0 %405  ;;  %v12716_v63 = vpop.xlane.xlu1 %414 }
 0x188   :  { %17028 = vst [vmem:[#allocation157_spill] sm:$0xff] %v12714_v15  ;;  %17029 = vst [vmem:[#allocation158_spill] sm:$0xff] %v12716_v63 }
 0x18a   :  { %1039 = vadd.xlane.f32.xlu1 %v1038_v4 }
 0x18b   :  { %1036 = vadd.xlane.f32.xlu0 %v1035_v8  ;;  %v12718_v61 = vpop.xlane.xlu0 %411  ;;  %v12720_v0 = vpop.permute.xlu1 %11011 }
 0x18c   :  { %17030 = vst [vmem:[#allocation159_spill] sm:$0xff] %v12718_v61  ;;  %17031 = vst [vmem:[#allocation160_spill] sm:$0xff] %v12720_v0 }
 0x18f   :  { %v12722_v59 = vpop.permute.xlu0 %11006  ;;  %v12724_v5 = vpop.permute.xlu1 %11016 }
 0x190   :  { %17032 = vst [vmem:[#allocation161_spill] sm:$0xff] %v12722_v59  ;;  %17033 = vst [vmem:[#allocation162_spill] sm:$0xff] %v12724_v5 }
 0x193   :  { %v12726_v17 = vpop.permute.xlu0 %11026  ;;  %v12728_v8 = vpop.permute.xlu1 %11021 }
 0x194   :  { %17034 = vst [vmem:[#allocation163_spill] sm:$0xff] %v12726_v17  ;;  %17035 = vst [vmem:[#allocation164_spill] sm:$0xff] %v12728_v8 }
 0x197   :  { %v12730_v4 = vpop.permute.xlu0 %11036  ;;  %v12732_v10 = vpop.permute.xlu1 %11031 }
 0x198   :  { %17036 = vst [vmem:[#allocation165_spill] sm:$0xff] %v12730_v4  ;;  %17037 = vst [vmem:[#allocation166_spill] sm:$0xff] %v12732_v10 }
 0x19b   :  { %v12734_v2 = vpop.permute.xlu0 %11046  ;;  %v12736_v15 = vpop.permute.xlu1 %11041 }
 0x19c   :  { %17038 = vst [vmem:[#allocation167_spill] sm:$0xff] %v12734_v2  ;;  %17039 = vst [vmem:[#allocation168_spill] sm:$0xff] %v12736_v15 }
 0x19f   :  { %v12738_v63 = vpop.permute.xlu0 %11056  ;;  %v12740_v61 = vpop.permute.xlu1 %11051 }
 0x1a0   :  { %17040 = vst [vmem:[#allocation169_spill] sm:$0xff] %v12738_v63  ;;  %17041 = vst [vmem:[#allocation170_spill] sm:$0xff] %v12740_v61 }
 0x1a3   :  { %v12742_v0 = vpop.permute.xlu0 %11066  ;;  %v12744_v59 = vpop.permute.xlu1 %11061 }
 0x1a4   :  { %17042 = vst [vmem:[#allocation171_spill] sm:$0xff] %v12742_v0  ;;  %17043 = vst [vmem:[#allocation172_spill] sm:$0xff] %v12744_v59 }
 0x1a7   :  { %v12746_v5 = vpop.permute.xlu0 %11076  ;;  %v12748_v17 = vpop.permute.xlu1 %11071 }
 0x1a8   :  { %17044 = vst [vmem:[#allocation173_spill] sm:$0xff] %v12746_v5  ;;  %17045 = vst [vmem:[#allocation174_spill] sm:$0xff] %v12748_v17 }
 0x1ab   :  { %v12750_v8 = vpop.permute.xlu0 %11086  ;;  %v12752_v4 = vpop.permute.xlu1 %11081 }
 0x1ac   :  { %17046 = vst [vmem:[#allocation175_spill] sm:$0xff] %v12750_v8  ;;  %17047 = vst [vmem:[#allocation176_spill] sm:$0xff] %v12752_v4 }
 0x1af   :  { %v12754_v10 = vpop.permute.xlu0 %11096  ;;  %v12756_v2 = vpop.permute.xlu1 %11091 }
 0x1b0   :  { %17048 = vst [vmem:[#allocation177_spill] sm:$0xff] %v12754_v10  ;;  %17049 = vst [vmem:[#allocation178_spill] sm:$0xff] %v12756_v2 }
 0x1b3   :  { %v12758_v15 = vpop.permute.xlu0 %11106  ;;  %v12760_v63 = vpop.permute.xlu1 %11101 }
 0x1b4   :  { %17050 = vst [vmem:[#allocation179_spill] sm:$0xff] %v12758_v15  ;;  %17051 = vst [vmem:[#allocation180_spill] sm:$0xff] %v12760_v63 }
 0x1b7   :  { %v12763_v0 = vpop.permute.xlu1 %11111 }
 0x1b8   :  { %17052 = vst [vmem:[#allocation181_spill] sm:$0xff] %v12763_v0 }
 0x1d8   :  { %v1043_v61 = vpop.xlane.xlu0 %1042 }
 0x1d9   :  { %1793 = vrot.lane.b32.xlu0 %v1043_v61, %s11607_s15 }
 0x1dc   :  { %v995_v5 = vpop.xlane.xlu0 %994 }
 0x1df   :  { %v1046_v17 = vpop.xlane.xlu1 %1045 }
 0x1e0   :  { %v998_v59 = vpop.xlane.xlu0 %997  ;;  %1795 = vrot.lane.b32.xlu1 %v1046_v17, %s11607_s15 }
 0x1e3   :  { %v1052_v8 = vpop.xlane.xlu1 %1051 }
 0x1e4   :  { %v1049_v4 = vpop.xlane.xlu0 %1048  ;;  %1761 = vrot.lane.b32.xlu1 %v995_v5, %s11607_s15 }
 0x1e5   :  { %1797 = vrot.lane.b32.xlu0 %v1049_v4, %s11607_s15 }
 0x1e7   :  { %v1004_v10 = vpop.xlane.xlu1 %1003 }
 0x1e8   :  { %v1001_v15 = vpop.xlane.xlu0 %1000  ;;  %1763 = vrot.lane.b32.xlu1 %v998_v59, %s11607_s15 }
 0x1e9   :  { %1765 = vrot.lane.b32.xlu0 %v1001_v15, %s11607_s15 }
 0x1eb   :  { %v1058_v63 = vpop.xlane.xlu1 %1057 }
 0x1ec   :  { %v1055_v61 = vpop.xlane.xlu0 %1054  ;;  %1799 = vrot.lane.b32.xlu1 %v1052_v8, %s11607_s15 }
 0x1ed   :  { %1801 = vrot.lane.b32.xlu0 %v1055_v61, %s11607_s15 }
 0x1ef   :  { %v1010_v17 = vpop.xlane.xlu1 %1009 }
 0x1f0   :  { %v1007_v2 = vpop.xlane.xlu0 %1006  ;;  %1767 = vrot.lane.b32.xlu1 %v1004_v10, %s11607_s15 }
 0x1f1   :  { %1769 = vrot.lane.b32.xlu0 %v1007_v2, %s11607_s15 }
 0x1f3   :  { %v1064_v4 = vpop.xlane.xlu1 %1063 }
 0x1f4   :  { %v1061_v5 = vpop.xlane.xlu0 %1060  ;;  %1803 = vrot.lane.b32.xlu1 %v1058_v63, %s11607_s15 }
 0x1f5   :  { %1805 = vrot.lane.b32.xlu0 %v1061_v5, %s11607_s15 }
 0x1f7   :  { %v1016_v15 = vpop.xlane.xlu1 %1015 }
 0x1f8   :  { %v1013_v59 = vpop.xlane.xlu0 %1012  ;;  %1771 = vrot.lane.b32.xlu1 %v1010_v17, %s11607_s15 }
 0x1f9   :  { %1773 = vrot.lane.b32.xlu0 %v1013_v59, %s11607_s15 }
 0x1fb   :  { %v1070_v61 = vpop.xlane.xlu1 %1069 }
 0x1fc   :  { %v1067_v8 = vpop.xlane.xlu0 %1066  ;;  %1807 = vrot.lane.b32.xlu1 %v1064_v4, %s11607_s15 }
 0x1fd   :  { %1809 = vrot.lane.b32.xlu0 %v1067_v8, %s11607_s15 }
 0x1ff   :  { %v1022_v2 = vpop.xlane.xlu1 %1021 }
 0x200   :  { %v1019_v10 = vpop.xlane.xlu0 %1018  ;;  %1775 = vrot.lane.b32.xlu1 %v1016_v15, %s11607_s15 }
 0x201   :  { %1777 = vrot.lane.b32.xlu0 %v1019_v10, %s11607_s15 }
 0x203   :  { %v1076_v5 = vpop.xlane.xlu1 %1075 }
 0x204   :  { %v1073_v63 = vpop.xlane.xlu0 %1072  ;;  %1811 = vrot.lane.b32.xlu1 %v1070_v61, %s11607_s15 }
 0x205   :  { %1813 = vrot.lane.b32.xlu0 %v1073_v63, %s11607_s15 }
 0x207   :  { %v1028_v59 = vpop.xlane.xlu1 %1027 }
 0x208   :  { %v1025_v17 = vpop.xlane.xlu0 %1024  ;;  %1779 = vrot.lane.b32.xlu1 %v1022_v2, %s11607_s15 }
 0x209   :  { %1781 = vrot.lane.b32.xlu0 %v1025_v17, %s11607_s15  ;;  %v12796_v17 = vld [vmem:[#allocation4 + $0x1c0] sm:$0xff]  }
 0x20b   :  { %v1082_v8 = vpop.xlane.xlu1 %1081 }
 0x20c   :  { %v1079_v4 = vpop.xlane.xlu0 %1078  ;;  %1815 = vrot.lane.b32.xlu1 %v1076_v5, %s11607_s15 }
 0x20d   :  { %1817 = vrot.lane.b32.xlu0 %v1079_v4, %s11607_s15  ;;  %v12799_v4 = vld [vmem:[#allocation4 + $0x180] sm:$0xff]  }
 0x20f   :  { %v1034_v61 = vpop.xlane.xlu1 %1033 }
 0x210   :  { %v1031_v15 = vpop.xlane.xlu0 %1030  ;;  %1783 = vrot.lane.b32.xlu1 %v1028_v59, %s11607_s15  ;;  %v16704_v59 = vunpack.c.l.bf16 %v12796_v17 }
 0x211   :  { %1785 = vrot.lane.b32.xlu0 %v1031_v15, %s11607_s15  ;;  %v16705_v15 = vunpack.c.l.bf16 %v12799_v4 }
 0x213   :  { %v1088_v63 = vpop.xlane.xlu1 %1087 }
 0x214   :  { %v1085_v10 = vpop.xlane.xlu0 %1084  ;;  %1819 = vrot.lane.b32.xlu1 %v1082_v8, %s11607_s15  ;;  %v1137_v8 = vsel %vm223_vm0, %v16704_v59, 0.0  ;;  %v16709_v59 = vunpack.c.h.bf16 %v12796_v17 }
 0x215   :  { %1821 = vrot.lane.b32.xlu0 %v1085_v10, %s11607_s15  ;;  %v16707_v10 = vunpack.c.h.bf16 %v12799_v4 }
 0x217   :  { %v1040_v5 = vpop.xlane.xlu1 %1039 }
 0x218   :  { %v1037_v2 = vpop.xlane.xlu0 %1036  ;;  %1787 = vrot.lane.b32.xlu1 %v1034_v61, %s11607_s15  ;;  %v1089_v61 = vsel %vm223_vm0, %v16705_v15, 0.0  ;;  %v16710_v15 = vunpack.c.l.bf16 %v12816_v7 }
 0x219   :  { %1789 = vrot.lane.b32.xlu0 %v1037_v2, %s11607_s15  ;;  %v12809_v2 = vld [vmem:[#allocation4 + $0x1c8] sm:$0xff]  }
 0x21a   :  { %v16714_v0 = vunpack.c.h.bf16 %v12809_v2 }
 0x21c   :  { %1823 = vrot.lane.b32.xlu1 %v1088_v63, %s11607_s15  ;;  %v1092_v63 = vsel %vm223_vm0, %v16707_v10, 0.0  ;;  %v12826_v10 = vld [vmem:[#allocation4 + $0x1d0] sm:$0xff]  }
 0x21d   :  { %v16713_v22 = vunpack.c.l.bf16 %v12826_v10  ;;  %v16721_v27 = vunpack.c.h.bf16 %v12826_v10 }
 0x220   :  { %1791 = vrot.lane.b32.xlu1 %v1040_v5, %s11607_s15  ;;  %v16708_v5 = vunpack.c.l.bf16 %v12809_v2 }
 0x238   :  { %1138 = vadd.xlane.f32.xlu0 %v1137_v8  ;;  %v1143_v8 = vsel %vm223_vm0, %v16708_v5, 0.0  ;;  %v1146_v5 = vsel %vm223_vm0, %v16714_v0, 0.0  ;;  %v1152_v0 = vsel %vm223_vm0, %v16721_v27, 0.0  ;;  %v16733_v27 = vunpack.c.h.bf16 %v12846_v24 }
 0x23c   :  { %1090 = vadd.xlane.f32.xlu0 %v1089_v61  ;;  %v1140_v61 = vsel %vm223_vm0, %v16709_v59, 0.0  ;;  %v12836_v59 = vld [vmem:[#allocation4 + $0x190] sm:$0xff]  }
 0x240   :  { %1093 = vadd.xlane.f32.xlu0 %v1092_v63  ;;  %v1095_v63 = vsel %vm223_vm0, %v16710_v15, 0.0  ;;  %v1098_v15 = vsel %vm223_vm0, %v16715_v47, 0.0  ;;  %v16727_v47 = vunpack.c.h.bf16 %v12836_v59 }
 0x242   :  { %v1104_v12 = vsel %vm223_vm0, %v16727_v47, 0.0  ;;  %v1158_v47 = vsel %vm223_vm0, %v16733_v27, 0.0 }
 0x244   :  { %1144 = vadd.xlane.f32.xlu0 %v1143_v8  ;;  %1141 = vadd.xlane.f32.xlu1 %v1140_v61  ;;  %v1149_v8 = vsel %vm223_vm0, %v16713_v22, 0.0  ;;  %v16718_v61 = vunpack.c.l.bf16 %v12836_v59  ;;  %v16726_v22 = vunpack.c.l.bf16 %v12846_v24 }
 0x248   :  { %1096 = vadd.xlane.f32.xlu0 %v1095_v63  ;;  %1147 = vadd.xlane.f32.xlu1 %v1146_v5  ;;  %v1101_v5 = vsel %vm223_vm0, %v16718_v61, 0.0 }
 0x24b   :  { %v1794_v63 = vpop.permute.xlu0 %1793 }
 0x24c   :  { %1150 = vadd.xlane.f32.xlu0 %v1149_v8  ;;  %1099 = vadd.xlane.f32.xlu1 %v1098_v15  ;;  %v2162_v14 = vsel %vm2145_vm1, %v12455_v40, %v1794_v63  ;;  %v12858_v8 = vld [vmem:[#allocation4 + $0x198] sm:$0xff]   ;;  %v1155_v15 = vsel %vm223_vm0, %v16726_v22, 0.0  ;;  %v16738_v22 = vunpack.c.l.bf16 %v12868_v11 }
 0x24d   :  { %v16732_v61 = vunpack.c.l.bf16 %v12858_v8  ;;  %v12870_v49 = vmul.f32 0.015625, %v2162_v14  ;;  %v16739_v14 = vunpack.c.h.bf16 %v12858_v8 }
 0x24f   :  { %17053 = vst [vmem:[#allocation182_spill] sm:$0xff] %v12870_v49 }
 0x250   :  { %1102 = vadd.xlane.f32.xlu0 %v1101_v5  ;;  %1153 = vadd.xlane.f32.xlu1 %v1152_v0  ;;  %v1107_v5 = vsel %vm223_vm0, %v16732_v61, 0.0  ;;  %v1161_v61 = vsel %vm223_vm0, %v16738_v22, 0.0 }
 0x252   :  { %v1796_v40 = vpop.permute.xlu1 %1795 }
 0x253   :  { %v2163_v0 = vsel %vm2145_vm1, %v12453_v48, %v1796_v40  ;;  %v2674_v48 = vmax.f32 %v12870_v49, 0.0  ;;  %v12888_v40 = vld [vmem:[#allocation4 + $0x1a0] sm:$0xff]   ;;  %v1110_v49 = vsel %vm223_vm0, %v16739_v14, 0.0 }
 0x254   :  { %1156 = vadd.xlane.f32.xlu0 %v1155_v15  ;;  %v12874_v63 = vmul.f32 0.015625, %v2163_v0  ;;  %1105 = vadd.xlane.f32.xlu1 %v1104_v12  ;;  %v16740_v27 = vunpack.c.l.bf16 %v12888_v40 }
 0x256   :  { %17054 = vst [vmem:[#allocation183_spill] sm:$0xff] %v12874_v63  ;;  %v1762_v37 = vpop.permute.xlu1 %1761  ;;  %v2675_v15 = vmax.f32 %v12874_v63, 0.0  ;;  %v16741_v63 = vunpack.c.h.bf16 %v12868_v11  ;;  %v1113_v22 = vsel %vm223_vm0, %v16740_v27, 0.0  ;;  %v12924_v27 = vld [vmem:[#allocation4 + $0x1a8] sm:$0xff]  }
 0x257   :  { %v1798_v3 = vpop.permute.xlu0 %1797  ;;  %v2146_v12 = vsel %vm2145_vm1, %v12393_v20, %v1762_v37 }
 0x258   :  { %1108 = vadd.xlane.f32.xlu0 %v1107_v5  ;;  %v2794_v0 = vpack.c.bf16 %v2675_v15, %v2674_v48  ;;  %1159 = vadd.xlane.f32.xlu1 %v1158_v47  ;;  %v12900_v20 = vmul.f32 0.015625, %v2146_v12  ;;  %v2164_v47 = vsel %vm2145_vm1, %v12465_v26, %v1798_v3  ;;  %v16744_v12 = vunpack.c.l.bf16 %v12898_v9 }
 0x259   :  { %v12916_v26 = vmul.f32 0.015625, %v2164_v47 }
 0x25a   :  { %17055 = vst [vmem:[#allocation184_spill] sm:$0xff] %v12900_v20  ;;  %v1764_v37 = vpop.permute.xlu1 %1763  ;;  %9965 = vmatprep.subr.bf16.mxu0 %v2794_v0  ;;  %v1164_v0 = vsel %vm223_vm0, %v16741_v63, 0.0  ;;  %v1167_v47 = vsel %vm223_vm0, %v16744_v12, 0.0 }
 0x25b   :  { %v1766_v5 = vpop.permute.xlu0 %1765  ;;  %v2147_v48 = vsel %vm2145_vm1, %v12399_v35, %v1764_v37  ;;  %17057 = vst [vmem:[#allocation186_spill] sm:$0xff] %v12916_v26 }
 0x25c   :  { %1162 = vadd.xlane.f32.xlu0 %v1161_v61  ;;  %v12906_v15 = vmul.f32 0.015625, %v2147_v48  ;;  %1111 = vadd.xlane.f32.xlu1 %v1110_v49  ;;  %v2658_v61 = vmax.f32 %v12900_v20, 0.0  ;;  %v2148_v37 = vsel %vm2145_vm1, %v12391_v44, %v1766_v5  ;;  %v16747_v20 = vunpack.c.l.bf16 %v12924_v27 }
 0x25e   :  { %17056 = vst [vmem:[#allocation185_spill] sm:$0xff] %v12906_v15  ;;  %v1800_v3 = vpop.permute.xlu1 %1799  ;;  %v2659_v49 = vmax.f32 %v12906_v15, 0.0  ;;  %v17059_v15 = vunpack.c.h.bf16 %v12888_v40 }
 0x25f   :  { %v1802_v35 = vpop.permute.xlu0 %1801  ;;  %v2165_v48 = vsel %vm2145_vm1, %v12463_v62, %v1800_v3  ;;  %v12936_v62 = vld [vmem:[#allocation4 + $0x1f0] sm:$0xff]   ;;  %v12939_v3 = vmul.f32 0.015625, %v2148_v37  ;;  %v1119_v37 = vsel %vm223_vm0, %v16747_v20, 0.0 }
 0x260   :  { %1114 = vadd.xlane.f32.xlu0 %v1113_v22  ;;  %v12926_v63 = vmul.f32 0.015625, %v2165_v48  ;;  %v2786_v14 = vpack.c.bf16 %v2659_v49, %v2658_v61  ;;  %1165 = vadd.xlane.f32.xlu1 %v1164_v0  ;;  %v1116_v44 = vsel %vm223_vm0, %v17059_v15, 0.0  ;;  %v2676_v22 = vmax.f32 %v12916_v26, 0.0 }
 0x261   :  { %17060 = vst [vmem:[#allocation188_spill] sm:$0xff] %v12939_v3  ;;  %v2166_v48 = vsel %vm2145_vm1, %v12474_v34, %v1802_v35  ;;  %v12956_v35 = vld [vmem:[#allocation4 + $0x1b0] sm:$0xff]  }
 0x262   :  { %17058 = vst [vmem:[#allocation187_spill] sm:$0xff] %v12926_v63  ;;  %v2677_v0 = vmax.f32 %v12926_v63, 0.0  ;;  %v1768_v61 = vpop.permute.xlu1 %1767  ;;  %9966 = vmatpush3.bf16.msra.mxu0 %v2786_v14  ;;  %v16749_v63 = vunpack.c.l.bf16 %v12936_v62  ;;  %v17062_v14 = vunpack.c.h.bf16 %v12898_v9  ;;  %v16751_v34 = vunpack.c.l.bf16 %v12956_v35 }
 0x263   :  { %v1770_v49 = vpop.permute.xlu0 %1769  ;;  %v2149_v12 = vsel %vm2145_vm1, %v12397_v39, %v1768_v61  ;;  %v2660_v39 = vmax.f32 %v12939_v3, 0.0 }
 0x264   :  { %1168 = vadd.xlane.f32.xlu0 %v1167_v47  ;;  %v12946_v15 = vmul.f32 0.015625, %v2149_v12  ;;  %v2795_v5 = vpack.c.bf16 %v2677_v0, %v2676_v22  ;;  %1117 = vadd.xlane.f32.xlu1 %v1116_v44  ;;  %v1170_v26 = vsel %vm223_vm0, %v17062_v14, 0.0  ;;  %v12959_v12 = vmul.f32 0.015625, %v2166_v48 }
 0x265   :  { %v2150_v0 = vsel %vm2145_vm1, %v12407_v33, %v1770_v49  ;;  %v1173_v48 = vsel %vm223_vm0, %v16749_v63, 0.0  ;;  %v12976_v49 = vld [vmem:[#allocation4 + $0x1f8] sm:$0xff]  }
 0x266   :  { %17061 = vst [vmem:[#allocation189_spill] sm:$0xff] %v12946_v15  ;;  %17063 = vst [vmem:[#allocation190_spill] sm:$0xff] %v12959_v12  ;;  %v2661_v47 = vmax.f32 %v12946_v15, 0.0  ;;  %v1804_v44 = vpop.permute.xlu1 %1803  ;;  %9967 = vmatprep.subr.bf16.mxu0 %v2795_v5  ;;  %v17065_v5 = vunpack.c.h.bf16 %v12924_v27  ;;  %v16753_v33 = vunpack.c.l.bf16 %v12976_v49 }
 0x267   :  { %v1806_v22 = vpop.permute.xlu0 %1805  ;;  %v2167_v61 = vsel %vm2145_vm1, %v12472_v50, %v1804_v44  ;;  %v2678_v50 = vmax.f32 %v12959_v12, 0.0 }
 0x268   :  { %1120 = vadd.xlane.f32.xlu0 %v1119_v37  ;;  %v12966_v14 = vmul.f32 0.015625, %v2167_v61  ;;  %v2787_v20 = vpack.c.bf16 %v2661_v47, %v2660_v39  ;;  %1171 = vadd.xlane.f32.xlu1 %v1170_v26  ;;  %v1122_v15 = vsel %vm223_vm0, %v17065_v5, 0.0  ;;  %v12979_v37 = vmul.f32 0.015625, %v2150_v0 }
 0x269   :  { %v2168_v44 = vsel %vm2145_vm1, %v12483_v45, %v1806_v22  ;;  %v1125_v0 = vsel %vm223_vm0, %v16751_v34, 0.0  ;;  %v12996_v22 = vld [vmem:[#allocation4 + $0x1b8] sm:$0xff]  }
 0x26a   :  { %17064 = vst [vmem:[#allocation191_spill] sm:$0xff] %v12966_v14  ;;  %17066 = vst [vmem:[#allocation192_spill] sm:$0xff] %v12979_v37  ;;  %v2679_v26 = vmax.f32 %v12966_v14, 0.0  ;;  %v1772_v39 = vpop.permute.xlu1 %1771  ;;  %9968 = vmatpush3.bf16.msra.mxu0 %v2787_v20  ;;  %v17068_v20 = vunpack.c.h.bf16 %v12936_v62  ;;  %v16754_v45 = vunpack.c.l.bf16 %v12996_v22 }
 0x26b   :  { %v1774_v47 = vpop.permute.xlu0 %1773  ;;  %v2151_v61 = vsel %vm2145_vm1, %v12405_v25, %v1772_v39  ;;  %v2662_v25 = vmax.f32 %v12979_v37, 0.0 }
 0x26c   :  { %1174 = vadd.xlane.f32.xlu0 %v1173_v48  ;;  %v12986_v5 = vmul.f32 0.015625, %v2151_v61  ;;  %v2796_v63 = vpack.c.bf16 %v2679_v26, %v2678_v50  ;;  %1123 = vadd.xlane.f32.xlu1 %v1122_v15  ;;  %v1176_v14 = vsel %vm223_vm0, %v17068_v20, 0.0  ;;  %v12999_v48 = vmul.f32 0.015625, %v2168_v44 }
 0x26d   :  { %v2152_v39 = vsel %vm2145_vm1, %v12415_v23, %v1774_v47  ;;  %v1179_v44 = vsel %vm223_vm0, %v16753_v33, 0.0  ;;  %v16755_v23 = vunpack.c.h.bf16 %v12976_v49  ;;  %v16757_v33 = vunpack.c.h.bf16 %v12996_v22 }
 0x26e   :  { %17067 = vst [vmem:[#allocation193_spill] sm:$0xff] %v12986_v5  ;;  %17069 = vst [vmem:[#allocation194_spill] sm:$0xff] %v12999_v48  ;;  %v2663_v15 = vmax.f32 %v12986_v5, 0.0  ;;  %v1808_v50 = vpop.permute.xlu1 %1807  ;;  %9969 = vmatprep.subr.bf16.mxu0 %v2796_v63  ;;  %v17071_v63 = vunpack.c.h.bf16 %v12956_v35  ;;  %v2680_v47 = vmax.f32 %v12999_v48, 0.0  ;;  %v2886_v48 = vld [vmem:[#allocation6 + $0x120] sm:$0xff] }
 0x26f   :  { %v1810_v26 = vpop.permute.xlu0 %1809  ;;  %v2169_v61 = vsel %vm2145_vm1, %v12481_v58, %v1808_v50  ;;  %v13017_v58 = vmul.f32 0.015625, %v2152_v39  ;;  %v1131_v39 = vsel %vm223_vm0, %v16754_v45, 0.0 }
 0x270   :  { %1126 = vadd.xlane.f32.xlu0 %v1125_v0  ;;  %v13006_v20 = vmul.f32 0.015625, %v2169_v61  ;;  %v2788_v34 = vpack.c.bf16 %v2663_v15, %v2662_v25  ;;  %1177 = vadd.xlane.f32.xlu1 %v1176_v14  ;;  %v1128_v12 = vsel %vm223_vm0, %v17071_v63, 0.0  ;;  %v2170_v15 = vsel %vm2145_vm1, %v12487_v53, %v1810_v26 }
 0x271   :  { %17072 = vst [vmem:[#allocation196_spill] sm:$0xff] %v13017_v58  ;;  %v2664_v53 = vmax.f32 %v13017_v58, 0.0  ;;  %v13034_v26 = vmul.f32 0.015625, %v2170_v15  ;;  %v1134_v15 = vsel %vm223_vm0, %v16757_v33, 0.0  ;;  %v2938_v58 = vld [vmem:[#allocation6 + $0x2c0] sm:$0xff] }
 0x272   :  { %17070 = vst [vmem:[#allocation195_spill] sm:$0xff] %v13006_v20  ;;  %v2681_v0 = vmax.f32 %v13006_v20, 0.0  ;;  %v1776_v25 = vpop.permute.xlu1 %1775  ;;  %9970 = vmatpush3.bf16.msra.mxu0 %v2788_v34  ;;  %v1182_v34 = vsel %vm223_vm0, %v16755_v23, 0.0 }
 0x273   :  { %v1778_v14 = vpop.permute.xlu0 %1777  ;;  %v2153_v50 = vsel %vm2145_vm1, %v12413_v32, %v1776_v25  ;;  %17074 = vst [vmem:[#allocation198_spill] sm:$0xff] %v13034_v26  ;;  %v2682_v45 = vmax.f32 %v13034_v26, 0.0 }
 0x274   :  { %1180 = vadd.xlane.f32.xlu0 %v1179_v44  ;;  %v13024_v61 = vmul.f32 0.015625, %v2153_v50  ;;  %v2797_v63 = vpack.c.bf16 %v2681_v0, %v2680_v47  ;;  %1129 = vadd.xlane.f32.xlu1 %v1128_v12  ;;  %v2154_v12 = vsel %vm2145_vm1, %v12423_v38, %v1778_v14 }
 0x275   :  { %v13047_v23 = vmul.f32 0.015625, %v2154_v12 }
 0x276   :  { %17073 = vst [vmem:[#allocation197_spill] sm:$0xff] %v13024_v61  ;;  %v2665_v32 = vmax.f32 %v13024_v61, 0.0  ;;  %v1812_v44 = vpop.permute.xlu1 %1811  ;;  %9971 = vmatprep.subr.bf16.mxu0 %v2797_v63 }
 0x277   :  { %v1814_v47 = vpop.permute.xlu0 %1813  ;;  %v2171_v0 = vsel %vm2145_vm1, %v12485_v21, %v1812_v44  ;;  %17076 = vst [vmem:[#allocation200_spill] sm:$0xff] %v13047_v23 }
 0x278   :  { %1132 = vadd.xlane.f32.xlu0 %v1131_v39  ;;  %v13041_v25 = vmul.f32 0.015625, %v2171_v0  ;;  %v2789_v50 = vpack.c.bf16 %v2665_v32, %v2664_v53  ;;  %1183 = vadd.xlane.f32.xlu1 %v1182_v34  ;;  %v2172_v21 = vsel %vm2145_vm1, %v12491_v54, %v1814_v47  ;;  %v2666_v53 = vmax.f32 %v13047_v23, 0.0 }
 0x279   :  { %v13057_v32 = vmul.f32 0.015625, %v2172_v21 }
 0x27a   :  { %17075 = vst [vmem:[#allocation199_spill] sm:$0xff] %v13041_v25  ;;  %v2683_v63 = vmax.f32 %v13041_v25, 0.0  ;;  %v1780_v20 = vpop.permute.xlu1 %1779  ;;  %9972 = vmatpush3.bf16.msra.mxu0 %v2789_v50 }
 0x27b   :  { %v1782_v38 = vpop.permute.xlu0 %1781  ;;  %v2155_v14 = vsel %vm2145_vm1, %v12421_v31, %v1780_v20  ;;  %17078 = vst [vmem:[#allocation202_spill] sm:$0xff] %v13057_v32 }
 0x27c   :  { %v13054_v39 = vmul.f32 0.015625, %v2155_v14  ;;  %v2798_v34 = vpack.c.bf16 %v2683_v63, %v2682_v45  ;;  %1135 = vadd.xlane.f32.xlu1 %v1134_v15  ;;  %v2156_v50 = vsel %vm2145_vm1, %v12431_v55, %v1782_v38  ;;  %v2684_v45 = vmax.f32 %v13057_v32, 0.0 }
 0x27d   :  { %v13067_v47 = vmul.f32 0.015625, %v2156_v50 }
 0x27e   :  { %17077 = vst [vmem:[#allocation201_spill] sm:$0xff] %v13054_v39  ;;  %v2667_v44 = vmax.f32 %v13054_v39, 0.0  ;;  %v1816_v12 = vpop.permute.xlu1 %1815  ;;  %9973 = vmatprep.subr.bf16.mxu0 %v2798_v34 }
 0x27f   :  { %v1818_v0 = vpop.permute.xlu0 %1817  ;;  %v2173_v54 = vsel %vm2145_vm1, %v12489_v42, %v1816_v12  ;;  %17080 = vst [vmem:[#allocation204_spill] sm:$0xff] %v13067_v47  ;;  %v2668_v34 = vmax.f32 %v13067_v47, 0.0 }
 0x280   :  { %v13064_v31 = vmul.f32 0.015625, %v2173_v54  ;;  %v2790_v20 = vpack.c.bf16 %v2667_v44, %v2666_v53  ;;  %v2174_v14 = vsel %vm2145_vm1, %v12495_v52, %v1818_v0 }
 0x281   :  { %v13077_v53 = vmul.f32 0.015625, %v2174_v14  ;;  %v17087_v14 = vunpack.c.l.bf16 %v12796_v17 }
 0x282   :  { %17079 = vst [vmem:[#allocation203_spill] sm:$0xff] %v13064_v31  ;;  %v2685_v15 = vmax.f32 %v13064_v31, 0.0  ;;  %v1784_v63 = vpop.permute.xlu1 %1783  ;;  %9974 = vmatpush3.bf16.msra.mxu0 %v2790_v20  ;;  %v17084_v20 = vunpack.c.h.bf16 %v12459_v60 }
 0x283   :  { %v1786_v21 = vpop.permute.xlu0 %1785  ;;  %v2157_v55 = vsel %vm2145_vm1, %v12429_v30, %v1784_v63  ;;  %17082 = vst [vmem:[#allocation206_spill] sm:$0xff] %v13077_v53  ;;  %v17086_v63 = vunpack.c.h.bf16 %v12505_v16 }
 0x284   :  { %v13074_v38 = vmul.f32 0.015625, %v2157_v55  ;;  %v2799_v42 = vpack.c.bf16 %v2685_v15, %v2684_v45  ;;  %v2158_v54 = vsel %vm2145_vm1, %v12439_v29, %v1786_v21  ;;  %v17085_v45 = vunpack.c.l.bf16 %v12505_v16 }
 0x285   :  { %v11120_v55 = vpack.i.bf16 %v17087_v14, %v17086_v63  ;;  %v13095_v33 = vmul.f32 0.015625, %v2158_v54  ;;  %v17091_v54 = vunpack.c.l.bf16 %v12799_v4  ;;  %v17094_v63 = vunpack.c.h.bf16 %v12799_v4 }
 0x286   :  { %17081 = vst [vmem:[#allocation205_spill] sm:$0xff] %v13074_v38  ;;  %v2669_v44 = vmax.f32 %v13074_v38, 0.0  ;;  %v1820_v12 = vpop.permute.xlu1 %1819  ;;  %9975 = vmatprep.subr.bf16.mxu0 %v2799_v42  ;;  %v11115_v15 = vpack.i.bf16 %v17085_v45, %v17084_v20  ;;  %v2686_v42 = vmax.f32 %v13077_v53, 0.0  ;;  %v17095_v14 = vunpack.c.l.bf16 %v12522_v6 }
 0x287   :  { %v1822_v50 = vpop.permute.xlu0 %1821  ;;  %v2175_v52 = vsel %vm2145_vm1, %v12493_v19, %v1820_v12  ;;  %17088 = vst [vmem:[#allocation208_spill] sm:$0xff] %v13095_v33  ;;  %v17090_v12 = vunpack.c.h.bf16 %v12796_v17 }
 0x288   :  { %v13084_v0 = vmul.f32 0.015625, %v2175_v52  ;;  %v2791_v30 = vpack.c.bf16 %v2669_v44, %v2668_v34  ;;  %v2176_v21 = vsel %vm2145_vm1, %v12499_v43, %v1822_v50 }
 0x289   :  { %v11125_v52 = vpack.i.bf16 %v17091_v54, %v17090_v12  ;;  %v13111_v20 = vmul.f32 0.015625, %v2176_v21  ;;  %v17098_v54 = vunpack.c.h.bf16 %v12522_v6 }
 0x28a   :  { %17083 = vst [vmem:[#allocation207_spill] sm:$0xff] %v13084_v0  ;;  %v2687_v29 = vmax.f32 %v13084_v0, 0.0  ;;  %v1788_v19 = vpop.permute.xlu1 %1787  ;;  %9976 = vmatpush3.bf16.msra.mxu0 %v2791_v30  ;;  %v2670_v30 = vmax.f32 %v13095_v33, 0.0  ;;  %v17265_v0 = vld [vmem:[#allocation178_spill] sm:$0xff] }
 0x28b   :  { %v2159_v60 = vsel %vm2145_vm1, %v12437_v28, %v1788_v19  ;;  %v1790_v16 = vpop.permute.xlu0 %1789  ;;  %17092 = vst [vmem:[#allocation210_spill] sm:$0xff] %v13111_v20  ;;  %v11093_v53 = vunpack.i.l.bf16 %v17265_v0 }
 0x28c   :  { %v13102_v34 = vmul.f32 0.015625, %v2159_v60  ;;  %v2800_v44 = vpack.c.bf16 %v2687_v29, %v2686_v42  ;;  %v2160_v50 = vsel %vm2145_vm1, %v12447_v51, %v1790_v16  ;;  %v2688_v42 = vmax.f32 %v13111_v20, 0.0 }
 0x28d   :  { %11121 = vrot.lane.b32.xlu1 %v11120_v55, %s11597_s1  ;;  %v11130_v55 = vpack.i.bf16 %v17095_v14, %v17094_v63  ;;  %v13126_v29 = vmul.f32 0.015625, %v2160_v50  ;;  %v2854_v50 = vld [vmem:[#allocation6 + $0x20] sm:$0xff] }
 0x28e   :  { %17089 = vst [vmem:[#allocation209_spill] sm:$0xff] %v13102_v34  ;;  %11116 = vrot.lane.b32.xlu0 %v11115_v15, %s11597_s1  ;;  %v2671_v43 = vmax.f32 %v13102_v34, 0.0  ;;  %v1824_v28 = vpop.permute.xlu1 %1823  ;;  %9977 = vmatprep.subr.bf16.mxu0 %v2800_v44  ;;  %v2894_v34 = vld [vmem:[#allocation6 + $0x160] sm:$0xff] }
 0x28f   :  { %v2177_v45 = vsel %vm2145_vm1, %v12497_v18, %v1824_v28  ;;  %17096 = vst [vmem:[#allocation212_spill] sm:$0xff] %v13126_v29  ;;  %v2672_v4 = vmax.f32 %v13126_v29, 0.0  ;;  %v2850_v28 = vld [vmem:[#allocation6] sm:$0xff] }
 0x290   :  { %v13118_v15 = vmul.f32 0.015625, %v2177_v45  ;;  %v2792_v17 = vpack.c.bf16 %v2671_v43, %v2670_v30  ;;  %v17100_v45 = vunpack.c.h.bf16 %v12809_v2  ;;  %v9391_v14 = vcombine.high %v2850_v28, %v2854_v50 }
 0x291   :  { %11126 = vrot.lane.b32.xlu1 %v11125_v52, %s11597_s1  ;;  %v17099_v52 = vunpack.c.l.bf16 %v12536_v1 }
 0x292   :  { %17093 = vst [vmem:[#allocation211_spill] sm:$0xff] %v13118_v15  ;;  %v2689_v19 = vmax.f32 %v13118_v15, 0.0  ;;  %v1792_v51 = vpop.permute.xlu1 %1791  ;;  %9978 = vmatpush3.bf16.msra.mxu0 %v2792_v17  ;;  %v17101_v17 = vunpack.c.l.bf16 %v12816_v7  ;;  %3810 = vmatprep.mubr.bf16.mxu0 %v9391_v14 }
 0x293   :  { %v2161_v18 = vsel %vm2145_vm1, %v12445_v56, %v1792_v51  ;;  %v11135_v56 = vpack.i.bf16 %v17099_v52, %v17098_v54  ;;  %v17102_v51 = vunpack.c.h.bf16 %v12548_v46  ;;  %v17106_v54 = vunpack.c.h.bf16 %v12816_v7 }
 0x294   :  { %v13131_v21 = vmul.f32 0.015625, %v2161_v18  ;;  %v2801_v60 = vpack.c.bf16 %v2689_v19, %v2688_v42  ;;  %v11145_v63 = vpack.i.bf16 %v17101_v17, %v17100_v45  ;;  %v17103_v18 = vunpack.c.l.bf16 %v12562_v57 }
 0x295   :  { %11131 = vrot.lane.b32.xlu1 %v11130_v55, %s11597_s1  ;;  %v9390_v55 = vcombine.low %v2850_v28, %v2854_v50  ;;  %v17107_v52 = vunpack.c.l.bf16 %v12548_v46  ;;  %v17110_v46 = vunpack.c.h.bf16 %v12574_v41  ;;  %v17111_v7 = vunpack.c.l.bf16 %v12586_v36 }
 0x296   :  { %17097 = vst [vmem:[#allocation213_spill] sm:$0xff] %v13131_v21  ;;  %v2673_v16 = vmax.f32 %v13131_v21, 0.0  ;;  %9979 = vmatprep.subr.bf16.mxu0 %v2801_v60  ;;  %v11155_v60 = vpack.i.bf16 %v17103_v18, %v17102_v51  ;;  %v17112_v17 = vunpack.c.h.bf16 %v12562_v57  ;;  %v17116_v18 = vunpack.c.h.bf16 %v12846_v24 }
 0x297   :  { %v11175_v45 = vpack.i.bf16 %v17111_v7, %v17110_v46  ;;  %v17117_v57 = vunpack.c.l.bf16 %v12858_v8  ;;  %v17129_v7 = vld [vmem:[#allocation142_spill] sm:$0xff] }
 0x298   :  { %v2793_v44 = vpack.c.bf16 %v2673_v16, %v2672_v4  ;;  %v17104_v4 = vunpack.c.h.bf16 %v12536_v1  ;;  %v17105_v16 = vunpack.c.l.bf16 %v12809_v2  ;;  %v17109_v1 = vunpack.c.l.bf16 %v12836_v59 }
 0x29a   :  { %9980 = vmatpush3.bf16.msra.mxu0 %v2793_v44  ;;  %v11140_v44 = vpack.i.bf16 %v17105_v16, %v17104_v4 }
 0x29d   :  { %3811 = vmatmul.mubr.bf16.vlgmr.msra.gmra.mrb[0].mxu0 %v9390_v55 }
 0x2c5   :  { %v1139_v12 = vpop.xlane.xlu0 %1138 }
 0x2c6   :  { %1857 = vrot.lane.b32.xlu0 %v1139_v12, %s11607_s15 }
 0x2c9   :  { %v1091_v30 = vpop.xlane.xlu0 %1090 }
 0x2ca   :  { %11136 = vrot.lane.b32.xlu0 %v11135_v56, %s11597_s1  ;;  %v11150_v56 = vpack.i.bf16 %v17107_v52, %v17106_v54  ;;  %v17122_v54 = vunpack.c.l.bf16 %v12846_v24 }
 0x2cd   :  { %v1094_v43 = vpop.xlane.xlu0 %1093 }
 0x2ce   :  { %1827 = vrot.lane.b32.xlu0 %v1094_v43, %s11607_s15 }
 0x2d1   :  { %v1142_v6 = vpop.xlane.xlu1 %1141  ;;  %v1145_v42 = vpop.xlane.xlu0 %1144 }
 0x2d2   :  { %11146 = vrot.lane.b32.xlu0 %v11145_v63, %s11597_s1  ;;  %1859 = vrot.lane.b32.xlu1 %v1142_v6, %s11607_s15  ;;  %v17113_v63 = vunpack.c.l.bf16 %v12826_v10  ;;  %v17114_v6 = vunpack.c.h.bf16 %v12836_v59  ;;  %v17119_v59 = vld [vmem:[#allocation137_spill] sm:$0xff] }
 0x2d3   :  { %v17120_v16 = vunpack.c.l.bf16 %v17119_v59 }
 0x2d4   :  { %v11160_v14 = vpack.i.bf16 %v17113_v63, %v17112_v17  ;;  %v17131_v63 = vunpack.c.h.bf16 %v17119_v59 }
 0x2d5   :  { %v1148_v19 = vpop.xlane.xlu1 %1147  ;;  %v1097_v43 = vpop.xlane.xlu0 %1096 }
 0x2d6   :  { %1861 = vrot.lane.b32.xlu0 %v1145_v42, %s11607_s15  ;;  %1825 = vrot.lane.b32.xlu1 %v1091_v30, %s11607_s15  ;;  %v17108_v30 = vunpack.c.h.bf16 %v12826_v10  ;;  %v17115_v42 = vunpack.c.l.bf16 %v12574_v41  ;;  %v17118_v41 = vunpack.c.h.bf16 %v12600_v13 }
 0x2d8   :  { %v11165_v28 = vpack.i.bf16 %v17109_v1, %v17108_v30  ;;  %v17124_v30 = vunpack.c.l.bf16 %v12600_v13  ;;  %v17127_v13 = vld [vmem:[#allocation139_spill] sm:$0xff] }
 0x2d9   :  { %v1100_v12 = vpop.xlane.xlu1 %1099  ;;  %v1151_v2 = vpop.xlane.xlu0 %1150 }
 0x2da   :  { %11156 = vrot.lane.b32.xlu0 %v11155_v60, %s11597_s1  ;;  %11141 = vrot.lane.b32.xlu1 %v11140_v44, %s11597_s1  ;;  %v11185_v60 = vpack.i.bf16 %v17117_v57, %v17116_v18  ;;  %v11195_v44 = vpack.i.bf16 %v17120_v16, %v17118_v41  ;;  %v17135_v57 = vunpack.c.h.bf16 %v12898_v9  ;;  %v17139_v16 = vld [vmem:[#allocation146_spill] sm:$0xff] }
 0x2dd   :  { %v1154_v50 = vpop.xlane.xlu1 %1153  ;;  %v1103_v51 = vpop.xlane.xlu0 %1102 }
 0x2de   :  { %1831 = vrot.lane.b32.xlu0 %v1100_v12, %s11607_s15  ;;  %11151 = vrot.lane.b32.xlu1 %v11150_v56, %s11597_s1  ;;  %v17121_v12 = vunpack.c.h.bf16 %v12586_v36  ;;  %v17126_v36 = vunpack.c.l.bf16 %v12888_v40 }
 0x2e0   :  { %v11180_v52 = vpack.i.bf16 %v17122_v54, %v17121_v12  ;;  %v17141_v54 = vunpack.c.h.bf16 %v17129_v7 }
 0x2e1   :  { %v1106_v55 = vpop.xlane.xlu1 %1105  ;;  %v1157_v10 = vpop.xlane.xlu0 %1156 }
 0x2e2   :  { %11166 = vrot.lane.b32.xlu0 %v11165_v28, %s11597_s1  ;;  %1863 = vrot.lane.b32.xlu1 %v1148_v19, %s11607_s15  ;;  %v11170_v19 = vpack.i.bf16 %v17115_v42, %v17114_v6 }
 0x2e5   :  { %v1160_v4 = vpop.xlane.xlu1 %1159  ;;  %v1109_v28 = vpop.xlane.xlu0 %1108 }
 0x2e6   :  { %1865 = vrot.lane.b32.xlu0 %v1151_v2, %s11607_s15  ;;  %1829 = vrot.lane.b32.xlu1 %v1097_v43, %s11607_s15  ;;  %v17123_v43 = vunpack.c.h.bf16 %v12858_v8  ;;  %v17125_v2 = vunpack.c.h.bf16 %v12868_v11  ;;  %v17128_v8 = vunpack.c.h.bf16 %v17127_v13 }
 0x2e8   :  { %v11190_v1 = vpack.i.bf16 %v17124_v30, %v17123_v43 }
 0x2e9   :  { %v1112_v56 = vpop.xlane.xlu1 %1111  ;;  %v1163_v24 = vpop.xlane.xlu0 %1162 }
 0x2ea   :  { %11176 = vrot.lane.b32.xlu0 %v11175_v45, %s11597_s1  ;;  %11161 = vrot.lane.b32.xlu1 %v11160_v14, %s11597_s1  ;;  %v17130_v45 = vunpack.c.l.bf16 %v17129_v7  ;;  %v17132_v14 = vunpack.c.l.bf16 %v12868_v11  ;;  %v17149_v7 = vld [vmem:[#allocation151_spill] sm:$0xff] }
 0x2ec   :  { %v11215_v17 = vpack.i.bf16 %v17130_v45, %v17128_v8  ;;  %v17150_v45 = vunpack.c.l.bf16 %v17149_v7 }
 0x2ed   :  { %v1166_v46 = vpop.xlane.xlu1 %1165  ;;  %v1115_v6 = vpop.xlane.xlu0 %1114 }
 0x2ee   :  { %1835 = vrot.lane.b32.xlu0 %v1106_v55, %s11607_s15  ;;  %11171 = vrot.lane.b32.xlu1 %v11170_v19, %s11597_s1  ;;  %v11200_v55 = vpack.i.bf16 %v17132_v14, %v17131_v63  ;;  %v17133_v19 = vunpack.c.h.bf16 %v12888_v40  ;;  %v17137_v40 = vld [vmem:[#allocation144_spill] sm:$0xff]  ;;  %v17151_v14 = vunpack.c.h.bf16 %v17139_v16 }
 0x2ef   :  { %v17138_v59 = vunpack.c.h.bf16 %v17137_v40 }
 0x2f1   :  { %v1118_v42 = vpop.xlane.xlu1 %1117  ;;  %v1169_v11 = vpop.xlane.xlu0 %1168 }
 0x2f2   :  { %11186 = vrot.lane.b32.xlu0 %v11185_v60, %s11597_s1  ;;  %1867 = vrot.lane.b32.xlu1 %v1154_v50, %s11607_s15  ;;  %v11205_v50 = vpack.i.bf16 %v17126_v36, %v17125_v2  ;;  %v17136_v60 = vunpack.c.l.bf16 %v12924_v27 }
 0x2f5   :  { %v1121_v41 = vpop.xlane.xlu0 %1120 }
 0x2f6   :  { %1869 = vrot.lane.b32.xlu0 %v1157_v10, %s11607_s15  ;;  %1833 = vrot.lane.b32.xlu1 %v1103_v51, %s11607_s15  ;;  %v17134_v51 = vunpack.c.l.bf16 %v17127_v13  ;;  %v11225_v10 = vpack.i.bf16 %v17136_v60, %v17135_v57 }
 0x2f8   :  { %v11210_v18 = vpack.i.bf16 %v17134_v51, %v17133_v19  ;;  %v17153_v19 = vunpack.c.h.bf16 %v12956_v35 }
 0x2f9   :  { %v1175_v30 = vpop.xlane.xlu0 %1174 }
 0x2fa   :  { %11196 = vrot.lane.b32.xlu0 %v11195_v44, %s11597_s1  ;;  %11181 = vrot.lane.b32.xlu1 %v11180_v52, %s11597_s1  ;;  %v17140_v44 = vunpack.c.l.bf16 %v17139_v16  ;;  %v17142_v52 = vunpack.c.l.bf16 %v12898_v9 }
 0x2fc   :  { %v11235_v12 = vpack.i.bf16 %v17140_v44, %v17138_v59 }
 0x2fe   :  { %1839 = vrot.lane.b32.xlu0 %v1112_v56, %s11607_s15  ;;  %11191 = vrot.lane.b32.xlu1 %v11190_v1, %s11597_s1  ;;  %v11220_v56 = vpack.i.bf16 %v17142_v52, %v17141_v54  ;;  %v17143_v1 = vunpack.c.h.bf16 %v12924_v27  ;;  %v17147_v27 = vld [vmem:[#allocation149_spill] sm:$0xff] }
 0x2ff   :  { %v17148_v8 = vunpack.c.h.bf16 %v17147_v27  ;;  %v17154_v51 = vunpack.c.l.bf16 %v17147_v27  ;;  %v17160_v54 = vld [vmem:[#allocation113_spill] sm:$0xff] }
 0x300   :  { %v17161_v52 = vunpack.c.l.bf16 %v17160_v54 }
 0x302   :  { %11206 = vrot.lane.b32.xlu0 %v11205_v50, %s11597_s1  ;;  %1871 = vrot.lane.b32.xlu1 %v1160_v4, %s11607_s15  ;;  %v1172_v4 = vpop.xlane.xlu1 %1171  ;;  %v17145_v50 = vunpack.c.h.bf16 %v12936_v62 }
 0x306   :  { %1873 = vrot.lane.b32.xlu0 %v1163_v24, %s11607_s15  ;;  %1837 = vrot.lane.b32.xlu1 %v1109_v28, %s11607_s15  ;;  %v1124_v43 = vpop.xlane.xlu1 %1123  ;;  %v17144_v28 = vunpack.c.l.bf16 %v17137_v40  ;;  %v17146_v24 = vunpack.c.l.bf16 %v12956_v35  ;;  %v17158_v40 = vunpack.c.l.bf16 %v12976_v49 }
 0x308   :  { %v11230_v2 = vpack.i.bf16 %v17144_v28, %v17143_v1  ;;  %v11245_v9 = vpack.i.bf16 %v17146_v24, %v17145_v50  ;;  %v17162_v1 = vld [vmem:[#allocation140_spill] sm:$0xff]  ;;  %v17164_v50 = vld [vmem:[#allocation121_spill] sm:$0xff] }
 0x30a   :  { %11216 = vrot.lane.b32.xlu0 %v11215_v17, %s11597_s1  ;;  %11201 = vrot.lane.b32.xlu1 %v11200_v55, %s11597_s1  ;;  %v1178_v36 = vpop.xlane.xlu1 %1177  ;;  %v11255_v17 = vpack.i.bf16 %v17150_v45, %v17148_v8  ;;  %v17152_v55 = vunpack.c.l.bf16 %v12936_v62 }
 0x30e   :  { %1843 = vrot.lane.b32.xlu0 %v1118_v42, %s11607_s15  ;;  %11211 = vrot.lane.b32.xlu1 %v11210_v18, %s11597_s1  ;;  %v1130_v13 = vpop.xlane.xlu1 %1129  ;;  %v11250_v18 = vpack.i.bf16 %v17154_v51, %v17153_v19 }
 0x312   :  { %11226 = vrot.lane.b32.xlu0 %v11225_v10, %s11597_s1  ;;  %1875 = vrot.lane.b32.xlu1 %v1166_v46, %s11607_s15  ;;  %v1127_v46 = vpop.xlane.xlu0 %1126  ;;  %v1184_v42 = vpop.xlane.xlu1 %1183  ;;  %v17155_v10 = vunpack.c.h.bf16 %v12976_v49 }
 0x316   :  { %1877 = vrot.lane.b32.xlu0 %v1169_v11, %s11607_s15  ;;  %1841 = vrot.lane.b32.xlu1 %v1115_v6, %s11607_s15  ;;  %v1181_v63 = vpop.xlane.xlu0 %1180  ;;  %v11240_v6 = vpack.i.bf16 %v17152_v55, %v17151_v14  ;;  %v1136_v60 = vpop.xlane.xlu1 %1135  ;;  %v17156_v11 = vunpack.c.l.bf16 %v12996_v22 }
 0x318   :  { %v11265_v62 = vpack.i.bf16 %v17156_v11, %v17155_v10  ;;  %v17170_v11 = vld [vmem:[#allocation143_spill] sm:$0xff] }
 0x31a   :  { %11236 = vrot.lane.b32.xlu0 %v11235_v12, %s11597_s1  ;;  %11221 = vrot.lane.b32.xlu1 %v11220_v56, %s11597_s1  ;;  %v1133_v57 = vpop.xlane.xlu0 %1132  ;;  %v13295_v35 = vpop.permute.xlu1 %11121  ;;  %v17159_v12 = vunpack.c.h.bf16 %v12996_v22 }
 0x31c   :  { %v11270_v56 = vpack.i.bf16 %v17161_v52, %v17159_v12  ;;  %v17173_v52 = vld [vmem:[#allocation123_spill] sm:$0xff] }
 0x31e   :  { %1847 = vrot.lane.b32.xlu0 %v1124_v43, %s11607_s15  ;;  %11231 = vrot.lane.b32.xlu1 %v11230_v2, %s11597_s1  ;;  %v13303_v44 = vpop.permute.xlu1 %11126 }
 0x322   :  { %11246 = vrot.lane.b32.xlu0 %v11245_v9, %s11597_s1  ;;  %1879 = vrot.lane.b32.xlu1 %v1172_v4, %s11607_s15  ;;  %v13292_v4 = vpop.permute.xlu0 %11116  ;;  %v17165_v9 = vld [vmem:[#allocation138_spill] sm:$0xff] }
 0x326   :  { %1881 = vrot.lane.b32.xlu0 %v1175_v30, %s11607_s15  ;;  %1845 = vrot.lane.b32.xlu1 %v1121_v41, %s11607_s15  ;;  %v17157_v41 = vunpack.c.h.bf16 %v17149_v7  ;;  %v13314_v30 = vpop.permute.xlu1 %11131 }
 0x328   :  { %v11260_v59 = vpack.i.bf16 %v17158_v40, %v17157_v41  ;;  %v17171_v41 = vld [vmem:[#allocation181_spill] sm:$0xff] }
 0x329   :  { %v11114_v40 = vunpack.i.h.bf16 %v17171_v41 }
 0x32a   :  { %11256 = vrot.lane.b32.xlu0 %v11255_v17, %s11597_s1  ;;  %11241 = vrot.lane.b32.xlu1 %v11240_v6, %s11597_s1 }
 0x32e   :  { %1851 = vrot.lane.b32.xlu0 %v1130_v13, %s11607_s15  ;;  %11251 = vrot.lane.b32.xlu1 %v11250_v18, %s11597_s1 }
 0x332   :  { %11266 = vrot.lane.b32.xlu0 %v11265_v62, %s11597_s1  ;;  %1883 = vrot.lane.b32.xlu1 %v1178_v36, %s11607_s15 }
 0x336   :  { %1885 = vrot.lane.b32.xlu0 %v1181_v63, %s11607_s15  ;;  %1849 = vrot.lane.b32.xlu1 %v1127_v46, %s11607_s15  ;;  %v17168_v63 = vld [vmem:[#allocation122_spill] sm:$0xff] }
 0x338   :  { %v1858_v16 = vpop.permute.xlu0 %1857 }
 0x339   :  { %v2194_v28 = vsel %vm2145_vm1, %v17162_v1, %v1858_v16 }
 0x33a   :  { %1853 = vrot.lane.b32.xlu0 %v1133_v57, %s11607_s15  ;;  %11261 = vrot.lane.b32.xlu1 %v11260_v59, %s11597_s1  ;;  %v13321_v36 = vmul.f32 0.015625, %v2194_v28 }
 0x33c   :  { %v13311_v43 = vpop.permute.xlu0 %11136  ;;  %17163 = vst [vmem:[#allocation137_spill] sm:$0xff] %v13321_v36  ;;  %v2706_v8 = vmax.f32 %v13321_v36, 0.0  ;;  %v17196_v36 = vld [vmem:[#allocation128_spill] sm:$0xff] }
 0x33e   :  { %11271 = vrot.lane.b32.xlu1 %v11270_v56, %s11597_s1 }
 0x340   :  { %v1828_v49 = vpop.permute.xlu0 %1827 }
 0x341   :  { %v2179_v24 = vsel %vm2145_vm1, %v17164_v50, %v1828_v49  ;;  %v17174_v49 = vld [vmem:[#allocation141_spill] sm:$0xff]  ;;  %v1489_v50 = vsel %vm223_vm0, %v11114_v40, 0.0 }
 0x342   :  { %1887 = vrot.lane.b32.xlu1 %v1184_v42, %s11607_s15  ;;  %v13331_v7 = vmul.f32 0.015625, %v2179_v24 }
 0x344   :  { %v13319_v2 = vpop.permute.xlu0 %11146  ;;  %v1860_v22 = vpop.permute.xlu1 %1859  ;;  %17167 = vst [vmem:[#allocation142_spill] sm:$0xff] %v13331_v7  ;;  %v2691_v19 = vmax.f32 %v13331_v7, 0.0  ;;  %v17223_v7 = vld [vmem:[#allocation134_spill] sm:$0xff] }
 0x345   :  { %v2195_v46 = vsel %vm2145_vm1, %v17165_v9, %v1860_v22 }
 0x346   :  { %v13327_v13 = vmul.f32 0.015625, %v2195_v46  ;;  %1855 = vrot.lane.b32.xlu1 %v1136_v60, %s11607_s15 }
 0x348   :  { %17166 = vst [vmem:[#allocation139_spill] sm:$0xff] %v13327_v13  ;;  %v1862_v27 = vpop.permute.xlu0 %1861  ;;  %v2707_v45 = vmax.f32 %v13327_v13, 0.0  ;;  %v1826_v17 = vpop.permute.xlu1 %1825  ;;  %v11133_v13 = vunpack.i.l.bf16 %v13314_v30 }
 0x349   :  { %v2178_v14 = vsel %vm2145_vm1, %v17168_v63, %v1826_v17  ;;  %v2196_v62 = vsel %vm2145_vm1, %v17170_v11, %v1862_v27 }
 0x34a   :  { %v13336_v55 = vmul.f32 0.015625, %v2178_v14  ;;  %v2810_v6 = vpack.c.bf16 %v2707_v45, %v2706_v8  ;;  %v13351_v16 = vmul.f32 0.015625, %v2196_v62  ;;  %v17177_v8 = vld [vmem:[#allocation124_spill] sm:$0xff]  ;;  %v17179_v62 = vld [vmem:[#allocation147_spill] sm:$0xff] }
 0x34c   :  { %17169 = vst [vmem:[#allocation144_spill] sm:$0xff] %v13336_v55  ;;  %v13338_v42 = vpop.permute.xlu0 %11156  ;;  %v2690_v51 = vmax.f32 %v13336_v55, 0.0  ;;  %v13342_v18 = vpop.permute.xlu1 %11141  ;;  %10077 = vmatprep.subr.bf16.mxu0 %v2810_v6  ;;  %17172 = vst [vmem:[#allocation146_spill] sm:$0xff] %v13351_v16  ;;  %v2708_v24 = vmax.f32 %v13351_v16, 0.0 }
 0x34d   :  { %v11159_v15 = vunpack.i.h.bf16 %v13338_v42 }
 0x34e   :  { %v2802_v57 = vpack.c.bf16 %v2691_v19, %v2690_v51 }
 0x350   :  { %v1832_v60 = vpop.permute.xlu0 %1831  ;;  %v13344_v10 = vpop.permute.xlu1 %11151  ;;  %10078 = vmatpush3.bf16.msra.mxu0 %v2802_v57 }
 0x351   :  { %v2181_v56 = vsel %vm2145_vm1, %v17173_v52, %v1832_v60 }
 0x352   :  { %v13361_v9 = vmul.f32 0.015625, %v2181_v56 }
 0x354   :  { %v13349_v59 = vpop.permute.xlu0 %11166  ;;  %v1864_v12 = vpop.permute.xlu1 %1863  ;;  %17176 = vst [vmem:[#allocation151_spill] sm:$0xff] %v13361_v9  ;;  %v2693_v6 = vmax.f32 %v13361_v9, 0.0  ;;  %v17211_v9 = vld [vmem:[#allocation131_spill] sm:$0xff] }
 0x355   :  { %v2197_v1 = vsel %vm2145_vm1, %v17174_v49, %v1864_v12  ;;  %v11118_v49 = vunpack.i.l.bf16 %v13292_v4 }
 0x356   :  { %v13357_v28 = vmul.f32 0.015625, %v2197_v1  ;;  %v17181_v1 = vld [vmem:[#allocation125_spill] sm:$0xff] }
 0x358   :  { %17175 = vst [vmem:[#allocation149_spill] sm:$0xff] %v13357_v28  ;;  %v1866_v22 = vpop.permute.xlu0 %1865  ;;  %v2709_v46 = vmax.f32 %v13357_v28, 0.0  ;;  %v1830_v27 = vpop.permute.xlu1 %1829 }
 0x359   :  { %1490 = vadd.xlane.f32.xlu0 %v1489_v50  ;;  %v2180_v45 = vsel %vm2145_vm1, %v17177_v8, %v1830_v27  ;;  %v2198_v40 = vsel %vm2145_vm1, %v17179_v62, %v1866_v22 }
 0x35a   :  { %v13366_v17 = vmul.f32 0.015625, %v2180_v45  ;;  %v2811_v63 = vpack.c.bf16 %v2709_v46, %v2708_v24  ;;  %v13380_v52 = vmul.f32 0.015625, %v2198_v40  ;;  %v17182_v24 = vld [vmem:[#allocation145_spill] sm:$0xff] }
 0x35c   :  { %17178 = vst [vmem:[#allocation113_spill] sm:$0xff] %v13366_v17  ;;  %v13368_v14 = vpop.permute.xlu0 %11176  ;;  %v2692_v19 = vmax.f32 %v13366_v17, 0.0  ;;  %v13372_v51 = vpop.permute.xlu1 %11161  ;;  %10079 = vmatprep.subr.bf16.mxu0 %v2811_v63  ;;  %17180 = vst [vmem:[#allocation140_spill] sm:$0xff] %v13380_v52  ;;  %v2710_v45 = vmax.f32 %v13380_v52, 0.0  ;;  %v17212_v17 = vld [vmem:[#allocation154_spill] sm:$0xff] }
 0x35e   :  { %v2803_v57 = vpack.c.bf16 %v2693_v6, %v2692_v19  ;;  %v11119_v19 = vunpack.i.h.bf16 %v13292_v4 }
 0x360   :  { %v1836_v60 = vpop.permute.xlu0 %1835  ;;  %v13374_v11 = vpop.permute.xlu1 %11171  ;;  %10080 = vmatpush3.bf16.msra.mxu0 %v2803_v57  ;;  %v17185_v57 = vld [vmem:[#allocation126_spill] sm:$0xff] }
 0x361   :  { %v2183_v50 = vsel %vm2145_vm1, %v17181_v1, %v1836_v60  ;;  %v1492_v60 = vsel %vm223_vm0, %v11118_v49, 0.0  ;;  %v17187_v1 = vunpack.c.h.bf16 %v17160_v54  ;;  %v11123_v49 = vunpack.i.l.bf16 %v13295_v35 }
 0x362   :  { %v13390_v63 = vmul.f32 0.015625, %v2183_v50 }
 0x364   :  { %v13378_v12 = vpop.permute.xlu0 %11186  ;;  %v1868_v56 = vpop.permute.xlu1 %1867  ;;  %17184 = vst [vmem:[#allocation138_spill] sm:$0xff] %v13390_v63 }
 0x365   :  { %v2199_v46 = vsel %vm2145_vm1, %v17182_v24, %v1868_v56  ;;  %v17188_v24 = vld [vmem:[#allocation114_spill] sm:$0xff] }
 0x366   :  { %v13387_v27 = vmul.f32 0.015625, %v2199_v46  ;;  %v17189_v46 = vunpack.c.l.bf16 %v17188_v24 }
 0x368   :  { %17183 = vst [vmem:[#allocation121_spill] sm:$0xff] %v13387_v27  ;;  %v1870_v8 = vpop.permute.xlu0 %1869  ;;  %v2711_v22 = vmax.f32 %v13387_v27, 0.0  ;;  %v1834_v6 = vpop.permute.xlu1 %1833  ;;  %v11275_v50 = vpack.i.bf16 %v17189_v46, %v17187_v1  ;;  %v2695_v27 = vmax.f32 %v13390_v63, 0.0  ;;  %v1444_v1 = vsel %vm223_vm0, %v11123_v49, 0.0 }
 0x369   :  { %v2182_v62 = vsel %vm2145_vm1, %v17185_v57, %v1834_v6  ;;  %v1441_v6 = vsel %vm223_vm0, %v11119_v19, 0.0  ;;  %v11128_v19 = vunpack.i.l.bf16 %v13303_v44 }
 0x36a   :  { %v13397_v40 = vmul.f32 0.015625, %v2182_v62  ;;  %1493 = vadd.xlane.f32.xlu1 %v1492_v60  ;;  %v2812_v56 = vpack.c.bf16 %v2711_v22, %v2710_v45  ;;  %v11124_v22 = vunpack.i.h.bf16 %v13295_v35  ;;  %v17190_v62 = vld [vmem:[#allocation150_spill] sm:$0xff] }
 0x36b   :  { %v2200_v60 = vsel %vm2145_vm1, %v17190_v62, %v1870_v8 }
 0x36c   :  { %17186 = vst [vmem:[#allocation122_spill] sm:$0xff] %v13397_v40  ;;  %v13403_v52 = vpop.permute.xlu0 %11196  ;;  %v2694_v4 = vmax.f32 %v13397_v40, 0.0  ;;  %v13407_v28 = vpop.permute.xlu1 %11181  ;;  %10081 = vmatprep.subr.bf16.mxu0 %v2812_v56  ;;  %v13420_v46 = vmul.f32 0.015625, %v2200_v60  ;;  %v1585_v35 = vsel %vm223_vm0, %v11124_v22, 0.0  ;;  %v17204_v40 = vld [vmem:[#allocation130_spill] sm:$0xff] }
 0x36e   :  { %v2804_v57 = vpack.c.bf16 %v2695_v27, %v2694_v4  ;;  %1442 = vadd.xlane.f32.xlu1 %v1441_v6  ;;  %17191 = vst [vmem:[#allocation143_spill] sm:$0xff] %v13420_v46  ;;  %v17193_v6 = vld [vmem:[#allocation148_spill] sm:$0xff]  ;;  %v2712_v49 = vmax.f32 %v13420_v46, 0.0  ;;  %v1540_v46 = vsel %vm223_vm0, %v11133_v13, 0.0  ;;  %v17200_v13 = vld [vmem:[#allocation129_spill] sm:$0xff] }
 0x36f   :  { %11276 = vrot.lane.b32.xlu0 %v11275_v50, %s11597_s1  ;;  %v17192_v50 = vld [vmem:[#allocation127_spill] sm:$0xff] }
 0x370   :  { %v1840_v54 = vpop.permute.xlu0 %1839  ;;  %v13412_v45 = vpop.permute.xlu1 %11191  ;;  %10082 = vmatpush3.bf16.msra.mxu0 %v2804_v57 }
 0x371   :  { %v2185_v4 = vsel %vm2145_vm1, %v17192_v50, %v1840_v54 }
 0x372   :  { %1445 = vadd.xlane.f32.xlu1 %v1444_v1  ;;  %v13431_v62 = vmul.f32 0.015625, %v2185_v4 }
 0x374   :  { %v13418_v56 = vpop.permute.xlu0 %11206  ;;  %v1872_v27 = vpop.permute.xlu1 %1871  ;;  %17195 = vst [vmem:[#allocation123_spill] sm:$0xff] %v13431_v62 }
 0x375   :  { %v2201_v57 = vsel %vm2145_vm1, %v17193_v6, %v1872_v27  ;;  %v1588_v27 = vsel %vm223_vm0, %v11128_v19, 0.0 }
 0x376   :  { %v13428_v16 = vmul.f32 0.015625, %v2201_v57  ;;  %1586 = vadd.xlane.f32.xlu1 %v1585_v35  ;;  %v2697_v57 = vmax.f32 %v13431_v62, 0.0 }
 0x378   :  { %17194 = vst [vmem:[#allocation181_spill] sm:$0xff] %v13428_v16  ;;  %v1874_v8 = vpop.permute.xlu0 %1873  ;;  %v2713_v60 = vmax.f32 %v13428_v16, 0.0  ;;  %v1838_v1 = vpop.permute.xlu1 %1837  ;;  %v11134_v16 = vunpack.i.h.bf16 %v13314_v30 }
 0x379   :  { %v2184_v54 = vsel %vm2145_vm1, %v17196_v36, %v1838_v1 }
 0x37a   :  { %v13438_v50 = vmul.f32 0.015625, %v2184_v54  ;;  %1589 = vadd.xlane.f32.xlu1 %v1588_v27  ;;  %v2813_v22 = vpack.c.bf16 %v2713_v60, %v2712_v49  ;;  %v11138_v49 = vunpack.i.l.bf16 %v13311_v43  ;;  %v17198_v60 = vld [vmem:[#allocation153_spill] sm:$0xff]  ;;  %v1495_v27 = vsel %vm223_vm0, %v11134_v16, 0.0 }
 0x37b   :  { %v2202_v54 = vsel %vm2145_vm1, %v17198_v60, %v1874_v8  ;;  %v11129_v16 = vunpack.i.h.bf16 %v13303_v44 }
 0x37c   :  { %17197 = vst [vmem:[#allocation141_spill] sm:$0xff] %v13438_v50  ;;  %v13440_v6 = vpop.permute.xlu0 %11216  ;;  %v2696_v4 = vmax.f32 %v13438_v50, 0.0  ;;  %v13444_v35 = vpop.permute.xlu1 %11201  ;;  %10083 = vmatprep.subr.bf16.mxu0 %v2813_v22  ;;  %v13456_v22 = vmul.f32 0.015625, %v2202_v54 }
 0x37e   :  { %v2805_v36 = vpack.c.bf16 %v2697_v57, %v2696_v4  ;;  %1541 = vadd.xlane.f32.xlu1 %v1540_v46  ;;  %17199 = vst [vmem:[#allocation124_spill] sm:$0xff] %v13456_v22  ;;  %v17201_v57 = vld [vmem:[#allocation152_spill] sm:$0xff]  ;;  %v2714_v60 = vmax.f32 %v13456_v22, 0.0 }
 0x380   :  { %v1844_v19 = vpop.permute.xlu0 %1843  ;;  %v13448_v1 = vpop.permute.xlu1 %11211  ;;  %10084 = vmatpush3.bf16.msra.mxu0 %v2805_v36  ;;  %v1498_v36 = vsel %vm223_vm0, %v11138_v49, 0.0 }
 0x381   :  { %v2187_v46 = vsel %vm2145_vm1, %v17200_v13, %v1844_v19 }
 0x382   :  { %1496 = vadd.xlane.f32.xlu1 %v1495_v27  ;;  %v13467_v27 = vmul.f32 0.015625, %v2187_v46  ;;  %v1537_v46 = vsel %vm223_vm0, %v11129_v16, 0.0 }
 0x384   :  { %v13454_v62 = vpop.permute.xlu0 %11226  ;;  %v1876_v30 = vpop.permute.xlu1 %1875  ;;  %17203 = vst [vmem:[#allocation125_spill] sm:$0xff] %v13467_v27 }
 0x385   :  { %v2203_v4 = vsel %vm2145_vm1, %v17201_v57, %v1876_v30  ;;  %v11139_v57 = vunpack.i.h.bf16 %v13311_v43  ;;  %v17206_v43 = vld [vmem:[#allocation155_spill] sm:$0xff] }
 0x386   :  { %v13463_v50 = vmul.f32 0.015625, %v2203_v4  ;;  %1499 = vadd.xlane.f32.xlu1 %v1498_v36  ;;  %v2699_v4 = vmax.f32 %v13467_v27, 0.0  ;;  %v17208_v27 = vld [vmem:[#allocation115_spill] sm:$0xff] }
 0x387   :  { %v17209_v16 = vunpack.c.l.bf16 %v17208_v27 }
 0x388   :  { %17202 = vst [vmem:[#allocation147_spill] sm:$0xff] %v13463_v50  ;;  %v1878_v8 = vpop.permute.xlu0 %1877  ;;  %v2715_v54 = vmax.f32 %v13463_v50, 0.0  ;;  %v1842_v63 = vpop.permute.xlu1 %1841 }
 0x389   :  { %v2186_v19 = vsel %vm2145_vm1, %v17204_v40, %v1842_v63  ;;  %v11144_v63 = vunpack.i.h.bf16 %v13342_v18 }
 0x38a   :  { %v13472_v13 = vmul.f32 0.015625, %v2186_v19  ;;  %v2814_v30 = vpack.c.bf16 %v2715_v54, %v2714_v60  ;;  %v1447_v60 = vsel %vm223_vm0, %v11139_v57, 0.0  ;;  %v2204_v54 = vsel %vm2145_vm1, %v17206_v43, %v1878_v8 }
 0x38c   :  { %17205 = vst [vmem:[#allocation145_spill] sm:$0xff] %v13472_v13  ;;  %v13474_v49 = vpop.permute.xlu0 %11236  ;;  %v2698_v44 = vmax.f32 %v13472_v13, 0.0  ;;  %v13479_v36 = vpop.permute.xlu1 %11221  ;;  %10085 = vmatprep.subr.bf16.mxu0 %v2814_v30  ;;  %v17207_v30 = vunpack.c.h.bf16 %v17188_v24  ;;  %v11149_v24 = vunpack.i.h.bf16 %v13319_v2 }
 0x38e   :  { %1538 = vadd.xlane.f32.xlu0 %v1537_v46  ;;  %v2806_v50 = vpack.c.bf16 %v2699_v4, %v2698_v44  ;;  %v11280_v46 = vpack.i.bf16 %v17209_v16, %v17207_v30  ;;  %v11148_v4 = vunpack.i.l.bf16 %v13319_v2  ;;  %v13495_v44 = vmul.f32 0.015625, %v2204_v54 }
 0x390   :  { %v1848_v22 = vpop.permute.xlu0 %1847  ;;  %v13483_v40 = vpop.permute.xlu1 %11231  ;;  %10086 = vmatpush3.bf16.msra.mxu0 %v2806_v50  ;;  %17210 = vst [vmem:[#allocation126_spill] sm:$0xff] %v13495_v44  ;;  %v1591_v50 = vsel %vm223_vm0, %v11144_v63, 0.0  ;;  %v2716_v54 = vmax.f32 %v13495_v44, 0.0 }
 0x391   :  { %v2189_v57 = vsel %vm2145_vm1, %v17211_v9, %v1848_v22  ;;  %v1594_v9 = vsel %vm223_vm0, %v11148_v4, 0.0  ;;  %v17215_v22 = vld [vmem:[#allocation132_spill] sm:$0xff]  ;;  %v1543_v4 = vsel %vm223_vm0, %v11149_v24, 0.0 }
 0x392   :  { %1448 = vadd.xlane.f32.xlu0 %v1447_v60  ;;  %v13507_v30 = vmul.f32 0.015625, %v2189_v57 }
 0x394   :  { %v13488_v19 = vpop.permute.xlu0 %11246  ;;  %v1880_v13 = vpop.permute.xlu1 %1879  ;;  %17214 = vst [vmem:[#allocation150_spill] sm:$0xff] %v13507_v30 }
 0x395   :  { %v2205_v8 = vsel %vm2145_vm1, %v17212_v17, %v1880_v13 }
 0x396   :  { %1592 = vadd.xlane.f32.xlu0 %v1591_v50  ;;  %v13502_v60 = vmul.f32 0.015625, %v2205_v8  ;;  %v2701_v8 = vmax.f32 %v13507_v30, 0.0  ;;  %v11158_v30 = vunpack.i.l.bf16 %v13338_v42  ;;  %v1453_v42 = vsel %vm223_vm0, %v11159_v15, 0.0 }
 0x397   :  { %11281 = vrot.lane.b32.xlu1 %v11280_v46, %s11597_s1  ;;  %v11153_v46 = vunpack.i.l.bf16 %v13344_v10  ;;  %v11174_v15 = vunpack.i.h.bf16 %v13374_v11 }
 0x398   :  { %17213 = vst [vmem:[#allocation114_spill] sm:$0xff] %v13502_v60  ;;  %v1882_v43 = vpop.permute.xlu0 %1881  ;;  %v2717_v63 = vmax.f32 %v13502_v60, 0.0  ;;  %v1846_v16 = vpop.permute.xlu1 %1845 }
 0x399   :  { %v2188_v17 = vsel %vm2145_vm1, %v17215_v22, %v1846_v16  ;;  %v11154_v16 = vunpack.i.h.bf16 %v13344_v10 }
 0x39a   :  { %1595 = vadd.xlane.f32.xlu0 %v1594_v9  ;;  %v13513_v13 = vmul.f32 0.015625, %v2188_v17  ;;  %v2815_v50 = vpack.c.bf16 %v2717_v63, %v2716_v54  ;;  %v1546_v54 = vsel %vm223_vm0, %v11153_v46, 0.0  ;;  %v17217_v63 = vld [vmem:[#allocation157_spill] sm:$0xff] }
 0x39b   :  { %v2206_v17 = vsel %vm2145_vm1, %v17217_v63, %v1882_v43  ;;  %v1501_v24 = vsel %vm223_vm0, %v11154_v16, 0.0  ;;  %v1504_v16 = vsel %vm223_vm0, %v11158_v30, 0.0  ;;  %v17225_v30 = vld [vmem:[#allocation159_spill] sm:$0xff] }
 0x39c   :  { %17216 = vst [vmem:[#allocation127_spill] sm:$0xff] %v13513_v13  ;;  %v13515_v2 = vpop.permute.xlu0 %11256  ;;  %v2700_v57 = vmax.f32 %v13513_v13, 0.0  ;;  %v13520_v44 = vpop.permute.xlu1 %11241  ;;  %10087 = vmatprep.subr.bf16.mxu0 %v2815_v50  ;;  %v13530_v13 = vmul.f32 0.015625, %v2206_v17 }
 0x39e   :  { %1544 = vadd.xlane.f32.xlu0 %v1543_v4  ;;  %v2807_v60 = vpack.c.bf16 %v2701_v8, %v2700_v57  ;;  %17218 = vst [vmem:[#allocation148_spill] sm:$0xff] %v13530_v13  ;;  %v17219_v8 = vld [vmem:[#allocation133_spill] sm:$0xff]  ;;  %v17220_v57 = vld [vmem:[#allocation156_spill] sm:$0xff]  ;;  %v2718_v43 = vmax.f32 %v13530_v13, 0.0 }
 0x3a0   :  { %v1852_v9 = vpop.permute.xlu0 %1851  ;;  %v13524_v22 = vpop.permute.xlu1 %11251  ;;  %10088 = vmatpush3.bf16.msra.mxu0 %v2807_v60 }
 0x3a1   :  { %v2191_v10 = vsel %vm2145_vm1, %v17219_v8, %v1852_v9 }
 0x3a2   :  { %1547 = vadd.xlane.f32.xlu0 %v1546_v54  ;;  %v13542_v54 = vmul.f32 0.015625, %v2191_v10 }
 0x3a4   :  { %v1884_v50 = vpop.permute.xlu1 %1883  ;;  %v13537_v60 = vpop.permute.xlu0 %11266  ;;  %17222 = vst [vmem:[#allocation153_spill] sm:$0xff] %v13542_v54 }
 0x3a5   :  { %v2207_v4 = vsel %vm2145_vm1, %v17220_v57, %v1884_v50 }
 0x3a6   :  { %1502 = vadd.xlane.f32.xlu0 %v1501_v24  ;;  %v13539_v46 = vmul.f32 0.015625, %v2207_v4  ;;  %v2703_v24 = vmax.f32 %v13542_v54, 0.0 }
 0x3a8   :  { %17221 = vst [vmem:[#allocation128_spill] sm:$0xff] %v13539_v46  ;;  %v2719_v63 = vmax.f32 %v13539_v46, 0.0  ;;  %v1850_v17 = vpop.permute.xlu1 %1849  ;;  %v1886_v57 = vpop.permute.xlu0 %1885 }
 0x3a9   :  { %v2190_v9 = vsel %vm2145_vm1, %v17223_v7, %v1850_v17  ;;  %v2208_v55 = vsel %vm2145_vm1, %v17225_v30, %v1886_v57 }
 0x3aa   :  { %1505 = vadd.xlane.f32.xlu0 %v1504_v16  ;;  %v13548_v8 = vmul.f32 0.015625, %v2190_v9  ;;  %v2816_v50 = vpack.c.bf16 %v2719_v63, %v2718_v43  ;;  %v13558_v17 = vmul.f32 0.015625, %v2208_v55  ;;  %v17227_v43 = vld [vmem:[#allocation136_spill] sm:$0xff]  ;;  %v17228_v9 = vld [vmem:[#allocation158_spill] sm:$0xff]  ;;  %v17231_v55 = vld [vmem:[#allocation135_spill] sm:$0xff] }
 0x3ac   :  { %17224 = vst [vmem:[#allocation129_spill] sm:$0xff] %v13548_v8  ;;  %v2702_v4 = vmax.f32 %v13548_v8, 0.0  ;;  %v13552_v13 = vpop.permute.xlu1 %11261  ;;  %10089 = vmatprep.subr.bf16.mxu0 %v2816_v50  ;;  %v1854_v7 = vpop.permute.xlu0 %1853  ;;  %17226 = vst [vmem:[#allocation152_spill] sm:$0xff] %v13558_v17  ;;  %v11143_v8 = vunpack.i.l.bf16 %v13342_v18  ;;  %v17233_v18 = vunpack.c.h.bf16 %v17208_v27 }
 0x3ad   :  { %v2192_v63 = vsel %vm2145_vm1, %v17227_v43, %v1854_v7 }
 0x3ae   :  { %v2808_v10 = vpack.c.bf16 %v2703_v24, %v2702_v4  ;;  %v2720_v24 = vmax.f32 %v13558_v17, 0.0  ;;  %v13568_v4 = vmul.f32 0.015625, %v2192_v63 }
 0x3b0   :  { %v13554_v46 = vpop.permute.xlu1 %11271  ;;  %10090 = vmatpush3.bf16.msra.mxu0 %v2808_v10  ;;  %17230 = vst [vmem:[#allocation155_spill] sm:$0xff] %v13568_v4  ;;  %v2704_v17 = vmax.f32 %v13568_v4, 0.0 }
 0x3b4   :  { %v1888_v16 = vpop.permute.xlu1 %1887 }
 0x3b5   :  { %v2209_v54 = vsel %vm2145_vm1, %v17228_v9, %v1888_v16  ;;  %v1450_v16 = vsel %vm223_vm0, %v11143_v8, 0.0  ;;  %v11164_v8 = vunpack.i.h.bf16 %v13372_v51 }
 0x3b6   :  { %v13565_v50 = vmul.f32 0.015625, %v2209_v54  ;;  %v17234_v54 = vld [vmem:[#allocation116_spill] sm:$0xff] }
 0x3b7   :  { %v17235_v9 = vunpack.c.l.bf16 %v17234_v54 }
 0x3b8   :  { %17229 = vst [vmem:[#allocation130_spill] sm:$0xff] %v13565_v50  ;;  %v2721_v57 = vmax.f32 %v13565_v50, 0.0  ;;  %v1856_v10 = vpop.permute.xlu1 %1855 }
 0x3b9   :  { %v2193_v30 = vsel %vm2145_vm1, %v17231_v55, %v1856_v10  ;;  %v11285_v63 = vpack.i.bf16 %v17235_v9, %v17233_v18  ;;  %v11163_v10 = vunpack.i.l.bf16 %v13372_v51  ;;  %v11178_v51 = vunpack.i.l.bf16 %v13368_v14 }
 0x3ba   :  { %v13574_v7 = vmul.f32 0.015625, %v2193_v30  ;;  %v2817_v43 = vpack.c.bf16 %v2721_v57, %v2720_v24  ;;  %v11168_v24 = vunpack.i.l.bf16 %v13349_v59  ;;  %v1597_v57 = vsel %vm223_vm0, %v11164_v8, 0.0 }
 0x3bb   :  { %1451 = vadd.xlane.f32.xlu1 %v1450_v16  ;;  %v1456_v27 = vsel %vm223_vm0, %v11163_v10, 0.0  ;;  %v11173_v30 = vunpack.i.l.bf16 %v13374_v11  ;;  %v1507_v16 = vsel %vm223_vm0, %v11174_v15, 0.0  ;;  %v11169_v18 = vunpack.i.h.bf16 %v13349_v59 }
 0x3bc   :  { %17232 = vst [vmem:[#allocation115_spill] sm:$0xff] %v13574_v7  ;;  %v2705_v50 = vmax.f32 %v13574_v7, 0.0  ;;  %10091 = vmatprep.subr.bf16.mxu0 %v2817_v43  ;;  %v1510_v43 = vsel %vm223_vm0, %v11178_v51, 0.0  ;;  %v11179_v9 = vunpack.i.h.bf16 %v13368_v14  ;;  %v11184_v11 = vunpack.i.h.bf16 %v13407_v28 }
 0x3bd   :  { %v11189_v59 = vunpack.i.h.bf16 %v13378_v12 }
 0x3be   :  { %v2809_v55 = vpack.c.bf16 %v2705_v50, %v2704_v17  ;;  %v1600_v17 = vsel %vm223_vm0, %v11168_v24, 0.0  ;;  %v1552_v50 = vsel %vm223_vm0, %v11173_v30, 0.0  ;;  %v1459_v10 = vsel %vm223_vm0, %v11179_v9, 0.0  ;;  %v17240_v9 = vld [vmem:[#allocation118_spill] sm:$0xff] }
 0x3bf   :  { %1454 = vadd.xlane.f32.xlu1 %v1453_v42  ;;  %v17237_v42 = vld [vmem:[#allocation117_spill] sm:$0xff]  ;;  %v11188_v24 = vunpack.i.l.bf16 %v13378_v12  ;;  %v11193_v30 = vunpack.i.l.bf16 %v13412_v45 }
 0x3c0   :  { %11286 = vrot.lane.b32.xlu0 %v11285_v63, %s11597_s1  ;;  %10092 = vmatpush3.bf16.msra.mxu0 %v2809_v55  ;;  %v1549_v63 = vsel %vm223_vm0, %v11169_v18, 0.0  ;;  %v17236_v55 = vunpack.c.h.bf16 %v17234_v54  ;;  %v17238_v8 = vunpack.c.l.bf16 %v17237_v42  ;;  %v11194_v54 = vunpack.i.h.bf16 %v13412_v45 }
 0x3c1   :  { %v1606_v14 = vsel %vm223_vm0, %v11188_v24, 0.0  ;;  %v1558_v15 = vsel %vm223_vm0, %v11193_v30, 0.0  ;;  %v17239_v45 = vunpack.c.h.bf16 %v17237_v42  ;;  %v11213_v42 = vunpack.i.l.bf16 %v13448_v1 }
 0x3c2   :  { %v1513_v51 = vsel %vm223_vm0, %v11194_v54, 0.0  ;;  %v11219_v54 = vunpack.i.h.bf16 %v13440_v6 }
 0x3c3   :  { %1457 = vadd.xlane.f32.xlu1 %v1456_v27  ;;  %v11290_v27 = vpack.i.bf16 %v17238_v8, %v17236_v55  ;;  %v11204_v8 = vunpack.i.h.bf16 %v13444_v35 }
 0x3c7   :  { %1598 = vadd.xlane.f32.xlu1 %v1597_v57  ;;  %v1603_v57 = vsel %vm223_vm0, %v11184_v11, 0.0 }
 0x3cb   :  { %1601 = vadd.xlane.f32.xlu1 %v1600_v17  ;;  %v1555_v17 = vsel %vm223_vm0, %v11189_v59, 0.0  ;;  %v1564_v59 = vsel %vm223_vm0, %v11213_v42, 0.0  ;;  %v17245_v42 = vld [vmem:[#allocation119_spill] sm:$0xff] }
 0x3cf   :  { %1553 = vadd.xlane.f32.xlu1 %v1552_v50  ;;  %v11198_v50 = vunpack.i.l.bf16 %v13403_v52 }
 0x3d1   :  { %v1516_v12 = vsel %vm223_vm0, %v11198_v50, 0.0  ;;  %v1471_v50 = vsel %vm223_vm0, %v11219_v54, 0.0  ;;  %v11244_v54 = vunpack.i.h.bf16 %v13520_v44 }
 0x3d3   :  { %1508 = vadd.xlane.f32.xlu1 %v1507_v16  ;;  %v11183_v16 = vunpack.i.l.bf16 %v13407_v28 }
 0x3d5   :  { %v1462_v18 = vsel %vm223_vm0, %v11183_v16, 0.0 }
 0x3d7   :  { %1511 = vadd.xlane.f32.xlu1 %v1510_v43  ;;  %v11199_v43 = vunpack.i.h.bf16 %v13403_v52  ;;  %v11208_v52 = vunpack.i.l.bf16 %v13418_v56 }
 0x3d9   :  { %v1465_v55 = vsel %vm223_vm0, %v11199_v43, 0.0  ;;  %v1612_v24 = vsel %vm223_vm0, %v11208_v52, 0.0  ;;  %v11239_v52 = vunpack.i.h.bf16 %v13474_v49 }
 0x3df   :  { %1550 = vadd.xlane.f32.xlu0 %v1549_v63  ;;  %v17241_v63 = vunpack.c.l.bf16 %v17240_v9 }
 0x3e1   :  { %v11295_v11 = vpack.i.bf16 %v17241_v63, %v17239_v45  ;;  %v11233_v63 = vunpack.i.l.bf16 %v13483_v40 }
 0x3e3   :  { %1460 = vadd.xlane.f32.xlu0 %v1459_v10  ;;  %v11203_v10 = vunpack.i.l.bf16 %v13444_v35  ;;  %v11218_v35 = vunpack.i.l.bf16 %v13440_v6 }
 0x3e5   :  { %v1468_v28 = vsel %vm223_vm0, %v11203_v10, 0.0  ;;  %v1522_v30 = vsel %vm223_vm0, %v11218_v35, 0.0  ;;  %v1570_v10 = vsel %vm223_vm0, %v11233_v63, 0.0  ;;  %v1477_v35 = vsel %vm223_vm0, %v11239_v52, 0.0 }
 0x3e6   :  { %v11259_v63 = vunpack.i.h.bf16 %v13515_v2 }
 0x3e7   :  { %1604 = vadd.xlane.f32.xlu0 %v1603_v57  ;;  %v11214_v57 = vunpack.i.h.bf16 %v13448_v1  ;;  %v11224_v1 = vunpack.i.h.bf16 %v13479_v36 }
 0x3e8   :  { %11291 = vrot.lane.b32.xlu1 %v11290_v27, %s11597_s1  ;;  %v1609_v27 = vsel %vm223_vm0, %v11204_v8, 0.0 }
 0x3e9   :  { %v1615_v45 = vsel %vm223_vm0, %v11224_v1, 0.0  ;;  %v1621_v1 = vsel %vm223_vm0, %v11244_v54, 0.0 }
 0x3eb   :  { %1607 = vadd.xlane.f32.xlu0 %v1606_v14  ;;  %v1519_v14 = vsel %vm223_vm0, %v11214_v57, 0.0 }
 0x3ef   :  { %1556 = vadd.xlane.f32.xlu0 %v1555_v17  ;;  %v11209_v17 = vunpack.i.h.bf16 %v13418_v56  ;;  %v11229_v56 = vunpack.i.h.bf16 %v13454_v62 }
 0x3f3   :  { %1559 = vadd.xlane.f32.xlu0 %v1558_v15  ;;  %v1561_v15 = vsel %vm223_vm0, %v11209_v17, 0.0 }
 0x3f7   :  { %1514 = vadd.xlane.f32.xlu0 %v1513_v51  ;;  %v17242_v51 = vunpack.c.h.bf16 %v17240_v9  ;;  %v11234_v9 = vunpack.i.h.bf16 %v13483_v40  ;;  %v17246_v40 = vunpack.c.l.bf16 %v17245_v42 }
 0x3f9   :  { %v1525_v8 = vsel %vm223_vm0, %v11234_v9, 0.0 }
 0x3fb   :  { %1517 = vadd.xlane.f32.xlu0 %v1516_v12  ;;  %v17243_v12 = vld [vmem:[#allocation110_spill] sm:$0xff] }
 0x3fc   :  { %v17244_v16 = vunpack.c.h.bf16 %v17243_v12  ;;  %v11254_v12 = vunpack.i.h.bf16 %v13524_v22 }
 0x3fe   :  { %v11300_v43 = vpack.i.bf16 %v17244_v16, %v17242_v51 }
 0x40c   :  { %1463 = vadd.xlane.f32.xlu1 %v1462_v18  ;;  %v11228_v18 = vunpack.i.l.bf16 %v13454_v62 }
 0x40e   :  { %v1618_v6 = vsel %vm223_vm0, %v11228_v18, 0.0  ;;  %v1531_v18 = vsel %vm223_vm0, %v11254_v12, 0.0 }
 0x410   :  { %1466 = vadd.xlane.f32.xlu1 %v1465_v55  ;;  %v11238_v55 = vunpack.i.l.bf16 %v13474_v49 }
 0x411   :  { %11296 = vrot.lane.b32.xlu0 %v11295_v11, %s11597_s1  ;;  %v1567_v11 = vsel %vm223_vm0, %v11229_v56, 0.0  ;;  %v11248_v56 = vunpack.i.l.bf16 %v13488_v19 }
 0x412   :  { %v1528_v62 = vsel %vm223_vm0, %v11238_v55, 0.0  ;;  %v1483_v55 = vsel %vm223_vm0, %v11259_v63, 0.0 }
 0x414   :  { %1469 = vadd.xlane.f32.xlu1 %v1468_v28  ;;  %v11223_v28 = vunpack.i.l.bf16 %v13479_v36  ;;  %v17248_v36 = vld [vmem:[#allocation111_spill] sm:$0xff] }
 0x415   :  { %v17249_v49 = vunpack.c.l.bf16 %v17248_v36 }
 0x418   :  { %1610 = vadd.xlane.f32.xlu1 %v1609_v27  ;;  %v1474_v27 = vsel %vm223_vm0, %v11223_v28, 0.0 }
 0x41c   :  { %1613 = vadd.xlane.f32.xlu1 %v1612_v24  ;;  %v17247_v24 = vunpack.c.h.bf16 %v17245_v42 }
 0x41e   :  { %v11305_v57 = vpack.i.bf16 %v17247_v24, %v17246_v40 }
 0x420   :  { %1565 = vadd.xlane.f32.xlu1 %v1564_v59  ;;  %v11243_v59 = vunpack.i.l.bf16 %v13520_v44 }
 0x424   :  { %1520 = vadd.xlane.f32.xlu1 %v1519_v14  ;;  %v1480_v14 = vsel %vm223_vm0, %v11243_v59, 0.0  ;;  %v17254_v59 = vld [vmem:[#allocation112_spill] sm:$0xff] }
 0x428   :  { %1523 = vadd.xlane.f32.xlu1 %v1522_v30  ;;  %v17250_v30 = vunpack.c.h.bf16 %v17248_v36 }
 0x42a   :  { %v11310_v17 = vpack.i.bf16 %v17250_v30, %v17249_v49 }
 0x430   :  { %1562 = vadd.xlane.f32.xlu0 %v1561_v15  ;;  %v11249_v15 = vunpack.i.h.bf16 %v13488_v19 }
 0x432   :  { %v1573_v51 = vsel %vm223_vm0, %v11249_v15, 0.0  ;;  %v11264_v15 = vunpack.i.h.bf16 %v13552_v13 }
 0x434   :  { %1472 = vadd.xlane.f32.xlu0 %v1471_v50  ;;  %v11253_v50 = vunpack.i.l.bf16 %v13524_v22  ;;  %v1624_v22 = vsel %vm223_vm0, %v11248_v56, 0.0  ;;  %v1627_v12 = vsel %vm223_vm0, %v11264_v15, 0.0 }
 0x436   :  { %v1576_v16 = vsel %vm223_vm0, %v11253_v50, 0.0 }
 0x438   :  { %1616 = vadd.xlane.f32.xlu0 %v1615_v45  ;;  %v13686_v45 = vpop.xlane.xlu0 %1490 }
 0x439   :  { %11301 = vrot.lane.b32.xlu1 %v11300_v43, %s11597_s1  ;;  %v11258_v43 = vunpack.i.l.bf16 %v13515_v2  ;;  %v17251_v2 = vld [vmem:[#allocation120_spill] sm:$0xff] }
 0x43a   :  { %v17252_v28 = vunpack.c.l.bf16 %v17251_v2  ;;  %v17253_v52 = vunpack.c.h.bf16 %v17251_v2 }
 0x43b   :  { %v1534_v44 = vsel %vm223_vm0, %v11258_v43, 0.0 }
 0x43c   :  { %1619 = vadd.xlane.f32.xlu0 %v1618_v6  ;;  %v13689_v6 = vpop.permute.xlu0 %11276 }
 0x440   :  { %1568 = vadd.xlane.f32.xlu0 %v1567_v11  ;;  %v13693_v11 = vpop.xlane.xlu1 %1493  ;;  %v13695_v9 = vpop.xlane.xlu0 %1538 }
 0x444   :  { %1571 = vadd.xlane.f32.xlu0 %v1570_v10  ;;  %v11263_v10 = vunpack.i.l.bf16 %v13552_v13  ;;  %v13702_v19 = vpop.xlane.xlu0 %1448  ;;  %v17257_v13 = vld [vmem:[#allocation167_spill] sm:$0xff] }
 0x445   :  { %v11048_v63 = vunpack.i.l.bf16 %v17257_v13 }
 0x448   :  { %1526 = vadd.xlane.f32.xlu0 %v1525_v8  ;;  %v1486_v8 = vsel %vm223_vm0, %v11263_v10, 0.0  ;;  %v13711_v40 = vpop.xlane.xlu0 %1592 }
 0x44c   :  { %1529 = vadd.xlane.f32.xlu0 %v1528_v62  ;;  %v13700_v62 = vpop.xlane.xlu1 %1442 }
 0x450   :  { %v13709_v42 = vpop.xlane.xlu1 %1445 }
 0x454   :  { %v13713_v24 = vpop.xlane.xlu1 %1586 }
 0x458   :  { %v13722_v49 = vpop.xlane.xlu1 %1589 }
 0x45d   :  { %1475 = vadd.xlane.f32.xlu1 %v1474_v27  ;;  %v11315_v27 = vpack.i.bf16 %v17253_v52, %v17252_v28  ;;  %v720_v52 = vsel %vm223_vm0, %v11048_v63, 0.0 }
 0x461   :  { %1478 = vadd.xlane.f32.xlu1 %v1477_v35  ;;  %v17255_v35 = vunpack.c.l.bf16 %v17254_v59 }
 0x462   :  { %11306 = vrot.lane.b32.xlu0 %v11305_v57, %s11597_s1  ;;  %v13715_v57 = vpop.xlane.xlu0 %1595 }
 0x465   :  { %1481 = vadd.xlane.f32.xlu1 %v1480_v14  ;;  %v17256_v14 = vunpack.c.h.bf16 %v17254_v59  ;;  %v11274_v59 = vunpack.i.h.bf16 %v13554_v46 }
 0x466   :  { %v13724_v30 = vpop.xlane.xlu0 %1544 }
 0x467   :  { %v11320_v36 = vpack.i.bf16 %v17256_v14, %v17255_v35 }
 0x46a   :  { %v13728_v54 = vpop.xlane.xlu0 %1547 }
 0x46e   :  { %v13733_v50 = vpop.xlane.xlu0 %1502 }
 0x472   :  { %v13739_v43 = vpop.xlane.xlu0 %1505 }
 0x476   :  { %11311 = vrot.lane.b32.xlu1 %v11310_v17, %s11597_s1  ;;  %v13726_v17 = vpop.xlane.xlu1 %1541  ;;  %v13743_v56 = vpop.permute.xlu0 %11286 }
 0x481   :  { %1622 = vadd.xlane.f32.xlu0 %v1621_v1  ;;  %v13731_v1 = vpop.xlane.xlu1 %1496 }
 0x485   :  { %1574 = vadd.xlane.f32.xlu0 %v1573_v51  ;;  %v11269_v51 = vunpack.i.h.bf16 %v13537_v60 }
 0x489   :  { %1577 = vadd.xlane.f32.xlu0 %v1576_v16  ;;  %v13737_v16 = vpop.xlane.xlu1 %1499 }
 0x48d   :  { %1532 = vadd.xlane.f32.xlu0 %v1531_v18  ;;  %v11273_v18 = vunpack.i.l.bf16 %v13554_v46 }
 0x48f   :  { %v1582_v10 = vsel %vm223_vm0, %v11273_v18, 0.0 }
 0x491   :  { %1535 = vadd.xlane.f32.xlu0 %v1534_v44  ;;  %v1579_v44 = vsel %vm223_vm0, %v11269_v51, 0.0 }
 0x49a   :  { %1625 = vadd.xlane.f32.xlu1 %v1624_v22  ;;  %v13746_v22 = vpop.permute.xlu1 %11281 }
 0x49b   :  { %v11283_v31 = vunpack.i.l.bf16 %v13746_v22  ;;  %v11284_v25 = vunpack.i.h.bf16 %v13746_v22 }
 0x49d   :  { %v825_v32 = vsel %vm223_vm0, %v11283_v31, 0.0 }
 0x49e   :  { %1484 = vadd.xlane.f32.xlu1 %v1483_v55  ;;  %v13749_v55 = vpop.xlane.xlu0 %1550  ;;  %v13752_v28 = vpop.xlane.xlu1 %1451 }
 0x4a2   :  { %1487 = vadd.xlane.f32.xlu1 %v1486_v8  ;;  %v17258_v8 = vld [vmem:[#allocation161_spill] sm:$0xff]  ;;  %v13757_v35 = vpop.xlane.xlu0 %1460  ;;  %v13761_v15 = vpop.xlane.xlu1 %1454 }
 0x4a3   :  { %v11008_v2 = vunpack.i.l.bf16 %v17258_v8 }
 0x4a5   :  { %v672_v14 = vsel %vm223_vm0, %v11008_v2, 0.0 }
 0x4a6   :  { %v13767_v46 = vpop.xlane.xlu0 %1604 }
 0x4a7   :  { %11316 = vrot.lane.b32.xlu0 %v11315_v27, %s11597_s1  ;;  %v11268_v27 = vunpack.i.l.bf16 %v13537_v60  ;;  %v11009_v60 = vunpack.i.h.bf16 %v17258_v8  ;;  %17260 = vst [vmem:[#allocation131_spill] sm:$0xff] %v13767_v46 }
 0x4a9   :  { %v1630_v51 = vsel %vm223_vm0, %v11268_v27, 0.0  ;;  %v11278_v27 = vunpack.i.l.bf16 %v13689_v6 }
 0x4aa   :  { %v13777_v8 = vpop.xlane.xlu0 %1607 }
 0x4ab   :  { %17263 = vst [vmem:[#allocation154_spill] sm:$0xff] %v13777_v8  ;;  %v819_v7 = vsel %vm223_vm0, %v11278_v27, 0.0 }
 0x4ae   :  { %v13787_v20 = vpop.xlane.xlu0 %1556 }
 0x4af   :  { %17264 = vst [vmem:[#allocation132_spill] sm:$0xff] %v13787_v20 }
 0x4b3   :  { %11321 = vrot.lane.b32.xlu1 %v11320_v36, %s11597_s1  ;;  %v11049_v36 = vunpack.i.h.bf16 %v17257_v13  ;;  %v13771_v13 = vpop.xlane.xlu1 %1457 }
 0x4b5   :  { %v723_v63 = vsel %vm223_vm0, %v11049_v36, 0.0 }
 0x4c6   :  { %1628 = vadd.xlane.f32.xlu0 %v1627_v12  ;;  %v17259_v12 = vld [vmem:[#allocation175_spill] sm:$0xff] }
 0x4c7   :  { %v11088_v18 = vunpack.i.l.bf16 %v17259_v12  ;;  %v11089_v36 = vunpack.i.h.bf16 %v17259_v12 }
 0x4ca   :  { %1580 = vadd.xlane.f32.xlu0 %v1579_v44  ;;  %v816_v44 = vsel %vm223_vm0, %v11274_v59, 0.0  ;;  %v17262_v59 = vld [vmem:[#allocation160_spill] sm:$0xff] }
 0x4ce   :  { %1583 = vadd.xlane.f32.xlu0 %v1582_v10  ;;  %v17261_v10 = vld [vmem:[#allocation170_spill] sm:$0xff] }
 0x4cf   :  { %v11053_v2 = vunpack.i.l.bf16 %v17261_v10  ;;  %v11054_v4 = vunpack.i.h.bf16 %v17261_v10 }
 0x4d1   :  { %v729_v10 = vsel %vm223_vm0, %v11054_v4, 0.0  ;;  %v17268_v4 = vld [vmem:[#allocation162_spill] sm:$0xff] }
 0x4d2   :  { %721 = vadd.xlane.f32.xlu0 %v720_v52  ;;  %v768_v52 = vsel %vm223_vm0, %v11088_v18, 0.0  ;;  %v11279_v18 = vunpack.i.h.bf16 %v13689_v6  ;;  %v11014_v6 = vunpack.i.h.bf16 %v17262_v59  ;;  %v11019_v22 = vunpack.i.h.bf16 %v17268_v4 }
 0x4d6   :  { %673 = vadd.xlane.f32.xlu0 %v672_v14  ;;  %v675_v14 = vsel %vm223_vm0, %v11009_v60, 0.0  ;;  %v2858_v60 = vld [vmem:[#allocation6 + $0x40] sm:$0xff] }
 0x4d7   :  { %1631 = vadd.xlane.f32.xlu1 %v1630_v51  ;;  %v11013_v51 = vunpack.i.l.bf16 %v17262_v59 }
 0x4da   :  { %817 = vadd.xlane.f32.xlu0 %v816_v44  ;;  %v726_v44 = vsel %vm223_vm0, %v11053_v2, 0.0  ;;  %v771_v2 = vsel %vm223_vm0, %v11089_v36, 0.0  ;;  %v13797_v36 = vpop.xlane.xlu0 %1559 }
 0x4db   :  { %724 = vadd.xlane.f32.xlu1 %v723_v63  ;;  %v13781_v63 = vpop.xlane.xlu1 %1598  ;;  %17267 = vst [vmem:[#allocation157_spill] sm:$0xff] %v13797_v36 }
 0x4de   :  { %769 = vadd.xlane.f32.xlu0 %v768_v52  ;;  %v678_v52 = vsel %vm223_vm0, %v11013_v51, 0.0  ;;  %v17266_v51 = vld [vmem:[#allocation169_spill] sm:$0xff] }
 0x4df   :  { %676 = vadd.xlane.f32.xlu1 %v675_v14  ;;  %v2862_v14 = vld [vmem:[#allocation6 + $0x60] sm:$0xff]  ;;  %v13791_v27 = vpop.xlane.xlu1 %1601 }
 0x4e0   :  { %v9398_v12 = vcombine.low %v2858_v60, %v2862_v14 }
 0x4e2   :  { %727 = vadd.xlane.f32.xlu0 %v726_v44  ;;  %v9399_v44 = vcombine.high %v2858_v60, %v2862_v14  ;;  %v774_v60 = vsel %vm223_vm0, %v11093_v53, 0.0  ;;  %v2866_v14 = vld [vmem:[#allocation6 + $0x80] sm:$0xff]  ;;  %v11094_v53 = vunpack.i.h.bf16 %v17265_v0 }
 0x4e3   :  { %820 = vadd.xlane.f32.xlu1 %v819_v7  ;;  %v822_v7 = vsel %vm223_vm0, %v11279_v18, 0.0  ;;  %v13801_v18 = vpop.xlane.xlu1 %1553 }
 0x4e4   :  { %3818 = vmatprep.mubr.bf16.mxu0 %v9399_v44  ;;  %v681_v44 = vsel %vm223_vm0, %v11014_v6, 0.0 }
 0x4e5   :  { %3819 = vmatmul.mubr.bf16.gmra.mrb[4].mxu0 %v9398_v12 }
 0x4e6   :  { %679 = vadd.xlane.f32.xlu0 %v678_v52  ;;  %v11058_v52 = vunpack.i.l.bf16 %v17266_v51 }
 0x4e7   :  { %772 = vadd.xlane.f32.xlu1 %v771_v2  ;;  %v2870_v2 = vld [vmem:[#allocation6 + $0xa0] sm:$0xff]  ;;  %v13811_v6 = vpop.xlane.xlu1 %1508 }
 0x4e8   :  { %v9407_v12 = vcombine.high %v2866_v14, %v2870_v2  ;;  %v9406_v59 = vcombine.low %v2866_v14, %v2870_v2  ;;  %v2874_v2 = vld [vmem:[#allocation6 + $0xc0] sm:$0xff] }
 0x4ea   :  { %823 = vadd.xlane.f32.xlu0 %v822_v7  ;;  %v11018_v7 = vunpack.i.l.bf16 %v17268_v4  ;;  %3826 = vmatprep.mubr.bf16.mxu0 %v9407_v12  ;;  %v777_v12 = vsel %vm223_vm0, %v11094_v53, 0.0  ;;  %v17272_v53 = vld [vmem:[#allocation172_spill] sm:$0xff] }
 0x4eb   :  { %730 = vadd.xlane.f32.xlu1 %v729_v10  ;;  %v732_v10 = vsel %vm223_vm0, %v11058_v52, 0.0  ;;  %v11059_v52 = vunpack.i.h.bf16 %v17266_v51  ;;  %v11064_v33 = vunpack.i.h.bf16 %v17272_v53 }
 0x4ec   :  { %v684_v14 = vsel %vm223_vm0, %v11018_v7, 0.0  ;;  %v13821_v7 = vpop.xlane.xlu1 %1511 }
 0x4ed   :  { %3827 = vmatmul.mubr.bf16.gmra.mrb[8].mxu0 %v9406_v59  ;;  %v735_v51 = vsel %vm223_vm0, %v11059_v52, 0.0 }
 0x4ee   :  { %775 = vadd.xlane.f32.xlu0 %v774_v60  ;;  %v13807_v60 = vpop.xlane.xlu0 %1514 }
 0x4ef   :  { %682 = vadd.xlane.f32.xlu1 %v681_v44  ;;  %17269 = vst [vmem:[#allocation133_spill] sm:$0xff] %v13807_v60  ;;  %v2878_v44 = vld [vmem:[#allocation6 + $0xe0] sm:$0xff] }
 0x4f0   :  { %v9415_v59 = vcombine.high %v2874_v2, %v2878_v44  ;;  %v9414_v0 = vcombine.low %v2874_v2, %v2878_v44  ;;  %v2882_v44 = vld [vmem:[#allocation6 + $0x100] sm:$0xff]  ;;  %v13831_v52 = vpop.permute.xlu1 %11291 }
 0x4f1   :  { %v9422_v4 = vcombine.low %v2882_v44, %v2886_v48 }
 0x4f2   :  { %733 = vadd.xlane.f32.xlu0 %v732_v10  ;;  %v17270_v10 = vld [vmem:[#allocation177_spill] sm:$0xff]  ;;  %v13817_v31 = vpop.xlane.xlu0 %1517  ;;  %3834 = vmatprep.mubr.bf16.mxu0 %v9415_v59  ;;  %v687_v59 = vsel %vm223_vm0, %v11019_v22, 0.0  ;;  %v11289_v22 = vunpack.i.h.bf16 %v13743_v56 }
 0x4f3   :  { %826 = vadd.xlane.f32.xlu1 %v825_v32  ;;  %v11098_v26 = vunpack.i.l.bf16 %v17270_v10  ;;  %17271 = vst [vmem:[#allocation156_spill] sm:$0xff] %v13817_v31  ;;  %v828_v32 = vsel %vm223_vm0, %v11284_v25, 0.0  ;;  %v11288_v25 = vunpack.i.l.bf16 %v13743_v56 }
 0x4f5   :  { %3835 = vmatmul.mubr.bf16.gmra.mrb[12].mxu0 %v9414_v0  ;;  %v780_v2 = vsel %vm223_vm0, %v11098_v26, 0.0  ;;  %v9423_v0 = vcombine.high %v2882_v44, %v2886_v48  ;;  %v11099_v26 = vunpack.i.h.bf16 %v17270_v10  ;;  %v2890_v44 = vld [vmem:[#allocation6 + $0x140] sm:$0xff] }
 0x4f6   :  { %685 = vadd.xlane.f32.xlu0 %v684_v14  ;;  %v11063_v14 = vunpack.i.l.bf16 %v17272_v53  ;;  %v9430_v10 = vcombine.low %v2890_v44, %v2894_v34 }
 0x4f7   :  { %778 = vadd.xlane.f32.xlu1 %v777_v12  ;;  %v13825_v12 = vpop.permute.xlu0 %11296  ;;  %3842 = vmatprep.mubr.bf16.mxu0 %v9423_v0  ;;  %v9431_v0 = vcombine.high %v2890_v44, %v2894_v34 }
 0x4f8   :  { %v738_v29 = vsel %vm223_vm0, %v11063_v14, 0.0 }
 0x4fa   :  { %829 = vadd.xlane.f32.xlu0 %v828_v32  ;;  %v17273_v32 = vld [vmem:[#allocation164_spill] sm:$0xff] }
 0x4fb   :  { %736 = vadd.xlane.f32.xlu1 %v735_v51  ;;  %v11023_v21 = vunpack.i.l.bf16 %v17273_v32  ;;  %v13833_v51 = vpop.xlane.xlu0 %1562  ;;  %v11024_v56 = vunpack.i.h.bf16 %v17273_v32 }
 0x4fc   :  { %17274 = vst [vmem:[#allocation134_spill] sm:$0xff] %v13833_v51 }
 0x4fd   :  { %3843 = vmatmul.mubr.bf16.gmra.mrb[16].mxu0 %v9422_v4  ;;  %v690_v48 = vsel %vm223_vm0, %v11023_v21, 0.0  ;;  %v741_v4 = vsel %vm223_vm0, %v11064_v33, 0.0  ;;  %v693_v34 = vsel %vm223_vm0, %v11024_v56, 0.0 }
 0x4fe   :  { %781 = vadd.xlane.f32.xlu0 %v780_v2  ;;  %v831_v2 = vsel %vm223_vm0, %v11288_v25, 0.0  ;;  %v834_v25 = vsel %vm223_vm0, %v11289_v22, 0.0  ;;  %3850 = vmatprep.mubr.bf16.mxu0 %v9431_v0  ;;  %v2906_v0 = vld [vmem:[#allocation6 + $0x1c0] sm:$0xff] }
 0x4ff   :  { %688 = vadd.xlane.f32.xlu1 %v687_v59  ;;  %v13839_v59 = vpop.xlane.xlu1 %1463  ;;  %v13843_v14 = vpop.xlane.xlu0 %1472 }
 0x500   :  { %17275 = vst [vmem:[#allocation159_spill] sm:$0xff] %v13843_v14 }
 0x502   :  { %739 = vadd.xlane.f32.xlu0 %v738_v29  ;;  %v783_v29 = vsel %vm223_vm0, %v11099_v26, 0.0  ;;  %v11293_v26 = vunpack.i.l.bf16 %v13831_v52 }
 0x503   :  { %832 = vadd.xlane.f32.xlu1 %v831_v2  ;;  %v13848_v21 = vpop.xlane.xlu1 %1466  ;;  %v13851_v53 = vpop.xlane.xlu0 %1616  ;;  %v2898_v2 = vld [vmem:[#allocation6 + $0x180] sm:$0xff] }
 0x504   :  { %17276 = vst [vmem:[#allocation136_spill] sm:$0xff] %v13848_v21  ;;  %17277 = vst [vmem:[#allocation158_spill] sm:$0xff] %v13851_v53  ;;  %v837_v33 = vsel %vm223_vm0, %v11293_v26, 0.0 }
 0x505   :  { %3851 = vmatmul.mubr.bf16.gmra.mrb[20].mxu0 %v9430_v10  ;;  %v2910_v10 = vld [vmem:[#allocation6 + $0x1e0] sm:$0xff] }
 0x506   :  { %691 = vadd.xlane.f32.xlu0 %v690_v48  ;;  %v2902_v48 = vld [vmem:[#allocation6 + $0x1a0] sm:$0xff]  ;;  %v9446_v38 = vcombine.low %v2906_v0, %v2910_v10 }
 0x507   :  { %784 = vadd.xlane.f32.xlu1 %v783_v29  ;;  %v9439_v44 = vcombine.high %v2898_v2, %v2902_v48  ;;  %v9438_v22 = vcombine.low %v2898_v2, %v2902_v48  ;;  %v13855_v29 = vpop.xlane.xlu1 %1469  ;;  %v13857_v32 = vpop.xlane.xlu0 %1619  ;;  %v2914_v2 = vld [vmem:[#allocation6 + $0x200] sm:$0xff] }
 0x508   :  { %17278 = vst [vmem:[#allocation135_spill] sm:$0xff] %v13855_v29  ;;  %17279 = vst [vmem:[#allocation116_spill] sm:$0xff] %v13857_v32  ;;  %v2918_v48 = vld [vmem:[#allocation6 + $0x220] sm:$0xff] }
 0x509   :  { %3858 = vmatprep.mubr.bf16.mxu0 %v9439_v44  ;;  %v9455_v44 = vcombine.high %v2914_v2, %v2918_v48  ;;  %v9454_v26 = vcombine.low %v2914_v2, %v2918_v48  ;;  %v2934_v2 = vld [vmem:[#allocation6 + $0x2a0] sm:$0xff] }
 0x50a   :  { %835 = vadd.xlane.f32.xlu0 %v834_v25 }
 0x50b   :  { %742 = vadd.xlane.f32.xlu1 %v741_v4  ;;  %v13860_v25 = vpop.xlane.xlu1 %1610  ;;  %v9447_v4 = vcombine.high %v2906_v0, %v2910_v10  ;;  %v13862_v47 = vpop.xlane.xlu0 %1568  ;;  %v2926_v0 = vld [vmem:[#allocation6 + $0x260] sm:$0xff] }
 0x50c   :  { %17280 = vst [vmem:[#allocation117_spill] sm:$0xff] %v13860_v25  ;;  %17281 = vst [vmem:[#allocation118_spill] sm:$0xff] %v13862_v47 }
 0x50d   :  { %3859 = vmatmul.mubr.bf16.gmra.mrb[24].mxu0 %v9438_v22 }
 0x50e   :  { %3866 = vmatprep.mubr.bf16.mxu0 %v9447_v4 }
 0x50f   :  { %694 = vadd.xlane.f32.xlu1 %v693_v34  ;;  %v13864_v56 = vpop.xlane.xlu1 %1613  ;;  %v13866_v34 = vpop.xlane.xlu0 %1571 }
 0x510   :  { %17282 = vst [vmem:[#allocation110_spill] sm:$0xff] %v13864_v56  ;;  %17283 = vst [vmem:[#allocation119_spill] sm:$0xff] %v13866_v34 }
 0x513   :  { %838 = vadd.xlane.f32.xlu1 %v837_v33  ;;  %v13870_v22 = vpop.xlane.xlu1 %1565  ;;  %v13872_v33 = vpop.xlane.xlu0 %1526 }
 0x514   :  { %17284 = vst [vmem:[#allocation111_spill] sm:$0xff] %v13870_v22  ;;  %17285 = vst [vmem:[#allocation120_spill] sm:$0xff] %v13872_v33 }
 0x515   :  { %3867 = vmatmul.mubr.bf16.gmra.mrb[28].mxu0 %v9446_v38  ;;  %v2922_v38 = vld [vmem:[#allocation6 + $0x240] sm:$0xff] }
 0x516   :  { %3874 = vmatprep.mubr.bf16.mxu0 %v9455_v44  ;;  %v9463_v10 = vcombine.high %v2922_v38, %v2926_v0  ;;  %v9462_v4 = vcombine.low %v2922_v38, %v2926_v0  ;;  %v2942_v38 = vld [vmem:[#allocation6 + $0x2e0] sm:$0xff] }
 0x517   :  { %v13876_v39 = vpop.xlane.xlu1 %1520  ;;  %v13878_v23 = vpop.xlane.xlu0 %1529  ;;  %v9479_v0 = vcombine.high %v2938_v58, %v2942_v38 }
 0x518   :  { %17286 = vst [vmem:[#allocation112_spill] sm:$0xff] %v13876_v39  ;;  %17287 = vst [vmem:[#allocation167_spill] sm:$0xff] %v13878_v23 }
 0x51b   :  { %v13882_v61 = vpop.permute.xlu0 %11306 }
 0x51d   :  { %3875 = vmatmul.mubr.bf16.gmra.mrb[32].mxu0 %v9454_v26  ;;  %v13880_v26 = vpop.xlane.xlu1 %1523 }
 0x51e   :  { %3882 = vmatprep.mubr.bf16.mxu0 %v9463_v10  ;;  %17288 = vst [vmem:[#allocation161_spill] sm:$0xff] %v13880_v26  ;;  %v9478_v10 = vcombine.low %v2938_v58, %v2942_v38  ;;  %v2954_v38 = vld [vmem:[#allocation6 + $0x340] sm:$0xff] }
 0x520   :  { %1921 = vrot.lane.b32.xlu0 %v13686_v45, %s11607_s15  ;;  %v2930_v45 = vld [vmem:[#allocation6 + $0x280] sm:$0xff] }
 0x521   :  { %v9471_v48 = vcombine.high %v2930_v45, %v2934_v2  ;;  %v9470_v44 = vcombine.low %v2930_v45, %v2934_v2  ;;  %v13886_v5 = vpop.permute.xlu1 %11301  ;;  %v17292_v45 = vld [vmem:[#allocation180_spill] sm:$0xff] }
 0x522   :  { %v11104_v2 = vunpack.i.h.bf16 %v17292_v45  ;;  %v11103_v58 = vunpack.i.l.bf16 %v17292_v45 }
 0x524   :  { %1923 = vrot.lane.b32.xlu1 %v13693_v11, %s11607_s15  ;;  %v13884_v11 = vpop.xlane.xlu0 %1622  ;;  %v789_v3 = vsel %vm223_vm0, %v11104_v2, 0.0 }
 0x525   :  { %3883 = vmatmul.mubr.bf16.gmra.mrb[36].mxu0 %v9462_v4  ;;  %17289 = vst [vmem:[#allocation175_spill] sm:$0xff] %v13884_v11  ;;  %v13888_v4 = vpop.xlane.xlu1 %1475 }
 0x526   :  { %3890 = vmatprep.mubr.bf16.mxu0 %v9471_v48  ;;  %17290 = vst [vmem:[#allocation170_spill] sm:$0xff] %v13888_v4  ;;  %v2946_v48 = vld [vmem:[#allocation6 + $0x300] sm:$0xff] }
 0x528   :  { %v13890_v37 = vpop.xlane.xlu0 %1574 }
 0x529   :  { %17291 = vst [vmem:[#allocation160_spill] sm:$0xff] %v13890_v37  ;;  %v13894_v23 = vpop.xlane.xlu1 %1478 }
 0x52a   :  { %17293 = vst [vmem:[#allocation178_spill] sm:$0xff] %v13894_v23  ;;  %v786_v23 = vsel %vm223_vm0, %v11103_v58, 0.0 }
 0x52c   :  { %v13896_v34 = vpop.xlane.xlu0 %1577 }
 0x52d   :  { %3891 = vmatmul.mubr.bf16.gmra.mrb[40].mxu0 %v9470_v44  ;;  %v2950_v44 = vld [vmem:[#allocation6 + $0x320] sm:$0xff]  ;;  %17294 = vst [vmem:[#allocation169_spill] sm:$0xff] %v13896_v34  ;;  %v13899_v37 = vpop.xlane.xlu1 %1481 }
 0x52e   :  { %3898 = vmatprep.mubr.bf16.mxu0 %v9479_v0  ;;  %v9487_v11 = vcombine.high %v2946_v48, %v2950_v44  ;;  %v9486_v32 = vcombine.low %v2946_v48, %v2950_v44  ;;  %v2958_v0 = vld [vmem:[#allocation6 + $0x360] sm:$0xff]  ;;  %17295 = vst [vmem:[#allocation162_spill] sm:$0xff] %v13899_v37 }
 0x52f   :  { %v9495_v2 = vcombine.high %v2954_v38, %v2958_v0  ;;  %v9494_v4 = vcombine.low %v2954_v38, %v2958_v0 }
 0x535   :  { %3899 = vmatmul.mubr.bf16.gmra.mrb[44].mxu0 %v9478_v10  ;;  %v13901_v10 = vpop.xlane.xlu0 %1532 }
 0x536   :  { %3906 = vmatprep.mubr.bf16.mxu0 %v9487_v11  ;;  %17296 = vst [vmem:[#allocation177_spill] sm:$0xff] %v13901_v10  ;;  %v2966_v11 = vld [vmem:[#allocation6 + $0x3a0] sm:$0xff] }
 0x539   :  { %v13906_v48 = vpop.xlane.xlu0 %1535 }
 0x53a   :  { %17297 = vst [vmem:[#allocation172_spill] sm:$0xff] %v13906_v48 }
 0x53d   :  { %3907 = vmatmul.mubr.bf16.gmra.mrb[48].mxu0 %v9486_v32  ;;  %v2962_v32 = vld [vmem:[#allocation6 + $0x380] sm:$0xff]  ;;  %v13908_v45 = vpop.permute.xlu0 %11316 }
 0x53e   :  { %3914 = vmatprep.mubr.bf16.mxu0 %v9495_v2  ;;  %17298 = vst [vmem:[#allocation164_spill] sm:$0xff] %v13908_v45  ;;  %v9503_v34 = vcombine.high %v2962_v32, %v2966_v11  ;;  %v9502_v37 = vcombine.low %v2962_v32, %v2966_v11  ;;  %v2851_v32 = vld [vmem:[#allocation6 + $0x8] sm:$0xff] }
 0x53f   :  { %790 = vadd.xlane.f32.xlu0 %v789_v3  ;;  %v13904_v3 = vpop.permute.xlu1 %11311  ;;  %v2855_v11 = vld [vmem:[#allocation6 + $0x28] sm:$0xff] }
 0x543   :  { %v13910_v44 = vpop.xlane.xlu1 %1625 }
 0x544   :  { %17299 = vst [vmem:[#allocation180_spill] sm:$0xff] %v13910_v44  ;;  %v9393_v44 = vcombine.high %v2851_v32, %v2855_v11 }
 0x545   :  { %3915 = vmatmul.mubr.bf16.gmra.mrb[52].mxu0 %v9494_v4  ;;  %v2974_v4 = vld [vmem:[#allocation6 + $0x3e0] sm:$0xff] }
 0x546   :  { %3922 = vmatprep.mubr.bf16.mxu0 %v9503_v34 }
 0x547   :  { %v13914_v0 = vpop.xlane.xlu1 %1484 }
 0x548   :  { %787 = vadd.xlane.f32.xlu1 %v786_v23  ;;  %17301 = vst [vmem:[#allocation215_spill] sm:$0xff] %v13914_v0  ;;  %v2970_v23 = vld [vmem:[#allocation6 + $0x3c0] sm:$0xff] }
 0x549   :  { %v9511_v2 = vcombine.high %v2970_v23, %v2974_v4  ;;  %v9510_v48 = vcombine.low %v2970_v23, %v2974_v4 }
 0x54b   :  { %v13922_v34 = vpop.xlane.xlu1 %1487 }
 0x54c   :  { %17303 = vst [vmem:[#allocation217_spill] sm:$0xff] %v13922_v34  ;;  %v17307_v34 = vld [vmem:[#allocation171_spill] sm:$0xff] }
 0x54d   :  { %3923 = vmatmul.mubr.bf16.gmra.mrb[56].mxu0 %v9502_v37 }
 0x54e   :  { %3930 = vmatprep.mubr.bf16.mxu0 %v9511_v2 }
 0x54f   :  { %v13926_v0 = vpop.permute.xlu1 %11321 }
 0x550   :  { %17305 = vst [vmem:[#allocation219_spill] sm:$0xff] %v13926_v0 }
 0x553   :  { %v13912_v38 = vpop.xlane.xlu0 %1628 }
 0x554   :  { %17300 = vst [vmem:[#allocation214_spill] sm:$0xff] %v13912_v38 }
 0x555   :  { %1889 = vrot.lane.b32.xlu0 %v13700_v62, %s11607_s15  ;;  %3931 = vmatmul.mubr.bf16.gmra.mrb[60].mxu0 %v9510_v48  ;;  %v9392_v62 = vcombine.low %v2851_v32, %v2855_v11 }
 0x556   :  { %3971 = vmatprep.mubr.bf16.mxu0 %v9393_v44 }
 0x557   :  { %v13918_v58 = vpop.xlane.xlu0 %1580 }
 0x558   :  { %17302 = vst [vmem:[#allocation216_spill] sm:$0xff] %v13918_v58 }
 0x559   :  { %1891 = vrot.lane.b32.xlu1 %v13709_v42, %s11607_s15 }
 0x55b   :  { %v13924_v37 = vpop.xlane.xlu0 %1583 }
 0x55c   :  { %17304 = vst [vmem:[#allocation218_spill] sm:$0xff] %v13924_v37  ;;  %v11069_v37 = vunpack.i.h.bf16 %v17307_v34 }
 0x55d   :  { %3972 = vmatmul.mubr.bf16.vlgmr.msra.gmra.mrb[64].mxu0 %v9392_v62 }
 0x55e   :  { %v747_v44 = vsel %vm223_vm0, %v11069_v37, 0.0 }
 0x55f   :  { %v722_v38 = vpop.xlane.xlu0 %721 }
 0x563   :  { %v674_v58 = vpop.xlane.xlu0 %673 }
 0x564   :  { %v13928_v23 = vpop.xlane.xlu1 %1631 }
 0x565   :  { %17306 = vst [vmem:[#allocation220_spill] sm:$0xff] %v13928_v23  ;;  %v11068_v23 = vunpack.i.l.bf16 %v17307_v34 }
 0x567   :  { %v13930_v4 = vpop.xlane.xlu0 %817  ;;  %v744_v53 = vsel %vm223_vm0, %v11068_v23, 0.0 }
 0x568   :  { %v725_v42 = vpop.xlane.xlu1 %724 }
 0x56b   :  { %v13932_v48 = vpop.xlane.xlu0 %769 }
 0x56c   :  { %v677_v2 = vpop.xlane.xlu1 %676 }
 0x56f   :  { %v13935_v10 = vpop.xlane.xlu0 %727 }
 0x570   :  { %v13937_v33 = vpop.xlane.xlu1 %820 }
 0x573   :  { %v13939_v32 = vpop.xlane.xlu0 %679 }
 0x574   :  { %748 = vadd.xlane.f32.xlu0 %v747_v44  ;;  %v13942_v11 = vpop.xlane.xlu1 %772 }
 0x577   :  { %v13944_v62 = vpop.xlane.xlu0 %823 }
 0x578   :  { %v13947_v26 = vpop.xlane.xlu1 %730 }
 0x57b   :  { %v13949_v47 = vpop.xlane.xlu0 %775 }
 0x57c   :  { %v13951_v22 = vpop.xlane.xlu1 %682 }
 0x57d   :  { %745 = vadd.xlane.f32.xlu1 %v744_v53 }
 0x57f   :  { %v13954_v56 = vpop.xlane.xlu0 %733 }
 0x580   :  { %v13956_v14 = vpop.xlane.xlu1 %826 }
 0x583   :  { %v13958_v37 = vpop.xlane.xlu0 %685 }
 0x584   :  { %v13960_v44 = vpop.xlane.xlu1 %778 }
 0x587   :  { %v13962_v25 = vpop.xlane.xlu0 %829 }
 0x588   :  { %v13964_v34 = vpop.xlane.xlu1 %736 }
 0x58a   :  { %1985 = vrot.lane.b32.xlu0 %v13713_v24, %s11607_s15 }
 0x58b   :  { %v13968_v39 = vpop.xlane.xlu0 %781 }
 0x58c   :  { %v13970_v29 = vpop.xlane.xlu1 %688 }
 0x58e   :  { %1987 = vrot.lane.b32.xlu1 %v13722_v49, %s11607_s15  ;;  %v17314_v49 = vld [vmem:[#allocation163_spill] sm:$0xff] }
 0x58f   :  { %v13974_v53 = vpop.xlane.xlu0 %739  ;;  %v11029_v20 = vunpack.i.h.bf16 %v17314_v49 }
 0x590   :  { %17308 = vst [vmem:[#allocation171_spill] sm:$0xff] %v13974_v53  ;;  %v13976_v23 = vpop.xlane.xlu1 %832 }
 0x593   :  { %v13978_v51 = vpop.xlane.xlu0 %691 }
 0x594   :  { %17309 = vst [vmem:[#allocation221_spill] sm:$0xff] %v13978_v51  ;;  %v13980_v21 = vpop.xlane.xlu1 %784 }
 0x595   :  { %17310 = vst [vmem:[#allocation222_spill] sm:$0xff] %v13980_v21 }
 0x597   :  { %v13982_v0 = vpop.xlane.xlu0 %835 }
 0x598   :  { %17311 = vst [vmem:[#allocation223_spill] sm:$0xff] %v13982_v0  ;;  %v13984_v31 = vpop.xlane.xlu1 %742  ;;  %v699_v0 = vsel %vm223_vm0, %v11029_v20, 0.0 }
 0x599   :  { %17312 = vst [vmem:[#allocation224_spill] sm:$0xff] %v13984_v31 }
 0x59b   :  { %v1922_v60 = vpop.permute.xlu0 %1921 }
 0x59c   :  { %v13986_v24 = vpop.xlane.xlu1 %694  ;;  %v2226_v36 = vsel %vm2145_vm1, %v722_v38, %v1922_v60  ;;  %v11028_v60 = vunpack.i.l.bf16 %v17314_v49 }
 0x59d   :  { %17313 = vst [vmem:[#allocation225_spill] sm:$0xff] %v13986_v24  ;;  %v13992_v53 = vmul.f32 0.015625, %v2226_v36 }
 0x59e   :  { %v696_v38 = vsel %vm223_vm0, %v11028_v60, 0.0 }
 0x59f   :  { %17315 = vst [vmem:[#allocation163_spill] sm:$0xff] %v13992_v53  ;;  %v2738_v31 = vmax.f32 %v13992_v53, 0.0 }
 0x5a0   :  { %v13988_v45 = vpop.xlane.xlu1 %838 }
 0x5a4   :  { %v1924_v8 = vpop.permute.xlu1 %1923 }
 0x5a5   :  { %v2227_v51 = vsel %vm2145_vm1, %v725_v42, %v1924_v8 }
 0x5a6   :  { %v13995_v46 = vmul.f32 0.015625, %v2227_v51 }
 0x5a8   :  { %17316 = vst [vmem:[#allocation226_spill] sm:$0xff] %v13995_v46  ;;  %v2739_v24 = vmax.f32 %v13995_v46, 0.0  ;;  %v17383_v46 = vld [vmem:[#allocation161_spill] sm:$0xff] }
 0x5a9   :  { %700 = vadd.xlane.f32.xlu0 %v699_v0 }
 0x5aa   :  { %v2826_v21 = vpack.c.bf16 %v2739_v24, %v2738_v31  ;;  %v11298_v31 = vunpack.i.l.bf16 %v13825_v12 }
 0x5ac   :  { %10189 = vmatprep.subr.bf16.mxu0 %v2826_v21 }
 0x5b2   :  { %697 = vadd.xlane.f32.xlu1 %v696_v38 }
 0x5bf   :  { %1953 = vrot.lane.b32.xlu0 %v13695_v9, %s11607_s15  ;;  %v843_v9 = vsel %vm223_vm0, %v11298_v31, 0.0 }
 0x5c3   :  { %1955 = vrot.lane.b32.xlu1 %v13726_v17, %s11607_s15 }
 0x5cc   :  { %v14006_v8 = vpop.xlane.xlu0 %790 }
 0x5d0   :  { %v1890_v20 = vpop.permute.xlu0 %1889 }
 0x5d1   :  { %v2210_v51 = vsel %vm2145_vm1, %v674_v58, %v1890_v20  ;;  %v11294_v58 = vunpack.i.h.bf16 %v13831_v52 }
 0x5d2   :  { %v14012_v21 = vmul.f32 0.015625, %v2210_v51 }
 0x5d3   :  { %v840_v38 = vsel %vm223_vm0, %v11294_v58, 0.0 }
 0x5d4   :  { %17317 = vst [vmem:[#allocation227_spill] sm:$0xff] %v14012_v21  ;;  %v2722_v17 = vmax.f32 %v14012_v21, 0.0 }
 0x5d5   :  { %v14008_v36 = vpop.xlane.xlu1 %787 }
 0x5d9   :  { %v1892_v0 = vpop.permute.xlu1 %1891 }
 0x5da   :  { %v2211_v42 = vsel %vm2145_vm1, %v677_v2, %v1892_v0  ;;  %v17319_v0 = vld [vmem:[#allocation179_spill] sm:$0xff] }
 0x5db   :  { %v14015_v24 = vmul.f32 0.015625, %v2211_v42  ;;  %v11109_v42 = vunpack.i.h.bf16 %v17319_v0 }
 0x5dd   :  { %17318 = vst [vmem:[#allocation228_spill] sm:$0xff] %v14015_v24  ;;  %v2723_v49 = vmax.f32 %v14015_v24, 0.0 }
 0x5de   :  { %844 = vadd.xlane.f32.xlu0 %v843_v9 }
 0x5df   :  { %v2818_v60 = vpack.c.bf16 %v2723_v49, %v2722_v17 }
 0x5e1   :  { %10190 = vmatpush3.bf16.msra.mxu0 %v2818_v60 }
 0x5e7   :  { %841 = vadd.xlane.f32.xlu1 %v840_v38 }
 0x5f4   :  { %1925 = vrot.lane.b32.xlu0 %v13731_v1, %s11607_s15 }
 0x5f8   :  { %1927 = vrot.lane.b32.xlu1 %v13737_v16, %s11607_s15  ;;  %v795_v16 = vsel %vm223_vm0, %v11109_v42, 0.0 }
 0x601   :  { %v14026_v2 = vpop.xlane.xlu0 %748 }
 0x605   :  { %v1986_v20 = vpop.permute.xlu0 %1985 }
 0x606   :  { %v2258_v31 = vsel %vm2145_vm1, %v13930_v4, %v1986_v20  ;;  %v11108_v4 = vunpack.i.l.bf16 %v17319_v0 }
 0x607   :  { %v14033_v52 = vmul.f32 0.015625, %v2258_v31 }
 0x608   :  { %v792_v38 = vsel %vm223_vm0, %v11108_v4, 0.0 }
 0x609   :  { %17320 = vst [vmem:[#allocation179_spill] sm:$0xff] %v14033_v52  ;;  %v2770_v49 = vmax.f32 %v14033_v52, 0.0 }
 0x60a   :  { %v14028_v51 = vpop.xlane.xlu1 %745 }
 0x60e   :  { %v1988_v9 = vpop.permute.xlu1 %1987 }
 0x60f   :  { %v2259_v17 = vsel %vm2145_vm1, %v13937_v33, %v1988_v9  ;;  %v17322_v9 = vld [vmem:[#allocation174_spill] sm:$0xff] }
 0x610   :  { %v14037_v1 = vmul.f32 0.015625, %v2259_v17  ;;  %v11074_v17 = vunpack.i.h.bf16 %v17322_v9 }
 0x612   :  { %17321 = vst [vmem:[#allocation229_spill] sm:$0xff] %v14037_v1  ;;  %v2771_v60 = vmax.f32 %v14037_v1, 0.0 }
 0x613   :  { %796 = vadd.xlane.f32.xlu0 %v795_v16 }
 0x614   :  { %v2842_v58 = vpack.c.bf16 %v2771_v60, %v2770_v49 }
 0x616   :  { %10301 = vmatprep.subr.bf16.mxu1 %v2842_v58 }
 0x61c   :  { %793 = vadd.xlane.f32.xlu1 %v792_v38 }
 0x629   :  { %1893 = vrot.lane.b32.xlu0 %v13702_v19, %s11607_s15 }
 0x62d   :  { %1895 = vrot.lane.b32.xlu1 %v13752_v28, %s11607_s15  ;;  %v753_v28 = vsel %vm223_vm0, %v11074_v17, 0.0 }
 0x636   :  { %v14048_v33 = vpop.xlane.xlu0 %700 }
 0x63a   :  { %v1954_v20 = vpop.permute.xlu0 %1953 }
 0x63b   :  { %v2242_v42 = vsel %vm2145_vm1, %v13932_v48, %v1954_v20  ;;  %v11073_v48 = vunpack.i.l.bf16 %v17322_v9 }
 0x63c   :  { %v14055_v0 = vmul.f32 0.015625, %v2242_v42 }
 0x63d   :  { %v750_v38 = vsel %vm223_vm0, %v11073_v48, 0.0 }
 0x63e   :  { %17323 = vst [vmem:[#allocation174_spill] sm:$0xff] %v14055_v0  ;;  %v2754_v60 = vmax.f32 %v14055_v0, 0.0 }
 0x63f   :  { %v14050_v31 = vpop.xlane.xlu1 %697 }
 0x643   :  { %v1956_v16 = vpop.permute.xlu1 %1955 }
 0x644   :  { %v2243_v49 = vsel %vm2145_vm1, %v13942_v11, %v1956_v16  ;;  %v17325_v16 = vld [vmem:[#allocation166_spill] sm:$0xff] }
 0x645   :  { %v14059_v19 = vmul.f32 0.015625, %v2243_v49  ;;  %v11034_v49 = vunpack.i.h.bf16 %v17325_v16 }
 0x647   :  { %17324 = vst [vmem:[#allocation230_spill] sm:$0xff] %v14059_v19  ;;  %v2755_v58 = vmax.f32 %v14059_v19, 0.0 }
 0x648   :  { %754 = vadd.xlane.f32.xlu0 %v753_v28 }
 0x649   :  { %v2834_v4 = vpack.c.bf16 %v2755_v58, %v2754_v60 }
 0x64b   :  { %10302 = vmatpush3.bf16.msra.mxu1 %v2834_v4 }
 0x651   :  { %751 = vadd.xlane.f32.xlu1 %v750_v38 }
 0x65e   :  { %1989 = vrot.lane.b32.xlu0 %v13711_v40, %s11607_s15 }
 0x662   :  { %1991 = vrot.lane.b32.xlu1 %v13715_v57, %s11607_s15  ;;  %v705_v57 = vsel %vm223_vm0, %v11034_v49, 0.0 }
 0x66b   :  { %v14070_v11 = vpop.xlane.xlu0 %844 }
 0x66f   :  { %v1926_v20 = vpop.permute.xlu0 %1925 }
 0x670   :  { %v2228_v17 = vsel %vm2145_vm1, %v13935_v10, %v1926_v20  ;;  %v11033_v10 = vunpack.i.l.bf16 %v17325_v16 }
 0x671   :  { %v14077_v9 = vmul.f32 0.015625, %v2228_v17 }
 0x672   :  { %v702_v38 = vsel %vm223_vm0, %v11033_v10, 0.0 }
 0x673   :  { %17326 = vst [vmem:[#allocation166_spill] sm:$0xff] %v14077_v9  ;;  %v2740_v58 = vmax.f32 %v14077_v9, 0.0  ;;  %v17382_v9 = vld [vmem:[#allocation118_spill] sm:$0xff] }
 0x674   :  { %v14072_v42 = vpop.xlane.xlu1 %841 }
 0x678   :  { %v1928_v28 = vpop.permute.xlu1 %1927 }
 0x679   :  { %v2229_v60 = vsel %vm2145_vm1, %v13947_v26, %v1928_v28  ;;  %v11303_v28 = vunpack.i.l.bf16 %v13886_v5 }
 0x67a   :  { %v14081_v40 = vmul.f32 0.015625, %v2229_v60 }
 0x67c   :  { %17327 = vst [vmem:[#allocation231_spill] sm:$0xff] %v14081_v40  ;;  %v2741_v4 = vmax.f32 %v14081_v40, 0.0 }
 0x67d   :  { %706 = vadd.xlane.f32.xlu0 %v705_v57 }
 0x67e   :  { %v2827_v48 = vpack.c.bf16 %v2741_v4, %v2740_v58 }
 0x680   :  { %10191 = vmatprep.subr.bf16.mxu0 %v2827_v48 }
 0x686   :  { %703 = vadd.xlane.f32.xlu1 %v702_v38 }
 0x693   :  { %1957 = vrot.lane.b32.xlu0 %v13724_v30, %s11607_s15 }
 0x697   :  { %1959 = vrot.lane.b32.xlu1 %v13728_v54, %s11607_s15  ;;  %v849_v54 = vsel %vm223_vm0, %v11303_v28, 0.0  ;;  %v11304_v28 = vunpack.i.h.bf16 %v13886_v5 }
 0x6a0   :  { %v14092_v26 = vpop.xlane.xlu0 %796 }
 0x6a4   :  { %v1894_v20 = vpop.permute.xlu0 %1893 }
 0x6a5   :  { %v2212_v49 = vsel %vm2145_vm1, %v13939_v32, %v1894_v20  ;;  %v11299_v32 = vunpack.i.h.bf16 %v13825_v12 }
 0x6a6   :  { %v14099_v16 = vmul.f32 0.015625, %v2212_v49 }
 0x6a7   :  { %v846_v10 = vsel %vm223_vm0, %v11299_v32, 0.0 }
 0x6a8   :  { %17328 = vst [vmem:[#allocation232_spill] sm:$0xff] %v14099_v16  ;;  %v2724_v58 = vmax.f32 %v14099_v16, 0.0 }
 0x6a9   :  { %v14094_v17 = vpop.xlane.xlu1 %793 }
 0x6ad   :  { %v1896_v60 = vpop.permute.xlu1 %1895 }
 0x6ae   :  { %v2213_v57 = vsel %vm2145_vm1, %v13951_v22, %v1896_v60 }
 0x6af   :  { %v14103_v30 = vmul.f32 0.015625, %v2213_v57 }
 0x6b1   :  { %17329 = vst [vmem:[#allocation233_spill] sm:$0xff] %v14103_v30  ;;  %v2725_v4 = vmax.f32 %v14103_v30, 0.0 }
 0x6b2   :  { %850 = vadd.xlane.f32.xlu0 %v849_v54 }
 0x6b3   :  { %v2819_v48 = vpack.c.bf16 %v2725_v4, %v2724_v58 }
 0x6b5   :  { %10192 = vmatpush3.bf16.msra.mxu0 %v2819_v48 }
 0x6bb   :  { %847 = vadd.xlane.f32.xlu1 %v846_v10 }
 0x6c8   :  { %1929 = vrot.lane.b32.xlu0 %v13733_v50, %s11607_s15 }
 0x6cc   :  { %1931 = vrot.lane.b32.xlu1 %v13739_v43, %s11607_s15  ;;  %v801_v43 = vsel %vm223_vm0, %v11304_v28, 0.0 }
 0x6d5   :  { %v14114_v22 = vpop.xlane.xlu0 %754 }
 0x6d9   :  { %v1990_v38 = vpop.permute.xlu0 %1989 }
 0x6da   :  { %v2260_v49 = vsel %vm2145_vm1, %v13944_v62, %v1990_v38  ;;  %v11113_v62 = vunpack.i.l.bf16 %v17171_v41  ;;  %v17332_v38 = vld [vmem:[#allocation173_spill] sm:$0xff] }
 0x6db   :  { %v14121_v12 = vmul.f32 0.015625, %v2260_v49  ;;  %v11079_v49 = vunpack.i.h.bf16 %v17332_v38 }
 0x6dc   :  { %v798_v5 = vsel %vm223_vm0, %v11113_v62, 0.0 }
 0x6dd   :  { %17330 = vst [vmem:[#allocation234_spill] sm:$0xff] %v14121_v12  ;;  %v2772_v54 = vmax.f32 %v14121_v12, 0.0  ;;  %v2927_v12 = vld [vmem:[#allocation6 + $0x268] sm:$0xff] }
 0x6de   :  { %v14116_v20 = vpop.xlane.xlu1 %751 }
 0x6e2   :  { %v1992_v60 = vpop.permute.xlu1 %1991 }
 0x6e3   :  { %v2261_v57 = vsel %vm2145_vm1, %v13956_v14, %v1992_v60 }
 0x6e4   :  { %v14125_v50 = vmul.f32 0.015625, %v2261_v57 }
 0x6e6   :  { %17331 = vst [vmem:[#allocation235_spill] sm:$0xff] %v14125_v50  ;;  %v2773_v58 = vmax.f32 %v14125_v50, 0.0 }
 0x6e7   :  { %802 = vadd.xlane.f32.xlu0 %v801_v43 }
 0x6e8   :  { %v2843_v4 = vpack.c.bf16 %v2773_v58, %v2772_v54 }
 0x6ea   :  { %10303 = vmatprep.subr.bf16.mxu1 %v2843_v4 }
 0x6f0   :  { %799 = vadd.xlane.f32.xlu1 %v798_v5 }
 0x6fd   :  { %1897 = vrot.lane.b32.xlu0 %v13761_v15, %s11607_s15 }
 0x701   :  { %1899 = vrot.lane.b32.xlu1 %v13771_v13, %s11607_s15  ;;  %v759_v13 = vsel %vm223_vm0, %v11079_v49, 0.0 }
 0x70a   :  { %v14136_v14 = vpop.xlane.xlu0 %706 }
 0x70e   :  { %v1958_v48 = vpop.permute.xlu0 %1957 }
 0x70f   :  { %v2244_v10 = vsel %vm2145_vm1, %v13949_v47, %v1958_v48  ;;  %v11078_v47 = vunpack.i.l.bf16 %v17332_v38  ;;  %v17335_v48 = vld [vmem:[#allocation165_spill] sm:$0xff] }
 0x710   :  { %v14143_v41 = vmul.f32 0.015625, %v2244_v10  ;;  %v11039_v10 = vunpack.i.h.bf16 %v17335_v48 }
 0x711   :  { %v756_v58 = vsel %vm223_vm0, %v11078_v47, 0.0 }
 0x712   :  { %17333 = vst [vmem:[#allocation173_spill] sm:$0xff] %v14143_v41  ;;  %v2756_v57 = vmax.f32 %v14143_v41, 0.0 }
 0x713   :  { %v14138_v32 = vpop.xlane.xlu1 %703 }
 0x717   :  { %v1960_v28 = vpop.permute.xlu1 %1959 }
 0x718   :  { %v2245_v60 = vsel %vm2145_vm1, %v13960_v44, %v1960_v28 }
 0x719   :  { %v14147_v15 = vmul.f32 0.015625, %v2245_v60 }
 0x71b   :  { %17334 = vst [vmem:[#allocation236_spill] sm:$0xff] %v14147_v15  ;;  %v2757_v43 = vmax.f32 %v14147_v15, 0.0 }
 0x71c   :  { %760 = vadd.xlane.f32.xlu0 %v759_v13 }
 0x71d   :  { %v2835_v54 = vpack.c.bf16 %v2757_v43, %v2756_v57 }
 0x71f   :  { %10304 = vmatpush3.bf16.msra.mxu1 %v2835_v54 }
 0x725   :  { %757 = vadd.xlane.f32.xlu1 %v756_v58 }
 0x732   :  { %1993 = vrot.lane.b32.xlu0 %v13781_v63, %s11607_s15 }
 0x736   :  { %1995 = vrot.lane.b32.xlu1 %v13791_v27, %s11607_s15  ;;  %v711_v27 = vsel %vm223_vm0, %v11039_v10, 0.0 }
 0x73f   :  { %v14158_v44 = vpop.xlane.xlu0 %850 }
 0x743   :  { %v1930_v4 = vpop.permute.xlu0 %1929 }
 0x744   :  { %v2230_v5 = vsel %vm2145_vm1, %v13954_v56, %v1930_v4  ;;  %v11038_v56 = vunpack.i.l.bf16 %v17335_v48  ;;  %v11309_v4 = vunpack.i.h.bf16 %v13882_v61 }
 0x745   :  { %v14165_v38 = vmul.f32 0.015625, %v2230_v5 }
 0x746   :  { %v708_v43 = vsel %vm223_vm0, %v11038_v56, 0.0 }
 0x747   :  { %17336 = vst [vmem:[#allocation165_spill] sm:$0xff] %v14165_v38  ;;  %v2742_v60 = vmax.f32 %v14165_v38, 0.0 }
 0x748   :  { %v14160_v62 = vpop.xlane.xlu1 %847 }
 0x74c   :  { %v1932_v49 = vpop.permute.xlu1 %1931 }
 0x74d   :  { %v2231_v28 = vsel %vm2145_vm1, %v13964_v34, %v1932_v49 }
 0x74e   :  { %v14169_v63 = vmul.f32 0.015625, %v2231_v28 }
 0x750   :  { %17337 = vst [vmem:[#allocation237_spill] sm:$0xff] %v14169_v63  ;;  %v2743_v13 = vmax.f32 %v14169_v63, 0.0 }
 0x751   :  { %712 = vadd.xlane.f32.xlu0 %v711_v27 }
 0x752   :  { %v2828_v57 = vpack.c.bf16 %v2743_v13, %v2742_v60 }
 0x754   :  { %10193 = vmatprep.subr.bf16.mxu0 %v2828_v57 }
 0x75a   :  { %709 = vadd.xlane.f32.xlu1 %v708_v43  ;;  %v11314_v43 = vunpack.i.h.bf16 %v13904_v3 }
 0x767   :  { %1961 = vrot.lane.b32.xlu0 %v13749_v55, %s11607_s15 }
 0x76b   :  { %1963 = vrot.lane.b32.xlu1 %v13801_v18, %s11607_s15  ;;  %v855_v18 = vsel %vm223_vm0, %v11309_v4, 0.0 }
 0x774   :  { %v14180_v34 = vpop.xlane.xlu0 %802 }
 0x778   :  { %v1898_v54 = vpop.permute.xlu0 %1897 }
 0x779   :  { %v2214_v58 = vsel %vm2145_vm1, %v13958_v37, %v1898_v54  ;;  %v11308_v37 = vunpack.i.l.bf16 %v13882_v61 }
 0x77a   :  { %v14187_v5 = vmul.f32 0.015625, %v2214_v58 }
 0x77b   :  { %v852_v60 = vsel %vm223_vm0, %v11308_v37, 0.0  ;;  %v17342_v37 = vld [vmem:[#allocation176_spill] sm:$0xff] }
 0x77c   :  { %17338 = vst [vmem:[#allocation238_spill] sm:$0xff] %v14187_v5  ;;  %v2726_v49 = vmax.f32 %v14187_v5, 0.0 }
 0x77d   :  { %v14182_v47 = vpop.xlane.xlu1 %799 }
 0x781   :  { %v1900_v48 = vpop.permute.xlu1 %1899 }
 0x782   :  { %v2215_v10 = vsel %vm2145_vm1, %v13970_v29, %v1900_v48 }
 0x783   :  { %v14191_v55 = vmul.f32 0.015625, %v2215_v10 }
 0x785   :  { %17339 = vst [vmem:[#allocation239_spill] sm:$0xff] %v14191_v55  ;;  %v2727_v28 = vmax.f32 %v14191_v55, 0.0 }
 0x786   :  { %856 = vadd.xlane.f32.xlu0 %v855_v18 }
 0x787   :  { %v2820_v27 = vpack.c.bf16 %v2727_v28, %v2726_v49 }
 0x789   :  { %10194 = vmatpush3.bf16.msra.mxu0 %v2820_v27 }
 0x78f   :  { %853 = vadd.xlane.f32.xlu1 %v852_v60  ;;  %v11084_v60 = vunpack.i.h.bf16 %v17342_v37 }
 0x79c   :  { %1933 = vrot.lane.b32.xlu0 %v13811_v6, %s11607_s15 }
 0x7a0   :  { %1935 = vrot.lane.b32.xlu1 %v13821_v7, %s11607_s15  ;;  %v807_v7 = vsel %vm223_vm0, %v11314_v43, 0.0 }
 0x7a9   :  { %v14202_v29 = vpop.xlane.xlu0 %760 }
 0x7ad   :  { %v1994_v13 = vpop.permute.xlu0 %1993 }
 0x7ae   :  { %v2262_v56 = vsel %vm2145_vm1, %v13962_v25, %v1994_v13  ;;  %v11313_v25 = vunpack.i.l.bf16 %v13904_v3 }
 0x7af   :  { %v14209_v61 = vmul.f32 0.015625, %v2262_v56  ;;  %v17344_v56 = vld [vmem:[#allocation222_spill] sm:$0xff] }
 0x7b0   :  { %v804_v18 = vsel %vm223_vm0, %v11313_v25, 0.0 }
 0x7b1   :  { %17340 = vst [vmem:[#allocation240_spill] sm:$0xff] %v14209_v61  ;;  %v2774_v4 = vmax.f32 %v14209_v61, 0.0 }
 0x7b2   :  { %v14204_v57 = vpop.xlane.xlu1 %757 }
 0x7b6   :  { %v1996_v54 = vpop.permute.xlu1 %1995 }
 0x7b7   :  { %v2263_v58 = vsel %vm2145_vm1, %v13976_v23, %v1996_v54 }
 0x7b8   :  { %v14213_v6 = vmul.f32 0.015625, %v2263_v58 }
 0x7ba   :  { %17341 = vst [vmem:[#allocation241_spill] sm:$0xff] %v14213_v6  ;;  %v2775_v48 = vmax.f32 %v14213_v6, 0.0  ;;  %v2911_v6 = vld [vmem:[#allocation6 + $0x1e8] sm:$0xff] }
 0x7bb   :  { %808 = vadd.xlane.f32.xlu0 %v807_v7 }
 0x7bc   :  { %v2844_v10 = vpack.c.bf16 %v2775_v48, %v2774_v4  ;;  %v2859_v4 = vld [vmem:[#allocation6 + $0x48] sm:$0xff] }
 0x7be   :  { %10305 = vmatprep.subr.bf16.mxu1 %v2844_v10  ;;  %v11083_v10 = vunpack.i.l.bf16 %v17342_v37  ;;  %v17347_v37 = vld [vmem:[#allocation154_spill] sm:$0xff] }
 0x7c4   :  { %805 = vadd.xlane.f32.xlu1 %v804_v18  ;;  %v762_v18 = vsel %vm223_vm0, %v11083_v10, 0.0  ;;  %v2891_v10 = vld [vmem:[#allocation6 + $0x148] sm:$0xff] }
 0x7d1   :  { %1901 = vrot.lane.b32.xlu0 %v13757_v35, %s11607_s15 }
 0x7d5   :  { %1903 = vrot.lane.b32.xlu1 %v13839_v59, %s11607_s15  ;;  %v765_v59 = vsel %vm223_vm0, %v11084_v60, 0.0 }
 0x7de   :  { %v14224_v23 = vpop.xlane.xlu0 %712 }
 0x7e2   :  { %v1962_v49 = vpop.permute.xlu0 %1961 }
 0x7e3   :  { %v2246_v27 = vsel %vm2145_vm1, %v13968_v39, %v1962_v49  ;;  %v2863_v39 = vld [vmem:[#allocation6 + $0x68] sm:$0xff] }
 0x7e4   :  { %v14231_v3 = vmul.f32 0.015625, %v2246_v27  ;;  %v9401_v48 = vcombine.high %v2859_v4, %v2863_v39  ;;  %v9400_v25 = vcombine.low %v2859_v4, %v2863_v39  ;;  %v2867_v49 = vld [vmem:[#allocation6 + $0x88] sm:$0xff] }
 0x7e5   :  { %v2871_v27 = vld [vmem:[#allocation6 + $0xa8] sm:$0xff] }
 0x7e6   :  { %17343 = vst [vmem:[#allocation176_spill] sm:$0xff] %v14231_v3  ;;  %v2758_v54 = vmax.f32 %v14231_v3, 0.0  ;;  %3979 = vmatprep.mubr.bf16.mxu0 %v9401_v48  ;;  %v9409_v60 = vcombine.high %v2867_v49, %v2871_v27  ;;  %v2887_v4 = vld [vmem:[#allocation6 + $0x128] sm:$0xff] }
 0x7e7   :  { %v14226_v28 = vpop.xlane.xlu1 %709  ;;  %3980 = vmatmul.mubr.bf16.gmra.mrb[68].mxu0 %v9400_v25  ;;  %v2895_v25 = vld [vmem:[#allocation6 + $0x168] sm:$0xff] }
 0x7e8   :  { %3987 = vmatprep.mubr.bf16.mxu0 %v9409_v60  ;;  %v2899_v60 = vld [vmem:[#allocation6 + $0x188] sm:$0xff] }
 0x7eb   :  { %v1964_v13 = vpop.permute.xlu1 %1963 }
 0x7ec   :  { %v2247_v43 = vsel %vm2145_vm1, %v17344_v56, %v1964_v13  ;;  %v9408_v13 = vcombine.low %v2867_v49, %v2871_v27  ;;  %v2875_v56 = vld [vmem:[#allocation6 + $0xc8] sm:$0xff]  ;;  %v9432_v49 = vcombine.low %v2891_v10, %v2895_v25 }
 0x7ed   :  { %v14235_v35 = vmul.f32 0.015625, %v2247_v43  ;;  %v2879_v43 = vld [vmem:[#allocation6 + $0xe8] sm:$0xff] }
 0x7ef   :  { %17345 = vst [vmem:[#allocation222_spill] sm:$0xff] %v14235_v35  ;;  %v2759_v58 = vmax.f32 %v14235_v35, 0.0  ;;  %3988 = vmatmul.mubr.bf16.gmra.mrb[72].mxu0 %v9408_v13  ;;  %v2903_v13 = vld [vmem:[#allocation6 + $0x1a8] sm:$0xff]  ;;  %v17360_v35 = vld [vmem:[#allocation133_spill] sm:$0xff] }
 0x7f0   :  { %766 = vadd.xlane.f32.xlu0 %v765_v59  ;;  %v9417_v59 = vcombine.high %v2875_v56, %v2879_v43 }
 0x7f1   :  { %v2836_v7 = vpack.c.bf16 %v2759_v58, %v2758_v54  ;;  %v9416_v54 = vcombine.low %v2875_v56, %v2879_v43  ;;  %v17346_v58 = vld [vmem:[#allocation131_spill] sm:$0xff]  ;;  %v9441_v56 = vcombine.high %v2899_v60, %v2903_v13 }
 0x7f2   :  { %3995 = vmatprep.mubr.bf16.mxu0 %v9417_v59  ;;  %v9440_v59 = vcombine.low %v2899_v60, %v2903_v13 }
 0x7f3   :  { %10306 = vmatpush3.bf16.msra.mxu1 %v2836_v7  ;;  %v2883_v7 = vld [vmem:[#allocation6 + $0x108] sm:$0xff] }
 0x7f4   :  { %v9425_v39 = vcombine.high %v2883_v7, %v2887_v4  ;;  %v9424_v48 = vcombine.low %v2883_v7, %v2887_v4  ;;  %v17349_v7 = vld [vmem:[#allocation168_spill] sm:$0xff] }
 0x7f5   :  { %v11044_v4 = vunpack.i.h.bf16 %v17349_v7 }
 0x7f7   :  { %3996 = vmatmul.mubr.bf16.gmra.mrb[76].mxu0 %v9416_v54  ;;  %v717_v60 = vsel %vm223_vm0, %v11044_v4, 0.0  ;;  %v2923_v4 = vld [vmem:[#allocation6 + $0x248] sm:$0xff] }
 0x7f8   :  { %4003 = vmatprep.mubr.bf16.mxu0 %v9425_v39  ;;  %v9465_v1 = vcombine.high %v2923_v4, %v2927_v12 }
 0x7f9   :  { %763 = vadd.xlane.f32.xlu1 %v762_v18  ;;  %v9433_v18 = vcombine.high %v2891_v10, %v2895_v25  ;;  %v17351_v10 = vld [vmem:[#allocation224_spill] sm:$0xff] }
 0x7ff   :  { %4004 = vmatmul.mubr.bf16.gmra.mrb[80].mxu0 %v9424_v48 }
 0x800   :  { %4011 = vmatprep.mubr.bf16.mxu0 %v9433_v18 }
 0x806   :  { %1997 = vrot.lane.b32.xlu0 %v17346_v58, %s11607_s15  ;;  %v17348_v58 = vld [vmem:[#allocation171_spill] sm:$0xff] }
 0x807   :  { %4012 = vmatmul.mubr.bf16.gmra.mrb[84].mxu0 %v9432_v49  ;;  %v2907_v49 = vld [vmem:[#allocation6 + $0x1c8] sm:$0xff] }
 0x808   :  { %4019 = vmatprep.mubr.bf16.mxu0 %v9441_v56  ;;  %v9449_v13 = vcombine.high %v2907_v49, %v2911_v6 }
 0x80a   :  { %1999 = vrot.lane.b32.xlu1 %v17347_v37, %s11607_s15 }
 0x80f   :  { %4020 = vmatmul.mubr.bf16.gmra.mrb[88].mxu0 %v9440_v59  ;;  %v9448_v59 = vcombine.low %v2907_v49, %v2911_v6  ;;  %v17353_v6 = vld [vmem:[#allocation132_spill] sm:$0xff]  ;;  %v2931_v49 = vld [vmem:[#allocation6 + $0x288] sm:$0xff] }
 0x810   :  { %4027 = vmatprep.mubr.bf16.mxu0 %v9449_v13 }
 0x813   :  { %v14246_v27 = vpop.xlane.xlu0 %856 }
 0x817   :  { %v1934_v43 = vpop.permute.xlu0 %1933  ;;  %4028 = vmatmul.mubr.bf16.gmra.mrb[92].mxu0 %v9448_v59 }
 0x818   :  { %v2232_v37 = vsel %vm2145_vm1, %v17348_v58, %v1934_v43 }
 0x819   :  { %v14253_v39 = vmul.f32 0.015625, %v2232_v37  ;;  %v11043_v37 = vunpack.i.l.bf16 %v17349_v7  ;;  %v2935_v7 = vld [vmem:[#allocation6 + $0x2a8] sm:$0xff] }
 0x81a   :  { %v9473_v13 = vcombine.high %v2931_v49, %v2935_v7 }
 0x81b   :  { %17350 = vst [vmem:[#allocation131_spill] sm:$0xff] %v14253_v39  ;;  %v2744_v56 = vmax.f32 %v14253_v39, 0.0  ;;  %v714_v50 = vsel %vm223_vm0, %v11043_v37, 0.0  ;;  %v2951_v37 = vld [vmem:[#allocation6 + $0x328] sm:$0xff] }
 0x81c   :  { %v14248_v54 = vpop.xlane.xlu1 %853 }
 0x820   :  { %v1936_v48 = vpop.permute.xlu1 %1935 }
 0x821   :  { %v2233_v25 = vsel %vm2145_vm1, %v17351_v10, %v1936_v48  ;;  %v2915_v48 = vld [vmem:[#allocation6 + $0x208] sm:$0xff] }
 0x822   :  { %v14257_v18 = vmul.f32 0.015625, %v2233_v25  ;;  %v2919_v10 = vld [vmem:[#allocation6 + $0x228] sm:$0xff] }
 0x823   :  { %v9457_v25 = vcombine.high %v2915_v48, %v2919_v10  ;;  %v9456_v61 = vcombine.low %v2915_v48, %v2919_v10 }
 0x824   :  { %17352 = vst [vmem:[#allocation154_spill] sm:$0xff] %v14257_v18  ;;  %v2745_v43 = vmax.f32 %v14257_v18, 0.0 }
 0x825   :  { %718 = vadd.xlane.f32.xlu0 %v717_v60  ;;  %4035 = vmatprep.mubr.bf16.mxu0 %v9457_v25  ;;  %v9464_v60 = vcombine.low %v2923_v4, %v2927_v12  ;;  %v2947_v12 = vld [vmem:[#allocation6 + $0x308] sm:$0xff] }
 0x826   :  { %v2829_v58 = vpack.c.bf16 %v2745_v43, %v2744_v56  ;;  %4036 = vmatmul.mubr.bf16.gmra.mrb[96].mxu0 %v9456_v61  ;;  %v9472_v56 = vcombine.low %v2931_v49, %v2935_v7  ;;  %v17354_v43 = vld [vmem:[#allocation157_spill] sm:$0xff]  ;;  %v2943_v61 = vld [vmem:[#allocation6 + $0x2e8] sm:$0xff]  ;;  %v9489_v48 = vcombine.high %v2947_v12, %v2951_v37  ;;  %v9488_v10 = vcombine.low %v2947_v12, %v2951_v37 }
 0x827   :  { %4043 = vmatprep.mubr.bf16.mxu0 %v9465_v1  ;;  %v2955_v49 = vld [vmem:[#allocation6 + $0x348] sm:$0xff] }
 0x828   :  { %10195 = vmatprep.subr.bf16.mxu0 %v2829_v58  ;;  %v2959_v7 = vld [vmem:[#allocation6 + $0x368] sm:$0xff] }
 0x82e   :  { %715 = vadd.xlane.f32.xlu1 %v714_v50  ;;  %4044 = vmatmul.mubr.bf16.gmra.mrb[100].mxu0 %v9464_v60  ;;  %v2939_v50 = vld [vmem:[#allocation6 + $0x2c8] sm:$0xff]  ;;  %v17355_v60 = vld [vmem:[#allocation221_spill] sm:$0xff] }
 0x82f   :  { %4051 = vmatprep.mubr.bf16.mxu0 %v9473_v13  ;;  %v9481_v59 = vcombine.high %v2939_v50, %v2943_v61  ;;  %v9480_v58 = vcombine.low %v2939_v50, %v2943_v61  ;;  %v9497_v13 = vcombine.high %v2955_v49, %v2959_v7  ;;  %v9496_v50 = vcombine.low %v2955_v49, %v2959_v7  ;;  %v2967_v49 = vld [vmem:[#allocation6 + $0x3a8] sm:$0xff] }
 0x836   :  { %4052 = vmatmul.mubr.bf16.gmra.mrb[104].mxu0 %v9472_v56  ;;  %v17356_v56 = vld [vmem:[#allocation164_spill] sm:$0xff] }
 0x837   :  { %4059 = vmatprep.mubr.bf16.mxu0 %v9481_v59 }
 0x83b   :  { %1965 = vrot.lane.b32.xlu0 %v17353_v6, %s11607_s15 }
 0x83e   :  { %4060 = vmatmul.mubr.bf16.gmra.mrb[108].mxu0 %v9480_v58  ;;  %v17358_v58 = vld [vmem:[#allocation225_spill] sm:$0xff] }
 0x83f   :  { %1967 = vrot.lane.b32.xlu1 %v17354_v43, %s11607_s15  ;;  %4067 = vmatprep.mubr.bf16.mxu0 %v9489_v48  ;;  %v11319_v43 = vunpack.i.h.bf16 %v17356_v56 }
 0x841   :  { %v861_v48 = vsel %vm223_vm0, %v11319_v43, 0.0 }
 0x846   :  { %4068 = vmatmul.mubr.bf16.gmra.mrb[112].mxu0 %v9488_v10 }
 0x847   :  { %4075 = vmatprep.mubr.bf16.mxu0 %v9497_v13 }
 0x848   :  { %v14268_v1 = vpop.xlane.xlu0 %808 }
 0x84c   :  { %v1902_v25 = vpop.permute.xlu0 %1901 }
 0x84d   :  { %v2216_v6 = vsel %vm2145_vm1, %v17355_v60, %v1902_v25  ;;  %v16821_v60 = vmov 0  }
 0x84e   :  { %v14275_v61 = vmul.f32 0.015625, %v2216_v6  ;;  %4076 = vmatmul.mubr.bf16.gmra.mrb[116].mxu0 %v9496_v50  ;;  %11325 = vset.pattern.permute.xlu0 %v16821_v60  ;;  %v2963_v6 = vld [vmem:[#allocation6 + $0x388] sm:$0xff]  ;;  %v11318_v50 = vunpack.i.l.bf16 %v17356_v56 }
 0x84f   :  { %11326 = vset.pattern.permute.xlu1 %v16821_v60  ;;  %v9505_v13 = vcombine.high %v2963_v6, %v2967_v49 }
 0x850   :  { %17357 = vst [vmem:[#allocation171_spill] sm:$0xff] %v14275_v61  ;;  %v2728_v10 = vmax.f32 %v14275_v61, 0.0  ;;  %v858_v43 = vsel %vm223_vm0, %v11318_v50, 0.0  ;;  %v17387_v61 = vld [vmem:[#allocation170_spill] sm:$0xff] }
 0x851   :  { %v14270_v4 = vpop.xlane.xlu1 %805  ;;  %4083 = vmatprep.mubr.bf16.mxu0 %v9505_v13  ;;  %v17363_v13 = vld [vmem:[#allocation219_spill] sm:$0xff] }
 0x855   :  { %v1904_v59 = vpop.permute.xlu1 %1903 }
 0x856   :  { %v2217_v12 = vsel %vm2145_vm1, %v17358_v58, %v1904_v59  ;;  %v9504_v59 = vcombine.low %v2963_v6, %v2967_v49  ;;  %v2971_v58 = vld [vmem:[#allocation6 + $0x3c8] sm:$0xff] }
 0x857   :  { %v14279_v37 = vmul.f32 0.015625, %v2217_v12  ;;  %v2975_v12 = vld [vmem:[#allocation6 + $0x3e8] sm:$0xff] }
 0x858   :  { %4084 = vmatmul.mubr.bf16.gmra.mrb[120].mxu0 %v9504_v59  ;;  %v9512_v52 = vcombine.low %v2971_v58, %v2975_v12  ;;  %v17362_v49 = vld [vmem:[#allocation223_spill] sm:$0xff]  ;;  %v11324_v59 = vunpack.i.h.bf16 %v17363_v13 }
 0x859   :  { %17359 = vst [vmem:[#allocation168_spill] sm:$0xff] %v14279_v37  ;;  %v2729_v25 = vmax.f32 %v14279_v37, 0.0 }
 0x85a   :  { %862 = vadd.xlane.f32.xlu0 %v861_v48  ;;  %v9513_v48 = vcombine.high %v2971_v58, %v2975_v12  ;;  %v813_v58 = vsel %vm223_vm0, %v11324_v59, 0.0 }
 0x85b   :  { %v2821_v7 = vpack.c.bf16 %v2729_v25, %v2728_v10  ;;  %v17361_v10 = vld [vmem:[#allocation156_spill] sm:$0xff] }
 0x85c   :  { %4091 = vmatprep.mubr.bf16.mxu0 %v9513_v48 }
 0x85d   :  { %10196 = vmatpush3.bf16.msra.mxu0 %v2821_v7 }
 0x860   :  { %4092 = vmatmul.mubr.bf16.gmra.mrb[124].mxu0 %v9512_v52 }
 0x863   :  { %859 = vadd.xlane.f32.xlu1 %v858_v43 }
 0x870   :  { %1937 = vrot.lane.b32.xlu0 %v17360_v35, %s11607_s15 }
 0x874   :  { %1939 = vrot.lane.b32.xlu1 %v17361_v10, %s11607_s15 }
 0x87d   :  { %v14292_v25 = vpop.xlane.xlu0 %766 }
 0x881   :  { %v1998_v6 = vpop.permute.xlu0 %1997 }
 0x882   :  { %v2264_v7 = vsel %vm2145_vm1, %v17362_v49, %v1998_v6  ;;  %v11323_v6 = vunpack.i.l.bf16 %v17363_v13  ;;  %v9981_v49 = vpop.f32.mrb[0].mxu0 }
 0x883   :  { %v14299_v50 = vmul.f32 0.015625, %v2264_v7  ;;  %v9982_v60 = vpop.f32.mrb[1].mxu0 }
 0x884   :  { %v810_v7 = vsel %vm223_vm0, %v11323_v6, 0.0  ;;  %v14310_v3 = vadd.f32 %v9982_v60, %v9981_v49  ;;  %v17367_v60 = vld [vmem:[#allocation136_spill] sm:$0xff] }
 0x885   :  { %17364 = vst [vmem:[#allocation224_spill] sm:$0xff] %v14299_v50  ;;  %v2776_v12 = vmax.f32 %v14299_v50, 0.0 }
 0x886   :  { %v14294_v56 = vpop.xlane.xlu1 %763 }
 0x88a   :  { %v2000_v43 = vpop.permute.xlu1 %1999 }
 0x88b   :  { %v2265_v52 = vsel %vm2145_vm1, %v13988_v45, %v2000_v43  ;;  %v9984_v45 = vpop.f32.mrb[2].mxu0 }
 0x88c   :  { %v14303_v35 = vmul.f32 0.015625, %v2265_v52  ;;  %v9985_v43 = vpop.f32.mrb[3].mxu0 }
 0x88d   :  { %v14312_v52 = vadd.f32 %v9985_v43, %v9984_v45  ;;  %v9987_v59 = vpop.f32.mrb[4].mxu0 }
 0x88e   :  { %17365 = vst [vmem:[#allocation132_spill] sm:$0xff] %v14303_v35  ;;  %v2777_v48 = vmax.f32 %v14303_v35, 0.0  ;;  %v9988_v50 = vpop.f32.mrb[5].mxu0 }
 0x88f   :  { %814 = vadd.xlane.f32.xlu0 %v813_v58  ;;  %v14314_v15 = vadd.f32 %v9988_v50, %v9987_v59  ;;  %v9990_v58 = vpop.f32.mrb[6].mxu0  ;;  %v17369_v59 = vld [vmem:[#allocation134_spill] sm:$0xff] }
 0x890   :  { %v2845_v10 = vpack.c.bf16 %v2777_v48, %v2776_v12  ;;  %v9991_v12 = vpop.f32.mrb[7].mxu0 }
 0x891   :  { %v14316_v48 = vadd.f32 %v9991_v12, %v9990_v58  ;;  %v9993_v13 = vpop.f32.mrb[8].mxu0  ;;  %v17370_v12 = vld [vmem:[#allocation135_spill] sm:$0xff] }
 0x892   :  { %10307 = vmatprep.subr.bf16.mxu1 %v2845_v10  ;;  %v9994_v10 = vpop.f32.mrb[9].mxu0 }
 0x893   :  { %v14318_v35 = vadd.f32 %v9994_v10, %v9993_v13  ;;  %v9996_v6 = vpop.f32.mrb[10].mxu0 }
 0x894   :  { %v9997_v49 = vpop.f32.mrb[11].mxu0 }
 0x895   :  { %17366 = vst [vmem:[#allocation157_spill] sm:$0xff] %v14318_v35  ;;  %v9999_v45 = vpop.f32.mrb[12].mxu0 }
 0x896   :  { %v10000_v43 = vpop.f32.mrb[13].mxu0 }
 0x897   :  { %v14324_v41 = vadd.f32 %v10000_v43, %v9999_v45  ;;  %v10002_v50 = vpop.f32.mrb[14].mxu0  ;;  %v17373_v43 = vld [vmem:[#allocation117_spill] sm:$0xff] }
 0x898   :  { %811 = vadd.xlane.f32.xlu1 %v810_v7  ;;  %v14322_v7 = vadd.f32 %v9997_v49, %v9996_v6  ;;  %v10003_v58 = vpop.f32.mrb[15].mxu0  ;;  %v17372_v49 = vld [vmem:[#allocation112_spill] sm:$0xff] }
 0x899   :  { %17368 = vst [vmem:[#allocation221_spill] sm:$0xff] %v14324_v41  ;;  %v14330_v13 = vadd.f32 %v10003_v58, %v10002_v50  ;;  %v10005_v10 = vpop.f32.mrb[16].mxu0  ;;  %v17375_v58 = vld [vmem:[#allocation159_spill] sm:$0xff] }
 0x89a   :  { %v10006_v19 = vpop.f32.mrb[17].mxu0 }
 0x89b   :  { %v10008_v6 = vpop.f32.mrb[18].mxu0 }
 0x89c   :  { %v10009_v45 = vpop.f32.mrb[19].mxu0 }
 0x89d   :  { %v10011_v0 = vpop.f32.mrb[20].mxu0  ;;  %v14338_v18 = vadd.f32 %v10009_v45, %v10008_v6 }
 0x8a5   :  { %1905 = vrot.lane.b32.xlu0 %v17367_v60, %s11607_s15  ;;  %v14332_v60 = vadd.f32 %v10006_v19, %v10005_v10 }
 0x8a7   :  { %17371 = vst [vmem:[#allocation164_spill] sm:$0xff] %v14332_v60 }
 0x8a9   :  { %1969 = vrot.lane.b32.xlu0 %v17369_v59, %s11607_s15  ;;  %1907 = vrot.lane.b32.xlu1 %v17370_v12, %s11607_s15  ;;  %v10012_v59 = vpop.f32.mrb[21].mxu0  ;;  %v17376_v12 = vld [vmem:[#allocation110_spill] sm:$0xff] }
 0x8aa   :  { %v14340_v39 = vadd.f32 %v10012_v59, %v10011_v0  ;;  %v10014_v50 = vpop.f32.mrb[22].mxu0  ;;  %v17378_v0 = vld [vmem:[#allocation158_spill] sm:$0xff]  ;;  %v17379_v59 = vld [vmem:[#allocation111_spill] sm:$0xff] }
 0x8ab   :  { %v10015_v19 = vpop.f32.mrb[23].mxu0 }
 0x8ac   :  { %17374 = vst [vmem:[#allocation225_spill] sm:$0xff] %v14340_v39  ;;  %v14346_v10 = vadd.f32 %v10015_v19, %v10014_v50 }
 0x8ad   :  { %1941 = vrot.lane.b32.xlu0 %v17372_v49, %s11607_s15  ;;  %2001 = vrot.lane.b32.xlu1 %v17373_v43, %s11607_s15  ;;  %v10017_v49 = vpop.f32.mrb[24].mxu0 }
 0x8ae   :  { %v10018_v63 = vpop.f32.mrb[25].mxu0 }
 0x8af   :  { %v14350_v43 = vadd.f32 %v10018_v63, %v10017_v49  ;;  %v10020_v6 = vpop.f32.mrb[26].mxu0 }
 0x8b0   :  { %v10021_v45 = vpop.f32.mrb[27].mxu0 }
 0x8b1   :  { %1909 = vrot.lane.b32.xlu0 %v17375_v58, %s11607_s15  ;;  %2003 = vrot.lane.b32.xlu1 %v17376_v12, %s11607_s15  ;;  %17377 = vst [vmem:[#allocation133_spill] sm:$0xff] %v14350_v43  ;;  %v14356_v58 = vadd.f32 %v10021_v45, %v10020_v6  ;;  %v10023_v40 = vpop.f32.mrb[28].mxu0 }
 0x8b2   :  { %v14348_v38 = vpop.xlane.xlu0 %718  ;;  %v10024_v12 = vpop.f32.mrb[29].mxu0 }
 0x8b3   :  { %17380 = vst [vmem:[#allocation156_spill] sm:$0xff] %v14356_v58  ;;  %v14358_v50 = vadd.f32 %v10024_v12, %v10023_v40  ;;  %v10026_v19 = vpop.f32.mrb[30].mxu0  ;;  %v17386_v12 = vld [vmem:[#allocation120_spill] sm:$0xff] }
 0x8b4   :  { %v10027_v63 = vpop.f32.mrb[31].mxu0 }
 0x8b5   :  { %2005 = vrot.lane.b32.xlu0 %v17378_v0, %s11607_s15  ;;  %1971 = vrot.lane.b32.xlu1 %v17379_v59, %s11607_s15  ;;  %17381 = vst [vmem:[#allocation223_spill] sm:$0xff] %v14358_v50  ;;  %v14364_v0 = vadd.f32 %v10027_v63, %v10026_v19  ;;  %v10029_v53 = vpop.f32.mrb[32].mxu0 }
 0x8b6   :  { %v1966_v49 = vpop.permute.xlu0 %1965  ;;  %v10030_v37 = vpop.f32.mrb[33].mxu0 }
 0x8b7   :  { %17384 = vst [vmem:[#allocation219_spill] sm:$0xff] %v14364_v0  ;;  %v14368_v6 = vadd.f32 %v10030_v37, %v10029_v53  ;;  %v10032_v45 = vpop.f32.mrb[34].mxu0  ;;  %v2248_v40 = vsel %vm2145_vm1, %v14008_v36, %v1966_v49  ;;  %v17391_v49 = vld [vmem:[#allocation178_spill] sm:$0xff]  ;;  %v14505_v0 = vld [vmem:[#allocation6 + $0x18] sm:$0xff] }
 0x8b8   :  { %v14378_v55 = vmul.f32 0.015625, %v2248_v40 }
 0x8b9   :  { %1973 = vrot.lane.b32.xlu0 %v17382_v9, %s11607_s15  ;;  %1943 = vrot.lane.b32.xlu1 %v17383_v46, %s11607_s15  ;;  %17385 = vst [vmem:[#allocation136_spill] sm:$0xff] %v14368_v6  ;;  %v10033_v9 = vpop.f32.mrb[35].mxu0 }
 0x8ba   :  { %v14376_v46 = vadd.f32 %v10033_v9, %v10032_v45  ;;  %v10035_v19 = vpop.f32.mrb[36].mxu0  ;;  %17389 = vst [vmem:[#allocation135_spill] sm:$0xff] %v14378_v55  ;;  %v2760_v40 = vmax.f32 %v14378_v55, 0.0 }
 0x8bb   :  { %v14366_v59 = vpop.xlane.xlu1 %715  ;;  %v10036_v63 = vpop.f32.mrb[37].mxu0 }
 0x8bc   :  { %17388 = vst [vmem:[#allocation134_spill] sm:$0xff] %v14376_v46  ;;  %v14380_v53 = vadd.f32 %v10036_v63, %v10035_v19  ;;  %v10038_v37 = vpop.f32.mrb[38].mxu0  ;;  %v2406_v46 = vld [vmem:[%s16605_s3 + $0x20] sm:$0xff] }
 0x8bd   :  { %1945 = vrot.lane.b32.xlu0 %v17386_v12, %s11607_s15  ;;  %1911 = vrot.lane.b32.xlu1 %v17387_v61, %s11607_s15  ;;  %v10039_v12 = vpop.f32.mrb[39].mxu0  ;;  %v17393_v61 = vld [vmem:[#allocation116_spill] sm:$0xff] }
 0x8be   :  { %17390 = vst [vmem:[#allocation112_spill] sm:$0xff] %v14380_v53  ;;  %v10041_v45 = vpop.f32.mrb[40].mxu0  ;;  %v14392_v63 = vadd.f32 %v10039_v12, %v10038_v37  ;;  %v17400_v12 = vld [vmem:[#allocation160_spill] sm:$0xff] }
 0x8bf   :  { %v1968_v5 = vpop.permute.xlu1 %1967  ;;  %v10042_v9 = vpop.f32.mrb[41].mxu0 }
 0x8c0   :  { %v2249_v36 = vsel %vm2145_vm1, %v14006_v8, %v1968_v5  ;;  %17394 = vst [vmem:[#allocation159_spill] sm:$0xff] %v14392_v63  ;;  %v14394_v16 = vadd.f32 %v10042_v9, %v10041_v45  ;;  %v10044_v8 = vpop.f32.mrb[42].mxu0  ;;  %v17396_v5 = vld [vmem:[#allocation175_spill] sm:$0xff] }
 0x8c1   :  { %1913 = vrot.lane.b32.xlu0 %v17391_v49, %s11607_s15  ;;  %v14386_v30 = vmul.f32 0.015625, %v2249_v36  ;;  %2007 = vrot.lane.b32.xlu1 %v17393_v61, %s11607_s15  ;;  %v10045_v49 = vpop.f32.mrb[43].mxu0  ;;  %v17397_v36 = vld [vmem:[#allocation119_spill] sm:$0xff] }
 0x8c2   :  { %17395 = vst [vmem:[#allocation110_spill] sm:$0xff] %v14394_v16  ;;  %v14400_v61 = vadd.f32 %v10045_v49, %v10044_v8  ;;  %v10047_v21 = vpop.f32.mrb[44].mxu0  ;;  %v17401_v9 = vld [vmem:[#allocation167_spill] sm:$0xff]  ;;  %v17404_v8 = vld [vmem:[#allocation177_spill] sm:$0xff] }
 0x8c3   :  { %17392 = vst [vmem:[#allocation117_spill] sm:$0xff] %v14386_v30  ;;  %v2761_v19 = vmax.f32 %v14386_v30, 0.0  ;;  %v10048_v53 = vpop.f32.mrb[45].mxu0 }
 0x8c4   :  { %17398 = vst [vmem:[#allocation158_spill] sm:$0xff] %v14400_v61  ;;  %v14402_v55 = vadd.f32 %v10048_v53, %v10047_v21  ;;  %v10050_v37 = vpop.f32.mrb[46].mxu0  ;;  %v2411_v61 = vld [vmem:[%s16605_s3 + $0x48] sm:$0xff] }
 0x8c5   :  { %2009 = vrot.lane.b32.xlu0 %v17396_v5, %s11607_s15  ;;  %1975 = vrot.lane.b32.xlu1 %v17397_v36, %s11607_s15  ;;  %v2837_v24 = vpack.c.bf16 %v2761_v19, %v2760_v40  ;;  %v10051_v45 = vpop.f32.mrb[47].mxu0 }
 0x8c6   :  { %17399 = vst [vmem:[#allocation111_spill] sm:$0xff] %v14402_v55  ;;  %v14408_v5 = vadd.f32 %v10051_v45, %v10050_v37  ;;  %v10053_v30 = vpop.f32.mrb[48].mxu0  ;;  %v17408_v45 = vld [vmem:[#allocation215_spill] sm:$0xff] }
 0x8c7   :  { %10308 = vmatpush3.bf16.msra.mxu1 %v2837_v24  ;;  %v10054_v36 = vpop.f32.mrb[49].mxu0  ;;  %v17405_v24 = vld [vmem:[#allocation162_spill] sm:$0xff] }
 0x8c8   :  { %17402 = vst [vmem:[#allocation118_spill] sm:$0xff] %v14408_v5  ;;  %v14410_v40 = vadd.f32 %v10054_v36, %v10053_v30  ;;  %v10056_v19 = vpop.f32.mrb[50].mxu0  ;;  %v14472_v5 = vld [vmem:[#allocation6 + $0x10] sm:$0xff] }
 0x8c9   :  { %1977 = vrot.lane.b32.xlu0 %v17400_v12, %s11607_s15  ;;  %1947 = vrot.lane.b32.xlu1 %v17401_v9, %s11607_s15  ;;  %v10057_v21 = vpop.f32.mrb[51].mxu0  ;;  %v17409_v9 = vld [vmem:[#allocation180_spill] sm:$0xff] }
 0x8ca   :  { %17403 = vst [vmem:[#allocation161_spill] sm:$0xff] %v14410_v40  ;;  %v14416_v53 = vadd.f32 %v10057_v21, %v10056_v19  ;;  %v10059_v49 = vpop.f32.mrb[52].mxu0  ;;  %v17412_v21 = vld [vmem:[#allocation214_spill] sm:$0xff] }
 0x8cb   :  { %v10060_v12 = vpop.f32.mrb[53].mxu0 }
 0x8cc   :  { %17406 = vst [vmem:[#allocation120_spill] sm:$0xff] %v14416_v53  ;;  %v14418_v55 = vadd.f32 %v10060_v12, %v10059_v49  ;;  %v10062_v37 = vpop.f32.mrb[54].mxu0  ;;  %v17413_v49 = vld [vmem:[#allocation169_spill] sm:$0xff] }
 0x8cd   :  { %1949 = vrot.lane.b32.xlu0 %v17404_v8, %s11607_s15  ;;  %1915 = vrot.lane.b32.xlu1 %v17405_v24, %s11607_s15  ;;  %v10063_v30 = vpop.f32.mrb[55].mxu0 }
 0x8ce   :  { %17407 = vst [vmem:[#allocation170_spill] sm:$0xff] %v14418_v55  ;;  %v10065_v36 = vpop.f32.mrb[56].mxu0  ;;  %v14424_v40 = vadd.f32 %v10063_v30, %v10062_v37  ;;  %v17416_v37 = vld [vmem:[#allocation216_spill] sm:$0xff] }
 0x8cf   :  { %v10066_v8 = vpop.f32.mrb[57].mxu0 }
 0x8d0   :  { %17410 = vst [vmem:[#allocation178_spill] sm:$0xff] %v14424_v40  ;;  %v14426_v16 = vadd.f32 %v10066_v8, %v10065_v36  ;;  %v10068_v19 = vpop.f32.mrb[58].mxu0  ;;  %v17417_v36 = vld [vmem:[#allocation172_spill] sm:$0xff]  ;;  %v2402_v8 = vld [vmem:[%s16605_s3] sm:$0xff] }
 0x8d1   :  { %1917 = vrot.lane.b32.xlu0 %v17408_v45, %s11607_s15  ;;  %2011 = vrot.lane.b32.xlu1 %v17409_v9, %s11607_s15  ;;  %v10069_v24 = vpop.f32.mrb[59].mxu0 }
 0x8d2   :  { %17411 = vst [vmem:[#allocation116_spill] sm:$0xff] %v14426_v16  ;;  %v14432_v12 = vadd.f32 %v10069_v24, %v10068_v19  ;;  %v10071_v45 = vpop.f32.mrb[60].mxu0 }
 0x8d3   :  { %v10072_v55 = vpop.f32.mrb[61].mxu0 }
 0x8d4   :  { %17414 = vst [vmem:[#allocation175_spill] sm:$0xff] %v14432_v12  ;;  %v14434_v53 = vadd.f32 %v10072_v55, %v10071_v45  ;;  %v10074_v9 = vpop.f32.mrb[62].mxu0 }
 0x8d5   :  { %2013 = vrot.lane.b32.xlu0 %v17412_v21, %s11607_s15  ;;  %1979 = vrot.lane.b32.xlu1 %v17413_v49, %s11607_s15  ;;  %v10075_v30 = vpop.f32.mrb[63].mxu0 }
 0x8d6   :  { %17415 = vst [vmem:[#allocation119_spill] sm:$0xff] %v14434_v53  ;;  %v14443_v21 = vadd.f32 %v10075_v30, %v10074_v9  ;;  %v10093_v19 = vpop.f32.mrb[64].mxu0  ;;  %v17419_v53 = vld [vmem:[#allocation217_spill] sm:$0xff] }
 0x8d7   :  { %v10094_v24 = vpop.f32.mrb[65].mxu0 }
 0x8d8   :  { %17418 = vst [vmem:[#allocation160_spill] sm:$0xff] %v14443_v21  ;;  %v14445_v49 = vadd.f32 %v10094_v24, %v10093_v19  ;;  %v10096_v55 = vpop.f32.mrb[66].mxu0  ;;  %v17420_v24 = vld [vmem:[#allocation220_spill] sm:$0xff] }
 0x8d9   :  { %1981 = vrot.lane.b32.xlu0 %v17416_v37, %s11607_s15  ;;  %1951 = vrot.lane.b32.xlu1 %v17417_v36, %s11607_s15  ;;  %v10097_v45 = vpop.f32.mrb[67].mxu0  ;;  %v2405_v37 = vld [vmem:[%s16605_s3 + $0x18] sm:$0xff] }
 0x8da   :  { %v14452_v36 = vadd.f32 %v10097_v45, %v10096_v55  ;;  %v10099_v16 = vpop.f32.mrb[68].mxu0 }
 0x8db   :  { %v10100_v12 = vpop.f32.mrb[69].mxu0 }
 0x8dc   :  { %v14454_v9 = vadd.f32 %v10100_v12, %v10099_v16  ;;  %v10102_v30 = vpop.f32.mrb[70].mxu0  ;;  %v17422_v12 = vld [vmem:[#allocation218_spill] sm:$0xff] }
 0x8dd   :  { %2980 = vperm.xlu0 %11325, %v2402_v8   ;;  %1919 = vrot.lane.b32.xlu1 %v17419_v53, %s11607_s15  ;;  %v10103_v19 = vpop.f32.mrb[71].mxu0  ;;  %v2407_v53 = vld [vmem:[%s16605_s3 + $0x28] sm:$0xff] }
 0x8de   :  { %v14461_v8 = vadd.f32 %v10103_v19, %v10102_v30  ;;  %v10105_v21 = vpop.f32.mrb[72].mxu0  ;;  %v14474_v30 = vld [vmem:[#allocation6 + $0x30] sm:$0xff] }
 0x8df   :  { %v10106_v40 = vpop.f32.mrb[73].mxu0  ;;  %v9395_v19 = vcombine.high %v14472_v5, %v14474_v30 }
 0x8e0   :  { %v14463_v55 = vadd.f32 %v10106_v40, %v10105_v21  ;;  %v10108_v45 = vpop.f32.mrb[74].mxu0  ;;  %v2403_v40 = vld [vmem:[%s16605_s3 + $0x8] sm:$0xff] }
 0x8e1   :  { %2995 = vperm.xlu0 %11325, %v2405_v37   ;;  %2015 = vrot.lane.b32.xlu1 %v17420_v24, %s11607_s15  ;;  %v10109_v16 = vpop.f32.mrb[75].mxu0  ;;  %v2409_v37 = vld [vmem:[%s16605_s3 + $0x38] sm:$0xff] }
 0x8e2   :  { %17421 = vst [vmem:[#allocation167_spill] sm:$0xff] %v14463_v55  ;;  %v14470_v24 = vadd.f32 %v10109_v16, %v10108_v45  ;;  %v10111_v6 = vpop.f32.mrb[76].mxu0  ;;  %4132 = vmatprep.mubr.bf16.mxu0 %v9395_v19 }
 0x8e3   :  { %v10112_v21 = vpop.f32.mrb[77].mxu0 }
 0x8e5   :  { %3005 = vperm.xlu0 %11325, %v2407_v53   ;;  %1983 = vrot.lane.b32.xlu1 %v17422_v12, %s11607_s15  ;;  %v14481_v53 = vadd.f32 %v10112_v21, %v10111_v6  ;;  %v10114_v12 = vpop.f32.mrb[78].mxu0  ;;  %v2404_v6 = vld [vmem:[%s16605_s3 + $0x10] sm:$0xff] }
 0x8e6   :  { %v10115_v50 = vpop.f32.mrb[79].mxu0 }
 0x8e7   :  { %17423 = vst [vmem:[#allocation177_spill] sm:$0xff] %v14481_v53  ;;  %v14485_v16 = vpop.xlane.xlu0 %862  ;;  %v14490_v43 = vadd.f32 %v10115_v50, %v10114_v12  ;;  %v10117_v63 = vpop.f32.mrb[80].mxu0 }
 0x8e8   :  { %v10118_v21 = vpop.f32.mrb[81].mxu0 }
 0x8e9   :  { %3015 = vperm.xlu0 %11325, %v2409_v37   ;;  %2985 = vperm.xlu1 %11326, %v2403_v40   ;;  %v14495_v39 = vadd.f32 %v10118_v21, %v10117_v63  ;;  %v10120_v45 = vpop.f32.mrb[82].mxu0  ;;  %v2413_v40 = vld [vmem:[%s16605_s3 + $0x58] sm:$0xff]  ;;  %v2408_v21 = vld [vmem:[%s16605_s3 + $0x30] sm:$0xff] }
 0x8ea   :  { %v10121_v37 = vpop.f32.mrb[83].mxu0  ;;  %v14507_v63 = vld [vmem:[#allocation6 + $0x38] sm:$0xff] }
 0x8eb   :  { %17424 = vst [vmem:[#allocation162_spill] sm:$0xff] %v14495_v39  ;;  %v14500_v19 = vadd.f32 %v10121_v37, %v10120_v45  ;;  %v10123_v50 = vpop.f32.mrb[84].mxu0  ;;  %v1938_v12 = vpop.permute.xlu0 %1937  ;;  %17425 = vst [vmem:[#allocation215_spill] sm:$0xff] %v14507_v63  ;;  %v9397_v45 = vcombine.high %v14505_v0, %v14507_v63 }
 0x8ec   :  { %v10124_v60 = vpop.f32.mrb[85].mxu0  ;;  %v2234_v53 = vsel %vm2145_vm1, %v14028_v51, %v1938_v12 }
 0x8ed   :  { %3025 = vperm.xlu0 %11325, %v2411_v61   ;;  %2990 = vperm.xlu1 %11326, %v2404_v6   ;;  %v14509_v61 = vadd.f32 %v10124_v60, %v10123_v50  ;;  %v10126_v6 = vpop.f32.mrb[86].mxu0  ;;  %v2415_v60 = vld [vmem:[%s16605_s3 + $0x68] sm:$0xff] }
 0x8ee   :  { %v10127_v39 = vpop.f32.mrb[87].mxu0  ;;  %4293 = vmatprep.mubr.bf16.mxu1 %v9397_v45 }
 0x8ef   :  { %17426 = vst [vmem:[#allocation180_spill] sm:$0xff] %v14509_v61  ;;  %v14522_v50 = vadd.f32 %v10127_v39, %v10126_v6  ;;  %v10129_v61 = vpop.f32.mrb[88].mxu0  ;;  %v2417_v39 = vld [vmem:[%s16605_s3 + $0x78] sm:$0xff] }
 0x8f0   :  { %v14515_v37 = vpop.xlane.xlu1 %859  ;;  %v10130_v41 = vpop.f32.mrb[89].mxu0 }
 0x8f1   :  { %3035 = vperm.xlu0 %11325, %v2413_v40   ;;  %3000 = vperm.xlu1 %11326, %v2406_v46   ;;  %17427 = vst [vmem:[#allocation214_spill] sm:$0xff] %v14522_v50  ;;  %v10132_v58 = vpop.f32.mrb[90].mxu0  ;;  %v14527_v40 = vmul.f32 0.015625, %v2234_v53  ;;  %v14529_v51 = vadd.f32 %v10130_v41, %v10129_v61  ;;  %v2410_v53 = vld [vmem:[%s16605_s3 + $0x40] sm:$0xff] }
 0x8f2   :  { %v10133_v46 = vpop.f32.mrb[91].mxu0 }
 0x8f3   :  { %17428 = vst [vmem:[#allocation169_spill] sm:$0xff] %v14527_v40  ;;  %17429 = vst [vmem:[#allocation216_spill] sm:$0xff] %v14529_v51  ;;  %v14536_v6 = vadd.f32 %v10133_v46, %v10132_v58  ;;  %v2746_v41 = vmax.f32 %v14527_v40, 0.0  ;;  %v2412_v58 = vld [vmem:[%s16605_s3 + $0x50] sm:$0xff]  ;;  %v2430_v51 = vld [vmem:[%s16605_s3 + $0xe0] sm:$0xff] }
 0x8f4   :  { %v1940_v55 = vpop.permute.xlu1 %1939 }
 0x8f5   :  { %3045 = vperm.xlu0 %11325, %v2415_v60   ;;  %v2235_v12 = vsel %vm2145_vm1, %v14026_v2, %v1940_v55  ;;  %3010 = vperm.xlu1 %11326, %v2408_v21   ;;  %17430 = vst [vmem:[#allocation172_spill] sm:$0xff] %v14536_v6  ;;  %v2419_v2 = vld [vmem:[%s16605_s3 + $0x88] sm:$0xff]  ;;  %v10135_v55 = vpop.f32.mrb[92].mxu0 }
 0x8f6   :  { %v14538_v45 = vmul.f32 0.015625, %v2235_v12  ;;  %v10136_v60 = vpop.f32.mrb[93].mxu0 }
 0x8f7   :  { %v10138_v46 = vpop.f32.mrb[94].mxu0  ;;  %v14551_v12 = vadd.f32 %v10136_v60, %v10135_v55  ;;  %v2416_v55 = vld [vmem:[%s16605_s3 + $0x70] sm:$0xff] }
 0x8f8   :  { %17431 = vst [vmem:[#allocation217_spill] sm:$0xff] %v14538_v45  ;;  %v2747_v61 = vmax.f32 %v14538_v45, 0.0  ;;  %v10139_v40 = vpop.f32.mrb[95].mxu0 }
 0x8f9   :  { %3055 = vperm.xlu0 %11325, %v2417_v39   ;;  %3020 = vperm.xlu1 %11326, %v2410_v53   ;;  %17432 = vst [vmem:[#allocation220_spill] sm:$0xff] %v14551_v12  ;;  %v2421_v39 = vld [vmem:[%s16605_s3 + $0x98] sm:$0xff]  ;;  %v14556_v53 = vadd.f32 %v10139_v40, %v10138_v46  ;;  %v2426_v12 = vld [vmem:[%s16605_s3 + $0xc0] sm:$0xff] }
 0x8fa   :  { %v2830_v21 = vpack.c.bf16 %v2747_v61, %v2746_v41  ;;  %v2414_v41 = vld [vmem:[%s16605_s3 + $0x60] sm:$0xff]  ;;  %v2423_v61 = vld [vmem:[%s16605_s3 + $0xa8] sm:$0xff]  ;;  %v2425_v46 = vld [vmem:[%s16605_s3 + $0xb8] sm:$0xff] }
 0x8fb   :  { %17433 = vst [vmem:[#allocation218_spill] sm:$0xff] %v14556_v53 }
 0x8fc   :  { %10197 = vmatprep.subr.bf16.mxu0 %v2830_v21 }
 0x8fd   :  { %3065 = vperm.xlu0 %11325, %v2419_v2   ;;  %3030 = vperm.xlu1 %11326, %v2412_v58   ;;  %v10141_v2 = vpop.f32.mrb[96].mxu0 }
 0x8fe   :  { %v10142_v21 = vpop.f32.mrb[97].mxu0 }
 0x8ff   :  { %v10144_v58 = vpop.f32.mrb[98].mxu0  ;;  %v14567_v40 = vadd.f32 %v10142_v21, %v10141_v2 }
 0x900   :  { %v10145_v60 = vpop.f32.mrb[99].mxu0 }
 0x901   :  { %3075 = vperm.xlu0 %11325, %v2421_v39   ;;  %3040 = vperm.xlu1 %11326, %v2414_v41   ;;  %17434 = vst [vmem:[#allocation242_spill] sm:$0xff] %v14567_v40  ;;  %v14572_v39 = vadd.f32 %v10145_v60, %v10144_v58  ;;  %v2418_v41 = vld [vmem:[%s16605_s3 + $0x80] sm:$0xff]  ;;  %v10147_v2 = vpop.f32.mrb[100].mxu0 }
 0x902   :  { %v10148_v21 = vpop.f32.mrb[101].mxu0  ;;  %v2422_v40 = vld [vmem:[%s16605_s3 + $0xa0] sm:$0xff] }
 0x903   :  { %17435 = vst [vmem:[#allocation243_spill] sm:$0xff] %v14572_v39  ;;  %v10150_v45 = vpop.f32.mrb[102].mxu0  ;;  %v14583_v58 = vadd.f32 %v10148_v21, %v10147_v2 }
 0x904   :  { %v10151_v60 = vpop.f32.mrb[103].mxu0 }
 0x905   :  { %3085 = vperm.xlu0 %11325, %v2423_v61   ;;  %3050 = vperm.xlu1 %11326, %v2416_v55   ;;  %v2427_v61 = vld [vmem:[%s16605_s3 + $0xc8] sm:$0xff]  ;;  %v2420_v55 = vld [vmem:[%s16605_s3 + $0x90] sm:$0xff]  ;;  %17436 = vst [vmem:[#allocation244_spill] sm:$0xff] %v14583_v58 }
 0x909   :  { %3095 = vperm.xlu0 %11325, %v2425_v46   ;;  %3060 = vperm.xlu1 %11326, %v2418_v41   ;;  %v2429_v46 = vld [vmem:[%s16605_s3 + $0xd8] sm:$0xff]  ;;  %v14588_v41 = vadd.f32 %v10151_v60, %v10150_v45  ;;  %v10153_v2 = vpop.f32.mrb[104].mxu0 }
 0x90a   :  { %v10154_v21 = vpop.f32.mrb[105].mxu0 }
 0x90b   :  { %17437 = vst [vmem:[#allocation245_spill] sm:$0xff] %v14588_v41  ;;  %v14599_v58 = vadd.f32 %v10154_v21, %v10153_v2  ;;  %v10156_v45 = vpop.f32.mrb[106].mxu0  ;;  %v2435_v2 = vld [vmem:[%s16605_s3 + $0x108] sm:$0xff] }
 0x90c   :  { %v10157_v60 = vpop.f32.mrb[107].mxu0 }
 0x90d   :  { %3105 = vperm.xlu0 %11325, %v2427_v61   ;;  %3070 = vperm.xlu1 %11326, %v2420_v55   ;;  %v2431_v61 = vld [vmem:[%s16605_s3 + $0xe8] sm:$0xff]  ;;  %v2424_v55 = vld [vmem:[%s16605_s3 + $0xb0] sm:$0xff]  ;;  %17438 = vst [vmem:[#allocation246_spill] sm:$0xff] %v14599_v58 }
 0x911   :  { %3115 = vperm.xlu0 %11325, %v2429_v46   ;;  %3080 = vperm.xlu1 %11326, %v2422_v40   ;;  %v2433_v40 = vld [vmem:[%s16605_s3 + $0xf8] sm:$0xff]  ;;  %v14604_v46 = vadd.f32 %v10157_v60, %v10156_v45  ;;  %v10159_v21 = vpop.f32.mrb[108].mxu0 }
 0x913   :  { %17439 = vst [vmem:[#allocation247_spill] sm:$0xff] %v14604_v46 }
 0x915   :  { %3125 = vperm.xlu0 %11325, %v2431_v61   ;;  %3090 = vperm.xlu1 %11326, %v2424_v55   ;;  %v2428_v61 = vld [vmem:[%s16605_s3 + $0xd0] sm:$0xff]  ;;  %v10160_v55 = vpop.f32.mrb[109].mxu0 }
 0x916   :  { %v14617_v45 = vadd.f32 %v10160_v55, %v10159_v21  ;;  %v10162_v60 = vpop.f32.mrb[110].mxu0  ;;  %v2439_v21 = vld [vmem:[%s16605_s3 + $0x128] sm:$0xff] }
 0x917   :  { %v10163_v46 = vpop.f32.mrb[111].mxu0 }
 0x918   :  { %17440 = vst [vmem:[#allocation248_spill] sm:$0xff] %v14617_v45 }
 0x919   :  { %3135 = vperm.xlu0 %11325, %v2433_v40   ;;  %3100 = vperm.xlu1 %11326, %v2426_v12   ;;  %v2437_v12 = vld [vmem:[%s16605_s3 + $0x118] sm:$0xff]  ;;  %v14622_v40 = vadd.f32 %v10163_v46, %v10162_v60 }
 0x91b   :  { %17441 = vst [vmem:[#allocation249_spill] sm:$0xff] %v14622_v40 }
 0x91c   :  { %v14615_v58 = vpop.xlane.xlu0 %814 }
 0x91d   :  { %4605 = vperm.xlu0 %11325, %v2435_v2   ;;  %3110 = vperm.xlu1 %11326, %v2428_v61   ;;  %v10165_v2 = vpop.f32.mrb[112].mxu0  ;;  %v2432_v61 = vld [vmem:[%s16605_s3 + $0xf0] sm:$0xff] }
 0x91e   :  { %v10166_v55 = vpop.f32.mrb[113].mxu0 }
 0x91f   :  { %v14633_v46 = vadd.f32 %v10166_v55, %v10165_v2  ;;  %v10168_v60 = vpop.f32.mrb[114].mxu0  ;;  %v2434_v2 = vld [vmem:[%s16605_s3 + $0x100] sm:$0xff] }
 0x920   :  { %v1906_v41 = vpop.permute.xlu0 %1905  ;;  %v10169_v40 = vpop.f32.mrb[115].mxu0 }
 0x921   :  { %4615 = vperm.xlu0 %11325, %v2437_v12   ;;  %3120 = vperm.xlu1 %11326, %v2430_v51   ;;  %17442 = vst [vmem:[#allocation250_spill] sm:$0xff] %v14633_v46  ;;  %v2441_v51 = vld [vmem:[%s16605_s3 + $0x138] sm:$0xff]  ;;  %v14640_v12 = vadd.f32 %v10169_v40, %v10168_v60  ;;  %v2218_v53 = vsel %vm2145_vm1, %v14050_v31, %v1906_v41  ;;  %v2443_v46 = vld [vmem:[%s16605_s3 + $0x148] sm:$0xff]  ;;  %v10171_v6 = vpop.f32.mrb[116].mxu0  ;;  %v2436_v31 = vld [vmem:[%s16605_s3 + $0x110] sm:$0xff] }
 0x922   :  { %v10172_v41 = vpop.f32.mrb[117].mxu0 }
 0x923   :  { %17443 = vst [vmem:[#allocation251_spill] sm:$0xff] %v14640_v12 }
 0x924   :  { %v1970_v45 = vpop.permute.xlu0 %1969 }
 0x925   :  { %4625 = vperm.xlu0 %11325, %v2439_v21   ;;  %3130 = vperm.xlu1 %11326, %v2432_v61   ;;  %v14635_v39 = vpop.xlane.xlu1 %811  ;;  %v14647_v21 = vmul.f32 0.015625, %v2218_v53  ;;  %v14659_v53 = vadd.f32 %v10172_v41, %v10171_v6  ;;  %v2438_v6 = vld [vmem:[%s16605_s3 + $0x120] sm:$0xff] }
 0x927   :  { %17444 = vst [vmem:[#allocation252_spill] sm:$0xff] %v14647_v21  ;;  %17446 = vst [vmem:[#allocation254_spill] sm:$0xff] %v14659_v53  ;;  %v2730_v35 = vmax.f32 %v14647_v21, 0.0 }
 0x928   :  { %v1942_v55 = vpop.permute.xlu0 %1941 }
 0x929   :  { %4635 = vperm.xlu0 %11325, %v2441_v51   ;;  %4600 = vperm.xlu1 %11326, %v2434_v2   ;;  %v1908_v61 = vpop.permute.xlu1 %1907  ;;  %v10174_v2 = vpop.f32.mrb[118].mxu0 }
 0x92a   :  { %v2219_v40 = vsel %vm2145_vm1, %v14048_v33, %v1908_v61  ;;  %v10175_v12 = vpop.f32.mrb[119].mxu0  ;;  %v2445_v33 = vld [vmem:[%s16605_s3 + $0x158] sm:$0xff] }
 0x92b   :  { %v14657_v60 = vmul.f32 0.015625, %v2219_v40  ;;  %v14666_v61 = vadd.f32 %v10175_v12, %v10174_v2  ;;  %v2447_v12 = vld [vmem:[%s16605_s3 + $0x168] sm:$0xff]  ;;  %v10177_v2 = vpop.f32.mrb[120].mxu0 }
 0x92c   :  { %v1910_v51 = vpop.permute.xlu0 %1909 }
 0x92d   :  { %17445 = vst [vmem:[#allocation253_spill] sm:$0xff] %v14657_v60  ;;  %4645 = vperm.xlu0 %11325, %v2443_v46   ;;  %v2731_v50 = vmax.f32 %v14657_v60, 0.0  ;;  %4610 = vperm.xlu1 %11326, %v2436_v31   ;;  %v2002_v63 = vpop.permute.xlu1 %2001 }
 0x92e   :  { %v2266_v40 = vsel %vm2145_vm1, %v14072_v42, %v2002_v63  ;;  %v2250_v42 = vsel %vm2145_vm1, %v14094_v17, %v1970_v45 }
 0x92f   :  { %v2822_v46 = vpack.c.bf16 %v2731_v50, %v2730_v35  ;;  %v14673_v21 = vmul.f32 0.015625, %v2266_v40  ;;  %v2440_v35 = vld [vmem:[%s16605_s3 + $0x130] sm:$0xff]  ;;  %v10178_v50 = vpop.f32.mrb[121].mxu0  ;;  %v14689_v53 = vmul.f32 0.015625, %v2250_v42  ;;  %v2442_v42 = vld [vmem:[%s16605_s3 + $0x140] sm:$0xff] }
 0x930   :  { %v2006_v41 = vpop.permute.xlu0 %2005 }
 0x931   :  { %4655 = vperm.xlu0 %11325, %v2445_v33   ;;  %17447 = vst [vmem:[#allocation255_spill] sm:$0xff] %v14673_v21  ;;  %4620 = vperm.xlu1 %11326, %v2438_v6   ;;  %v2004_v31 = vpop.permute.xlu1 %2003  ;;  %v14687_v6 = vadd.f32 %v10178_v50, %v10177_v2  ;;  %17450 = vst [vmem:[#allocation258_spill] sm:$0xff] %v14689_v53  ;;  %v2778_v17 = vmax.f32 %v14673_v21, 0.0  ;;  %v2236_v2 = vsel %vm2145_vm1, %v14116_v20, %v1942_v55 }
 0x932   :  { %10198 = vmatpush3.bf16.msra.mxu0 %v2822_v46  ;;  %v2267_v63 = vsel %vm2145_vm1, %v14070_v11, %v2004_v31  ;;  %v10180_v46 = vpop.f32.mrb[122].mxu0  ;;  %v2449_v31 = vld [vmem:[%s16605_s3 + $0x178] sm:$0xff]  ;;  %v2762_v21 = vmax.f32 %v14689_v53, 0.0 }
 0x933   :  { %v14685_v33 = vmul.f32 0.015625, %v2267_v63  ;;  %17449 = vst [vmem:[#allocation257_spill] sm:$0xff] %v14687_v6  ;;  %v10181_v60 = vpop.f32.mrb[123].mxu0  ;;  %v14708_v6 = vmul.f32 0.015625, %v2236_v2 }
 0x934   :  { %v1974_v40 = vpop.permute.xlu0 %1973  ;;  %v14696_v63 = vadd.f32 %v10181_v60, %v10180_v46  ;;  %v10183_v55 = vpop.f32.mrb[124].mxu0  ;;  %v2220_v46 = vsel %vm2145_vm1, %v14138_v32, %v1910_v51 }
 0x935   :  { %17448 = vst [vmem:[#allocation256_spill] sm:$0xff] %v14685_v33  ;;  %4665 = vperm.xlu0 %11325, %v2447_v12   ;;  %v2779_v45 = vmax.f32 %v14685_v33, 0.0  ;;  %4630 = vperm.xlu1 %11326, %v2440_v35   ;;  %v1972_v11 = vpop.permute.xlu1 %1971  ;;  %17452 = vst [vmem:[#allocation260_spill] sm:$0xff] %v14708_v6  ;;  %v2748_v53 = vmax.f32 %v14708_v6, 0.0  ;;  %v14726_v32 = vmul.f32 0.015625, %v2220_v46  ;;  %v2551_v6 = vld [vmem:[%s16605_s3 + $0x4a8] sm:$0xff] }
 0x936   :  { %v2251_v12 = vsel %vm2145_vm1, %v14092_v26, %v1972_v11  ;;  %v2451_v26 = vld [vmem:[%s16605_s3 + $0x188] sm:$0xff]  ;;  %v10184_v11 = vpop.f32.mrb[125].mxu0 }
 0x937   :  { %v14705_v50 = vmul.f32 0.015625, %v2251_v12  ;;  %v2846_v33 = vpack.c.bf16 %v2779_v45, %v2778_v17  ;;  %v2444_v45 = vld [vmem:[%s16605_s3 + $0x150] sm:$0xff]  ;;  %v14723_v12 = vadd.f32 %v10184_v11, %v10183_v55  ;;  %17454 = vst [vmem:[#allocation262_spill] sm:$0xff] %v14726_v32  ;;  %v2732_v11 = vmax.f32 %v14726_v32, 0.0  ;;  %v2561_v32 = vld [vmem:[%s16605_s3 + $0x4f8] sm:$0xff] }
 0x938   :  { %v1946_v35 = vpop.permute.xlu0 %1945 }
 0x939   :  { %17451 = vst [vmem:[#allocation259_spill] sm:$0xff] %v14705_v50  ;;  %4675 = vperm.xlu0 %11325, %v2449_v31   ;;  %v2763_v60 = vmax.f32 %v14705_v50, 0.0  ;;  %4640 = vperm.xlu1 %11326, %v2442_v42   ;;  %v1944_v20 = vpop.permute.xlu1 %1943  ;;  %v10186_v42 = vpop.f32.mrb[126].mxu0 }
 0x93a   :  { %10309 = vmatprep.subr.bf16.mxu1 %v2846_v33  ;;  %v2237_v17 = vsel %vm2145_vm1, %v14114_v22, %v1944_v20  ;;  %v10187_v50 = vpop.f32.mrb[127].mxu0  ;;  %v2453_v20 = vld [vmem:[%s16605_s3 + $0x198] sm:$0xff] }
 0x93b   :  { %v14721_v31 = vmul.f32 0.015625, %v2237_v17  ;;  %v2838_v33 = vpack.c.bf16 %v2763_v60, %v2762_v21  ;;  %v14732_v17 = vadd.f32 %v10187_v50, %v10186_v42  ;;  %v2268_v21 = vsel %vm2145_vm1, %v14160_v62, %v2006_v41  ;;  %v2448_v42 = vld [vmem:[%s16605_s3 + $0x170] sm:$0xff] }
 0x93c   :  { %v1914_v2 = vpop.permute.xlu0 %1913  ;;  %v2252_v41 = vsel %vm2145_vm1, %v14182_v47, %v1974_v40  ;;  %v2238_v40 = vsel %vm2145_vm1, %v14204_v57, %v1946_v35 }
 0x93d   :  { %17453 = vst [vmem:[#allocation261_spill] sm:$0xff] %v14721_v31  ;;  %4685 = vperm.xlu0 %11325, %v2451_v26   ;;  %v2749_v22 = vmax.f32 %v14721_v31, 0.0  ;;  %4650 = vperm.xlu1 %11326, %v2444_v45   ;;  %v1912_v51 = vpop.permute.xlu1 %1911  ;;  %v2446_v26 = vld [vmem:[%s16605_s3 + $0x160] sm:$0xff]  ;;  %v2222_v35 = vsel %vm2145_vm1, %v14226_v28, %v1914_v2 }
 0x93e   :  { %10310 = vmatpush3.bf16.msra.mxu1 %v2838_v33  ;;  %v2221_v60 = vsel %vm2145_vm1, %v14136_v14, %v1912_v51  ;;  %v14744_v33 = vmul.f32 0.015625, %v2268_v21  ;;  %v2455_v14 = vld [vmem:[%s16605_s3 + $0x1a8] sm:$0xff] }
 0x93f   :  { %v14741_v55 = vmul.f32 0.015625, %v2221_v60  ;;  %v2831_v45 = vpack.c.bf16 %v2749_v22, %v2748_v53  ;;  %v14760_v60 = vmul.f32 0.015625, %v2252_v41 }
 0x940   :  { %v2010_v46 = vpop.permute.xlu0 %2009  ;;  %17456 = vst [vmem:[#allocation264_spill] sm:$0xff] %v14744_v33  ;;  %v2780_v21 = vmax.f32 %v14744_v33, 0.0 }
 0x941   :  { %17455 = vst [vmem:[#allocation263_spill] sm:$0xff] %v14741_v55  ;;  %4695 = vperm.xlu0 %11325, %v2453_v20   ;;  %v2733_v50 = vmax.f32 %v14741_v55, 0.0  ;;  %4660 = vperm.xlu1 %11326, %v2446_v26   ;;  %v2008_v62 = vpop.permute.xlu1 %2007  ;;  %17458 = vst [vmem:[#allocation266_spill] sm:$0xff] %v14760_v60  ;;  %v2764_v41 = vmax.f32 %v14760_v60, 0.0  ;;  %v2270_v2 = vsel %vm2145_vm1, %v14248_v54, %v2010_v46 }
 0x942   :  { %10199 = vmatprep.subr.bf16.mxu0 %v2831_v45  ;;  %v2269_v53 = vsel %vm2145_vm1, %v14158_v44, %v2008_v62  ;;  %v2457_v44 = vld [vmem:[%s16605_s3 + $0x1b8] sm:$0xff] }
 0x943   :  { %v2823_v22 = vpack.c.bf16 %v2733_v50, %v2732_v11  ;;  %v14757_v51 = vmul.f32 0.015625, %v2269_v53  ;;  %v2450_v11 = vld [vmem:[%s16605_s3 + $0x180] sm:$0xff]  ;;  %v14776_v53 = vmul.f32 0.015625, %v2238_v40 }
 0x944   :  { %v1978_v20 = vpop.permute.xlu0 %1977 }
 0x945   :  { %17457 = vst [vmem:[#allocation265_spill] sm:$0xff] %v14757_v51  ;;  %4705 = vperm.xlu0 %11325, %v2455_v14   ;;  %v2781_v26 = vmax.f32 %v14757_v51, 0.0  ;;  %4670 = vperm.xlu1 %11326, %v2448_v42   ;;  %v1976_v47 = vpop.permute.xlu1 %1975  ;;  %17460 = vst [vmem:[#allocation268_spill] sm:$0xff] %v14776_v53  ;;  %v2750_v40 = vmax.f32 %v14776_v53, 0.0  ;;  %v2254_v46 = vsel %vm2145_vm1, %v14270_v4, %v1978_v20  ;;  %v2549_v53 = vld [vmem:[%s16605_s3 + $0x498] sm:$0xff] }
 0x946   :  { %10200 = vmatpush3.bf16.msra.mxu0 %v2823_v22  ;;  %v2253_v45 = vsel %vm2145_vm1, %v14180_v34, %v1976_v47  ;;  %v2459_v34 = vld [vmem:[%s16605_s3 + $0x1c8] sm:$0xff] }
 0x947   :  { %v14773_v50 = vmul.f32 0.015625, %v2253_v45  ;;  %v2847_v14 = vpack.c.bf16 %v2781_v26, %v2780_v21  ;;  %v2452_v21 = vld [vmem:[%s16605_s3 + $0x190] sm:$0xff]  ;;  %v14792_v45 = vmul.f32 0.015625, %v2222_v35  ;;  %v14808_v35 = vmul.f32 0.015625, %v2270_v2 }
 0x948   :  { %v1950_v62 = vpop.permute.xlu0 %1949  ;;  %v14824_v2 = vmul.f32 0.015625, %v2254_v46 }
 0x949   :  { %17459 = vst [vmem:[#allocation267_spill] sm:$0xff] %v14773_v50  ;;  %4715 = vperm.xlu0 %11325, %v2457_v44   ;;  %v2765_v42 = vmax.f32 %v14773_v50, 0.0  ;;  %4680 = vperm.xlu1 %11326, %v2450_v11   ;;  %v1948_v57 = vpop.permute.xlu1 %1947  ;;  %17462 = vst [vmem:[#allocation270_spill] sm:$0xff] %v14792_v45  ;;  %v2240_v4 = vsel %vm2145_vm1, %v14294_v56, %v1950_v62  ;;  %v2490_v50 = vld [vmem:[%s16605_s3 + $0x2c0] sm:$0xff] }
 0x94a   :  { %10311 = vmatprep.subr.bf16.mxu1 %v2847_v14  ;;  %v2239_v22 = vsel %vm2145_vm1, %v14202_v29, %v1948_v57  ;;  %v2461_v29 = vld [vmem:[%s16605_s3 + $0x1d8] sm:$0xff]  ;;  %17464 = vst [vmem:[#allocation272_spill] sm:$0xff] %v14808_v35  ;;  %17466 = vst [vmem:[#allocation274_spill] sm:$0xff] %v14824_v2  ;;  %v14840_v46 = vmul.f32 0.015625, %v2240_v4 }
 0x94b   :  { %v14789_v26 = vmul.f32 0.015625, %v2239_v22  ;;  %v2839_v44 = vpack.c.bf16 %v2765_v42, %v2764_v41  ;;  %v2454_v41 = vld [vmem:[%s16605_s3 + $0x1a0] sm:$0xff] }
 0x94c   :  { %v1918_v47 = vpop.permute.xlu0 %1917  ;;  %17468 = vst [vmem:[#allocation276_spill] sm:$0xff] %v14840_v46  ;;  %v2752_v4 = vmax.f32 %v14840_v46, 0.0 }
 0x94d   :  { %17461 = vst [vmem:[#allocation269_spill] sm:$0xff] %v14789_v26  ;;  %4725 = vperm.xlu0 %11325, %v2459_v34   ;;  %v2751_v11 = vmax.f32 %v14789_v26, 0.0  ;;  %4690 = vperm.xlu1 %11326, %v2452_v21   ;;  %v1916_v28 = vpop.permute.xlu1 %1915  ;;  %v2734_v34 = vmax.f32 %v14792_v45, 0.0  ;;  %v2224_v62 = vsel %vm2145_vm1, %v14366_v59, %v1918_v47  ;;  %v2557_v45 = vld [vmem:[%s16605_s3 + $0x4d8] sm:$0xff] }
 0x94e   :  { %10312 = vmatpush3.bf16.msra.mxu1 %v2839_v44  ;;  %v2223_v14 = vsel %vm2145_vm1, %v14224_v23, %v1916_v28  ;;  %v2463_v23 = vld [vmem:[%s16605_s3 + $0x1e8] sm:$0xff] }
 0x94f   :  { %v14805_v42 = vmul.f32 0.015625, %v2223_v14  ;;  %v2832_v57 = vpack.c.bf16 %v2751_v11, %v2750_v40  ;;  %v2456_v40 = vld [vmem:[%s16605_s3 + $0x1b0] sm:$0xff] }
 0x950   :  { %v2014_v21 = vpop.permute.xlu0 %2013 }
 0x951   :  { %17463 = vst [vmem:[#allocation271_spill] sm:$0xff] %v14805_v42  ;;  %4735 = vperm.xlu0 %11325, %v2461_v29   ;;  %v2735_v22 = vmax.f32 %v14805_v42, 0.0  ;;  %4700 = vperm.xlu1 %11326, %v2454_v41   ;;  %v2012_v54 = vpop.permute.xlu1 %2011  ;;  %v2782_v29 = vmax.f32 %v14808_v35, 0.0  ;;  %v2482_v35 = vld [vmem:[%s16605_s3 + $0x280] sm:$0xff] }
 0x952   :  { %10201 = vmatprep.subr.bf16.mxu0 %v2832_v57  ;;  %v2271_v44 = vsel %vm2145_vm1, %v14246_v27, %v2012_v54  ;;  %v2465_v27 = vld [vmem:[%s16605_s3 + $0x1f8] sm:$0xff]  ;;  %v2458_v57 = vld [vmem:[%s16605_s3 + $0x1c0] sm:$0xff] }
 0x953   :  { %v2824_v11 = vpack.c.bf16 %v2735_v22, %v2734_v34  ;;  %v14821_v28 = vmul.f32 0.015625, %v2271_v44 }
 0x954   :  { %v1982_v34 = vpop.permute.xlu0 %1981 }
 0x955   :  { %17465 = vst [vmem:[#allocation273_spill] sm:$0xff] %v14821_v28  ;;  %4745 = vperm.xlu0 %11325, %v2463_v23   ;;  %v2783_v14 = vmax.f32 %v14821_v28, 0.0  ;;  %4710 = vperm.xlu1 %11326, %v2456_v40   ;;  %v1980_v41 = vpop.permute.xlu1 %1979  ;;  %v2766_v23 = vmax.f32 %v14824_v2, 0.0 }
 0x956   :  { %10202 = vmatpush3.bf16.msra.mxu0 %v2824_v11  ;;  %v2255_v20 = vsel %vm2145_vm1, %v14268_v1, %v1980_v41  ;;  %v2467_v1 = vld [vmem:[%s16605_s3 + $0x208] sm:$0xff]  ;;  %v2460_v11 = vld [vmem:[%s16605_s3 + $0x1d0] sm:$0xff] }
 0x957   :  { %v14837_v22 = vmul.f32 0.015625, %v2255_v20  ;;  %v2848_v54 = vpack.c.bf16 %v2783_v14, %v2782_v29  ;;  %v14857_v20 = vmul.f32 0.015625, %v2224_v62 }
 0x959   :  { %17467 = vst [vmem:[#allocation275_spill] sm:$0xff] %v14837_v22  ;;  %4755 = vperm.xlu0 %11325, %v2465_v27   ;;  %v2767_v44 = vmax.f32 %v14837_v22, 0.0  ;;  %4720 = vperm.xlu1 %11326, %v2458_v57   ;;  %v1952_v56 = vpop.permute.xlu1 %1951  ;;  %17470 = vst [vmem:[#allocation278_spill] sm:$0xff] %v14857_v20  ;;  %v2272_v57 = vsel %vm2145_vm1, %v14515_v37, %v2014_v21 }
 0x95a   :  { %10313 = vmatprep.subr.bf16.mxu1 %v2848_v54  ;;  %v2241_v40 = vsel %vm2145_vm1, %v14292_v25, %v1952_v56  ;;  %v2469_v25 = vld [vmem:[%s16605_s3 + $0x218] sm:$0xff]  ;;  %v14877_v37 = vmul.f32 0.015625, %v2272_v57 }
 0x95b   :  { %v14853_v29 = vmul.f32 0.015625, %v2241_v40  ;;  %v2840_v41 = vpack.c.bf16 %v2767_v44, %v2766_v23  ;;  %v2462_v23 = vld [vmem:[%s16605_s3 + $0x1e0] sm:$0xff]  ;;  %v2736_v40 = vmax.f32 %v14857_v20, 0.0  ;;  %v2555_v20 = vld [vmem:[%s16605_s3 + $0x4c8] sm:$0xff] }
 0x95c   :  { %v2981_v14 = vpop.permute.xlu0 %2980  ;;  %17472 = vst [vmem:[#allocation280_spill] sm:$0xff] %v14877_v37 }
 0x95d   :  { %17469 = vst [vmem:[#allocation277_spill] sm:$0xff] %v14853_v29  ;;  %v3813_v27 = vadd.f32 %v14310_v3, %v2981_v14  ;;  %4765 = vperm.xlu0 %11325, %v2467_v1   ;;  %v2753_v59 = vmax.f32 %v14853_v29, 0.0  ;;  %4730 = vperm.xlu1 %11326, %v2460_v11   ;;  %v1920_v47 = vpop.permute.xlu1 %1919  ;;  %v2256_v11 = vsel %vm2145_vm1, %v14635_v39, %v1982_v34  ;;  %v2784_v39 = vmax.f32 %v14877_v37, 0.0  ;;  %v17499_v37 = vld [vmem:[#allocation158_spill] sm:$0xff] }
 0x95e   :  { %10314 = vmatpush3.bf16.msra.mxu1 %v2840_v41  ;;  %v2225_v3 = vsel %vm2145_vm1, %v14348_v38, %v1920_v47  ;;  %v2471_v38 = vld [vmem:[%s16605_s3 + $0x228] sm:$0xff]  ;;  %v2464_v41 = vld [vmem:[%s16605_s3 + $0x1f0] sm:$0xff] }
 0x95f   :  { %v14866_v54 = vadd.f32 %v14445_v49, %v3813_v27  ;;  %v14873_v44 = vmul.f32 0.015625, %v2225_v3  ;;  %v2833_v1 = vpack.c.bf16 %v2753_v59, %v2752_v4  ;;  %v2860_v47 = vld [vmem:[#allocation6 + $0x50] sm:$0xff]  ;;  %v2473_v3 = vld [vmem:[%s16605_s3 + $0x238] sm:$0xff] }
 0x960   :  { %v2996_v56 = vpop.permute.xlu0 %2995 }
 0x961   :  { %17471 = vst [vmem:[#allocation279_spill] sm:$0xff] %v14873_v44  ;;  %v3824_v62 = vadd.f32 %v14316_v48, %v2996_v56  ;;  %4775 = vperm.xlu0 %11325, %v2469_v25   ;;  %v2737_v49 = vmax.f32 %v14873_v44, 0.0  ;;  %4740 = vperm.xlu1 %11326, %v2462_v23   ;;  %v2016_v21 = vpop.permute.xlu1 %2015  ;;  %v2864_v25 = vld [vmem:[#allocation6 + $0x70] sm:$0xff]  ;;  %v2466_v56 = vld [vmem:[%s16605_s3 + $0x200] sm:$0xff] }
 0x962   :  { %10203 = vmatprep.subr.bf16.mxu0 %v2833_v1  ;;  %v2273_v48 = vsel %vm2145_vm1, %v14485_v16, %v2016_v21  ;;  %v9403_v1 = vcombine.high %v2860_v47, %v2864_v25 }
 0x963   :  { %v14886_v14 = vadd.f32 %v14461_v8, %v3824_v62  ;;  %v2825_v27 = vpack.c.bf16 %v2737_v49, %v2736_v40  ;;  %v14893_v4 = vmul.f32 0.015625, %v2273_v48  ;;  %v14897_v8 = vmul.f32 0.015625, %v2256_v11 }
 0x964   :  { %v3006_v59 = vpop.permute.xlu0 %3005  ;;  %v17475_v62 = vmov 0  }
 0x965   :  { %17473 = vst [vmem:[#allocation281_spill] sm:$0xff] %v14893_v4  ;;  %v3832_v57 = vadd.f32 %v14322_v7, %v3006_v59  ;;  %4785 = vperm.xlu0 %11325, %v2471_v38   ;;  %17474 = vst [vmem:[#allocation282_spill] sm:$0xff] %v14897_v8  ;;  %v2785_v34 = vmax.f32 %v14893_v4, 0.0  ;;  %4750 = vperm.xlu1 %11326, %v2464_v41   ;;  %v1984_v16 = vpop.permute.xlu1 %1983  ;;  %v2475_v41 = vld [vmem:[%s16605_s3 + $0x248] sm:$0xff] }
 0x966   :  { %10204 = vmatpush3.bf16.msra.mxu0 %v2825_v27  ;;  %v2257_v7 = vsel %vm2145_vm1, %v14615_v58, %v1984_v16  ;;  %v2768_v58 = vmax.f32 %v14897_v8, 0.0  ;;  %v2865_v16 = vld [vmem:[#allocation6 + $0x78] sm:$0xff]  ;;  %v17493_v4 = vld [vmem:[#allocation243_spill] sm:$0xff]  ;;  %v2486_v8 = vld [vmem:[%s16605_s3 + $0x2a0] sm:$0xff] }
 0x967   :  { %v14904_v23 = vadd.f32 %v14470_v24, %v3832_v57  ;;  %5878 = vmatprep.subr.bf16.mxu0 %v17475_v62  ;;  %v14912_v40 = vmul.f32 0.015625, %v2257_v7  ;;  %v2849_v21 = vpack.c.bf16 %v2785_v34, %v2784_v39  ;;  %v17477_v24 = vcombine.low %v14472_v5, %v14474_v30  ;;  %v2468_v5 = vld [vmem:[%s16605_s3 + $0x210] sm:$0xff]  ;;  %v2861_v34 = vld [vmem:[#allocation6 + $0x58] sm:$0xff] }
 0x968   :  { %v3016_v49 = vpop.permute.xlu0 %3015  ;;  %v2868_v30 = vld [vmem:[#allocation6 + $0x90] sm:$0xff] }
 0x969   :  { %17476 = vst [vmem:[#allocation283_spill] sm:$0xff] %v14912_v40  ;;  %v3840_v38 = vadd.f32 %v14330_v13, %v3016_v49  ;;  %4795 = vperm.xlu0 %11325, %v2473_v3   ;;  %4133 = vmatmul.mubr.bf16.vlgmr.msra.gmra.mrb[128].mxu0 %v17477_v24  ;;  %v2769_v11 = vmax.f32 %v14912_v40, 0.0  ;;  %v2986_v48 = vpop.permute.xlu1 %2985  ;;  %v2872_v39 = vld [vmem:[#allocation6 + $0xb0] sm:$0xff]  ;;  %v17478_v24 = vld [vmem:[#allocation215_spill] sm:$0xff] }
 0x96a   :  { %4760 = vperm.xlu1 %11326, %v2466_v56   ;;  %10315 = vmatprep.subr.bf16.mxu1 %v2849_v21  ;;  %v3816_v13 = vadd.f32 %v14312_v52, %v2986_v48  ;;  %v2477_v56 = vld [vmem:[%s16605_s3 + $0x258] sm:$0xff]  ;;  %v9411_v21 = vcombine.high %v2868_v30, %v2872_v39 }
 0x96b   :  { %v14924_v27 = vadd.f32 %v14490_v43, %v3840_v38  ;;  %4140 = vmatprep.mubr.bf16.mxu0 %v9403_v1  ;;  %v2841_v57 = vpack.c.bf16 %v2769_v11, %v2768_v58  ;;  %v9402_v43 = vcombine.low %v2860_v47, %v2864_v25  ;;  %v2479_v58 = vld [vmem:[%s16605_s3 + $0x268] sm:$0xff]  ;;  %v17480_v11 = vld [vmem:[#allocation214_spill] sm:$0xff] }
 0x96c   :  { %v3026_v59 = vpop.permute.xlu0 %3025  ;;  %v14931_v3 = vadd.f32 %v14452_v36, %v3816_v13  ;;  %v2470_v36 = vld [vmem:[%s16605_s3 + $0x220] sm:$0xff]  ;;  %v2876_v13 = vld [vmem:[#allocation6 + $0xd0] sm:$0xff] }
 0x96d   :  { %v3848_v7 = vadd.f32 %v14338_v18, %v3026_v59  ;;  %4805 = vperm.xlu0 %11325, %v2475_v41   ;;  %v2991_v52 = vpop.permute.xlu1 %2990  ;;  %10316 = vmatpush3.bf16.msra.mxu1 %v2841_v57  ;;  %v9405_v18 = vcombine.high %v2861_v34, %v2865_v16  ;;  %v17481_v41 = vld [vmem:[#allocation157_spill] sm:$0xff] }
 0x96e   :  { %4770 = vperm.xlu1 %11326, %v2468_v5   ;;  %v3821_v49 = vadd.f32 %v14314_v15, %v2991_v52  ;;  %v2880_v5 = vld [vmem:[#allocation6 + $0xf0] sm:$0xff]  ;;  %v2869_v59 = vld [vmem:[#allocation6 + $0x98] sm:$0xff]  ;;  %8028 = vmatprep.subr.bf16.mxu1 %v17475_v62 }
 0x96f   :  { %v14938_v1 = vadd.f32 %v14500_v19, %v3848_v7  ;;  %v17479_v19 = vcombine.low %v14505_v0, %v17478_v24  ;;  %v2873_v57 = vld [vmem:[#allocation6 + $0xb8] sm:$0xff]  ;;  %v17482_v7 = vld [vmem:[#allocation167_spill] sm:$0xff]  ;;  %v17483_v52 = vld [vmem:[#allocation156_spill] sm:$0xff] }
 0x970   :  { %v3036_v38 = vpop.permute.xlu0 %3035  ;;  %v14945_v47 = vadd.f32 %v14454_v9, %v3821_v49  ;;  %v9410_v49 = vcombine.low %v2868_v30, %v2872_v39  ;;  %v17485_v24 = vld [vmem:[#allocation221_spill] sm:$0xff] }
 0x971   :  { %v3856_v25 = vadd.f32 %v14346_v10, %v3036_v38  ;;  %4815 = vperm.xlu0 %11325, %v2477_v56   ;;  %4141 = vmatmul.mubr.bf16.gmra.mrb[132].mxu0 %v9402_v43  ;;  %v3001_v15 = vpop.permute.xlu1 %3000  ;;  %v2472_v10 = vld [vmem:[%s16605_s3 + $0x230] sm:$0xff]  ;;  %v2481_v38 = vld [vmem:[%s16605_s3 + $0x278] sm:$0xff] }
 0x972   :  { %4294 = vmatmul.mubr.bf16.vlgmr.msra.gmra.mrb[0].mxu1 %v17479_v19  ;;  %4780 = vperm.xlu1 %11326, %v2470_v36   ;;  %v3829_v9 = vadd.f32 %v17481_v41, %v3001_v15  ;;  %v2474_v15 = vld [vmem:[%s16605_s3 + $0x240] sm:$0xff]  ;;  %v9413_v41 = vcombine.high %v2869_v59, %v2873_v57  ;;  %v17486_v30 = vld [vmem:[#allocation177_spill] sm:$0xff] }
 0x973   :  { %v14955_v48 = vadd.f32 %v17480_v11, %v3856_v25  ;;  %4148 = vmatprep.mubr.bf16.mxu0 %v9411_v21  ;;  %4301 = vmatprep.mubr.bf16.mxu1 %v9405_v18  ;;  %v9404_v21 = vcombine.low %v2861_v34, %v2865_v16  ;;  %v17484_v18 = vld [vmem:[#allocation172_spill] sm:$0xff]  ;;  %v9419_v11 = vcombine.high %v2876_v13, %v2880_v5  ;;  %v2483_v16 = vld [vmem:[%s16605_s3 + $0x288] sm:$0xff] }
 0x974   :  { %v3046_v0 = vpop.permute.xlu0 %3045  ;;  %v14962_v43 = vadd.f32 %v17482_v7, %v3829_v9  ;;  %v17487_v9 = vld [vmem:[#allocation219_spill] sm:$0xff] }
 0x975   :  { %v3864_v56 = vadd.f32 %v17483_v52, %v3046_v0  ;;  %4825 = vperm.xlu0 %11325, %v2479_v58   ;;  %v3011_v36 = vpop.permute.xlu1 %3010  ;;  %v17488_v0 = vld [vmem:[#allocation164_spill] sm:$0xff]  ;;  %v17489_v52 = vld [vmem:[#allocation218_spill] sm:$0xff] }
 0x976   :  { %4790 = vperm.xlu1 %11326, %v2472_v10   ;;  %v3837_v19 = vadd.f32 %v17485_v24, %v3011_v36  ;;  %v2476_v36 = vld [vmem:[%s16605_s3 + $0x250] sm:$0xff]  ;;  %v2881_v24 = vld [vmem:[#allocation6 + $0xf8] sm:$0xff] }
 0x977   :  { %v14969_v25 = vadd.f32 %v17484_v18, %v3864_v56  ;;  %v2877_v18 = vld [vmem:[#allocation6 + $0xd8] sm:$0xff] }
 0x978   :  { %v3056_v58 = vpop.permute.xlu0 %3055  ;;  %v14976_v39 = vadd.f32 %v17486_v30, %v3837_v19  ;;  %v17490_v19 = vld [vmem:[#allocation162_spill] sm:$0xff] }
 0x979   :  { %v3872_v10 = vadd.f32 %v17487_v9, %v3056_v58  ;;  %4835 = vperm.xlu0 %11325, %v2481_v38   ;;  %4149 = vmatmul.mubr.bf16.gmra.mrb[136].mxu0 %v9410_v49  ;;  %v3021_v34 = vpop.permute.xlu1 %3020  ;;  %v2884_v38 = vld [vmem:[#allocation6 + $0x110] sm:$0xff]  ;;  %v17491_v58 = vld [vmem:[#allocation134_spill] sm:$0xff]  ;;  %v9418_v9 = vcombine.low %v2876_v13, %v2880_v5 }
 0x97a   :  { %4302 = vmatmul.mubr.bf16.gmra.mrb[4].mxu1 %v9404_v21  ;;  %4800 = vperm.xlu1 %11326, %v2474_v15   ;;  %v3845_v7 = vadd.f32 %v17488_v0, %v3021_v34  ;;  %v2888_v21 = vld [vmem:[#allocation6 + $0x130] sm:$0xff]  ;;  %v2485_v34 = vld [vmem:[%s16605_s3 + $0x298] sm:$0xff] }
 0x97b   :  { %v14984_v56 = vadd.f32 %v17489_v52, %v3872_v10  ;;  %4156 = vmatprep.mubr.bf16.mxu0 %v9419_v11  ;;  %4309 = vmatprep.mubr.bf16.mxu1 %v9413_v41  ;;  %v9412_v11 = vcombine.low %v2869_v59, %v2873_v57  ;;  %v17492_v41 = vld [vmem:[#allocation225_spill] sm:$0xff]  ;;  %v2478_v52 = vld [vmem:[%s16605_s3 + $0x260] sm:$0xff]  ;;  %v17494_v13 = vld [vmem:[#allocation180_spill] sm:$0xff] }
 0x97c   :  { %v3066_v49 = vpop.permute.xlu0 %3065  ;;  %v14990_v15 = vadd.f32 %v17490_v19, %v3845_v7  ;;  %v9427_v19 = vcombine.high %v2884_v38, %v2888_v21  ;;  %v2487_v57 = vld [vmem:[%s16605_s3 + $0x2a8] sm:$0xff] }
 0x97d   :  { %v3880_v30 = vadd.f32 %v17491_v58, %v3066_v49  ;;  %4845 = vperm.xlu0 %11325, %v2483_v16   ;;  %v3031_v10 = vpop.permute.xlu1 %3030  ;;  %v9421_v49 = vcombine.high %v2877_v18, %v2881_v24 }
 0x97e   :  { %4810 = vperm.xlu1 %11326, %v2476_v36   ;;  %v3853_v0 = vadd.f32 %v17492_v41, %v3031_v10  ;;  %v17495_v36 = vld [vmem:[#allocation159_spill] sm:$0xff]  ;;  %v17496_v10 = vld [vmem:[#allocation133_spill] sm:$0xff] }
 0x97f   :  { %v15001_v7 = vadd.f32 %v17493_v4, %v3880_v30  ;;  %v2480_v30 = vld [vmem:[%s16605_s3 + $0x270] sm:$0xff]  ;;  %v17497_v41 = vld [vmem:[#allocation245_spill] sm:$0xff] }
 0x980   :  { %v3076_v16 = vpop.permute.xlu0 %3075  ;;  %v15004_v5 = vadd.f32 %v17494_v13, %v3853_v0  ;;  %v17498_v13 = vld [vmem:[#allocation216_spill] sm:$0xff] }
 0x981   :  { %v3888_v58 = vadd.f32 %v17495_v36, %v3076_v16  ;;  %4855 = vperm.xlu0 %11325, %v2485_v34   ;;  %4157 = vmatmul.mubr.bf16.gmra.mrb[140].mxu0 %v9418_v9  ;;  %v3041_v59 = vpop.permute.xlu1 %3040  ;;  %v2892_v34 = vld [vmem:[#allocation6 + $0x150] sm:$0xff]  ;;  %v2889_v16 = vld [vmem:[#allocation6 + $0x138] sm:$0xff] }
 0x982   :  { %4310 = vmatmul.mubr.bf16.gmra.mrb[8].mxu1 %v9412_v11  ;;  %4820 = vperm.xlu1 %11326, %v2478_v52   ;;  %v3861_v4 = vadd.f32 %v17496_v10, %v3041_v59  ;;  %v2896_v11 = vld [vmem:[#allocation6 + $0x170] sm:$0xff]  ;;  %v2885_v52 = vld [vmem:[#allocation6 + $0x118] sm:$0xff]  ;;  %v9426_v59 = vcombine.low %v2884_v38, %v2888_v21 }
 0x983   :  { %4164 = vmatprep.mubr.bf16.mxu0 %v9427_v19  ;;  %4317 = vmatprep.mubr.bf16.mxu1 %v9421_v49  ;;  %v15015_v0 = vadd.f32 %v17497_v41, %v3888_v58  ;;  %v2489_v19 = vld [vmem:[%s16605_s3 + $0x2b8] sm:$0xff]  ;;  %v9420_v49 = vcombine.low %v2877_v18, %v2881_v24  ;;  %v17500_v58 = vld [vmem:[#allocation223_spill] sm:$0xff]  ;;  %v9435_v51 = vcombine.high %v2892_v34, %v2896_v11  ;;  %v17502_v38 = vld [vmem:[#allocation220_spill] sm:$0xff] }
 0x984   :  { %v3086_v9 = vpop.permute.xlu0 %3085  ;;  %v15018_v36 = vadd.f32 %v17498_v13, %v3861_v4  ;;  %v9429_v4 = vcombine.high %v2885_v52, %v2889_v16  ;;  %v17501_v13 = vld [vmem:[#allocation247_spill] sm:$0xff] }
 0x985   :  { %v3896_v28 = vadd.f32 %v17499_v37, %v3086_v9  ;;  %4865 = vperm.xlu0 %11325, %v2487_v57   ;;  %v3051_v10 = vpop.permute.xlu1 %3050  ;;  %v17503_v57 = vld [vmem:[#allocation118_spill] sm:$0xff]  ;;  %v2491_v24 = vld [vmem:[%s16605_s3 + $0x2c8] sm:$0xff]  ;;  %v17504_v9 = vld [vmem:[#allocation136_spill] sm:$0xff] }
 0x986   :  { %4830 = vperm.xlu1 %11326, %v2480_v30   ;;  %v3869_v41 = vadd.f32 %v17500_v58, %v3051_v10  ;;  %v2900_v58 = vld [vmem:[#allocation6 + $0x190] sm:$0xff] }
 0x987   :  { %v15029_v33 = vadd.f32 %v17501_v13, %v3896_v28  ;;  %v2484_v28 = vld [vmem:[%s16605_s3 + $0x290] sm:$0xff] }
 0x988   :  { %v3096_v37 = vpop.permute.xlu0 %3095  ;;  %v15032_v21 = vadd.f32 %v17502_v38, %v3869_v41  ;;  %v17505_v41 = vld [vmem:[#allocation249_spill] sm:$0xff] }
 0x989   :  { %v3904_v30 = vadd.f32 %v17503_v57, %v3096_v37  ;;  %4875 = vperm.xlu0 %11325, %v2489_v19   ;;  %4165 = vmatmul.mubr.bf16.gmra.mrb[144].mxu0 %v9426_v59  ;;  %v3061_v18 = vpop.permute.xlu1 %3060  ;;  %v2904_v19 = vld [vmem:[#allocation6 + $0x1b0] sm:$0xff]  ;;  %v17506_v37 = vld [vmem:[#allocation242_spill] sm:$0xff] }
 0x98a   :  { %4318 = vmatmul.mubr.bf16.gmra.mrb[12].mxu1 %v9420_v49  ;;  %4840 = vperm.xlu1 %11326, %v2482_v35   ;;  %v3877_v10 = vadd.f32 %v17504_v9, %v3061_v18  ;;  %v2893_v35 = vld [vmem:[#allocation6 + $0x158] sm:$0xff]  ;;  %v17507_v57 = vld [vmem:[#allocation120_spill] sm:$0xff]  ;;  %v9434_v18 = vcombine.low %v2892_v34, %v2896_v11  ;;  %v9443_v22 = vcombine.high %v2900_v58, %v2904_v19 }
 0x98b   :  { %4172 = vmatprep.mubr.bf16.mxu0 %v9435_v51  ;;  %4325 = vmatprep.mubr.bf16.mxu1 %v9429_v4  ;;  %v15043_v13 = vadd.f32 %v17505_v41, %v3904_v30  ;;  %v2897_v49 = vld [vmem:[#allocation6 + $0x178] sm:$0xff]  ;;  %v9428_v4 = vcombine.low %v2885_v52, %v2889_v16  ;;  %v17508_v30 = vld [vmem:[#allocation112_spill] sm:$0xff]  ;;  %v2495_v16 = vld [vmem:[%s16605_s3 + $0x2e8] sm:$0xff] }
 0x98c   :  { %v3106_v59 = vpop.permute.xlu0 %3105  ;;  %v15046_v38 = vadd.f32 %v17506_v37, %v3877_v10  ;;  %v2493_v51 = vld [vmem:[%s16605_s3 + $0x2d8] sm:$0xff]  ;;  %v9437_v10 = vcombine.high %v2893_v35, %v2897_v49  ;;  %v17509_v37 = vld [vmem:[#allocation251_spill] sm:$0xff]  ;;  %v17510_v34 = vld [vmem:[#allocation244_spill] sm:$0xff] }
 0x98d   :  { %v3912_v40 = vadd.f32 %v17507_v57, %v3106_v59  ;;  %4885 = vperm.xlu0 %11325, %v2491_v24   ;;  %v3071_v9 = vpop.permute.xlu1 %3070  ;;  %v17512_v57 = vld [vmem:[#allocation110_spill] sm:$0xff] }
 0x98e   :  { %4850 = vperm.xlu1 %11326, %v2484_v28   ;;  %v3885_v41 = vadd.f32 %v17508_v30, %v3071_v9  ;;  %v17511_v28 = vld [vmem:[#allocation178_spill] sm:$0xff]  ;;  %v2908_v30 = vld [vmem:[#allocation6 + $0x1d0] sm:$0xff] }
 0x98f   :  { %v15057_v2 = vadd.f32 %v17509_v37, %v3912_v40  ;;  %v2488_v40 = vld [vmem:[%s16605_s3 + $0x2b0] sm:$0xff]  ;;  %v17513_v37 = vld [vmem:[#allocation246_spill] sm:$0xff] }
 0x990   :  { %v3116_v24 = vpop.permute.xlu0 %3115  ;;  %v15060_v11 = vadd.f32 %v17510_v34, %v3885_v41  ;;  %v17514_v34 = vld [vmem:[#allocation175_spill] sm:$0xff] }
 0x991   :  { %v3920_v59 = vadd.f32 %v17511_v28, %v3116_v24  ;;  %4895 = vperm.xlu0 %11325, %v2493_v51   ;;  %4173 = vmatmul.mubr.bf16.gmra.mrb[148].mxu0 %v9434_v18  ;;  %v3081_v52 = vpop.permute.xlu1 %3080  ;;  %v2912_v51 = vld [vmem:[#allocation6 + $0x1f0] sm:$0xff] }
 0x992   :  { %4326 = vmatmul.mubr.bf16.gmra.mrb[16].mxu1 %v9428_v4  ;;  %4860 = vperm.xlu1 %11326, %v2486_v8   ;;  %v3893_v9 = vadd.f32 %v17512_v57, %v3081_v52  ;;  %v2901_v8 = vld [vmem:[#allocation6 + $0x198] sm:$0xff]  ;;  %v9442_v52 = vcombine.low %v2900_v58, %v2904_v19  ;;  %v9451_v60 = vcombine.high %v2908_v30, %v2912_v51  ;;  %v17516_v58 = vld [vmem:[#allocation160_spill] sm:$0xff] }
 0x993   :  { %4180 = vmatprep.mubr.bf16.mxu0 %v9443_v22  ;;  %4333 = vmatprep.mubr.bf16.mxu1 %v9437_v10  ;;  %v15071_v41 = vadd.f32 %v14666_v61, %v3920_v59  ;;  %v2905_v4 = vld [vmem:[#allocation6 + $0x1b8] sm:$0xff]  ;;  %v9436_v10 = vcombine.low %v2893_v35, %v2897_v49  ;;  %v17515_v61 = vld [vmem:[#allocation111_spill] sm:$0xff] }
 0x994   :  { %v3126_v18 = vpop.permute.xlu0 %3125  ;;  %v15074_v24 = vadd.f32 %v17513_v37, %v3893_v9  ;;  %v2497_v22 = vld [vmem:[%s16605_s3 + $0x2f8] sm:$0xff]  ;;  %v9445_v9 = vcombine.high %v2901_v8, %v2905_v4  ;;  %v2499_v49 = vld [vmem:[%s16605_s3 + $0x308] sm:$0xff] }
 0x995   :  { %v3928_v28 = vadd.f32 %v17514_v34, %v3126_v18  ;;  %4905 = vperm.xlu0 %11325, %v2495_v16   ;;  %v3091_v57 = vpop.permute.xlu1 %3090  ;;  %v17518_v34 = vld [vmem:[#allocation161_spill] sm:$0xff] }
 0x996   :  { %4870 = vperm.xlu1 %11326, %v2488_v40   ;;  %v3901_v59 = vadd.f32 %v17515_v61, %v3091_v57  ;;  %v17517_v40 = vld [vmem:[#allocation248_spill] sm:$0xff]  ;;  %v9450_v61 = vcombine.low %v2908_v30, %v2912_v51  ;;  %v17521_v30 = vld [vmem:[#allocation254_spill] sm:$0xff] }
 0x997   :  { %v15085_v37 = vadd.f32 %v14696_v63, %v3928_v28  ;;  %v2492_v63 = vld [vmem:[%s16605_s3 + $0x2d0] sm:$0xff] }
 0x998   :  { %v3136_v16 = vpop.permute.xlu0 %3135  ;;  %v15089_v18 = vadd.f32 %v17517_v40, %v3901_v59  ;;  %v2916_v28 = vld [vmem:[#allocation6 + $0x210] sm:$0xff]  ;;  %v17519_v59 = vld [vmem:[#allocation250_spill] sm:$0xff]  ;;  %v9444_v40 = vcombine.low %v2901_v8, %v2905_v4  ;;  %v2503_v4 = vld [vmem:[%s16605_s3 + $0x328] sm:$0xff] }
 0x999   :  { %v3936_v19 = vadd.f32 %v17516_v58, %v3136_v16  ;;  %4181 = vmatmul.mubr.bf16.gmra.mrb[152].mxu0 %v9442_v52  ;;  %4915 = vperm.xlu0 %11325, %v2497_v22   ;;  %v3101_v35 = vpop.permute.xlu1 %3100  ;;  %v2920_v22 = vld [vmem:[#allocation6 + $0x230] sm:$0xff] }
 0x99a   :  { %4334 = vmatmul.mubr.bf16.gmra.mrb[20].mxu1 %v9436_v10  ;;  %4880 = vperm.xlu1 %11326, %v2490_v50   ;;  %v3909_v57 = vadd.f32 %v17518_v34, %v3101_v35  ;;  %v2909_v10 = vld [vmem:[#allocation6 + $0x1d8] sm:$0xff] }
 0x99b   :  { %4188 = vmatprep.mubr.bf16.mxu0 %v9451_v60  ;;  %4341 = vmatprep.mubr.bf16.mxu1 %v9445_v9  ;;  %v15099_v52 = vadd.f32 %v14732_v17, %v3936_v19  ;;  %v2913_v50 = vld [vmem:[#allocation6 + $0x1f8] sm:$0xff]  ;;  %v17520_v9 = vld [vmem:[#allocation170_spill] sm:$0xff]  ;;  %v9459_v19 = vcombine.high %v2916_v28, %v2920_v22 }
 0x99c   :  { %v15102_v16 = vadd.f32 %v17519_v59, %v3909_v57  ;;  %v2501_v60 = vld [vmem:[%s16605_s3 + $0x318] sm:$0xff]  ;;  %v2494_v17 = vld [vmem:[%s16605_s3 + $0x2e0] sm:$0xff]  ;;  %v9453_v34 = vcombine.high %v2909_v10, %v2913_v50  ;;  %v2928_v59 = vld [vmem:[#allocation6 + $0x270] sm:$0xff] }
 0x99d   :  { %4925 = vperm.xlu0 %11325, %v2499_v49   ;;  %v3111_v58 = vpop.permute.xlu1 %3110  ;;  %v17522_v49 = vld [vmem:[#allocation116_spill] sm:$0xff] }
 0x99e   :  { %4890 = vperm.xlu1 %11326, %v2492_v63   ;;  %v3917_v35 = vadd.f32 %v17520_v9, %v3111_v58  ;;  %v2496_v63 = vld [vmem:[%s16605_s3 + $0x2f0] sm:$0xff]  ;;  %v2917_v58 = vld [vmem:[#allocation6 + $0x218] sm:$0xff] }
 0x99f   :  { %v17523_v9 = vld [vmem:[#allocation257_spill] sm:$0xff] }
 0x9a0   :  { %v15112_v51 = vadd.f32 %v17521_v30, %v3917_v35  ;;  %v9452_v30 = vcombine.low %v2909_v10, %v2913_v50  ;;  %v2500_v10 = vld [vmem:[%s16605_s3 + $0x310] sm:$0xff] }
 0x9a1   :  { %4189 = vmatmul.mubr.bf16.gmra.mrb[156].mxu0 %v9450_v61  ;;  %4935 = vperm.xlu0 %11325, %v2501_v60   ;;  %v3121_v8 = vpop.permute.xlu1 %3120  ;;  %v2924_v61 = vld [vmem:[#allocation6 + $0x250] sm:$0xff]  ;;  %v2921_v60 = vld [vmem:[#allocation6 + $0x238] sm:$0xff] }
 0x9a2   :  { %4342 = vmatmul.mubr.bf16.gmra.mrb[24].mxu1 %v9444_v40  ;;  %4900 = vperm.xlu1 %11326, %v2494_v17   ;;  %v3925_v57 = vadd.f32 %v17522_v49, %v3121_v8  ;;  %v9458_v40 = vcombine.low %v2916_v28, %v2920_v22  ;;  %v2505_v8 = vld [vmem:[%s16605_s3 + $0x338] sm:$0xff]  ;;  %v17524_v49 = vld [vmem:[#allocation119_spill] sm:$0xff]  ;;  %v9461_v46 = vcombine.high %v2917_v58, %v2921_v60  ;;  %v2932_v50 = vld [vmem:[#allocation6 + $0x290] sm:$0xff] }
 0x9a3   :  { %4196 = vmatprep.mubr.bf16.mxu0 %v9459_v19  ;;  %4349 = vmatprep.mubr.bf16.mxu1 %v9453_v34  ;;  %v2498_v19 = vld [vmem:[%s16605_s3 + $0x300] sm:$0xff]  ;;  %v9467_v34 = vcombine.high %v2924_v61, %v2928_v59  ;;  %v2507_v22 = vld [vmem:[%s16605_s3 + $0x348] sm:$0xff] }
 0x9a4   :  { %v15122_v35 = vadd.f32 %v17523_v9, %v3925_v57  ;;  %v2925_v57 = vld [vmem:[#allocation6 + $0x258] sm:$0xff]  ;;  %v2502_v9 = vld [vmem:[%s16605_s3 + $0x320] sm:$0xff] }
 0x9a5   :  { %4945 = vperm.xlu0 %11325, %v2503_v4   ;;  %v3131_v17 = vpop.permute.xlu1 %3130  ;;  %v2936_v4 = vld [vmem:[#allocation6 + $0x2b0] sm:$0xff] }
 0x9a6   :  { %4910 = vperm.xlu1 %11326, %v2496_v63   ;;  %v3933_v29 = vadd.f32 %v17524_v49, %v3131_v17  ;;  %v2929_v63 = vld [vmem:[#allocation6 + $0x278] sm:$0xff]  ;;  %v9475_v17 = vcombine.high %v2932_v50, %v2936_v4  ;;  %v9474_v49 = vcombine.low %v2932_v50, %v2936_v4  ;;  %v2515_v50 = vld [vmem:[%s16605_s3 + $0x388] sm:$0xff]  ;;  %v2508_v4 = vld [vmem:[%s16605_s3 + $0x350] sm:$0xff] }
 0x9a8   :  { %v15132_v28 = vadd.f32 %v14723_v12, %v3933_v29  ;;  %v9460_v12 = vcombine.low %v2917_v58, %v2921_v60  ;;  %v2509_v29 = vld [vmem:[%s16605_s3 + $0x358] sm:$0xff]  ;;  %v2944_v58 = vld [vmem:[#allocation6 + $0x2f0] sm:$0xff] }
 0x9a9   :  { %4197 = vmatmul.mubr.bf16.gmra.mrb[160].mxu0 %v9458_v40  ;;  %4955 = vperm.xlu0 %11325, %v2505_v8   ;;  %v9466_v40 = vcombine.low %v2924_v61, %v2928_v59  ;;  %v2504_v61 = vld [vmem:[%s16605_s3 + $0x330] sm:$0xff]  ;;  %v2933_v60 = vld [vmem:[#allocation6 + $0x298] sm:$0xff] }
 0x9aa   :  { %4350 = vmatmul.mubr.bf16.gmra.mrb[28].mxu1 %v9452_v30  ;;  %4920 = vperm.xlu1 %11326, %v2498_v19   ;;  %v9469_v30 = vcombine.high %v2925_v57, %v2929_v63  ;;  %v2940_v59 = vld [vmem:[#allocation6 + $0x2d0] sm:$0xff]  ;;  %v2937_v8 = vld [vmem:[#allocation6 + $0x2b8] sm:$0xff]  ;;  %v9468_v19 = vcombine.low %v2925_v57, %v2929_v63 }
 0x9ab   :  { %4204 = vmatprep.mubr.bf16.mxu0 %v9467_v34  ;;  %4357 = vmatprep.mubr.bf16.mxu1 %v9461_v46  ;;  %v2511_v46 = vld [vmem:[%s16605_s3 + $0x368] sm:$0xff]  ;;  %v2513_v34 = vld [vmem:[%s16605_s3 + $0x378] sm:$0xff]  ;;  %v2948_v57 = vld [vmem:[#allocation6 + $0x310] sm:$0xff] }
 0x9ac   :  { %v2952_v63 = vld [vmem:[#allocation6 + $0x330] sm:$0xff] }
 0x9ad   :  { %4965 = vperm.xlu0 %11325, %v2507_v22   ;;  %v2506_v22 = vld [vmem:[%s16605_s3 + $0x340] sm:$0xff] }
 0x9ae   :  { %4930 = vperm.xlu1 %11326, %v2500_v10   ;;  %v9483_v10 = vcombine.high %v2940_v59, %v2944_v58 }
 0x9b1   :  { %4205 = vmatmul.mubr.bf16.gmra.mrb[164].mxu0 %v9466_v40  ;;  %4975 = vperm.xlu0 %11325, %v2509_v29   ;;  %v9477_v40 = vcombine.high %v2933_v60, %v2937_v8  ;;  %v2945_v29 = vld [vmem:[#allocation6 + $0x2f8] sm:$0xff] }
 0x9b2   :  { %4358 = vmatmul.mubr.bf16.gmra.mrb[32].mxu1 %v9460_v12  ;;  %4940 = vperm.xlu1 %11326, %v2502_v9   ;;  %v2941_v12 = vld [vmem:[#allocation6 + $0x2d8] sm:$0xff]  ;;  %v9482_v9 = vcombine.low %v2940_v59, %v2944_v58  ;;  %v2519_v59 = vld [vmem:[%s16605_s3 + $0x3a8] sm:$0xff]  ;;  %v2512_v58 = vld [vmem:[%s16605_s3 + $0x370] sm:$0xff] }
 0x9b3   :  { %4212 = vmatprep.mubr.bf16.mxu0 %v9475_v17  ;;  %4365 = vmatprep.mubr.bf16.mxu1 %v9469_v30  ;;  %v9476_v17 = vcombine.low %v2933_v60, %v2937_v8  ;;  %v2517_v30 = vld [vmem:[%s16605_s3 + $0x398] sm:$0xff]  ;;  %v2956_v60 = vld [vmem:[#allocation6 + $0x350] sm:$0xff] }
 0x9b4   :  { %v2960_v8 = vld [vmem:[#allocation6 + $0x370] sm:$0xff] }
 0x9b5   :  { %4985 = vperm.xlu0 %11325, %v2511_v46   ;;  %v2510_v46 = vld [vmem:[%s16605_s3 + $0x360] sm:$0xff] }
 0x9b6   :  { %4950 = vperm.xlu1 %11326, %v2504_v61   ;;  %v9491_v61 = vcombine.high %v2948_v57, %v2952_v63 }
 0x9b9   :  { %4213 = vmatmul.mubr.bf16.gmra.mrb[168].mxu0 %v9474_v49  ;;  %4995 = vperm.xlu0 %11325, %v2513_v34   ;;  %v9485_v49 = vcombine.high %v2941_v12, %v2945_v29  ;;  %v2953_v34 = vld [vmem:[#allocation6 + $0x338] sm:$0xff] }
 0x9ba   :  { %4366 = vmatmul.mubr.bf16.gmra.mrb[36].mxu1 %v9468_v19  ;;  %4960 = vperm.xlu1 %11326, %v2506_v22   ;;  %v2949_v19 = vld [vmem:[#allocation6 + $0x318] sm:$0xff]  ;;  %v15176_v22 = vpop.permute.xlu0 %4605 }
 0x9bb   :  { %4220 = vmatprep.mubr.bf16.mxu0 %v9483_v10  ;;  %4373 = vmatprep.mubr.bf16.mxu1 %v9477_v40  ;;  %v9490_v10 = vcombine.low %v2948_v57, %v2952_v63  ;;  %v9484_v40 = vcombine.low %v2941_v12, %v2945_v29  ;;  %v2523_v57 = vld [vmem:[%s16605_s3 + $0x3c8] sm:$0xff]  ;;  %v2516_v12 = vld [vmem:[%s16605_s3 + $0x390] sm:$0xff] }
 0x9bc   :  { %v2964_v29 = vld [vmem:[#allocation6 + $0x390] sm:$0xff] }
 0x9bd   :  { %5005 = vperm.xlu0 %11325, %v2515_v50   ;;  %v2521_v50 = vld [vmem:[%s16605_s3 + $0x3b8] sm:$0xff] }
 0x9be   :  { %4970 = vperm.xlu1 %11326, %v2508_v4   ;;  %v2514_v4 = vld [vmem:[%s16605_s3 + $0x380] sm:$0xff]  ;;  %v15187_v63 = vpop.permute.xlu0 %4615 }
 0x9c1   :  { %4221 = vmatmul.mubr.bf16.gmra.mrb[172].mxu0 %v9482_v9  ;;  %5015 = vperm.xlu0 %11325, %v2517_v30   ;;  %v9499_v9 = vcombine.high %v2956_v60, %v2960_v8  ;;  %v2968_v30 = vld [vmem:[#allocation6 + $0x3b0] sm:$0xff] }
 0x9c2   :  { %4374 = vmatmul.mubr.bf16.gmra.mrb[40].mxu1 %v9476_v17  ;;  %4980 = vperm.xlu1 %11326, %v2510_v46   ;;  %v9493_v17 = vcombine.high %v2949_v19, %v2953_v34  ;;  %v2957_v46 = vld [vmem:[#allocation6 + $0x358] sm:$0xff] }
 0x9c3   :  { %4228 = vmatprep.mubr.bf16.mxu0 %v9491_v61  ;;  %4381 = vmatprep.mubr.bf16.mxu1 %v9485_v49  ;;  %v2961_v61 = vld [vmem:[#allocation6 + $0x378] sm:$0xff]  ;;  %v9498_v49 = vcombine.low %v2956_v60, %v2960_v8  ;;  %v2527_v60 = vld [vmem:[%s16605_s3 + $0x3e8] sm:$0xff]  ;;  %v2520_v8 = vld [vmem:[%s16605_s3 + $0x3b0] sm:$0xff] }
 0x9c5   :  { %5025 = vperm.xlu0 %11325, %v2519_v59   ;;  %v9492_v59 = vcombine.low %v2949_v19, %v2953_v34  ;;  %v2972_v19 = vld [vmem:[#allocation6 + $0x3d0] sm:$0xff] }
 0x9c6   :  { %4990 = vperm.xlu1 %11326, %v2512_v58   ;;  %v2525_v58 = vld [vmem:[%s16605_s3 + $0x3d8] sm:$0xff]  ;;  %v2976_v34 = vld [vmem:[#allocation6 + $0x3f0] sm:$0xff] }
 0x9c9   :  { %4229 = vmatmul.mubr.bf16.gmra.mrb[176].mxu0 %v9490_v10  ;;  %5035 = vperm.xlu0 %11325, %v2521_v50   ;;  %v2518_v10 = vld [vmem:[%s16605_s3 + $0x3a0] sm:$0xff]  ;;  %v9501_v50 = vcombine.high %v2957_v46, %v2961_v61 }
 0x9ca   :  { %4382 = vmatmul.mubr.bf16.gmra.mrb[44].mxu1 %v9484_v40  ;;  %5000 = vperm.xlu1 %11326, %v2514_v4   ;;  %v9507_v40 = vcombine.high %v2964_v29, %v2968_v30  ;;  %v15198_v4 = vpop.permute.xlu0 %4625 }
 0x9cb   :  { %4236 = vmatprep.mubr.bf16.mxu0 %v9499_v9  ;;  %4389 = vmatprep.mubr.bf16.mxu1 %v9493_v17  ;;  %v15200_v9 = vpop.permute.xlu1 %4600  ;;  %v2965_v17 = vld [vmem:[#allocation6 + $0x398] sm:$0xff] }
 0x9cd   :  { %5045 = vperm.xlu0 %11325, %v2523_v57   ;;  %v2969_v57 = vld [vmem:[#allocation6 + $0x3b8] sm:$0xff] }
 0x9ce   :  { %5010 = vperm.xlu1 %11326, %v2516_v12   ;;  %v9506_v12 = vcombine.low %v2964_v29, %v2968_v30  ;;  %v2531_v29 = vld [vmem:[%s16605_s3 + $0x408] sm:$0xff]  ;;  %v2524_v30 = vld [vmem:[%s16605_s3 + $0x3d0] sm:$0xff] }
 0x9cf   :  { %v15216_v26 = vpop.permute.xlu1 %4610 }
 0x9d1   :  { %4237 = vmatmul.mubr.bf16.gmra.mrb[180].mxu0 %v9498_v49  ;;  %5055 = vperm.xlu0 %11325, %v2525_v58   ;;  %v9500_v49 = vcombine.low %v2957_v46, %v2961_v61  ;;  %v15211_v58 = vpop.permute.xlu0 %4635  ;;  %v2973_v46 = vld [vmem:[#allocation6 + $0x3d8] sm:$0xff] }
 0x9d2   :  { %4390 = vmatmul.mubr.bf16.gmra.mrb[48].mxu1 %v9492_v59  ;;  %5020 = vperm.xlu1 %11326, %v2518_v10   ;;  %v2529_v59 = vld [vmem:[%s16605_s3 + $0x3f8] sm:$0xff]  ;;  %17525 = vst [vmem:[#allocation215_spill] sm:$0xff] %v15211_v58  ;;  %v2522_v10 = vld [vmem:[%s16605_s3 + $0x3c0] sm:$0xff] }
 0x9d3   :  { %4244 = vmatprep.mubr.bf16.mxu0 %v9507_v40  ;;  %4397 = vmatprep.mubr.bf16.mxu1 %v9501_v50  ;;  %v9515_v40 = vcombine.high %v2972_v19, %v2976_v34  ;;  %v9509_v50 = vcombine.high %v2965_v17, %v2969_v57  ;;  %v2977_v61 = vld [vmem:[#allocation6 + $0x3f8] sm:$0xff] }
 0x9d5   :  { %5065 = vperm.xlu0 %11325, %v2527_v60   ;;  %v15224_v60 = vpop.permute.xlu0 %4645 }
 0x9d6   :  { %5030 = vperm.xlu1 %11326, %v2520_v8   ;;  %17526 = vst [vmem:[#allocation214_spill] sm:$0xff] %v15224_v60  ;;  %v9514_v8 = vcombine.low %v2972_v19, %v2976_v34  ;;  %v2535_v19 = vld [vmem:[%s16605_s3 + $0x428] sm:$0xff] }
 0x9d9   :  { %4245 = vmatmul.mubr.bf16.gmra.mrb[184].mxu0 %v9506_v12  ;;  %5075 = vperm.xlu0 %11325, %v2529_v59   ;;  %v15226_v12 = vpop.permute.xlu1 %4620  ;;  %v2533_v59 = vld [vmem:[%s16605_s3 + $0x418] sm:$0xff]  ;;  %v15237_v34 = vpop.permute.xlu0 %4655 }
 0x9da   :  { %4398 = vmatmul.mubr.bf16.gmra.mrb[52].mxu1 %v9500_v49  ;;  %5040 = vperm.xlu1 %11326, %v2522_v10   ;;  %v9508_v49 = vcombine.low %v2965_v17, %v2969_v57  ;;  %v2526_v10 = vld [vmem:[%s16605_s3 + $0x3e0] sm:$0xff]  ;;  %17527 = vst [vmem:[#allocation157_spill] sm:$0xff] %v15237_v34  ;;  %v2528_v17 = vld [vmem:[%s16605_s3 + $0x3f0] sm:$0xff] }
 0x9db   :  { %4252 = vmatprep.mubr.bf16.mxu0 %v9515_v40  ;;  %4405 = vmatprep.mubr.bf16.mxu1 %v9509_v50  ;;  %v9517_v40 = vcombine.high %v2973_v46, %v2977_v61  ;;  %v9516_v50 = vcombine.low %v2973_v46, %v2977_v61  ;;  %v2532_v46 = vld [vmem:[%s16605_s3 + $0x410] sm:$0xff]  ;;  %v2541_v61 = vld [vmem:[%s16605_s3 + $0x458] sm:$0xff] }
 0x9dd   :  { %5085 = vperm.xlu0 %11325, %v2531_v29   ;;  %v15242_v57 = vpop.permute.xlu1 %4630  ;;  %v2537_v29 = vld [vmem:[%s16605_s3 + $0x438] sm:$0xff] }
 0x9de   :  { %5050 = vperm.xlu1 %11326, %v2524_v30   ;;  %v2530_v30 = vld [vmem:[%s16605_s3 + $0x400] sm:$0xff] }
 0x9e1   :  { %4253 = vmatmul.mubr.bf16.gmra.mrb[188].mxu0 %v9514_v8  ;;  %5095 = vperm.xlu0 %11325, %v2533_v59   ;;  %v15250_v8 = vpop.permute.xlu0 %4665  ;;  %v2539_v59 = vld [vmem:[%s16605_s3 + $0x448] sm:$0xff] }
 0x9e2   :  { %4406 = vmatmul.mubr.bf16.gmra.mrb[56].mxu1 %v9508_v49  ;;  %5060 = vperm.xlu1 %11326, %v2526_v10   ;;  %17528 = vst [vmem:[#allocation167_spill] sm:$0xff] %v15250_v8  ;;  %v15252_v49 = vpop.permute.xlu1 %4640 }
 0x9e3   :  { %4413 = vmatprep.mubr.bf16.mxu1 %v9517_v40  ;;  %17529 = vst [vmem:[#allocation156_spill] sm:$0xff] %v15252_v49  ;;  %v2534_v40 = vld [vmem:[%s16605_s3 + $0x420] sm:$0xff] }
 0x9e5   :  { %5105 = vperm.xlu0 %11325, %v2535_v19   ;;  %v15263_v10 = vpop.permute.xlu0 %4675 }
 0x9e6   :  { %5070 = vperm.xlu1 %11326, %v2528_v17   ;;  %17530 = vst [vmem:[#allocation172_spill] sm:$0xff] %v15263_v10  ;;  %v15268_v19 = vpop.permute.xlu1 %4650  ;;  %v2543_v17 = vld [vmem:[%s16605_s3 + $0x468] sm:$0xff] }
 0x9e7   :  { %17531 = vst [vmem:[#allocation221_spill] sm:$0xff] %v15268_v19 }
 0x9e9   :  { %5115 = vperm.xlu0 %11325, %v2537_v29   ;;  %v15276_v29 = vpop.permute.xlu0 %4685 }
 0x9ea   :  { %4414 = vmatmul.mubr.bf16.gmra.mrb[60].mxu1 %v9516_v50  ;;  %5080 = vperm.xlu1 %11326, %v2530_v30   ;;  %v2536_v50 = vld [vmem:[%s16605_s3 + $0x430] sm:$0xff]  ;;  %17532 = vst [vmem:[#allocation177_spill] sm:$0xff] %v15276_v29  ;;  %v15278_v30 = vpop.permute.xlu1 %4660 }
 0x9eb   :  { %17533 = vst [vmem:[#allocation219_spill] sm:$0xff] %v15278_v30 }
 0x9ed   :  { %5125 = vperm.xlu0 %11325, %v2539_v59   ;;  %v2545_v59 = vld [vmem:[%s16605_s3 + $0x478] sm:$0xff] }
 0x9ee   :  { %5090 = vperm.xlu1 %11326, %v2532_v46   ;;  %v2538_v46 = vld [vmem:[%s16605_s3 + $0x440] sm:$0xff] }
 0x9f1   :  { %5135 = vperm.xlu0 %11325, %v2541_v61   ;;  %v2547_v61 = vld [vmem:[%s16605_s3 + $0x488] sm:$0xff] }
 0x9f2   :  { %5100 = vperm.xlu1 %11326, %v2534_v40   ;;  %v15289_v40 = vpop.permute.xlu0 %4695 }
 0x9f3   :  { %17534 = vst [vmem:[#allocation164_spill] sm:$0xff] %v15289_v40 }
 0x9f5   :  { %5145 = vperm.xlu0 %11325, %v2543_v17   ;;  %v2540_v17 = vld [vmem:[%s16605_s3 + $0x450] sm:$0xff] }
 0x9f6   :  { %5110 = vperm.xlu1 %11326, %v2536_v50   ;;  %v15294_v50 = vpop.permute.xlu1 %4670 }
 0x9f7   :  { %17535 = vst [vmem:[#allocation218_spill] sm:$0xff] %v15294_v50 }
 0x9f9   :  { %5155 = vperm.xlu0 %11325, %v2545_v59   ;;  %v2542_v59 = vld [vmem:[%s16605_s3 + $0x460] sm:$0xff] }
 0x9fa   :  { %5120 = vperm.xlu1 %11326, %v2538_v46   ;;  %v15302_v46 = vpop.permute.xlu0 %4705  ;;  %v15304_v31 = vpop.permute.xlu1 %4680 }
 0x9fb   :  { %17536 = vst [vmem:[#allocation162_spill] sm:$0xff] %v15302_v46  ;;  %17537 = vst [vmem:[#allocation134_spill] sm:$0xff] %v15304_v31 }
 0x9fd   :  { %5165 = vperm.xlu0 %11325, %v2547_v61   ;;  %v2544_v61 = vld [vmem:[%s16605_s3 + $0x470] sm:$0xff] }
 0x9fe   :  { %5130 = vperm.xlu1 %11326, %v2540_v17   ;;  %v2553_v17 = vld [vmem:[%s16605_s3 + $0x4b8] sm:$0xff]  ;;  %v15315_v44 = vpop.permute.xlu0 %4715 }
 0x9ff   :  { %17538 = vst [vmem:[#allocation225_spill] sm:$0xff] %v15315_v44 }
 0xa01   :  { %5175 = vperm.xlu0 %11325, %v2549_v53   ;;  %v2546_v53 = vld [vmem:[%s16605_s3 + $0x480] sm:$0xff] }
 0xa02   :  { %5140 = vperm.xlu1 %11326, %v2542_v59   ;;  %v15320_v59 = vpop.permute.xlu1 %4690 }
 0xa03   :  { %17539 = vst [vmem:[#allocation243_spill] sm:$0xff] %v15320_v59 }
 0xa05   :  { %5185 = vperm.xlu0 %11325, %v2551_v6   ;;  %v2548_v6 = vld [vmem:[%s16605_s3 + $0x490] sm:$0xff] }
 0xa06   :  { %5150 = vperm.xlu1 %11326, %v2544_v61   ;;  %v15328_v61 = vpop.permute.xlu0 %4725  ;;  %v15330_v42 = vpop.permute.xlu1 %4700 }
 0xa07   :  { %17540 = vst [vmem:[#allocation180_spill] sm:$0xff] %v15328_v61  ;;  %17541 = vst [vmem:[#allocation159_spill] sm:$0xff] %v15330_v42  ;;  %v2556_v61 = vld [vmem:[%s16605_s3 + $0x4d0] sm:$0xff] }
 0xa09   :  { %5195 = vperm.xlu0 %11325, %v2553_v17   ;;  %v2550_v17 = vld [vmem:[%s16605_s3 + $0x4a0] sm:$0xff] }
 0xa0a   :  { %5160 = vperm.xlu1 %11326, %v2546_v53   ;;  %v2559_v53 = vld [vmem:[%s16605_s3 + $0x4e8] sm:$0xff]  ;;  %v15341_v55 = vpop.permute.xlu0 %4735 }
 0xa0b   :  { %17542 = vst [vmem:[#allocation133_spill] sm:$0xff] %v15341_v55 }
 0xa0d   :  { %5205 = vperm.xlu0 %11325, %v2555_v20   ;;  %v2552_v20 = vld [vmem:[%s16605_s3 + $0x4b0] sm:$0xff] }
 0xa0e   :  { %5170 = vperm.xlu1 %11326, %v2548_v6   ;;  %v15346_v6 = vpop.permute.xlu1 %4710 }
 0xa0f   :  { %17543 = vst [vmem:[#allocation245_spill] sm:$0xff] %v15346_v6 }
 0xa11   :  { %5215 = vperm.xlu0 %11325, %v2557_v45   ;;  %v2554_v45 = vld [vmem:[%s16605_s3 + $0x4c0] sm:$0xff] }
 0xa12   :  { %5180 = vperm.xlu1 %11326, %v2550_v17   ;;  %v15354_v17 = vpop.permute.xlu0 %4745  ;;  %v15356_v55 = vpop.permute.xlu1 %4720 }
 0xa13   :  { %17544 = vst [vmem:[#allocation216_spill] sm:$0xff] %v15354_v17  ;;  %17545 = vst [vmem:[#allocation158_spill] sm:$0xff] %v15356_v55  ;;  %v2560_v17 = vld [vmem:[%s16605_s3 + $0x4f0] sm:$0xff] }
 0xa15   :  { %5225 = vperm.xlu0 %11325, %v2559_v53   ;;  %v2558_v53 = vld [vmem:[%s16605_s3 + $0x4e0] sm:$0xff] }
 0xa16   :  { %5190 = vperm.xlu1 %11326, %v2552_v20   ;;  %v15364_v20 = vpop.permute.xlu1 %4730 }
 0xa17   :  { %17546 = vst [vmem:[#allocation223_spill] sm:$0xff] %v15364_v20 }
 0xa19   :  { %5235 = vperm.xlu0 %11325, %v2561_v32  }
 0xa1a   :  { %5200 = vperm.xlu1 %11326, %v2554_v45   ;;  %v15369_v32 = vpop.permute.xlu1 %4740 }
 0xa1b   :  { %17547 = vst [vmem:[#allocation247_spill] sm:$0xff] %v15369_v32 }
 0xa1e   :  { %5210 = vperm.xlu1 %11326, %v2556_v61  }
 0xa22   :  { %5220 = vperm.xlu1 %11326, %v2558_v53  }
 0xa26   :  { %5230 = vperm.xlu1 %11326, %v2560_v17  }
 0xa3c   :  { %v10205_v45 = vpop.f32.mrb[128].mxu0 }
 0xa3d   :  { %v10206_v55 = vpop.f32.mrb[129].mxu0 }
 0xa3e   :  { %v10207_v44 = vadd.f32 %v10206_v55, %v10205_v45  ;;  %v10208_v6 = vpop.f32.mrb[130].mxu0 }
 0xa3f   :  { %v10209_v46 = vpop.f32.mrb[131].mxu0 }
 0xa40   :  { %v10210_v61 = vadd.f32 %v10209_v46, %v10208_v6  ;;  %v4135_v42 = vadd.f32 %v10207_v44, %v14866_v54  ;;  %v11329_v46 = vld [vmem:[#allocation8 + $0x4] ss:$8 sps:$4 sm:$0xff]  }
 0xa41   :  { %5910 = vmatprep.mubr.bf16.mxu0 %v11329_v46 }
 0xa42   :  { %v4138_v40 = vadd.f32 %v10210_v61, %v14931_v3 }
 0xa44   :  { %v10211_v59 = vpop.f32.mrb[132].mxu0 }
 0xa45   :  { %v10317_v20 = vpop.f32.mrb[0].mxu1  ;;  %v10212_v53 = vpop.f32.mrb[133].mxu0 }
 0xa46   :  { %v10213_v29 = vadd.f32 %v10212_v53, %v10211_v59  ;;  %v10318_v31 = vpop.f32.mrb[1].mxu1  ;;  %v10214_v50 = vpop.f32.mrb[134].mxu0 }
 0xa47   :  { %v10319_v10 = vadd.f32 %v10318_v31, %v10317_v20  ;;  %v10320_v8 = vpop.f32.mrb[2].mxu1  ;;  %v10215_v32 = vpop.f32.mrb[135].mxu0 }
 0xa48   :  { %v10321_v17 = vpop.f32.mrb[3].mxu1  ;;  %v4143_v30 = vadd.f32 %v10213_v29, %v14945_v47  ;;  %v10216_v45 = vadd.f32 %v10215_v32, %v10214_v50 }
 0xa49   :  { %v4296_v55 = vadd.f32 %v10319_v10, %v4135_v42  ;;  %v10322_v34 = vadd.f32 %v10321_v17, %v10320_v8 }
 0xa4a   :  { %v4146_v54 = vadd.f32 %v10216_v45, %v14886_v14 }
 0xa4b   :  { %v4299_v6 = vadd.f32 %v10322_v34, %v4138_v40  ;;  %v4422_v3 = vmax.f32 %v4296_v55, 0.0 }
 0xa4c   :  { %v10217_v44 = vpop.f32.mrb[136].mxu0 }
 0xa4d   :  { %v4423_v61 = vmax.f32 %v4299_v6, 0.0  ;;  %v10323_v59 = vpop.f32.mrb[4].mxu1  ;;  %v10218_v53 = vpop.f32.mrb[137].mxu0 }
 0xa4e   :  { %v10324_v31 = vpop.f32.mrb[5].mxu1  ;;  %v10219_v19 = vadd.f32 %v10218_v53, %v10217_v44  ;;  %v10220_v49 = vpop.f32.mrb[138].mxu0 }
 0xa4f   :  { %v4454_v20 = vpack.c.bf16 %v4423_v61, %v4422_v3  ;;  %v10325_v60 = vadd.f32 %v10324_v31, %v10323_v59  ;;  %v10326_v58 = vpop.f32.mrb[6].mxu1  ;;  %v10221_v47 = vpop.f32.mrb[139].mxu0 }
 0xa50   :  { %v10222_v10 = vadd.f32 %v10221_v47, %v10220_v49  ;;  %v10327_v8 = vpop.f32.mrb[7].mxu1  ;;  %v4151_v34 = vadd.f32 %v10219_v19, %v14962_v43 }
 0xa51   :  { %v4304_v42 = vadd.f32 %v10325_v60, %v4143_v30  ;;  %5879 = vmatpush1.bf16.msra.mxu0 %v4454_v20  ;;  %v10328_v14 = vadd.f32 %v10327_v8, %v10326_v58 }
 0xa52   :  { %5880 = vmatprep.subr.bf16.mxu0 %v17475_v62  ;;  %v4154_v29 = vadd.f32 %v10222_v10, %v14904_v23 }
 0xa53   :  { %v4307_v40 = vadd.f32 %v10328_v14, %v4146_v54  ;;  %v4424_v17 = vmax.f32 %v4304_v42, 0.0 }
 0xa54   :  { %v10223_v50 = vpop.f32.mrb[140].mxu0 }
 0xa55   :  { %v10329_v32 = vpop.f32.mrb[8].mxu1  ;;  %v4425_v55 = vmax.f32 %v4307_v40, 0.0  ;;  %v10224_v45 = vpop.f32.mrb[141].mxu0 }
 0xa56   :  { %v10330_v46 = vpop.f32.mrb[9].mxu1  ;;  %v10225_v6 = vadd.f32 %v10224_v45, %v10223_v50  ;;  %v10226_v60 = vpop.f32.mrb[142].mxu0 }
 0xa57   :  { %v10331_v44 = vadd.f32 %v10330_v46, %v10329_v32  ;;  %v4455_v49 = vpack.c.bf16 %v4425_v55, %v4424_v17  ;;  %v10332_v30 = vpop.f32.mrb[10].mxu1  ;;  %v10227_v3 = vpop.f32.mrb[143].mxu0 }
 0xa58   :  { %v10228_v43 = vadd.f32 %v10227_v3, %v10226_v60  ;;  %v10333_v58 = vpop.f32.mrb[11].mxu1  ;;  %v4159_v19 = vadd.f32 %v10225_v6, %v14976_v39 }
 0xa59   :  { %v4312_v61 = vadd.f32 %v10331_v44, %v4151_v34  ;;  %v10334_v59 = vadd.f32 %v10333_v58, %v10332_v30  ;;  %5881 = vmatpush1.bf16.msra.mxu0 %v4455_v49 }
 0xa5a   :  { %v4162_v23 = vadd.f32 %v10228_v43, %v14924_v27  ;;  %5882 = vmatprep.subr.bf16.mxu0 %v17475_v62 }
 0xa5b   :  { %v4315_v54 = vadd.f32 %v10334_v59, %v4154_v29  ;;  %v4426_v20 = vmax.f32 %v4312_v61, 0.0 }
 0xa5c   :  { %v10229_v53 = vpop.f32.mrb[144].mxu0 }
 0xa5d   :  { %v10335_v31 = vpop.f32.mrb[12].mxu1  ;;  %v4427_v47 = vmax.f32 %v4315_v54, 0.0  ;;  %v10230_v42 = vpop.f32.mrb[145].mxu0 }
 0xa5e   :  { %v10336_v10 = vpop.f32.mrb[13].mxu1  ;;  %v10231_v8 = vadd.f32 %v10230_v42, %v10229_v53  ;;  %v10232_v34 = vpop.f32.mrb[146].mxu0 }
 0xa5f   :  { %v10337_v14 = vadd.f32 %v10336_v10, %v10335_v31  ;;  %v4456_v40 = vpack.c.bf16 %v4427_v47, %v4426_v20  ;;  %v10338_v50 = vpop.f32.mrb[14].mxu1  ;;  %v10233_v32 = vpop.f32.mrb[147].mxu0 }
 0xa60   :  { %v10234_v17 = vadd.f32 %v10233_v32, %v10232_v34  ;;  %v10339_v55 = vpop.f32.mrb[15].mxu1  ;;  %v4167_v27 = vadd.f32 %v10231_v8, %v14990_v15 }
 0xa61   :  { %v4320_v39 = vadd.f32 %v10337_v14, %v4159_v19  ;;  %v10340_v45 = vadd.f32 %v10339_v55, %v10338_v50  ;;  %5883 = vmatpush1.bf16.msra.mxu0 %v4456_v40 }
 0xa62   :  { %v4170_v29 = vadd.f32 %v10234_v17, %v14938_v1  ;;  %5884 = vmatprep.subr.bf16.mxu0 %v17475_v62 }
 0xa63   :  { %v4323_v46 = vadd.f32 %v10340_v45, %v4162_v23  ;;  %v4428_v60 = vmax.f32 %v4320_v39, 0.0 }
 0xa64   :  { %v10235_v6 = vpop.f32.mrb[148].mxu0 }
 0xa65   :  { %v10341_v44 = vpop.f32.mrb[16].mxu1  ;;  %v4429_v49 = vmax.f32 %v4323_v46, 0.0  ;;  %v10236_v30 = vpop.f32.mrb[149].mxu0 }
 0xa66   :  { %v10342_v3 = vpop.f32.mrb[17].mxu1  ;;  %v10237_v61 = vadd.f32 %v10236_v30, %v10235_v6  ;;  %v10238_v58 = vpop.f32.mrb[150].mxu0 }
 0xa67   :  { %v10343_v43 = vadd.f32 %v10342_v3, %v10341_v44  ;;  %v4457_v19 = vpack.c.bf16 %v4429_v49, %v4428_v60  ;;  %v10344_v59 = vpop.f32.mrb[18].mxu1  ;;  %v10239_v54 = vpop.f32.mrb[151].mxu0 }
 0xa68   :  { %v10240_v53 = vadd.f32 %v10239_v54, %v10238_v58  ;;  %v10345_v31 = vpop.f32.mrb[19].mxu1  ;;  %v4175_v1 = vadd.f32 %v10237_v61, %v15004_v5 }
 0xa69   :  { %v4328_v15 = vadd.f32 %v10343_v43, %v4167_v27  ;;  %v10346_v20 = vadd.f32 %v10345_v31, %v10344_v59  ;;  %5885 = vmatpush1.bf16.msra.mxu0 %v4457_v19 }
 0xa6a   :  { %v4178_v23 = vadd.f32 %v10240_v53, %v14955_v48  ;;  %5886 = vmatprep.subr.bf16.mxu0 %v17475_v62 }
 0xa6b   :  { %v4331_v47 = vadd.f32 %v10346_v20, %v4170_v29  ;;  %v4430_v8 = vmax.f32 %v4328_v15, 0.0 }
 0xa6c   :  { %v10241_v42 = vpop.f32.mrb[152].mxu0 }
 0xa6d   :  { %v10347_v10 = vpop.f32.mrb[20].mxu1  ;;  %v4431_v14 = vmax.f32 %v4331_v47, 0.0  ;;  %v10242_v34 = vpop.f32.mrb[153].mxu0 }
 0xa6e   :  { %v10348_v40 = vpop.f32.mrb[21].mxu1  ;;  %v10243_v50 = vadd.f32 %v10242_v34, %v10241_v42  ;;  %v10244_v39 = vpop.f32.mrb[154].mxu0 }
 0xa6f   :  { %v10349_v32 = vadd.f32 %v10348_v40, %v10347_v10  ;;  %v4458_v17 = vpack.c.bf16 %v4431_v14, %v4430_v8  ;;  %v10350_v55 = vpop.f32.mrb[22].mxu1  ;;  %v10245_v27 = vpop.f32.mrb[155].mxu0 }
 0xa70   :  { %v10246_v45 = vadd.f32 %v10245_v27, %v10244_v39  ;;  %v10351_v46 = vpop.f32.mrb[23].mxu1  ;;  %v4183_v48 = vadd.f32 %v10243_v50, %v15018_v36 }
 0xa71   :  { %v4336_v5 = vadd.f32 %v10349_v32, %v4175_v1  ;;  %v10352_v6 = vadd.f32 %v10351_v46, %v10350_v55  ;;  %5887 = vmatpush1.bf16.msra.mxu0 %v4458_v17 }
 0xa72   :  { %v4186_v29 = vadd.f32 %v10246_v45, %v14969_v25  ;;  %5888 = vmatprep.subr.bf16.mxu0 %v17475_v62 }
 0xa73   :  { %v4339_v44 = vadd.f32 %v10352_v6, %v4178_v23  ;;  %v4432_v30 = vmax.f32 %v4336_v5, 0.0 }
 0xa74   :  { %v10247_v60 = vpop.f32.mrb[156].mxu0 }
 0xa75   :  { %v10353_v49 = vpop.f32.mrb[24].mxu1  ;;  %v4433_v3 = vmax.f32 %v4339_v44, 0.0  ;;  %v10248_v61 = vpop.f32.mrb[157].mxu0 }
 0xa76   :  { %v10354_v43 = vpop.f32.mrb[25].mxu1  ;;  %v10249_v58 = vadd.f32 %v10248_v61, %v10247_v60  ;;  %v10250_v59 = vpop.f32.mrb[158].mxu0 }
 0xa77   :  { %v10355_v19 = vadd.f32 %v10354_v43, %v10353_v49  ;;  %v4459_v54 = vpack.c.bf16 %v4433_v3, %v4432_v30  ;;  %v10356_v15 = vpop.f32.mrb[26].mxu1  ;;  %v10251_v53 = vpop.f32.mrb[159].mxu0 }
 0xa78   :  { %v10252_v31 = vadd.f32 %v10251_v53, %v10250_v59  ;;  %v10357_v1 = vpop.f32.mrb[27].mxu1  ;;  %v4191_v25 = vadd.f32 %v10249_v58, %v15032_v21 }
 0xa79   :  { %v4344_v36 = vadd.f32 %v10355_v19, %v4183_v48  ;;  %v10358_v20 = vadd.f32 %v10357_v1, %v10356_v15  ;;  %5889 = vmatpush1.bf16.msra.mxu0 %v4459_v54 }
 0xa7a   :  { %v4194_v23 = vadd.f32 %v10252_v31, %v14984_v56  ;;  %5890 = vmatprep.subr.bf16.mxu0 %v17475_v62 }
 0xa7b   :  { %v4347_v47 = vadd.f32 %v10358_v20, %v4186_v29  ;;  %v4434_v8 = vmax.f32 %v4344_v36, 0.0 }
 0xa7c   :  { %v10253_v42 = vpop.f32.mrb[160].mxu0 }
 0xa7d   :  { %v10359_v10 = vpop.f32.mrb[28].mxu1  ;;  %v4435_v14 = vmax.f32 %v4347_v47, 0.0  ;;  %v10254_v34 = vpop.f32.mrb[161].mxu0 }
 0xa7e   :  { %v10360_v40 = vpop.f32.mrb[29].mxu1  ;;  %v10255_v50 = vadd.f32 %v10254_v34, %v10253_v42  ;;  %v10256_v39 = vpop.f32.mrb[162].mxu0 }
 0xa7f   :  { %v10361_v32 = vadd.f32 %v10360_v40, %v10359_v10  ;;  %v4460_v17 = vpack.c.bf16 %v4435_v14, %v4434_v8  ;;  %v10362_v55 = vpop.f32.mrb[30].mxu1  ;;  %v10257_v27 = vpop.f32.mrb[163].mxu0 }
 0xa80   :  { %v10258_v5 = vadd.f32 %v10257_v27, %v10256_v39  ;;  %v10363_v45 = vpop.f32.mrb[31].mxu1  ;;  %v4199_v56 = vadd.f32 %v10255_v50, %v15046_v38 }
 0xa81   :  { %v4352_v21 = vadd.f32 %v10361_v32, %v4191_v25  ;;  %v10364_v46 = vadd.f32 %v10363_v45, %v10362_v55  ;;  %5891 = vmatpush1.bf16.msra.mxu0 %v4460_v17 }
 0xa82   :  { %v4202_v48 = vadd.f32 %v10258_v5, %v15001_v7  ;;  %5892 = vmatprep.subr.bf16.mxu0 %v17475_v62 }
 0xa83   :  { %v4355_v6 = vadd.f32 %v10364_v46, %v4194_v23  ;;  %v4436_v60 = vmax.f32 %v4352_v21, 0.0 }
 0xa84   :  { %v10259_v29 = vpop.f32.mrb[164].mxu0 }
 0xa85   :  { %v10365_v44 = vpop.f32.mrb[32].mxu1  ;;  %v4437_v49 = vmax.f32 %v4355_v6, 0.0  ;;  %v10260_v30 = vpop.f32.mrb[165].mxu0 }
 0xa86   :  { %v10366_v3 = vpop.f32.mrb[33].mxu1  ;;  %v10261_v61 = vadd.f32 %v10260_v30, %v10259_v29  ;;  %v10262_v58 = vpop.f32.mrb[166].mxu0 }
 0xa87   :  { %v10367_v43 = vadd.f32 %v10366_v3, %v10365_v44  ;;  %v4461_v19 = vpack.c.bf16 %v4437_v49, %v4436_v60  ;;  %v10368_v59 = vpop.f32.mrb[34].mxu1  ;;  %v10263_v54 = vpop.f32.mrb[167].mxu0 }
 0xa88   :  { %v10264_v15 = vadd.f32 %v10263_v54, %v10262_v58  ;;  %v10369_v53 = vpop.f32.mrb[35].mxu1  ;;  %v4207_v7 = vadd.f32 %v10261_v61, %v15060_v11 }
 0xa89   :  { %v4360_v38 = vadd.f32 %v10367_v43, %v4199_v56  ;;  %v10370_v36 = vadd.f32 %v10369_v53, %v10368_v59  ;;  %5893 = vmatpush1.bf16.msra.mxu0 %v4461_v19 }
 0xa8a   :  { %v4210_v31 = vadd.f32 %v10264_v15, %v15015_v0  ;;  %5894 = vmatprep.subr.bf16.mxu0 %v17475_v62 }
 0xa8b   :  { %v4363_v1 = vadd.f32 %v10370_v36, %v4202_v48  ;;  %v4438_v23 = vmax.f32 %v4360_v38, 0.0 }
 0xa8c   :  { %v10265_v25 = vpop.f32.mrb[168].mxu0 }
 0xa8d   :  { %v10371_v20 = vpop.f32.mrb[36].mxu1  ;;  %v4439_v47 = vmax.f32 %v4363_v1, 0.0  ;;  %v10266_v42 = vpop.f32.mrb[169].mxu0 }
 0xa8e   :  { %v10372_v10 = vpop.f32.mrb[37].mxu1  ;;  %v10267_v8 = vadd.f32 %v10266_v42, %v10265_v25  ;;  %v10268_v34 = vpop.f32.mrb[170].mxu0 }
 0xa8f   :  { %v10373_v14 = vadd.f32 %v10372_v10, %v10371_v20  ;;  %v4462_v40 = vpack.c.bf16 %v4439_v47, %v4438_v23  ;;  %v10374_v50 = vpop.f32.mrb[38].mxu1  ;;  %v10269_v32 = vpop.f32.mrb[171].mxu0 }
 0xa90   :  { %v10270_v39 = vadd.f32 %v10269_v32, %v10268_v34  ;;  %v10375_v17 = vpop.f32.mrb[39].mxu1  ;;  %v4215_v0 = vadd.f32 %v10267_v8, %v15074_v24 }
 0xa91   :  { %v4368_v11 = vadd.f32 %v10373_v14, %v4207_v7  ;;  %v10376_v55 = vadd.f32 %v10375_v17, %v10374_v50  ;;  %5895 = vmatpush1.bf16.msra.mxu0 %v4462_v40 }
 0xa92   :  { %v4218_v27 = vadd.f32 %v10270_v39, %v15029_v33  ;;  %5896 = vmatprep.subr.bf16.mxu0 %v17475_v62 }
 0xa93   :  { %v4371_v21 = vadd.f32 %v10376_v55, %v4210_v31  ;;  %v4440_v56 = vmax.f32 %v4368_v11, 0.0 }
 0xa94   :  { %v10271_v5 = vpop.f32.mrb[172].mxu0 }
 0xa95   :  { %v10377_v45 = vpop.f32.mrb[40].mxu1  ;;  %v4441_v46 = vmax.f32 %v4371_v21, 0.0  ;;  %v10272_v48 = vpop.f32.mrb[173].mxu0 }
 0xa96   :  { %v10378_v6 = vpop.f32.mrb[41].mxu1  ;;  %v10273_v29 = vadd.f32 %v10272_v48, %v10271_v5  ;;  %v10274_v60 = vpop.f32.mrb[174].mxu0 }
 0xa97   :  { %v10379_v44 = vadd.f32 %v10378_v6, %v10377_v45  ;;  %v4463_v49 = vpack.c.bf16 %v4441_v46, %v4440_v56  ;;  %v10380_v30 = vpop.f32.mrb[42].mxu1  ;;  %v10275_v3 = vpop.f32.mrb[175].mxu0 }
 0xa98   :  { %v10276_v61 = vadd.f32 %v10275_v3, %v10274_v60  ;;  %v10381_v43 = vpop.f32.mrb[43].mxu1  ;;  %v4223_v33 = vadd.f32 %v10273_v29, %v15089_v18 }
 0xa99   :  { %v4376_v24 = vadd.f32 %v10379_v44, %v4215_v0  ;;  %v10382_v58 = vadd.f32 %v10381_v43, %v10380_v30  ;;  %5897 = vmatpush1.bf16.msra.mxu0 %v4463_v49 }
 0xa9a   :  { %v4226_v19 = vadd.f32 %v10276_v61, %v15043_v13  ;;  %5898 = vmatprep.subr.bf16.mxu0 %v17475_v62 }
 0xa9b   :  { %v4379_v59 = vadd.f32 %v10382_v58, %v4218_v27  ;;  %v4442_v53 = vmax.f32 %v4376_v24, 0.0 }
 0xa9c   :  { %v10277_v54 = vpop.f32.mrb[176].mxu0 }
 0xa9d   :  { %v10383_v38 = vpop.f32.mrb[44].mxu1  ;;  %v10278_v15 = vpop.f32.mrb[177].mxu0  ;;  %v4443_v7 = vmax.f32 %v4379_v59, 0.0 }
 0xa9e   :  { %v10279_v36 = vadd.f32 %v10278_v15, %v10277_v54  ;;  %v10384_v31 = vpop.f32.mrb[45].mxu1  ;;  %v10280_v1 = vpop.f32.mrb[178].mxu0 }
 0xa9f   :  { %v10385_v25 = vadd.f32 %v10384_v31, %v10383_v38  ;;  %v10386_v20 = vpop.f32.mrb[46].mxu1  ;;  %v4464_v23 = vpack.c.bf16 %v4443_v7, %v4442_v53  ;;  %v10281_v47 = vpop.f32.mrb[179].mxu0 }
 0xaa0   :  { %v10387_v18 = vpop.f32.mrb[47].mxu1  ;;  %v4231_v42 = vadd.f32 %v10279_v36, %v15102_v16  ;;  %v10282_v13 = vadd.f32 %v10281_v47, %v10280_v1 }
 0xaa1   :  { %v4384_v10 = vadd.f32 %v10385_v25, %v4223_v33  ;;  %v10388_v8 = vadd.f32 %v10387_v18, %v10386_v20  ;;  %5899 = vmatpush1.bf16.msra.mxu0 %v4464_v23 }
 0xaa2   :  { %v4234_v34 = vadd.f32 %v10282_v13, %v15057_v2  ;;  %5900 = vmatprep.subr.bf16.mxu0 %v17475_v62 }
 0xaa3   :  { %v4387_v14 = vadd.f32 %v10388_v8, %v4226_v19  ;;  %v4444_v50 = vmax.f32 %v4384_v10, 0.0 }
 0xaa4   :  { %v10283_v40 = vpop.f32.mrb[180].mxu0 }
 0xaa5   :  { %v4445_v32 = vmax.f32 %v4387_v14, 0.0  ;;  %v10389_v11 = vpop.f32.mrb[48].mxu1  ;;  %v10284_v39 = vpop.f32.mrb[181].mxu0 }
 0xaa6   :  { %v10285_v17 = vadd.f32 %v10284_v39, %v10283_v40  ;;  %v10390_v0 = vpop.f32.mrb[49].mxu1  ;;  %v10286_v55 = vpop.f32.mrb[182].mxu0 }
 0xaa7   :  { %v4465_v27 = vpack.c.bf16 %v4445_v32, %v4444_v50  ;;  %v10391_v21 = vadd.f32 %v10390_v0, %v10389_v11  ;;  %v10392_v16 = vpop.f32.mrb[50].mxu1  ;;  %v10287_v5 = vpop.f32.mrb[183].mxu0 }
 0xaa8   :  { %v10393_v45 = vpop.f32.mrb[51].mxu1  ;;  %v4239_v56 = vadd.f32 %v10285_v17, %v15112_v51  ;;  %v10288_v48 = vadd.f32 %v10287_v5, %v10286_v55 }
 0xaa9   :  { %v4392_v46 = vadd.f32 %v10391_v21, %v4231_v42  ;;  %v10394_v2 = vadd.f32 %v10393_v45, %v10392_v16  ;;  %5901 = vmatpush1.bf16.msra.mxu0 %v4465_v27 }
 0xaaa   :  { %5902 = vmatprep.subr.bf16.mxu0 %v17475_v62  ;;  %v4242_v29 = vadd.f32 %v10288_v48, %v15071_v41  ;;  %v11327_v48 = vld [vmem:[#allocation8] ss:$8 sps:$4 sm:$0xff]  }
 0xaab   :  { %v4395_v6 = vadd.f32 %v10394_v2, %v4234_v34  ;;  %v4446_v60 = vmax.f32 %v4392_v46, 0.0  ;;  %v11330_v2 = vld [vmem:[#allocation8 + $0x14] ss:$8 sps:$4 sm:$0xff]  }
 0xaac   :  { %v10289_v44 = vpop.f32.mrb[184].mxu0 }
 0xaad   :  { %v4447_v49 = vmax.f32 %v4395_v6, 0.0  ;;  %v10395_v30 = vpop.f32.mrb[52].mxu1  ;;  %v10290_v3 = vpop.f32.mrb[185].mxu0  ;;  %v11332_v6 = vld [vmem:[#allocation8 + $0x10] ss:$8 sps:$4 sm:$0xff]  }
 0xaae   :  { %v10291_v24 = vadd.f32 %v10290_v3, %v10289_v44  ;;  %v10396_v61 = vpop.f32.mrb[53].mxu1  ;;  %v10292_v43 = vpop.f32.mrb[186].mxu0  ;;  %v11335_v44 = vld [vmem:[#allocation8 + $0x20] ss:$8 sps:$4 sm:$0xff]  }
 0xaaf   :  { %v4466_v33 = vpack.c.bf16 %v4447_v49, %v4446_v60  ;;  %v10397_v58 = vadd.f32 %v10396_v61, %v10395_v30  ;;  %v10398_v51 = vpop.f32.mrb[54].mxu1  ;;  %v10293_v19 = vpop.f32.mrb[187].mxu0  ;;  %v11336_v60 = vld [vmem:[#allocation8 + $0x34] ss:$8 sps:$4 sm:$0xff]   ;;  %v11338_v49 = vld [vmem:[#allocation8 + $0x30] ss:$8 sps:$4 sm:$0xff]  }
 0xab0   :  { %v10294_v59 = vadd.f32 %v10293_v19, %v10292_v43  ;;  %v10399_v54 = vpop.f32.mrb[55].mxu1  ;;  %v4247_v38 = vadd.f32 %v10291_v24, %v15122_v35  ;;  %v11339_v30 = vld [vmem:[#allocation8 + $0x44] ss:$8 sps:$4 sm:$0xff]   ;;  %v11341_v3 = vld [vmem:[#allocation8 + $0x40] ss:$8 sps:$4 sm:$0xff]  }
 0xab1   :  { %v4400_v15 = vadd.f32 %v10397_v58, %v4239_v56  ;;  %v10400_v53 = vadd.f32 %v10399_v54, %v10398_v51  ;;  %5903 = vmatpush1.bf16.msra.mxu0 %v4466_v33  ;;  %v11342_v24 = vld [vmem:[#allocation8 + $0x54] ss:$8 sps:$4 sm:$0xff]   ;;  %v11344_v61 = vld [vmem:[#allocation8 + $0x50] ss:$8 sps:$4 sm:$0xff]   ;;  %v11345_v43 = vld [vmem:[#allocation8 + $0x64] ss:$8 sps:$4 sm:$0xff]  }
 0xab2   :  { %v4250_v41 = vadd.f32 %v10294_v59, %v15085_v37  ;;  %5904 = vmatprep.subr.bf16.mxu0 %v17475_v62  ;;  %v11347_v33 = vld [vmem:[#allocation8 + $0x60] ss:$8 sps:$4 sm:$0xff]   ;;  %v11348_v58 = vld [vmem:[#allocation8 + $0x74] ss:$8 sps:$4 sm:$0xff]   ;;  %v11350_v51 = vld [vmem:[#allocation8 + $0x70] ss:$8 sps:$4 sm:$0xff]  }
 0xab3   :  { %v4403_v7 = vadd.f32 %v10400_v53, %v4242_v29  ;;  %v4448_v31 = vmax.f32 %v4400_v15, 0.0  ;;  %v11333_v29 = vld [vmem:[#allocation8 + $0x24] ss:$8 sps:$4 sm:$0xff]   ;;  %v11353_v59 = vld [vmem:[#allocation8 + $0x80] ss:$8 sps:$4 sm:$0xff]  }
 0xab4   :  { %v10295_v36 = vpop.f32.mrb[188].mxu0  ;;  %v11351_v19 = vld [vmem:[#allocation8 + $0x84] ss:$8 sps:$4 sm:$0xff]   ;;  %v11354_v54 = vld [vmem:[#allocation8 + $0x94] ss:$8 sps:$4 sm:$0xff]  }
 0xab5   :  { %v4449_v1 = vmax.f32 %v4403_v7, 0.0  ;;  %v10401_v25 = vpop.f32.mrb[56].mxu1  ;;  %v10296_v20 = vpop.f32.mrb[189].mxu0  ;;  %v11357_v15 = vld [vmem:[#allocation8 + $0xa4] ss:$8 sps:$4 sm:$0xff]  }
 0xab6   :  { %v10297_v23 = vadd.f32 %v10296_v20, %v10295_v36  ;;  %v10402_v47 = vpop.f32.mrb[57].mxu1  ;;  %v10298_v18 = vpop.f32.mrb[190].mxu0  ;;  %v11359_v53 = vld [vmem:[#allocation8 + $0xa0] ss:$8 sps:$4 sm:$0xff]   ;;  %v11362_v7 = vld [vmem:[#allocation8 + $0xb0] ss:$8 sps:$4 sm:$0xff]  }
 0xab7   :  { %v4467_v42 = vpack.c.bf16 %v4449_v1, %v4448_v31  ;;  %v10403_v10 = vadd.f32 %v10402_v47, %v10401_v25  ;;  %v10404_v13 = vpop.f32.mrb[58].mxu1  ;;  %v10299_v35 = vpop.f32.mrb[191].mxu0  ;;  %v11363_v36 = vld [vmem:[#allocation8 + $0xc4] ss:$8 sps:$4 sm:$0xff]   ;;  %v11365_v31 = vld [vmem:[#allocation8 + $0xc0] ss:$8 sps:$4 sm:$0xff]  }
 0xab8   :  { %v10300_v8 = vadd.f32 %v10299_v35, %v10298_v18  ;;  %v10405_v14 = vpop.f32.mrb[59].mxu1  ;;  %v4255_v34 = vadd.f32 %v10297_v23, %v15132_v28  ;;  %v11366_v1 = vld [vmem:[#allocation8 + $0xd4] ss:$8 sps:$4 sm:$0xff]   ;;  %v11368_v25 = vld [vmem:[#allocation8 + $0xd0] ss:$8 sps:$4 sm:$0xff]  }
 0xab9   :  { %v4408_v37 = vadd.f32 %v10403_v10, %v4247_v38  ;;  %v10406_v40 = vadd.f32 %v10405_v14, %v10404_v13  ;;  %5905 = vmatpush1.bf16.msra.mxu0 %v4467_v42  ;;  %v11356_v38 = vld [vmem:[#allocation8 + $0x90] ss:$8 sps:$4 sm:$0xff]   ;;  %v11369_v20 = vld [vmem:[#allocation8 + $0xe4] ss:$8 sps:$4 sm:$0xff]   ;;  %v11371_v23 = vld [vmem:[#allocation8 + $0xe0] ss:$8 sps:$4 sm:$0xff]  }
 0xaba   :  { %v4258_v50 = vadd.f32 %v10300_v8, %v15099_v52  ;;  %5906 = vmatprep.subr.bf16.mxu0 %v17475_v62  ;;  %v11372_v47 = vld [vmem:[#allocation8 + $0xf4] ss:$8 sps:$4 sm:$0xff]   ;;  %v11374_v18 = vld [vmem:[#allocation8 + $0xf0] ss:$8 sps:$4 sm:$0xff]   ;;  %v11377_v42 = vld [vmem:[#allocation8 + $0x104] ss:$8 sps:$4 sm:$0xff]  }
 0xabb   :  { %v4411_v32 = vadd.f32 %v10406_v40, %v4250_v41  ;;  %v4450_v11 = vmax.f32 %v4408_v37, 0.0  ;;  %v11360_v41 = vld [vmem:[#allocation8 + $0xb4] ss:$8 sps:$4 sm:$0xff]   ;;  %v11375_v10 = vld [vmem:[#allocation8 + $0x100] ss:$8 sps:$4 sm:$0xff]  }
 0xabc   :  { %v11380_v13 = vld [vmem:[#allocation8 + $0x114] ss:$8 sps:$4 sm:$0xff]   ;;  %v11378_v35 = vld [vmem:[#allocation8 + $0x110] ss:$8 sps:$4 sm:$0xff]   ;;  %v11383_v8 = vld [vmem:[#allocation8 + $0x124] ss:$8 sps:$4 sm:$0xff]  }
 0xabd   :  { %v4451_v39 = vmax.f32 %v4411_v32, 0.0  ;;  %v10407_v17 = vpop.f32.mrb[60].mxu1  ;;  %v11381_v14 = vld [vmem:[#allocation8 + $0x120] ss:$8 sps:$4 sm:$0xff]   ;;  %v11384_v37 = vld [vmem:[#allocation8 + $0x130] ss:$8 sps:$4 sm:$0xff]  }
 0xabe   :  { %v10408_v0 = vpop.f32.mrb[61].mxu1  ;;  %v11389_v40 = vld [vmem:[#allocation8 + $0x144] ss:$8 sps:$4 sm:$0xff]   ;;  %v11392_v32 = vld [vmem:[#allocation8 + $0x154] ss:$8 sps:$4 sm:$0xff]  }
 0xabf   :  { %v4468_v55 = vpack.c.bf16 %v4451_v39, %v4450_v11  ;;  %v10409_v27 = vadd.f32 %v10408_v0, %v10407_v17  ;;  %v10410_v21 = vpop.f32.mrb[62].mxu1  ;;  %v11390_v11 = vld [vmem:[#allocation8 + $0x150] ss:$8 sps:$4 sm:$0xff]   ;;  %v11395_v39 = vld [vmem:[#allocation8 + $0x164] ss:$8 sps:$4 sm:$0xff]  }
 0xac0   :  { %v10411_v16 = vpop.f32.mrb[63].mxu1  ;;  %v11393_v17 = vld [vmem:[#allocation8 + $0x160] ss:$8 sps:$4 sm:$0xff]   ;;  %v11398_v0 = vld [vmem:[#allocation8 + $0x174] ss:$8 sps:$4 sm:$0xff]  }
 0xac1   :  { %v4416_v5 = vadd.f32 %v10409_v27, %v4255_v34  ;;  %v10412_v45 = vadd.f32 %v10411_v16, %v10410_v21  ;;  %5907 = vmatpush1.bf16.msra.mxu0 %v4468_v55  ;;  %v11386_v34 = vld [vmem:[#allocation8 + $0x134] ss:$8 sps:$4 sm:$0xff]   ;;  %v11396_v55 = vld [vmem:[#allocation8 + $0x170] ss:$8 sps:$4 sm:$0xff]   ;;  %v11401_v27 = vld [vmem:[#allocation8 + $0x184] ss:$8 sps:$4 sm:$0xff]  }
 0xac2   :  { %5908 = vmatprep.subr.bf16.mxu0 %v17475_v62  ;;  %v11399_v21 = vld [vmem:[#allocation8 + $0x180] ss:$8 sps:$4 sm:$0xff]   ;;  %v11404_v16 = vld [vmem:[#allocation8 + $0x194] ss:$8 sps:$4 sm:$0xff]  }
 0xac3   :  { %v4419_v28 = vadd.f32 %v10412_v45, %v4258_v50  ;;  %v4452_v56 = vmax.f32 %v4416_v5, 0.0  ;;  %v11387_v50 = vld [vmem:[#allocation8 + $0x140] ss:$8 sps:$4 sm:$0xff]   ;;  %v11402_v5 = vld [vmem:[#allocation8 + $0x190] ss:$8 sps:$4 sm:$0xff]  }
 0xac4   :  { %v11407_v45 = vld [vmem:[#allocation8 + $0x1a4] ss:$8 sps:$4 sm:$0xff]  }
 0xac5   :  { %v4453_v46 = vmax.f32 %v4419_v28, 0.0  ;;  %v11405_v28 = vld [vmem:[#allocation8 + $0x1a0] ss:$8 sps:$4 sm:$0xff]  }
 0xac7   :  { %v4469_v52 = vpack.c.bf16 %v4453_v46, %v4452_v56  ;;  %v11410_v56 = vld [vmem:[#allocation8 + $0x1b4] ss:$8 sps:$4 sm:$0xff]  }
 0xac9   :  { %5909 = vmatpush1.bf16.msra.mxu0 %v4469_v52 }
 0xacc   :  { %5911 = vmatmul.mubr.bf16.vlgmr.msra.gmra.mrb[192].mxu0 %v11327_v48 }
 0xacd   :  { %5918 = vmatprep.mubr.bf16.mxu0 %v11330_v2  ;;  %v11408_v2 = vld [vmem:[#allocation8 + $0x1b0] ss:$8 sps:$4 sm:$0xff]  }
 0xad4   :  { %5919 = vmatmul.mubr.bf16.gmra.mrb[196].mxu0 %v11332_v6 }
 0xad5   :  { %5926 = vmatprep.mubr.bf16.mxu0 %v11333_v29  ;;  %v11413_v29 = vld [vmem:[#allocation8 + $0x1c4] ss:$8 sps:$4 sm:$0xff]  }
 0xadc   :  { %5927 = vmatmul.mubr.bf16.gmra.mrb[200].mxu0 %v11335_v44  ;;  %v17548_v44 = vld [vmem:[#allocation184_spill] sm:$0xff] }
 0xadd   :  { %5934 = vmatprep.mubr.bf16.mxu0 %v11336_v60 }
 0xae4   :  { %5935 = vmatmul.mubr.bf16.gmra.mrb[204].mxu0 %v11338_v49 }
 0xae5   :  { %5942 = vmatprep.mubr.bf16.mxu0 %v11339_v30 }
 0xaec   :  { %5943 = vmatmul.mubr.bf16.gmra.mrb[208].mxu0 %v11341_v3  ;;  %v17549_v3 = vld [vmem:[#allocation185_spill] sm:$0xff] }
 0xaed   :  { %5950 = vmatprep.mubr.bf16.mxu0 %v11342_v24 }
 0xaf4   :  { %5951 = vmatmul.mubr.bf16.gmra.mrb[212].mxu0 %v11344_v61 }
 0xaf5   :  { %5958 = vmatprep.mubr.bf16.mxu0 %v11345_v43 }
 0xafc   :  { %5959 = vmatmul.mubr.bf16.gmra.mrb[216].mxu0 %v11347_v33 }
 0xafd   :  { %5966 = vmatprep.mubr.bf16.mxu0 %v11348_v58 }
 0xb04   :  { %5967 = vmatmul.mubr.bf16.gmra.mrb[220].mxu0 %v11350_v51 }
 0xb05   :  { %5974 = vmatprep.mubr.bf16.mxu0 %v11351_v19  ;;  %v11411_v19 = vld [vmem:[#allocation8 + $0x1c0] ss:$8 sps:$4 sm:$0xff]  }
 0xb0c   :  { %5975 = vmatmul.mubr.bf16.gmra.mrb[224].mxu0 %v11353_v59 }
 0xb0d   :  { %5982 = vmatprep.mubr.bf16.mxu0 %v11354_v54  ;;  %v11416_v54 = vld [vmem:[#allocation8 + $0x1d4] ss:$8 sps:$4 sm:$0xff]  }
 0xb14   :  { %5983 = vmatmul.mubr.bf16.gmra.mrb[228].mxu0 %v11356_v38  ;;  %v17550_v38 = vld [vmem:[#allocation188_spill] sm:$0xff] }
 0xb15   :  { %5990 = vmatprep.mubr.bf16.mxu0 %v11357_v15 }
 0xb1c   :  { %5991 = vmatmul.mubr.bf16.gmra.mrb[232].mxu0 %v11359_v53 }
 0xb1d   :  { %5998 = vmatprep.mubr.bf16.mxu0 %v11360_v41  ;;  %v17551_v41 = vld [vmem:[#allocation189_spill] sm:$0xff] }
 0xb24   :  { %5999 = vmatmul.mubr.bf16.gmra.mrb[236].mxu0 %v11362_v7 }
 0xb25   :  { %6006 = vmatprep.mubr.bf16.mxu0 %v11363_v36 }
 0xb2c   :  { %6007 = vmatmul.mubr.bf16.gmra.mrb[240].mxu0 %v11365_v31 }
 0xb2d   :  { %6014 = vmatprep.mubr.bf16.mxu0 %v11366_v1 }
 0xb34   :  { %6015 = vmatmul.mubr.bf16.gmra.mrb[244].mxu0 %v11368_v25 }
 0xb35   :  { %6022 = vmatprep.mubr.bf16.mxu0 %v11369_v20 }
 0xb3c   :  { %6023 = vmatmul.mubr.bf16.gmra.mrb[248].mxu0 %v11371_v23  ;;  %v11414_v23 = vld [vmem:[#allocation8 + $0x1d0] ss:$8 sps:$4 sm:$0xff]  }
 0xb3d   :  { %6030 = vmatprep.mubr.bf16.mxu0 %v11372_v47 }
 0xb44   :  { %6031 = vmatmul.mubr.bf16.gmra.mrb[252].mxu0 %v11374_v18  ;;  %v11419_v18 = vld [vmem:[#allocation8 + $0x1e4] ss:$8 sps:$4 sm:$0xff]  }
 0xb45   :  { %6038 = vmatprep.mubr.bf16.mxu0 %v11377_v42  ;;  %v17552_v42 = vld [vmem:[#allocation192_spill] sm:$0xff] }
 0xb4c   :  { %6039 = vmatmul.mubr.bf16.gmra.mrb[0].mxu0 %v11375_v10 }
 0xb4d   :  { %6046 = vmatprep.mubr.bf16.mxu0 %v11380_v13 }
 0xb54   :  { %6047 = vmatmul.mubr.bf16.gmra.mrb[4].mxu0 %v11378_v35  ;;  %v17553_v35 = vld [vmem:[#allocation193_spill] sm:$0xff] }
 0xb55   :  { %6054 = vmatprep.mubr.bf16.mxu0 %v11383_v8 }
 0xb5c   :  { %6055 = vmatmul.mubr.bf16.gmra.mrb[8].mxu0 %v11381_v14 }
 0xb5d   :  { %6062 = vmatprep.mubr.bf16.mxu0 %v11386_v34 }
 0xb64   :  { %6063 = vmatmul.mubr.bf16.gmra.mrb[12].mxu0 %v11384_v37 }
 0xb65   :  { %6070 = vmatprep.mubr.bf16.mxu0 %v11389_v40 }
 0xb6c   :  { %6071 = vmatmul.mubr.bf16.gmra.mrb[16].mxu0 %v11387_v50 }
 0xb6d   :  { %6078 = vmatprep.mubr.bf16.mxu0 %v11392_v32  ;;  %v11417_v32 = vld [vmem:[#allocation8 + $0x1e0] ss:$8 sps:$4 sm:$0xff]  }
 0xb74   :  { %6079 = vmatmul.mubr.bf16.gmra.mrb[20].mxu0 %v11390_v11 }
 0xb75   :  { %6086 = vmatprep.mubr.bf16.mxu0 %v11395_v39  ;;  %v11422_v39 = vld [vmem:[#allocation8 + $0x1f4] ss:$8 sps:$4 sm:$0xff]  }
 0xb7c   :  { %6087 = vmatmul.mubr.bf16.gmra.mrb[24].mxu0 %v11393_v17  ;;  %v17554_v17 = vld [vmem:[#allocation196_spill] sm:$0xff] }
 0xb7d   :  { %6094 = vmatprep.mubr.bf16.mxu0 %v11398_v0 }
 0xb84   :  { %6095 = vmatmul.mubr.bf16.gmra.mrb[28].mxu0 %v11396_v55  ;;  %v17555_v55 = vld [vmem:[#allocation215_spill] sm:$0xff] }
 0xb85   :  { %6102 = vmatprep.mubr.bf16.mxu0 %v11401_v27 }
 0xb8c   :  { %6103 = vmatmul.mubr.bf16.gmra.mrb[32].mxu0 %v11399_v21  ;;  %v17556_v21 = vld [vmem:[#allocation197_spill] sm:$0xff] }
 0xb8d   :  { %6110 = vmatprep.mubr.bf16.mxu0 %v11404_v16 }
 0xb94   :  { %6111 = vmatmul.mubr.bf16.gmra.mrb[36].mxu0 %v11402_v5 }
 0xb95   :  { %6118 = vmatprep.mubr.bf16.mxu0 %v11407_v45 }
 0xb9c   :  { %6119 = vmatmul.mubr.bf16.gmra.mrb[40].mxu0 %v11405_v28 }
 0xb9d   :  { %6126 = vmatprep.mubr.bf16.mxu0 %v11410_v56 }
 0xb9f   :  { %v5912_v46 = vpop.f32.mrb[192].mxu0 }
 0xba0   :  { %v5913_v52 = vadd.f32 %v5912_v46, %v15200_v9  ;;  %v5914_v48 = vpop.f32.mrb[193].mxu0  ;;  %v17557_v46 = vld [vmem:[#allocation156_spill] sm:$0xff] }
 0xba1   :  { %v5915_v6 = vpop.f32.mrb[194].mxu0  ;;  %v11420_v48 = vld [vmem:[#allocation8 + $0x1f0] ss:$8 sps:$4 sm:$0xff]  }
 0xba2   :  { %v6423_v60 = vadd.f32 %v5913_v52, %v17548_v44  ;;  %v5916_v49 = vadd.f32 %v5915_v6, %v15176_v22  ;;  %v5917_v30 = vpop.f32.mrb[195].mxu0  ;;  %v11425_v6 = vld [vmem:[#allocation8 + $0x204] ss:$8 sps:$4 sm:$0xff]  }
 0xba4   :  { %v6424_v24 = vadd.f32 %v5916_v49, %v17549_v3  ;;  %6127 = vmatmul.mubr.bf16.gmra.mrb[44].mxu0 %v11408_v2  ;;  %v6551_v61 = vmax.f32 %v6423_v60, 0.0  ;;  %v17559_v60 = vld [vmem:[#allocation214_spill] sm:$0xff]  ;;  %v17560_v3 = vld [vmem:[#allocation201_spill] sm:$0xff] }
 0xba5   :  { %6134 = vmatprep.mubr.bf16.mxu0 %v11413_v29  ;;  %v17558_v29 = vld [vmem:[#allocation200_spill] sm:$0xff] }
 0xba6   :  { %v6552_v43 = vmax.f32 %v6424_v24, 0.0 }
 0xba7   :  { %v5920_v33 = vpop.f32.mrb[196].mxu0 }
 0xba8   :  { %v15422_v58 = vpack.c.bf16 %v6552_v43, %v6551_v61  ;;  %v5921_v9 = vadd.f32 %v5920_v33, %v15216_v26  ;;  %v5922_v51 = vpop.f32.mrb[197].mxu0 }
 0xba9   :  { %v5923_v59 = vpop.f32.mrb[198].mxu0  ;;  %v17561_v51 = vld [vmem:[#allocation221_spill] sm:$0xff] }
 0xbaa   :  { %v6425_v15 = vadd.f32 %v5921_v9, %v17550_v38  ;;  %v5924_v22 = vadd.f32 %v5923_v59, %v15187_v63  ;;  %v5925_v53 = vpop.f32.mrb[199].mxu0 }
 0xbac   :  { %v6426_v7 = vadd.f32 %v5924_v22, %v17551_v41  ;;  %6135 = vmatmul.mubr.bf16.gmra.mrb[48].mxu0 %v11411_v19  ;;  %v6553_v36 = vmax.f32 %v6425_v15, 0.0  ;;  %v11428_v15 = vld [vmem:[#allocation8 + $0x214] ss:$8 sps:$4 sm:$0xff]  }
 0xbad   :  { %6142 = vmatprep.mubr.bf16.mxu0 %v11416_v54  ;;  %v11423_v54 = vld [vmem:[#allocation8 + $0x200] ss:$8 sps:$4 sm:$0xff]   ;;  %v17562_v22 = vld [vmem:[#allocation204_spill] sm:$0xff]  ;;  %v17563_v41 = vld [vmem:[#allocation157_spill] sm:$0xff] }
 0xbae   :  { %v6554_v31 = vmax.f32 %v6426_v7, 0.0 }
 0xbaf   :  { %v5928_v1 = vpop.f32.mrb[200].mxu0 }
 0xbb0   :  { %v15428_v25 = vpack.c.bf16 %v6554_v31, %v6553_v36  ;;  %v5929_v26 = vadd.f32 %v5928_v1, %v15226_v12  ;;  %v5930_v20 = vpop.f32.mrb[201].mxu0  ;;  %v17564_v31 = vld [vmem:[#allocation205_spill] sm:$0xff] }
 0xbb1   :  { %v5931_v47 = vpop.f32.mrb[202].mxu0 }
 0xbb2   :  { %v6427_v10 = vadd.f32 %v5929_v26, %v17552_v42  ;;  %v5932_v63 = vadd.f32 %v5931_v47, %v15198_v4  ;;  %v5933_v13 = vpop.f32.mrb[203].mxu0 }
 0xbb4   :  { %v6428_v8 = vadd.f32 %v5932_v63, %v17553_v35  ;;  %6143 = vmatmul.mubr.bf16.gmra.mrb[52].mxu0 %v11414_v23  ;;  %v6555_v14 = vmax.f32 %v6427_v10, 0.0  ;;  %v11426_v63 = vld [vmem:[#allocation8 + $0x210] ss:$8 sps:$4 sm:$0xff]   ;;  %v11431_v35 = vld [vmem:[#allocation8 + $0x224] ss:$8 sps:$4 sm:$0xff]  }
 0xbb5   :  { %6150 = vmatprep.mubr.bf16.mxu0 %v11419_v18  ;;  %v17565_v18 = vld [vmem:[#allocation219_spill] sm:$0xff] }
 0xbb6   :  { %v6556_v34 = vmax.f32 %v6428_v8, 0.0  ;;  %v17566_v8 = vld [vmem:[#allocation208_spill] sm:$0xff] }
 0xbb7   :  { %v5936_v37 = vpop.f32.mrb[204].mxu0 }
 0xbb8   :  { %v15434_v40 = vpack.c.bf16 %v6556_v34, %v6555_v14  ;;  %v5937_v12 = vadd.f32 %v5936_v37, %v15242_v57  ;;  %v5938_v50 = vpop.f32.mrb[205].mxu0  ;;  %v17567_v34 = vld [vmem:[#allocation167_spill] sm:$0xff] }
 0xbb9   :  { %v5939_v11 = vpop.f32.mrb[206].mxu0  ;;  %v17568_v50 = vld [vmem:[#allocation209_spill] sm:$0xff] }
 0xbba   :  { %v6429_v0 = vadd.f32 %v5937_v12, %v17554_v17  ;;  %v5940_v4 = vadd.f32 %v5939_v11, %v17555_v55  ;;  %v5941_v27 = vpop.f32.mrb[207].mxu0  ;;  %v17569_v55 = vld [vmem:[#allocation218_spill] sm:$0xff] }
 0xbbc   :  { %v6430_v16 = vadd.f32 %v5940_v4, %v17556_v21  ;;  %6151 = vmatmul.mubr.bf16.gmra.mrb[56].mxu0 %v11417_v32  ;;  %v6557_v5 = vmax.f32 %v6429_v0, 0.0  ;;  %v11429_v21 = vld [vmem:[#allocation8 + $0x220] ss:$8 sps:$4 sm:$0xff]  }
 0xbbd   :  { %6158 = vmatprep.mubr.bf16.mxu0 %v11422_v39 }
 0xbbe   :  { %v6558_v45 = vmax.f32 %v6430_v16, 0.0 }
 0xbbf   :  { %v5944_v28 = vpop.f32.mrb[208].mxu0 }
 0xbc0   :  { %v15440_v56 = vpack.c.bf16 %v6558_v45, %v6557_v5  ;;  %v5945_v57 = vadd.f32 %v5944_v28, %v17557_v46  ;;  %v5946_v52 = vpop.f32.mrb[209].mxu0  ;;  %v11434_v5 = vld [vmem:[#allocation8 + $0x234] ss:$8 sps:$4 sm:$0xff]  }
 0xbc1   :  { %v5947_v2 = vpop.f32.mrb[210].mxu0  ;;  %v17570_v45 = vld [vmem:[#allocation212_spill] sm:$0xff] }
 0xbc2   :  { %v6431_v44 = vadd.f32 %v5945_v57, %v17558_v29  ;;  %v5948_v49 = vadd.f32 %v5947_v2, %v17559_v60  ;;  %v5949_v30 = vpop.f32.mrb[211].mxu0  ;;  %v17571_v46 = vld [vmem:[#allocation172_spill] sm:$0xff] }
 0xbc4   :  { %v6432_v24 = vadd.f32 %v5948_v49, %v17560_v3  ;;  %6159 = vmatmul.mubr.bf16.gmra.mrb[60].mxu0 %v11420_v48  ;;  %v6559_v61 = vmax.f32 %v6431_v44, 0.0  ;;  %v17572_v48 = vld [vmem:[#allocation213_spill] sm:$0xff]  ;;  %v17573_v49 = vld [vmem:[#allocation134_spill] sm:$0xff] }
 0xbc5   :  { %6166 = vmatprep.mubr.bf16.mxu0 %v11425_v6 }
 0xbc6   :  { %v6560_v43 = vmax.f32 %v6432_v24, 0.0  ;;  %v11432_v24 = vld [vmem:[#allocation8 + $0x230] ss:$8 sps:$4 sm:$0xff]  }
 0xbc7   :  { %v5952_v33 = vpop.f32.mrb[212].mxu0 }
 0xbc8   :  { %v15446_v9 = vpack.c.bf16 %v6560_v43, %v6559_v61  ;;  %v5953_v19 = vadd.f32 %v5952_v33, %v17561_v51  ;;  %v5954_v59 = vpop.f32.mrb[213].mxu0  ;;  %v11437_v43 = vld [vmem:[#allocation8 + $0x244] ss:$8 sps:$4 sm:$0xff]  }
 0xbc9   :  { %v5955_v38 = vpop.f32.mrb[214].mxu0  ;;  %v17574_v33 = vld [vmem:[#allocation182_spill] sm:$0xff] }
 0xbca   :  { %v6433_v53 = vadd.f32 %v5953_v19, %v17562_v22  ;;  %v5956_v7 = vadd.f32 %v5955_v38, %v17563_v41  ;;  %v5957_v36 = vpop.f32.mrb[215].mxu0  ;;  %v17575_v19 = vld [vmem:[#allocation177_spill] sm:$0xff]  ;;  %v17576_v38 = vld [vmem:[#allocation183_spill] sm:$0xff] }
 0xbcb   :  { %v17577_v36 = vld [vmem:[#allocation243_spill] sm:$0xff] }
 0xbcc   :  { %v6434_v1 = vadd.f32 %v5956_v7, %v17564_v31  ;;  %6167 = vmatmul.mubr.bf16.gmra.mrb[64].mxu0 %v11423_v54  ;;  %v6561_v26 = vmax.f32 %v6433_v53, 0.0 }
 0xbcd   :  { %6174 = vmatprep.mubr.bf16.mxu0 %v11428_v15 }
 0xbce   :  { %v6562_v20 = vmax.f32 %v6434_v1, 0.0 }
 0xbcf   :  { %v5960_v23 = vpop.f32.mrb[216].mxu0 }
 0xbd0   :  { %v15452_v47 = vpack.c.bf16 %v6562_v20, %v6561_v26  ;;  %v5961_v42 = vadd.f32 %v5960_v23, %v17565_v18  ;;  %v5962_v10 = vpop.f32.mrb[217].mxu0  ;;  %v11435_v26 = vld [vmem:[#allocation8 + $0x240] ss:$8 sps:$4 sm:$0xff]   ;;  %v11440_v23 = vld [vmem:[#allocation8 + $0x254] ss:$8 sps:$4 sm:$0xff]  }
 0xbd1   :  { %v5963_v13 = vpop.f32.mrb[218].mxu0  ;;  %v17578_v18 = vld [vmem:[#allocation186_spill] sm:$0xff]  ;;  %v17579_v10 = vld [vmem:[#allocation164_spill] sm:$0xff] }
 0xbd2   :  { %v6435_v14 = vadd.f32 %v5961_v42, %v17566_v8  ;;  %v5964_v37 = vadd.f32 %v5963_v13, %v17567_v34  ;;  %v5965_v12 = vpop.f32.mrb[219].mxu0 }
 0xbd4   :  { %v6436_v32 = vadd.f32 %v5964_v37, %v17568_v50  ;;  %6175 = vmatmul.mubr.bf16.gmra.mrb[68].mxu0 %v11426_v63  ;;  %v6563_v11 = vmax.f32 %v6435_v14, 0.0  ;;  %v17581_v50 = vld [vmem:[#allocation159_spill] sm:$0xff] }
 0xbd5   :  { %6182 = vmatprep.mubr.bf16.mxu0 %v11431_v35  ;;  %v17580_v35 = vld [vmem:[#allocation187_spill] sm:$0xff] }
 0xbd6   :  { %v6564_v39 = vmax.f32 %v6436_v32, 0.0 }
 0xbd7   :  { %v5968_v17 = vpop.f32.mrb[220].mxu0 }
 0xbd8   :  { %v15458_v0 = vpack.c.bf16 %v6564_v39, %v6563_v11  ;;  %v5969_v4 = vadd.f32 %v5968_v17, %v17569_v55  ;;  %v5970_v27 = vpop.f32.mrb[221].mxu0  ;;  %v11438_v39 = vld [vmem:[#allocation8 + $0x250] ss:$8 sps:$4 sm:$0xff]   ;;  %v11443_v55 = vld [vmem:[#allocation8 + $0x264] ss:$8 sps:$4 sm:$0xff]  }
 0xbd9   :  { %v5971_v16 = vpop.f32.mrb[222].mxu0 }
 0xbda   :  { %v6437_v28 = vadd.f32 %v5969_v4, %v17570_v45  ;;  %v5972_v57 = vadd.f32 %v5971_v16, %v17571_v46  ;;  %v5973_v52 = vpop.f32.mrb[223].mxu0  ;;  %v17582_v4 = vld [vmem:[#allocation190_spill] sm:$0xff]  ;;  %v17584_v45 = vld [vmem:[#allocation191_spill] sm:$0xff] }
 0xbdc   :  { %v6438_v2 = vadd.f32 %v5972_v57, %v17572_v48  ;;  %6183 = vmatmul.mubr.bf16.gmra.mrb[72].mxu0 %v11429_v21  ;;  %v6565_v6 = vmax.f32 %v6437_v28, 0.0  ;;  %v17583_v21 = vld [vmem:[#allocation162_spill] sm:$0xff] }
 0xbdd   :  { %6190 = vmatprep.mubr.bf16.mxu0 %v11434_v5 }
 0xbde   :  { %v6566_v29 = vmax.f32 %v6438_v2, 0.0  ;;  %v17585_v2 = vld [vmem:[#allocation245_spill] sm:$0xff] }
 0xbdf   :  { %v5976_v44 = vpop.f32.mrb[224].mxu0 }
 0xbe0   :  { %v15464_v60 = vpack.c.bf16 %v6566_v29, %v6565_v6  ;;  %v5977_v30 = vadd.f32 %v5976_v44, %v17573_v49  ;;  %v5978_v3 = vpop.f32.mrb[225].mxu0  ;;  %v11441_v44 = vld [vmem:[#allocation8 + $0x260] ss:$8 sps:$4 sm:$0xff]  }
 0xbe1   :  { %v5979_v61 = vpop.f32.mrb[226].mxu0  ;;  %v17586_v3 = vld [vmem:[#allocation194_spill] sm:$0xff] }
 0xbe2   :  { %v6439_v51 = vadd.f32 %v5977_v30, %v17574_v33  ;;  %v5980_v59 = vadd.f32 %v5979_v61, %v17575_v19  ;;  %v5981_v54 = vpop.f32.mrb[227].mxu0  ;;  %v11446_v30 = vld [vmem:[#allocation8 + $0x274] ss:$8 sps:$4 sm:$0xff]  }
 0xbe3   :  { %v17587_v61 = vld [vmem:[#allocation225_spill] sm:$0xff] }
 0xbe4   :  { %v6440_v15 = vadd.f32 %v5980_v59, %v17576_v38  ;;  %6191 = vmatmul.mubr.bf16.gmra.mrb[76].mxu0 %v11432_v24  ;;  %v6567_v22 = vmax.f32 %v6439_v51, 0.0  ;;  %v17588_v51 = vld [vmem:[#allocation195_spill] sm:$0xff] }
 0xbe5   :  { %6198 = vmatprep.mubr.bf16.mxu0 %v11437_v43 }
 0xbe6   :  { %v6568_v53 = vmax.f32 %v6440_v15, 0.0 }
 0xbe7   :  { %v5984_v41 = vpop.f32.mrb[228].mxu0 }
 0xbe8   :  { %v15470_v7 = vpack.c.bf16 %v6568_v53, %v6567_v22  ;;  %v5985_v31 = vadd.f32 %v5984_v41, %v17577_v36  ;;  %v5986_v1 = vpop.f32.mrb[229].mxu0  ;;  %v17589_v22 = vld [vmem:[#allocation158_spill] sm:$0xff]  ;;  %v11444_v36 = vld [vmem:[#allocation8 + $0x270] ss:$8 sps:$4 sm:$0xff]  }
 0xbe9   :  { %v5987_v20 = vpop.f32.mrb[230].mxu0  ;;  %v11449_v1 = vld [vmem:[#allocation8 + $0x284] ss:$8 sps:$4 sm:$0xff]  }
 0xbea   :  { %v6441_v42 = vadd.f32 %v5985_v31, %v17578_v18  ;;  %v5988_v63 = vadd.f32 %v5987_v20, %v17579_v10  ;;  %v5989_v13 = vpop.f32.mrb[231].mxu0  ;;  %v17592_v10 = vld [vmem:[#allocation199_spill] sm:$0xff] }
 0xbec   :  { %v6442_v8 = vadd.f32 %v5988_v63, %v17580_v35  ;;  %6199 = vmatmul.mubr.bf16.gmra.mrb[80].mxu0 %v11435_v26  ;;  %v6569_v14 = vmax.f32 %v6441_v42, 0.0  ;;  %v17590_v26 = vld [vmem:[#allocation198_spill] sm:$0xff] }
 0xbed   :  { %6206 = vmatprep.mubr.bf16.mxu0 %v11440_v23  ;;  %v17591_v23 = vld [vmem:[#allocation180_spill] sm:$0xff] }
 0xbee   :  { %v6570_v34 = vmax.f32 %v6442_v8, 0.0 }
 0xbef   :  { %v5992_v37 = vpop.f32.mrb[232].mxu0 }
 0xbf0   :  { %v15476_v12 = vpack.c.bf16 %v6570_v34, %v6569_v14  ;;  %v5993_v32 = vadd.f32 %v5992_v37, %v17581_v50  ;;  %v5994_v11 = vpop.f32.mrb[233].mxu0  ;;  %v17593_v34 = vld [vmem:[#allocation223_spill] sm:$0xff] }
 0xbf1   :  { %v5995_v17 = vpop.f32.mrb[234].mxu0 }
 0xbf2   :  { %v6443_v27 = vadd.f32 %v5993_v32, %v17582_v4  ;;  %v5996_v16 = vadd.f32 %v5995_v17, %v17583_v21  ;;  %v5997_v5 = vpop.f32.mrb[235].mxu0  ;;  %v11447_v32 = vld [vmem:[#allocation8 + $0x280] ss:$8 sps:$4 sm:$0xff]   ;;  %v17595_v4 = vld [vmem:[#allocation133_spill] sm:$0xff] }
 0xbf3   :  { %v17594_v17 = vld [vmem:[#allocation202_spill] sm:$0xff] }
 0xbf4   :  { %v6444_v28 = vadd.f32 %v5996_v16, %v17584_v45  ;;  %6207 = vmatmul.mubr.bf16.gmra.mrb[84].mxu0 %v11438_v39  ;;  %v6571_v46 = vmax.f32 %v6443_v27, 0.0  ;;  %v11452_v39 = vld [vmem:[#allocation8 + $0x294] ss:$8 sps:$4 sm:$0xff]   ;;  %v17596_v16 = vld [vmem:[#allocation203_spill] sm:$0xff] }
 0xbf5   :  { %6214 = vmatprep.mubr.bf16.mxu0 %v11443_v55 }
 0xbf6   :  { %v6572_v57 = vmax.f32 %v6444_v28, 0.0 }
 0xbf7   :  { %v6000_v52 = vpop.f32.mrb[236].mxu0 }
 0xbf8   :  { %v15482_v48 = vpack.c.bf16 %v6572_v57, %v6571_v46  ;;  %v6001_v6 = vadd.f32 %v6000_v52, %v17585_v2  ;;  %v6002_v29 = vpop.f32.mrb[237].mxu0  ;;  %v17597_v52 = vld [vmem:[#allocation247_spill] sm:$0xff] }
 0xbf9   :  { %v6003_v49 = vpop.f32.mrb[238].mxu0  ;;  %v11450_v29 = vld [vmem:[#allocation8 + $0x290] ss:$8 sps:$4 sm:$0xff]  }
 0xbfa   :  { %v6445_v24 = vadd.f32 %v6001_v6, %v17586_v3  ;;  %v6004_v43 = vadd.f32 %v6003_v49, %v17587_v61  ;;  %v6005_v33 = vpop.f32.mrb[239].mxu0  ;;  %v11455_v49 = vld [vmem:[#allocation8 + $0x2a4] ss:$8 sps:$4 sm:$0xff]  }
 0xbfb   :  { %v17600_v33 = vld [vmem:[#allocation207_spill] sm:$0xff] }
 0xbfc   :  { %v6446_v19 = vadd.f32 %v6004_v43, %v17588_v51  ;;  %6215 = vmatmul.mubr.bf16.gmra.mrb[88].mxu0 %v11441_v44  ;;  %v6573_v59 = vmax.f32 %v6445_v24, 0.0  ;;  %v17599_v24 = vld [vmem:[#allocation216_spill] sm:$0xff] }
 0xbfd   :  { %6222 = vmatprep.mubr.bf16.mxu0 %v11446_v30  ;;  %v17598_v30 = vld [vmem:[#allocation206_spill] sm:$0xff] }
 0xbfe   :  { %v6574_v54 = vmax.f32 %v6446_v19, 0.0 }
 0xbff   :  { %v6008_v38 = vpop.f32.mrb[240].mxu0 }
 0xc00   :  { %v15488_v15 = vpack.c.bf16 %v6574_v54, %v6573_v59  ;;  %v6009_v53 = vadd.f32 %v6008_v38, %v17589_v22  ;;  %v6010_v41 = vpop.f32.mrb[241].mxu0  ;;  %v4751_v54 = vpop.permute.xlu1 %4750 }
 0xc01   :  { %v6011_v31 = vpop.f32.mrb[242].mxu0 }
 0xc02   :  { %v6447_v20 = vadd.f32 %v6009_v53, %v17590_v26  ;;  %v6012_v18 = vadd.f32 %v6011_v31, %v17591_v23  ;;  %v6013_v42 = vpop.f32.mrb[243].mxu0  ;;  %v4756_v31 = vpop.permute.xlu0 %4755  ;;  %v11458_v26 = vld [vmem:[#allocation8 + $0x2b4] ss:$8 sps:$4 sm:$0xff]  }
 0xc04   :  { %v6448_v63 = vadd.f32 %v6012_v18, %v17592_v10  ;;  %6223 = vmatmul.mubr.bf16.gmra.mrb[92].mxu0 %v11444_v36  ;;  %v6575_v13 = vmax.f32 %v6447_v20, 0.0  ;;  %v11453_v36 = vld [vmem:[#allocation8 + $0x2a0] ss:$8 sps:$4 sm:$0xff]  }
 0xc05   :  { %6230 = vmatprep.mubr.bf16.mxu0 %v11449_v1  ;;  %v17601_v20 = vld [vmem:[#allocation210_spill] sm:$0xff]  ;;  %v17602_v10 = vld [vmem:[#allocation211_spill] sm:$0xff] }
 0xc06   :  { %v6576_v35 = vmax.f32 %v6448_v63, 0.0 }
 0xc07   :  { %v6016_v8 = vpop.f32.mrb[244].mxu0 }
 0xc08   :  { %v15494_v14 = vpack.c.bf16 %v6576_v35, %v6575_v13  ;;  %v6017_v37 = vadd.f32 %v6016_v8, %v17593_v34  ;;  %v6018_v50 = vpop.f32.mrb[245].mxu0  ;;  %v4761_v8 = vpop.permute.xlu1 %4760 }
 0xc09   :  { %v6019_v11 = vpop.f32.mrb[246].mxu0 }
 0xc0a   :  { %v6449_v55 = vadd.f32 %v6017_v37, %v17594_v17  ;;  %v6020_v27 = vadd.f32 %v6019_v11, %v17595_v4  ;;  %v6021_v21 = vpop.f32.mrb[247].mxu0  ;;  %v11456_v11 = vld [vmem:[#allocation8 + $0x2b0] ss:$8 sps:$4 sm:$0xff]  }
 0xc0b   :  { %v17603_v4 = vld [vmem:[#allocation144_spill] sm:$0xff] }
 0xc0c   :  { %v6450_v5 = vadd.f32 %v6020_v27, %v17596_v16  ;;  %6231 = vmatmul.mubr.bf16.gmra.mrb[96].mxu0 %v11447_v32  ;;  %v6577_v45 = vmax.f32 %v6449_v55, 0.0  ;;  %v11461_v55 = vld [vmem:[#allocation8 + $0x2c4] ss:$8 sps:$4 sm:$0xff]  }
 0xc0d   :  { %6238 = vmatprep.mubr.bf16.mxu0 %v11452_v39  ;;  %v4766_v39 = vpop.permute.xlu0 %4765 }
 0xc0e   :  { %v6578_v28 = vmax.f32 %v6450_v5, 0.0  ;;  %v17604_v5 = vld [vmem:[#allocation142_spill] sm:$0xff] }
 0xc0f   :  { %v6024_v46 = vpop.f32.mrb[248].mxu0 }
 0xc10   :  { %v15500_v57 = vpack.c.bf16 %v6578_v28, %v6577_v45  ;;  %v6025_v2 = vadd.f32 %v6024_v46, %v17597_v52  ;;  %v6026_v6 = vpop.f32.mrb[249].mxu0  ;;  %v4771_v52 = vpop.permute.xlu1 %4770 }
 0xc11   :  { %v6027_v44 = vpop.f32.mrb[250].mxu0 }
 0xc12   :  { %v6451_v3 = vadd.f32 %v6025_v2, %v17598_v30  ;;  %v6028_v61 = vadd.f32 %v6027_v44, %v17599_v24  ;;  %v6029_v43 = vpop.f32.mrb[251].mxu0  ;;  %v4776_v30 = vpop.permute.xlu0 %4775  ;;  %v11464_v24 = vld [vmem:[#allocation8 + $0x2d4] ss:$8 sps:$4 sm:$0xff]  }
 0xc14   :  { %v6452_v51 = vadd.f32 %v6028_v61, %v17600_v33  ;;  %6239 = vmatmul.mubr.bf16.gmra.mrb[100].mxu0 %v11450_v29  ;;  %v6579_v19 = vmax.f32 %v6451_v3, 0.0  ;;  %v17605_v61 = vld [vmem:[#allocation113_spill] sm:$0xff] }
 0xc15   :  { %6246 = vmatprep.mubr.bf16.mxu0 %v11455_v49  ;;  %v11459_v49 = vld [vmem:[#allocation8 + $0x2c0] ss:$8 sps:$4 sm:$0xff]  }
 0xc16   :  { %v6580_v59 = vmax.f32 %v6452_v51, 0.0 }
 0xc17   :  { %v6032_v38 = vpop.f32.mrb[252].mxu0 }
 0xc18   :  { %v15506_v22 = vpack.c.bf16 %v6580_v59, %v6579_v19  ;;  %v6033_v53 = vadd.f32 %v6032_v38, %v4751_v54  ;;  %v6034_v41 = vpop.f32.mrb[253].mxu0  ;;  %v17606_v19 = vld [vmem:[#allocation151_spill] sm:$0xff] }
 0xc19   :  { %v6035_v1 = vpop.f32.mrb[254].mxu0 }
 0xc1a   :  { %v6453_v23 = vadd.f32 %v6033_v53, %v17601_v20  ;;  %v6036_v18 = vadd.f32 %v6035_v1, %v4756_v31  ;;  %v6037_v42 = vpop.f32.mrb[255].mxu0  ;;  %v4781_v53 = vpop.permute.xlu1 %4780 }
 0xc1b   :  { %v4786_v20 = vpop.permute.xlu0 %4785  ;;  %v17607_v42 = vld [vmem:[#allocation122_spill] sm:$0xff] }
 0xc1c   :  { %v6454_v63 = vadd.f32 %v6036_v18, %v17602_v10  ;;  %6247 = vmatmul.mubr.bf16.gmra.mrb[104].mxu0 %v11453_v36  ;;  %v6581_v13 = vmax.f32 %v6453_v23, 0.0  ;;  %v11467_v18 = vld [vmem:[#allocation8 + $0x2e4] ss:$8 sps:$4 sm:$0xff]  }
 0xc1d   :  { %6254 = vmatprep.mubr.bf16.mxu0 %v11458_v26  ;;  %v11462_v26 = vld [vmem:[#allocation8 + $0x2d0] ss:$8 sps:$4 sm:$0xff]  }
 0xc1e   :  { %v6582_v35 = vmax.f32 %v6454_v63, 0.0 }
 0xc1f   :  { %v6040_v34 = vpop.f32.mrb[0].mxu0 }
 0xc20   :  { %v15510_v37 = vpack.c.bf16 %v6582_v35, %v6581_v13  ;;  %v6041_v50 = vadd.f32 %v6040_v34, %v4761_v8  ;;  %v6042_v32 = vpop.f32.mrb[1].mxu0  ;;  %v17608_v35 = vld [vmem:[#allocation138_spill] sm:$0xff] }
 0xc21   :  { %v6043_v17 = vpop.f32.mrb[2].mxu0  ;;  %v4791_v32 = vpop.permute.xlu1 %4790 }
 0xc22   :  { %v6455_v27 = vadd.f32 %v6041_v50, %v17603_v4  ;;  %v6044_v21 = vadd.f32 %v6043_v17, %v4766_v39  ;;  %v6045_v16 = vpop.f32.mrb[3].mxu0  ;;  %v11465_v4 = vld [vmem:[#allocation8 + $0x2e0] ss:$8 sps:$4 sm:$0xff]  }
 0xc23   :  { %v11470_v16 = vld [vmem:[#allocation8 + $0x2f4] ss:$8 sps:$4 sm:$0xff]  }
 0xc24   :  { %v6456_v45 = vadd.f32 %v6044_v21, %v17604_v5  ;;  %6255 = vmatmul.mubr.bf16.gmra.mrb[108].mxu0 %v11456_v11  ;;  %v6583_v28 = vmax.f32 %v6455_v27, 0.0  ;;  %v4796_v27 = vpop.permute.xlu0 %4795  ;;  %v17609_v5 = vld [vmem:[#allocation141_spill] sm:$0xff] }
 0xc25   :  { %6262 = vmatprep.mubr.bf16.mxu0 %v11461_v55 }
 0xc26   :  { %v6584_v46 = vmax.f32 %v6456_v45, 0.0 }
 0xc27   :  { %v6048_v2 = vpop.f32.mrb[4].mxu0 }
 0xc28   :  { %v15514_v6 = vpack.c.bf16 %v6584_v46, %v6583_v28  ;;  %v6049_v29 = vadd.f32 %v6048_v2, %v4771_v52  ;;  %v6050_v44 = vpop.f32.mrb[5].mxu0  ;;  %v17610_v52 = vld [vmem:[#allocation123_spill] sm:$0xff] }
 0xc29   :  { %v6051_v3 = vpop.f32.mrb[6].mxu0 }
 0xc2a   :  { %v6457_v43 = vadd.f32 %v6049_v29, %v17605_v61  ;;  %v6052_v33 = vadd.f32 %v6051_v3, %v4776_v30  ;;  %v6053_v51 = vpop.f32.mrb[7].mxu0 }
 0xc2c   :  { %v6458_v59 = vadd.f32 %v6052_v33, %v17606_v19  ;;  %6263 = vmatmul.mubr.bf16.gmra.mrb[112].mxu0 %v11459_v49  ;;  %v6585_v54 = vmax.f32 %v6457_v43, 0.0  ;;  %v4801_v49 = vpop.permute.xlu1 %4800  ;;  %v11468_v43 = vld [vmem:[#allocation8 + $0x2f0] ss:$8 sps:$4 sm:$0xff]   ;;  %v4806_v33 = vpop.permute.xlu0 %4805  ;;  %v11473_v19 = vld [vmem:[#allocation8 + $0x304] ss:$8 sps:$4 sm:$0xff]  }
 0xc2d   :  { %6270 = vmatprep.mubr.bf16.mxu0 %v11464_v24 }
 0xc2e   :  { %v6586_v38 = vmax.f32 %v6458_v59, 0.0  ;;  %v17611_v59 = vld [vmem:[#allocation145_spill] sm:$0xff] }
 0xc2f   :  { %v6056_v41 = vpop.f32.mrb[8].mxu0 }
 0xc30   :  { %v15518_v36 = vpack.c.bf16 %v6586_v38, %v6585_v54  ;;  %v6057_v31 = vadd.f32 %v6056_v41, %v4781_v53  ;;  %v6058_v1 = vpop.f32.mrb[9].mxu0  ;;  %v17612_v41 = vld [vmem:[#allocation125_spill] sm:$0xff] }
 0xc31   :  { %v6059_v23 = vpop.f32.mrb[10].mxu0 }
 0xc32   :  { %v6459_v10 = vadd.f32 %v6057_v31, %v17607_v42  ;;  %v6060_v63 = vadd.f32 %v6059_v23, %v4786_v20  ;;  %v6061_v13 = vpop.f32.mrb[11].mxu0  ;;  %v4811_v20 = vpop.permute.xlu1 %4810 }
 0xc33   :  { %v4816_v13 = vpop.permute.xlu0 %4815 }
 0xc34   :  { %v6460_v8 = vadd.f32 %v6060_v63, %v17608_v35  ;;  %6271 = vmatmul.mubr.bf16.gmra.mrb[116].mxu0 %v11462_v26  ;;  %v6587_v34 = vmax.f32 %v6459_v10, 0.0  ;;  %v11471_v63 = vld [vmem:[#allocation8 + $0x300] ss:$8 sps:$4 sm:$0xff]  }
 0xc35   :  { %6278 = vmatprep.mubr.bf16.mxu0 %v11467_v18 }
 0xc36   :  { %v6588_v50 = vmax.f32 %v6460_v8, 0.0  ;;  %v11476_v8 = vld [vmem:[#allocation8 + $0x314] ss:$8 sps:$4 sm:$0xff]  }
 0xc37   :  { %v6064_v11 = vpop.f32.mrb[12].mxu0 }
 0xc38   :  { %v15522_v39 = vpack.c.bf16 %v6588_v50, %v6587_v34  ;;  %v6065_v17 = vadd.f32 %v6064_v11, %v4791_v32  ;;  %v6066_v55 = vpop.f32.mrb[13].mxu0  ;;  %v17613_v34 = vld [vmem:[#allocation127_spill] sm:$0xff] }
 0xc39   :  { %v6067_v21 = vpop.f32.mrb[14].mxu0 }
 0xc3a   :  { %v6461_v45 = vadd.f32 %v6065_v17, %v17609_v5  ;;  %v6068_v28 = vadd.f32 %v6067_v21, %v4796_v27  ;;  %v6069_v46 = vpop.f32.mrb[15].mxu0  ;;  %v17614_v17 = vld [vmem:[#allocation150_spill] sm:$0xff]  ;;  %v4821_v21 = vpop.permute.xlu1 %4820 }
 0xc3b   :  { %v11474_v46 = vld [vmem:[#allocation8 + $0x310] ss:$8 sps:$4 sm:$0xff]  }
 0xc3c   :  { %v6462_v2 = vadd.f32 %v6068_v28, %v17610_v52  ;;  %6279 = vmatmul.mubr.bf16.gmra.mrb[120].mxu0 %v11465_v4  ;;  %v6589_v29 = vmax.f32 %v6461_v45, 0.0  ;;  %v4826_v52 = vpop.permute.xlu0 %4825 }
 0xc3d   :  { %6286 = vmatprep.mubr.bf16.mxu0 %v11470_v16 }
 0xc3e   :  { %v6590_v44 = vmax.f32 %v6462_v2, 0.0 }
 0xc3f   :  { %v6072_v30 = vpop.f32.mrb[16].mxu0 }
 0xc40   :  { %v15526_v3 = vpack.c.bf16 %v6590_v44, %v6589_v29  ;;  %v6073_v24 = vadd.f32 %v6072_v30, %v4801_v49  ;;  %v6074_v61 = vpop.f32.mrb[17].mxu0  ;;  %v11479_v29 = vld [vmem:[#allocation8 + $0x324] ss:$8 sps:$4 sm:$0xff]   ;;  %v17615_v44 = vld [vmem:[#allocation129_spill] sm:$0xff] }
 0xc41   :  { %v6075_v51 = vpop.f32.mrb[18].mxu0  ;;  %v17616_v61 = vld [vmem:[#allocation153_spill] sm:$0xff] }
 0xc42   :  { %v6463_v54 = vadd.f32 %v6073_v24, %v17611_v59  ;;  %v6076_v38 = vadd.f32 %v6075_v51, %v4806_v33  ;;  %v6077_v53 = vpop.f32.mrb[19].mxu0 }
 0xc44   :  { %v6464_v31 = vadd.f32 %v6076_v38, %v17612_v41  ;;  %6287 = vmatmul.mubr.bf16.gmra.mrb[124].mxu0 %v11468_v43  ;;  %v6591_v1 = vmax.f32 %v6463_v54, 0.0  ;;  %v11477_v41 = vld [vmem:[#allocation8 + $0x320] ss:$8 sps:$4 sm:$0xff]  }
 0xc45   :  { %6294 = vmatprep.mubr.bf16.mxu0 %v11473_v19  ;;  %v4831_v19 = vpop.permute.xlu1 %4830 }
 0xc46   :  { %v6592_v26 = vmax.f32 %v6464_v31, 0.0  ;;  %v4836_v31 = vpop.permute.xlu0 %4835 }
 0xc47   :  { %v6080_v23 = vpop.f32.mrb[20].mxu0 }
 0xc48   :  { %v15530_v18 = vpack.c.bf16 %v6592_v26, %v6591_v1  ;;  %v6081_v42 = vadd.f32 %v6080_v23, %v4811_v20  ;;  %v6082_v10 = vpop.f32.mrb[21].mxu0  ;;  %v11482_v26 = vld [vmem:[#allocation8 + $0x334] ss:$8 sps:$4 sm:$0xff]   ;;  %v17617_v20 = vld [vmem:[#allocation155_spill] sm:$0xff] }
 0xc49   :  { %v6083_v35 = vpop.f32.mrb[22].mxu0 }
 0xc4a   :  { %v6465_v50 = vadd.f32 %v6081_v42, %v17613_v34  ;;  %v6084_v32 = vadd.f32 %v6083_v35, %v4816_v13  ;;  %v6085_v11 = vpop.f32.mrb[23].mxu0  ;;  %v4841_v34 = vpop.permute.xlu1 %4840 }
 0xc4c   :  { %v6466_v55 = vadd.f32 %v6084_v32, %v17614_v17  ;;  %6295 = vmatmul.mubr.bf16.gmra.mrb[128].mxu0 %v11471_v63  ;;  %v6593_v4 = vmax.f32 %v6465_v50, 0.0  ;;  %v17618_v63 = vld [vmem:[#allocation115_spill] sm:$0xff] }
 0xc4d   :  { %6302 = vmatprep.mubr.bf16.mxu0 %v11476_v8 }
 0xc4e   :  { %v6594_v27 = vmax.f32 %v6466_v55, 0.0  ;;  %v11480_v55 = vld [vmem:[#allocation8 + $0x330] ss:$8 sps:$4 sm:$0xff]  }
 0xc4f   :  { %v6088_v16 = vpop.f32.mrb[24].mxu0 }
 0xc50   :  { %v15534_v5 = vpack.c.bf16 %v6594_v27, %v6593_v4  ;;  %v6089_v45 = vadd.f32 %v6088_v16, %v4821_v21  ;;  %v6090_v28 = vpop.f32.mrb[25].mxu0  ;;  %v4846_v4 = vpop.permute.xlu0 %4845  ;;  %v11485_v21 = vld [vmem:[#allocation8 + $0x344] ss:$8 sps:$4 sm:$0xff]   ;;  %v17619_v16 = vld [vmem:[#allocation137_spill] sm:$0xff] }
 0xc51   :  { %v6091_v2 = vpop.f32.mrb[26].mxu0 }
 0xc52   :  { %v6467_v49 = vadd.f32 %v6089_v45, %v17615_v44  ;;  %v6092_v30 = vadd.f32 %v6091_v2, %v4826_v52  ;;  %v6093_v24 = vpop.f32.mrb[27].mxu0  ;;  %v17620_v52 = vld [vmem:[#allocation139_spill] sm:$0xff] }
 0xc54   :  { %v6468_v43 = vadd.f32 %v6092_v30, %v17616_v61  ;;  %6303 = vmatmul.mubr.bf16.gmra.mrb[132].mxu0 %v11474_v46  ;;  %v6595_v33 = vmax.f32 %v6467_v49, 0.0  ;;  %v4851_v49 = vpop.permute.xlu1 %4850 }
 0xc55   :  { %6310 = vmatprep.mubr.bf16.mxu0 %v11479_v29 }
 0xc56   :  { %v6596_v51 = vmax.f32 %v6468_v43, 0.0 }
 0xc57   :  { %v6096_v59 = vpop.f32.mrb[28].mxu0 }
 0xc58   :  { %v15538_v54 = vpack.c.bf16 %v6596_v51, %v6595_v33  ;;  %v6097_v38 = vadd.f32 %v6096_v59, %v4831_v19  ;;  %v6098_v53 = vpop.f32.mrb[29].mxu0  ;;  %v11483_v33 = vld [vmem:[#allocation8 + $0x340] ss:$8 sps:$4 sm:$0xff]   ;;  %v4856_v51 = vpop.permute.xlu0 %4855  ;;  %v11488_v59 = vld [vmem:[#allocation8 + $0x354] ss:$8 sps:$4 sm:$0xff]  }
 0xc59   :  { %v6099_v1 = vpop.f32.mrb[30].mxu0 }
 0xc5a   :  { %v6469_v23 = vadd.f32 %v6097_v38, %v17617_v20  ;;  %v6100_v42 = vadd.f32 %v6099_v1, %v4836_v31  ;;  %v6101_v10 = vpop.f32.mrb[31].mxu0  ;;  %v17621_v38 = vld [vmem:[#allocation146_spill] sm:$0xff]  ;;  %v17622_v1 = vld [vmem:[#allocation149_spill] sm:$0xff] }
 0xc5c   :  { %v6470_v13 = vadd.f32 %v6100_v42, %v17618_v63  ;;  %6311 = vmatmul.mubr.bf16.gmra.mrb[136].mxu0 %v11477_v41  ;;  %v6597_v35 = vmax.f32 %v6469_v23, 0.0  ;;  %v4861_v42 = vpop.permute.xlu1 %4860 }
 0xc5d   :  { %6318 = vmatprep.mubr.bf16.mxu0 %v11482_v26 }
 0xc5e   :  { %v6598_v8 = vmax.f32 %v6470_v13, 0.0 }
 0xc5f   :  { %v6104_v50 = vpop.f32.mrb[32].mxu0 }
 0xc60   :  { %v15542_v32 = vpack.c.bf16 %v6598_v8, %v6597_v35  ;;  %v6105_v11 = vadd.f32 %v6104_v50, %v4841_v34  ;;  %v6106_v17 = vpop.f32.mrb[33].mxu0  ;;  %v11486_v8 = vld [vmem:[#allocation8 + $0x350] ss:$8 sps:$4 sm:$0xff]   ;;  %v4866_v34 = vpop.permute.xlu0 %4865 }
 0xc61   :  { %v6107_v27 = vpop.f32.mrb[34].mxu0  ;;  %v17623_v17 = vld [vmem:[#allocation140_spill] sm:$0xff] }
 0xc62   :  { %v6471_v45 = vadd.f32 %v6105_v11, %v17619_v16  ;;  %v6108_v28 = vadd.f32 %v6107_v27, %v4846_v4  ;;  %v6109_v46 = vpop.f32.mrb[35].mxu0  ;;  %v11491_v11 = vld [vmem:[#allocation8 + $0x364] ss:$8 sps:$4 sm:$0xff]  }
 0xc63   :  { %v4871_v46 = vpop.permute.xlu1 %4870 }
 0xc64   :  { %v6472_v2 = vadd.f32 %v6108_v28, %v17620_v52  ;;  %6319 = vmatmul.mubr.bf16.gmra.mrb[140].mxu0 %v11480_v55  ;;  %v6599_v29 = vmax.f32 %v6471_v45, 0.0 }
 0xc65   :  { %6326 = vmatprep.mubr.bf16.mxu0 %v11485_v21  ;;  %v17624_v21 = vld [vmem:[#allocation121_spill] sm:$0xff] }
 0xc66   :  { %v6600_v44 = vmax.f32 %v6472_v2, 0.0 }
 0xc67   :  { %v6112_v30 = vpop.f32.mrb[36].mxu0 }
 0xc68   :  { %v15546_v24 = vpack.c.bf16 %v6600_v44, %v6599_v29  ;;  %v6113_v61 = vadd.f32 %v6112_v30, %v4851_v49  ;;  %v6114_v43 = vpop.f32.mrb[37].mxu0  ;;  %v11489_v49 = vld [vmem:[#allocation8 + $0x360] ss:$8 sps:$4 sm:$0xff]   ;;  %v4876_v30 = vpop.permute.xlu0 %4875 }
 0xc69   :  { %v6115_v19 = vpop.f32.mrb[38].mxu0  ;;  %v11494_v43 = vld [vmem:[#allocation8 + $0x374] ss:$8 sps:$4 sm:$0xff]  }
 0xc6a   :  { %v6473_v53 = vadd.f32 %v6113_v61, %v17621_v38  ;;  %v6116_v41 = vadd.f32 %v6115_v19, %v4856_v51  ;;  %v6117_v31 = vpop.f32.mrb[39].mxu0  ;;  %v17626_v38 = vld [vmem:[#allocation181_spill] sm:$0xff] }
 0xc6c   :  { %v6474_v26 = vadd.f32 %v6116_v41, %v17622_v1  ;;  %6327 = vmatmul.mubr.bf16.gmra.mrb[144].mxu0 %v11483_v33  ;;  %v6601_v20 = vmax.f32 %v6473_v53, 0.0  ;;  %v17625_v33 = vld [vmem:[#allocation143_spill] sm:$0xff]  ;;  %v4881_v1 = vpop.permute.xlu1 %4880 }
 0xc6d   :  { %6334 = vmatprep.mubr.bf16.mxu0 %v11488_v59 }
 0xc6e   :  { %v6602_v23 = vmax.f32 %v6474_v26, 0.0 }
 0xc6f   :  { %v6120_v10 = vpop.f32.mrb[40].mxu0 }
 0xc70   :  { %v15550_v63 = vpack.c.bf16 %v6602_v23, %v6601_v20  ;;  %v6121_v13 = vadd.f32 %v6120_v10, %v4861_v42  ;;  %v6122_v35 = vpop.f32.mrb[41].mxu0  ;;  %v11492_v10 = vld [vmem:[#allocation8 + $0x370] ss:$8 sps:$4 sm:$0xff]  }
 0xc71   :  { %v6123_v50 = vpop.f32.mrb[42].mxu0 }
 0xc72   :  { %v6475_v55 = vadd.f32 %v6121_v13, %v17623_v17  ;;  %v6124_v4 = vadd.f32 %v6123_v50, %v4866_v34  ;;  %v6125_v27 = vpop.f32.mrb[43].mxu0  ;;  %v4886_v13 = vpop.permute.xlu0 %4885  ;;  %v17627_v34 = vld [vmem:[#allocation124_spill] sm:$0xff] }
 0xc74   :  { %v6476_v16 = vadd.f32 %v6124_v4, %v17624_v21  ;;  %6335 = vmatmul.mubr.bf16.gmra.mrb[148].mxu0 %v11486_v8  ;;  %v6603_v45 = vmax.f32 %v6475_v55, 0.0  ;;  %v11497_v8 = vld [vmem:[#allocation8 + $0x384] ss:$8 sps:$4 sm:$0xff]  }
 0xc75   :  { %6342 = vmatprep.mubr.bf16.mxu0 %v11491_v11  ;;  %v17628_v55 = vld [vmem:[#allocation147_spill] sm:$0xff] }
 0xc76   :  { %v6604_v28 = vmax.f32 %v6476_v16, 0.0  ;;  %v4891_v16 = vpop.permute.xlu1 %4890 }
 0xc77   :  { %v6128_v52 = vpop.f32.mrb[44].mxu0 }
 0xc78   :  { %v15554_v2 = vpack.c.bf16 %v6604_v28, %v6603_v45  ;;  %v6129_v29 = vadd.f32 %v6128_v52, %v4871_v46  ;;  %v6130_v44 = vpop.f32.mrb[45].mxu0 }
 0xc79   :  { %v6131_v61 = vpop.f32.mrb[46].mxu0  ;;  %v4896_v44 = vpop.permute.xlu0 %4895 }
 0xc7a   :  { %v6477_v51 = vadd.f32 %v6129_v29, %v17625_v33  ;;  %v6132_v19 = vadd.f32 %v6131_v61, %v4876_v30  ;;  %v6133_v59 = vpop.f32.mrb[47].mxu0  ;;  %v11495_v29 = vld [vmem:[#allocation8 + $0x380] ss:$8 sps:$4 sm:$0xff]   ;;  %v11500_v30 = vld [vmem:[#allocation8 + $0x394] ss:$8 sps:$4 sm:$0xff]  }
 0xc7b   :  { %v17629_v61 = vld [vmem:[#allocation126_spill] sm:$0xff] }
 0xc7c   :  { %v6478_v53 = vadd.f32 %v6132_v19, %v17626_v38  ;;  %6343 = vmatmul.mubr.bf16.gmra.mrb[152].mxu0 %v11489_v49  ;;  %v6605_v41 = vmax.f32 %v6477_v51, 0.0  ;;  %v17630_v19 = vld [vmem:[#allocation114_spill] sm:$0xff] }
 0xc7d   :  { %6350 = vmatprep.mubr.bf16.mxu0 %v11494_v43 }
 0xc7e   :  { %v6606_v31 = vmax.f32 %v6478_v53, 0.0 }
 0xc7f   :  { %v6136_v26 = vpop.f32.mrb[48].mxu0 }
 0xc80   :  { %v15558_v20 = vpack.c.bf16 %v6606_v31, %v6605_v41  ;;  %v6137_v23 = vadd.f32 %v6136_v26, %v4881_v1  ;;  %v6138_v42 = vpop.f32.mrb[49].mxu0  ;;  %v4901_v41 = vpop.permute.xlu1 %4900 }
 0xc81   :  { %v6139_v35 = vpop.f32.mrb[50].mxu0  ;;  %v11498_v42 = vld [vmem:[#allocation8 + $0x390] ss:$8 sps:$4 sm:$0xff]  }
 0xc82   :  { %v6479_v50 = vadd.f32 %v6137_v23, %v17627_v34  ;;  %v6140_v11 = vadd.f32 %v6139_v35, %v4886_v13  ;;  %v6141_v17 = vpop.f32.mrb[51].mxu0  ;;  %v11503_v35 = vld [vmem:[#allocation8 + $0x3a4] ss:$8 sps:$4 sm:$0xff]  }
 0xc83   :  { %v17632_v17 = vld [vmem:[#allocation128_spill] sm:$0xff] }
 0xc84   :  { %v6480_v4 = vadd.f32 %v6140_v11, %v17628_v55  ;;  %6351 = vmatmul.mubr.bf16.gmra.mrb[156].mxu0 %v11492_v10  ;;  %v6607_v27 = vmax.f32 %v6479_v50, 0.0  ;;  %v4906_v10 = vpop.permute.xlu0 %4905 }
 0xc85   :  { %6358 = vmatprep.mubr.bf16.mxu0 %v11497_v8  ;;  %v17631_v8 = vld [vmem:[#allocation148_spill] sm:$0xff] }
 0xc86   :  { %v6608_v21 = vmax.f32 %v6480_v4, 0.0 }
 0xc87   :  { %v6144_v45 = vpop.f32.mrb[52].mxu0 }
 0xc88   :  { %v15562_v28 = vpack.c.bf16 %v6608_v21, %v6607_v27  ;;  %v6145_v46 = vadd.f32 %v6144_v45, %v4891_v16  ;;  %v6146_v52 = vpop.f32.mrb[53].mxu0  ;;  %v4911_v21 = vpop.permute.xlu1 %4910 }
 0xc89   :  { %v6147_v49 = vpop.f32.mrb[54].mxu0 }
 0xc8a   :  { %v6481_v43 = vadd.f32 %v6145_v46, %v17629_v61  ;;  %v6148_v33 = vadd.f32 %v6147_v49, %v4896_v44  ;;  %v6149_v51 = vpop.f32.mrb[55].mxu0  ;;  %v4916_v44 = vpop.permute.xlu0 %4915  ;;  %v17633_v61 = vld [vmem:[#allocation152_spill] sm:$0xff] }
 0xc8c   :  { %v6482_v59 = vadd.f32 %v6148_v33, %v17630_v19  ;;  %6359 = vmatmul.mubr.bf16.gmra.mrb[160].mxu0 %v11495_v29  ;;  %v6609_v38 = vmax.f32 %v6481_v43, 0.0  ;;  %v11501_v29 = vld [vmem:[#allocation8 + $0x3a0] ss:$8 sps:$4 sm:$0xff]  }
 0xc8d   :  { %6366 = vmatprep.mubr.bf16.mxu0 %v11500_v30  ;;  %v11506_v30 = vld [vmem:[#allocation8 + $0x3b4] ss:$8 sps:$4 sm:$0xff]   ;;  %v17634_v19 = vld [vmem:[#allocation130_spill] sm:$0xff] }
 0xc8e   :  { %v6610_v53 = vmax.f32 %v6482_v59, 0.0 }
 0xc8f   :  { %v6152_v31 = vpop.f32.mrb[56].mxu0 }
 0xc90   :  { %v15566_v1 = vpack.c.bf16 %v6610_v53, %v6609_v38  ;;  %v6153_v26 = vadd.f32 %v6152_v31, %v4901_v41  ;;  %v6154_v23 = vpop.f32.mrb[57].mxu0  ;;  %v4921_v41 = vpop.permute.xlu1 %4920 }
 0xc91   :  { %v6155_v13 = vpop.f32.mrb[58].mxu0 }
 0xc92   :  { %v6483_v34 = vadd.f32 %v6153_v26, %v17631_v8  ;;  %v6156_v50 = vadd.f32 %v6155_v13, %v4906_v10  ;;  %v6157_v11 = vpop.f32.mrb[59].mxu0  ;;  %v11504_v10 = vld [vmem:[#allocation8 + $0x3b0] ss:$8 sps:$4 sm:$0xff]   ;;  %v4926_v13 = vpop.permute.xlu0 %4925  ;;  %v11509_v8 = vld [vmem:[#allocation8 + $0x3c4] ss:$8 sps:$4 sm:$0xff]  }
 0xc94   :  { %v6484_v55 = vadd.f32 %v6156_v50, %v17632_v17  ;;  %6367 = vmatmul.mubr.bf16.gmra.mrb[164].mxu0 %v11498_v42  ;;  %v6611_v4 = vmax.f32 %v6483_v34, 0.0  ;;  %v17635_v34 = vld [vmem:[#allocation227_spill] sm:$0xff] }
 0xc95   :  { %6374 = vmatprep.mubr.bf16.mxu0 %v11503_v35 }
 0xc96   :  { %v6612_v27 = vmax.f32 %v6484_v55, 0.0  ;;  %v17636_v55 = vld [vmem:[#allocation228_spill] sm:$0xff] }
 0xc97   :  { %v6160_v16 = vpop.f32.mrb[60].mxu0 }
 0xc98   :  { %v15570_v45 = vpack.c.bf16 %v6612_v27, %v6611_v4  ;;  %v6161_v46 = vadd.f32 %v6160_v16, %v4911_v21  ;;  %v6162_v52 = vpop.f32.mrb[61].mxu0  ;;  %v4931_v16 = vpop.permute.xlu1 %4930 }
 0xc99   :  { %v6163_v49 = vpop.f32.mrb[62].mxu0 }
 0xc9a   :  { %v6485_v43 = vadd.f32 %v6161_v46, %v17633_v61  ;;  %v6164_v33 = vadd.f32 %v6163_v49, %v4916_v44  ;;  %v6165_v51 = vpop.f32.mrb[63].mxu0  ;;  %v11507_v49 = vld [vmem:[#allocation8 + $0x3c0] ss:$8 sps:$4 sm:$0xff]  }
 0xc9c   :  { %v6486_v59 = vadd.f32 %v6164_v33, %v17634_v19  ;;  %6375 = vmatmul.mubr.bf16.gmra.mrb[168].mxu0 %v11501_v29  ;;  %v6613_v38 = vmax.f32 %v6485_v43, 0.0  ;;  %v11512_v43 = vld [vmem:[#allocation8 + $0x3d4] ss:$8 sps:$4 sm:$0xff]  }
 0xc9d   :  { %6382 = vmatprep.mubr.bf16.mxu0 %v11506_v30  ;;  %v4936_v30 = vpop.permute.xlu0 %4935  ;;  %v17637_v33 = vld [vmem:[#allocation232_spill] sm:$0xff] }
 0xc9e   :  { %v6614_v53 = vmax.f32 %v6486_v59, 0.0 }
 0xc9f   :  { %v6168_v31 = vpop.f32.mrb[64].mxu0 }
 0xca0   :  { %v15574_v26 = vpack.c.bf16 %v6614_v53, %v6613_v38  ;;  %v6169_v23 = vadd.f32 %v6168_v31, %v4921_v41  ;;  %v6170_v42 = vpop.f32.mrb[65].mxu0  ;;  %v17638_v38 = vld [vmem:[#allocation233_spill] sm:$0xff] }
 0xca1   :  { %v6171_v35 = vpop.f32.mrb[66].mxu0 }
 0xca2   :  { %v6487_v50 = vadd.f32 %v6169_v23, %v17635_v34  ;;  %v6172_v11 = vadd.f32 %v6171_v35, %v4926_v13  ;;  %v6173_v17 = vpop.f32.mrb[67].mxu0  ;;  %v4941_v23 = vpop.permute.xlu1 %4940 }
 0xca3   :  { %v4946_v34 = vpop.permute.xlu0 %4945  ;;  %v17639_v17 = vld [vmem:[#allocation238_spill] sm:$0xff] }
 0xca4   :  { %v6488_v4 = vadd.f32 %v6172_v11, %v17636_v55  ;;  %6383 = vmatmul.mubr.bf16.gmra.mrb[172].mxu0 %v11504_v10  ;;  %v6615_v27 = vmax.f32 %v6487_v50, 0.0  ;;  %v11515_v11 = vld [vmem:[#allocation8 + $0x3e4] ss:$8 sps:$4 sm:$0xff]  }
 0xca5   :  { %6390 = vmatprep.mubr.bf16.mxu0 %v11509_v8  ;;  %v11510_v8 = vld [vmem:[#allocation8 + $0x3d0] ss:$8 sps:$4 sm:$0xff]  }
 0xca6   :  { %v6616_v21 = vmax.f32 %v6488_v4, 0.0 }
 0xca7   :  { %v6176_v46 = vpop.f32.mrb[68].mxu0 }
 0xca8   :  { %v15578_v52 = vpack.c.bf16 %v6616_v21, %v6615_v27  ;;  %v6177_v29 = vadd.f32 %v6176_v46, %v4931_v16  ;;  %v6178_v44 = vpop.f32.mrb[69].mxu0  ;;  %v17640_v21 = vld [vmem:[#allocation239_spill] sm:$0xff] }
 0xca9   :  { %v6179_v61 = vpop.f32.mrb[70].mxu0  ;;  %v4951_v44 = vpop.permute.xlu1 %4950 }
 0xcaa   :  { %v6489_v51 = vadd.f32 %v6177_v29, %v17637_v33  ;;  %v6180_v19 = vadd.f32 %v6179_v61, %v4936_v30  ;;  %v6181_v59 = vpop.f32.mrb[71].mxu0  ;;  %v11513_v33 = vld [vmem:[#allocation8 + $0x3e0] ss:$8 sps:$4 sm:$0xff]  }
 0xcab   :  { %v11518_v59 = vld [vmem:[#allocation8 + $0x3f4] ss:$8 sps:$4 sm:$0xff]  }
 0xcac   :  { %v6490_v53 = vadd.f32 %v6180_v19, %v17638_v38  ;;  %6391 = vmatmul.mubr.bf16.gmra.mrb[176].mxu0 %v11507_v49  ;;  %v6617_v41 = vmax.f32 %v6489_v51, 0.0  ;;  %v4956_v51 = vpop.permute.xlu0 %4955  ;;  %v17641_v38 = vld [vmem:[#allocation171_spill] sm:$0xff] }
 0xcad   :  { %6398 = vmatprep.mubr.bf16.mxu0 %v11512_v43 }
 0xcae   :  { %v6618_v31 = vmax.f32 %v6490_v53, 0.0 }
 0xcaf   :  { %v6184_v42 = vpop.f32.mrb[72].mxu0 }
 0xcb0   :  { %v15582_v10 = vpack.c.bf16 %v6618_v31, %v6617_v41  ;;  %v6185_v13 = vadd.f32 %v6184_v42, %v4941_v23  ;;  %v6186_v35 = vpop.f32.mrb[73].mxu0  ;;  %v17642_v23 = vld [vmem:[#allocation168_spill] sm:$0xff] }
 0xcb1   :  { %v6187_v50 = vpop.f32.mrb[74].mxu0 }
 0xcb2   :  { %v6491_v55 = vadd.f32 %v6185_v13, %v17639_v17  ;;  %v6188_v4 = vadd.f32 %v6187_v50, %v4946_v34  ;;  %v6189_v27 = vpop.f32.mrb[75].mxu0 }
 0xcb4   :  { %v6492_v16 = vadd.f32 %v6188_v4, %v17640_v21  ;;  %6399 = vmatmul.mubr.bf16.gmra.mrb[180].mxu0 %v11510_v8  ;;  %v6619_v46 = vmax.f32 %v6491_v55, 0.0  ;;  %v4961_v8 = vpop.permute.xlu1 %4960  ;;  %v11516_v55 = vld [vmem:[#allocation8 + $0x3f0] ss:$8 sps:$4 sm:$0xff]   ;;  %v4966_v4 = vpop.permute.xlu0 %4965 }
 0xcb5   :  { %6406 = vmatprep.mubr.bf16.mxu0 %v11515_v11  ;;  %v17643_v21 = vld [vmem:[#allocation252_spill] sm:$0xff] }
 0xcb6   :  { %v6620_v29 = vmax.f32 %v6492_v16, 0.0 }
 0xcb7   :  { %v6192_v49 = vpop.f32.mrb[76].mxu0 }
 0xcb8   :  { %v15586_v30 = vpack.c.bf16 %v6620_v29, %v6619_v46  ;;  %v6193_v61 = vadd.f32 %v6192_v49, %v4951_v44  ;;  %v6194_v43 = vpop.f32.mrb[77].mxu0  ;;  %v17644_v44 = vld [vmem:[#allocation253_spill] sm:$0xff] }
 0xcb9   :  { %v6195_v19 = vpop.f32.mrb[78].mxu0 }
 0xcba   :  { %v6493_v53 = vadd.f32 %v6193_v61, %v17641_v38  ;;  %v6196_v41 = vadd.f32 %v6195_v19, %v4956_v51  ;;  %v6197_v31 = vpop.f32.mrb[79].mxu0 }
 0xcbb   :  { %v17645_v31 = vld [vmem:[#allocation262_spill] sm:$0xff] }
 0xcbc   :  { %v6494_v42 = vadd.f32 %v6196_v41, %v17642_v23  ;;  %6407 = vmatmul.mubr.bf16.gmra.mrb[184].mxu0 %v11513_v33  ;;  %v6621_v13 = vmax.f32 %v6493_v53, 0.0  ;;  %v4971_v33 = vpop.permute.xlu1 %4970  ;;  %v4976_v53 = vpop.permute.xlu0 %4975 }
 0xcbd   :  { %6414 = vmatprep.mubr.bf16.mxu0 %v11518_v59 }
 0xcbe   :  { %v6622_v35 = vmax.f32 %v6494_v42, 0.0 }
 0xcbf   :  { %v6200_v34 = vpop.f32.mrb[80].mxu0 }
 0xcc0   :  { %v15590_v50 = vpack.c.bf16 %v6622_v35, %v6621_v13  ;;  %v6201_v11 = vadd.f32 %v6200_v34, %v4961_v8  ;;  %v6202_v17 = vpop.f32.mrb[81].mxu0  ;;  %v17646_v35 = vld [vmem:[#allocation263_spill] sm:$0xff] }
 0xcc1   :  { %v6203_v27 = vpop.f32.mrb[82].mxu0  ;;  %v4981_v17 = vpop.permute.xlu1 %4980 }
 0xcc2   :  { %v6495_v16 = vadd.f32 %v6201_v11, %v17643_v21  ;;  %v6204_v46 = vadd.f32 %v6203_v27, %v4966_v4  ;;  %v6205_v29 = vpop.f32.mrb[83].mxu0 }
 0xcc3   :  { %v17647_v29 = vld [vmem:[#allocation270_spill] sm:$0xff] }
 0xcc4   :  { %v6496_v49 = vadd.f32 %v6204_v46, %v17644_v44  ;;  %6415 = vmatmul.mubr.bf16.gmra.mrb[188].mxu0 %v11516_v55  ;;  %v6623_v61 = vmax.f32 %v6495_v16, 0.0  ;;  %v4986_v16 = vpop.permute.xlu0 %4985 }
 0xcc6   :  { %v6624_v43 = vmax.f32 %v6496_v49, 0.0 }
 0xcc7   :  { %v6208_v51 = vpop.f32.mrb[84].mxu0 }
 0xcc8   :  { %v15594_v19 = vpack.c.bf16 %v6624_v43, %v6623_v61  ;;  %v6209_v59 = vadd.f32 %v6208_v51, %v4971_v33  ;;  %v6210_v38 = vpop.f32.mrb[85].mxu0  ;;  %v17648_v43 = vld [vmem:[#allocation271_spill] sm:$0xff] }
 0xcc9   :  { %v6211_v41 = vpop.f32.mrb[86].mxu0  ;;  %v4991_v38 = vpop.permute.xlu1 %4990 }
 0xcca   :  { %v6497_v23 = vadd.f32 %v6209_v59, %v17645_v31  ;;  %v6212_v42 = vadd.f32 %v6211_v41, %v4976_v53  ;;  %v6213_v13 = vpop.f32.mrb[87].mxu0 }
 0xccc   :  { %v6498_v8 = vadd.f32 %v6212_v42, %v17646_v35  ;;  %v6625_v34 = vmax.f32 %v6497_v23, 0.0  ;;  %v4996_v42 = vpop.permute.xlu0 %4995  ;;  %v17649_v35 = vld [vmem:[#allocation278_spill] sm:$0xff] }
 0xcce   :  { %v6626_v11 = vmax.f32 %v6498_v8, 0.0 }
 0xccf   :  { %v6216_v55 = vpop.f32.mrb[88].mxu0 }
 0xcd0   :  { %v15598_v4 = vpack.c.bf16 %v6626_v11, %v6625_v34  ;;  %v6217_v27 = vadd.f32 %v6216_v55, %v4981_v17  ;;  %v6218_v21 = vpop.f32.mrb[89].mxu0  ;;  %v17650_v17 = vld [vmem:[#allocation279_spill] sm:$0xff] }
 0xcd1   :  { %v6219_v46 = vpop.f32.mrb[90].mxu0 }
 0xcd2   :  { %v6499_v44 = vadd.f32 %v6217_v27, %v17647_v29  ;;  %v6220_v49 = vadd.f32 %v6219_v46, %v4986_v16  ;;  %v6221_v61 = vpop.f32.mrb[91].mxu0  ;;  %v5001_v16 = vpop.permute.xlu1 %5000 }
 0xcd3   :  { %v5006_v61 = vpop.permute.xlu0 %5005 }
 0xcd4   :  { %v6500_v33 = vadd.f32 %v6220_v49, %v17648_v43  ;;  %v6627_v51 = vmax.f32 %v6499_v44, 0.0 }
 0xcd6   :  { %v6628_v59 = vmax.f32 %v6500_v33, 0.0  ;;  %v17651_v33 = vld [vmem:[#allocation163_spill] sm:$0xff] }
 0xcd7   :  { %v6224_v53 = vpop.f32.mrb[92].mxu0 }
 0xcd8   :  { %v15602_v41 = vpack.c.bf16 %v6628_v59, %v6627_v51  ;;  %v6225_v31 = vadd.f32 %v6224_v53, %v4991_v38  ;;  %v6226_v23 = vpop.f32.mrb[93].mxu0  ;;  %v17652_v53 = vld [vmem:[#allocation226_spill] sm:$0xff] }
 0xcd9   :  { %v6227_v13 = vpop.f32.mrb[94].mxu0 }
 0xcda   :  { %v6501_v8 = vadd.f32 %v6225_v31, %v17649_v35  ;;  %v6228_v34 = vadd.f32 %v6227_v13, %v4996_v42  ;;  %v6229_v11 = vpop.f32.mrb[95].mxu0  ;;  %v5011_v13 = vpop.permute.xlu1 %5010 }
 0xcdc   :  { %v6502_v55 = vadd.f32 %v6228_v34, %v17650_v17  ;;  %v6629_v27 = vmax.f32 %v6501_v8, 0.0  ;;  %v5016_v17 = vpop.permute.xlu0 %5015 }
 0xcde   :  { %v6630_v21 = vmax.f32 %v6502_v55, 0.0 }
 0xcdf   :  { %v6232_v46 = vpop.f32.mrb[96].mxu0 }
 0xce0   :  { %v15606_v29 = vpack.c.bf16 %v6630_v21, %v6629_v27  ;;  %v6233_v44 = vadd.f32 %v6232_v46, %v5001_v16  ;;  %v6234_v49 = vpop.f32.mrb[97].mxu0  ;;  %v17654_v27 = vld [vmem:[#allocation166_spill] sm:$0xff] }
 0xce1   :  { %v6235_v43 = vpop.f32.mrb[98].mxu0  ;;  %v17655_v49 = vld [vmem:[#allocation231_spill] sm:$0xff] }
 0xce2   :  { %v6503_v51 = vadd.f32 %v6233_v44, %v17651_v33  ;;  %v6236_v59 = vadd.f32 %v6235_v43, %v5006_v61  ;;  %v6237_v38 = vpop.f32.mrb[99].mxu0  ;;  %v5021_v33 = vpop.permute.xlu1 %5020 }
 0xce4   :  { %v6504_v31 = vadd.f32 %v6236_v59, %v17652_v53  ;;  %v6631_v23 = vmax.f32 %v6503_v51, 0.0 }
 0xce6   :  { %v6632_v42 = vmax.f32 %v6504_v31, 0.0  ;;  %v5026_v31 = vpop.permute.xlu0 %5025 }
 0xce7   :  { %v6240_v35 = vpop.f32.mrb[100].mxu0 }
 0xce8   :  { %v15610_v8 = vpack.c.bf16 %v6632_v42, %v6631_v23  ;;  %v6241_v34 = vadd.f32 %v6240_v35, %v5011_v13  ;;  %v6242_v11 = vpop.f32.mrb[101].mxu0  ;;  %v17657_v42 = vld [vmem:[#allocation165_spill] sm:$0xff] }
 0xce9   :  { %v6243_v55 = vpop.f32.mrb[102].mxu0 }
 0xcea   :  { %17653 = vst [vmem:[#allocation220_spill] sm:$0xff] %v15610_v8  ;;  %v6505_v21 = vadd.f32 %v6241_v34, %v17654_v27  ;;  %v6244_v16 = vadd.f32 %v6243_v55, %v5016_v17  ;;  %v6245_v46 = vpop.f32.mrb[103].mxu0  ;;  %v17658_v8 = vld [vmem:[#allocation237_spill] sm:$0xff]  ;;  %v5031_v27 = vpop.permute.xlu1 %5030 }
 0xcec   :  { %v6506_v44 = vadd.f32 %v6244_v16, %v17655_v49  ;;  %v6633_v61 = vmax.f32 %v6505_v21, 0.0 }
 0xcee   :  { %v6634_v43 = vmax.f32 %v6506_v44, 0.0  ;;  %v5036_v44 = vpop.permute.xlu0 %5035 }
 0xcef   :  { %v6248_v59 = vpop.f32.mrb[104].mxu0 }
 0xcf0   :  { %v15614_v51 = vpack.c.bf16 %v6634_v43, %v6633_v61  ;;  %v6249_v38 = vadd.f32 %v6248_v59, %v5021_v33  ;;  %v6250_v53 = vpop.f32.mrb[105].mxu0  ;;  %v17660_v43 = vld [vmem:[#allocation131_spill] sm:$0xff] }
 0xcf1   :  { %v6251_v23 = vpop.f32.mrb[106].mxu0 }
 0xcf2   :  { %17656 = vst [vmem:[#allocation118_spill] sm:$0xff] %v15614_v51  ;;  %v6507_v13 = vadd.f32 %v6249_v38, %v17657_v42  ;;  %v6252_v35 = vadd.f32 %v6251_v23, %v5026_v31  ;;  %v6253_v11 = vpop.f32.mrb[107].mxu0  ;;  %v17661_v51 = vld [vmem:[#allocation154_spill] sm:$0xff]  ;;  %v5041_v42 = vpop.permute.xlu1 %5040 }
 0xcf4   :  { %v6508_v34 = vadd.f32 %v6252_v35, %v17658_v8  ;;  %v6635_v17 = vmax.f32 %v6507_v13, 0.0 }
 0xcf6   :  { %v6636_v55 = vmax.f32 %v6508_v34, 0.0  ;;  %v5046_v34 = vpop.permute.xlu0 %5045 }
 0xcf7   :  { %v6256_v16 = vpop.f32.mrb[108].mxu0 }
 0xcf8   :  { %v15618_v21 = vpack.c.bf16 %v6636_v55, %v6635_v17  ;;  %v6257_v46 = vadd.f32 %v6256_v16, %v5031_v27  ;;  %v6258_v49 = vpop.f32.mrb[109].mxu0  ;;  %v17663_v55 = vld [vmem:[#allocation169_spill] sm:$0xff] }
 0xcf9   :  { %v6259_v61 = vpop.f32.mrb[110].mxu0 }
 0xcfa   :  { %17659 = vst [vmem:[#allocation136_spill] sm:$0xff] %v15618_v21  ;;  %v6509_v33 = vadd.f32 %v6257_v46, %v17660_v43  ;;  %v6260_v59 = vadd.f32 %v6259_v61, %v5036_v44  ;;  %v6261_v53 = vpop.f32.mrb[111].mxu0  ;;  %v17664_v21 = vld [vmem:[#allocation217_spill] sm:$0xff]  ;;  %v5051_v43 = vpop.permute.xlu1 %5050 }
 0xcfc   :  { %v6510_v38 = vadd.f32 %v6260_v59, %v17661_v51  ;;  %v6637_v31 = vmax.f32 %v6509_v33, 0.0 }
 0xcfe   :  { %v6638_v23 = vmax.f32 %v6510_v38, 0.0  ;;  %v5056_v38 = vpop.permute.xlu0 %5055 }
 0xcff   :  { %v6264_v8 = vpop.f32.mrb[112].mxu0 }
 0xd00   :  { %v15622_v13 = vpack.c.bf16 %v6638_v23, %v6637_v31  ;;  %v6265_v35 = vadd.f32 %v6264_v8, %v5041_v42  ;;  %v6266_v11 = vpop.f32.mrb[113].mxu0  ;;  %v17666_v23 = vld [vmem:[#allocation260_spill] sm:$0xff] }
 0xd01   :  { %v6267_v17 = vpop.f32.mrb[114].mxu0 }
 0xd02   :  { %17662 = vst [vmem:[#allocation249_spill] sm:$0xff] %v15622_v13  ;;  %v6511_v27 = vadd.f32 %v6265_v35, %v17663_v55  ;;  %v6268_v16 = vadd.f32 %v6267_v17, %v5046_v34  ;;  %v6269_v49 = vpop.f32.mrb[115].mxu0  ;;  %v17667_v13 = vld [vmem:[#allocation261_spill] sm:$0xff]  ;;  %v5061_v55 = vpop.permute.xlu1 %5060 }
 0xd04   :  { %v6512_v46 = vadd.f32 %v6268_v16, %v17664_v21  ;;  %v6639_v44 = vmax.f32 %v6511_v27, 0.0 }
 0xd06   :  { %v6640_v61 = vmax.f32 %v6512_v46, 0.0  ;;  %v5066_v46 = vpop.permute.xlu0 %5065 }
 0xd07   :  { %v6272_v51 = vpop.f32.mrb[116].mxu0 }
 0xd08   :  { %v15626_v33 = vpack.c.bf16 %v6640_v61, %v6639_v44  ;;  %v6273_v59 = vadd.f32 %v6272_v51, %v5051_v43  ;;  %v6274_v53 = vpop.f32.mrb[117].mxu0  ;;  %v17669_v61 = vld [vmem:[#allocation268_spill] sm:$0xff] }
 0xd09   :  { %v6275_v31 = vpop.f32.mrb[118].mxu0 }
 0xd0a   :  { %17665 = vst [vmem:[#allocation242_spill] sm:$0xff] %v15626_v33  ;;  %v6513_v42 = vadd.f32 %v6273_v59, %v17666_v23  ;;  %v6276_v8 = vadd.f32 %v6275_v31, %v5056_v38  ;;  %v6277_v11 = vpop.f32.mrb[119].mxu0  ;;  %v17670_v33 = vld [vmem:[#allocation269_spill] sm:$0xff]  ;;  %v5071_v23 = vpop.permute.xlu1 %5070 }
 0xd0c   :  { %v6514_v35 = vadd.f32 %v6276_v8, %v17667_v13  ;;  %v6641_v34 = vmax.f32 %v6513_v42, 0.0 }
 0xd0e   :  { %v6642_v17 = vmax.f32 %v6514_v35, 0.0  ;;  %v5076_v35 = vpop.permute.xlu0 %5075 }
 0xd0f   :  { %v6280_v21 = vpop.f32.mrb[120].mxu0 }
 0xd10   :  { %v15630_v27 = vpack.c.bf16 %v6642_v17, %v6641_v34  ;;  %v6281_v16 = vadd.f32 %v6280_v21, %v5061_v55  ;;  %v6282_v49 = vpop.f32.mrb[121].mxu0  ;;  %v17672_v17 = vld [vmem:[#allocation276_spill] sm:$0xff] }
 0xd11   :  { %v6283_v44 = vpop.f32.mrb[122].mxu0 }
 0xd12   :  { %17668 = vst [vmem:[#allocation120_spill] sm:$0xff] %v15630_v27  ;;  %v6515_v43 = vadd.f32 %v6281_v16, %v17669_v61  ;;  %v6284_v51 = vadd.f32 %v6283_v44, %v5066_v46  ;;  %v6285_v53 = vpop.f32.mrb[123].mxu0  ;;  %v17673_v27 = vld [vmem:[#allocation277_spill] sm:$0xff]  ;;  %v5081_v61 = vpop.permute.xlu1 %5080 }
 0xd14   :  { %v6516_v59 = vadd.f32 %v6284_v51, %v17670_v33  ;;  %v6643_v38 = vmax.f32 %v6515_v43, 0.0 }
 0xd16   :  { %v6644_v31 = vmax.f32 %v6516_v59, 0.0  ;;  %v5086_v59 = vpop.permute.xlu0 %5085 }
 0xd17   :  { %v6288_v13 = vpop.f32.mrb[124].mxu0 }
 0xd18   :  { %v15634_v42 = vpack.c.bf16 %v6644_v31, %v6643_v38  ;;  %v6289_v8 = vadd.f32 %v6288_v13, %v5071_v23  ;;  %v6290_v11 = vpop.f32.mrb[125].mxu0  ;;  %v17675_v31 = vld [vmem:[#allocation174_spill] sm:$0xff] }
 0xd19   :  { %v6291_v34 = vpop.f32.mrb[126].mxu0 }
 0xd1a   :  { %17671 = vst [vmem:[#allocation112_spill] sm:$0xff] %v15634_v42  ;;  %v6517_v55 = vadd.f32 %v6289_v8, %v17672_v17  ;;  %v6292_v21 = vadd.f32 %v6291_v34, %v5076_v35  ;;  %v6293_v49 = vpop.f32.mrb[127].mxu0  ;;  %v17676_v42 = vld [vmem:[#allocation230_spill] sm:$0xff]  ;;  %v5091_v17 = vpop.permute.xlu1 %5090 }
 0xd1c   :  { %v6518_v16 = vadd.f32 %v6292_v21, %v17673_v27  ;;  %v6645_v46 = vmax.f32 %v6517_v55, 0.0 }
 0xd1e   :  { %v6646_v44 = vmax.f32 %v6518_v16, 0.0  ;;  %v5096_v16 = vpop.permute.xlu0 %5095 }
 0xd1f   :  { %v6296_v33 = vpop.f32.mrb[128].mxu0 }
 0xd20   :  { %v15638_v43 = vpack.c.bf16 %v6646_v44, %v6645_v46  ;;  %v6297_v51 = vadd.f32 %v6296_v33, %v5081_v61  ;;  %v6298_v53 = vpop.f32.mrb[129].mxu0  ;;  %v17678_v44 = vld [vmem:[#allocation173_spill] sm:$0xff] }
 0xd21   :  { %v6299_v38 = vpop.f32.mrb[130].mxu0 }
 0xd22   :  { %17674 = vst [vmem:[#allocation251_spill] sm:$0xff] %v15638_v43  ;;  %v6519_v23 = vadd.f32 %v6297_v51, %v17675_v31  ;;  %v6300_v13 = vadd.f32 %v6299_v38, %v5086_v59  ;;  %v6301_v11 = vpop.f32.mrb[131].mxu0  ;;  %v17679_v43 = vld [vmem:[#allocation236_spill] sm:$0xff]  ;;  %v5101_v31 = vpop.permute.xlu1 %5100 }
 0xd24   :  { %v6520_v8 = vadd.f32 %v6300_v13, %v17676_v42  ;;  %v6647_v35 = vmax.f32 %v6519_v23, 0.0 }
 0xd26   :  { %v6648_v34 = vmax.f32 %v6520_v8, 0.0  ;;  %v5106_v8 = vpop.permute.xlu0 %5105 }
 0xd27   :  { %v6304_v27 = vpop.f32.mrb[132].mxu0 }
 0xd28   :  { %v15642_v55 = vpack.c.bf16 %v6648_v34, %v6647_v35  ;;  %v6305_v21 = vadd.f32 %v6304_v27, %v5091_v17  ;;  %v6306_v49 = vpop.f32.mrb[133].mxu0  ;;  %v17681_v34 = vld [vmem:[#allocation176_spill] sm:$0xff] }
 0xd29   :  { %v6307_v46 = vpop.f32.mrb[134].mxu0 }
 0xd2a   :  { %17677 = vst [vmem:[#allocation244_spill] sm:$0xff] %v15642_v55  ;;  %v6521_v61 = vadd.f32 %v6305_v21, %v17678_v44  ;;  %v6308_v33 = vadd.f32 %v6307_v46, %v5096_v16  ;;  %v6309_v53 = vpop.f32.mrb[135].mxu0  ;;  %v17682_v55 = vld [vmem:[#allocation222_spill] sm:$0xff]  ;;  %v5111_v44 = vpop.permute.xlu1 %5110 }
 0xd2c   :  { %v6522_v51 = vadd.f32 %v6308_v33, %v17679_v43  ;;  %v6649_v59 = vmax.f32 %v6521_v61, 0.0 }
 0xd2e   :  { %v6650_v38 = vmax.f32 %v6522_v51, 0.0  ;;  %v5116_v51 = vpop.permute.xlu0 %5115 }
 0xd2f   :  { %v6312_v42 = vpop.f32.mrb[136].mxu0 }
 0xd30   :  { %v15646_v23 = vpack.c.bf16 %v6650_v38, %v6649_v59  ;;  %v6313_v13 = vadd.f32 %v6312_v42, %v5101_v31  ;;  %v6314_v11 = vpop.f32.mrb[137].mxu0  ;;  %v17684_v38 = vld [vmem:[#allocation135_spill] sm:$0xff] }
 0xd31   :  { %v6315_v35 = vpop.f32.mrb[138].mxu0 }
 0xd32   :  { %17680 = vst [vmem:[#allocation178_spill] sm:$0xff] %v15646_v23  ;;  %v6523_v17 = vadd.f32 %v6313_v13, %v17681_v34  ;;  %v6316_v27 = vadd.f32 %v6315_v35, %v5106_v8  ;;  %v6317_v49 = vpop.f32.mrb[139].mxu0  ;;  %v17685_v23 = vld [vmem:[#allocation117_spill] sm:$0xff]  ;;  %v5121_v34 = vpop.permute.xlu1 %5120 }
 0xd34   :  { %v6524_v21 = vadd.f32 %v6316_v27, %v17682_v55  ;;  %v6651_v16 = vmax.f32 %v6523_v17, 0.0 }
 0xd36   :  { %v6652_v46 = vmax.f32 %v6524_v21, 0.0  ;;  %v5126_v21 = vpop.permute.xlu0 %5125 }
 0xd37   :  { %v6320_v43 = vpop.f32.mrb[140].mxu0 }
 0xd38   :  { %v15650_v61 = vpack.c.bf16 %v6652_v46, %v6651_v16  ;;  %v6321_v33 = vadd.f32 %v6320_v43, %v5111_v44  ;;  %v6322_v53 = vpop.f32.mrb[141].mxu0  ;;  %v17687_v46 = vld [vmem:[#allocation258_spill] sm:$0xff] }
 0xd39   :  { %v6323_v59 = vpop.f32.mrb[142].mxu0 }
 0xd3a   :  { %17683 = vst [vmem:[#allocation110_spill] sm:$0xff] %v15650_v61  ;;  %v6525_v31 = vadd.f32 %v6321_v33, %v17684_v38  ;;  %v6324_v42 = vadd.f32 %v6323_v59, %v5116_v51  ;;  %v6325_v11 = vpop.f32.mrb[143].mxu0  ;;  %v17688_v61 = vld [vmem:[#allocation259_spill] sm:$0xff]  ;;  %v5131_v38 = vpop.permute.xlu1 %5130 }
 0xd3c   :  { %v6526_v13 = vadd.f32 %v6324_v42, %v17685_v23  ;;  %v6653_v8 = vmax.f32 %v6525_v31, 0.0 }
 0xd3e   :  { %v6654_v35 = vmax.f32 %v6526_v13, 0.0  ;;  %v5136_v13 = vpop.permute.xlu0 %5135 }
 0xd3f   :  { %v6328_v55 = vpop.f32.mrb[144].mxu0 }
 0xd40   :  { %v15654_v17 = vpack.c.bf16 %v6654_v35, %v6653_v8  ;;  %v6329_v27 = vadd.f32 %v6328_v55, %v5121_v34  ;;  %v6330_v49 = vpop.f32.mrb[145].mxu0  ;;  %v17690_v35 = vld [vmem:[#allocation266_spill] sm:$0xff] }
 0xd41   :  { %v6331_v16 = vpop.f32.mrb[146].mxu0 }
 0xd42   :  { %17686 = vst [vmem:[#allocation246_spill] sm:$0xff] %v15654_v17  ;;  %v6527_v44 = vadd.f32 %v6329_v27, %v17687_v46  ;;  %v6332_v43 = vadd.f32 %v6331_v16, %v5126_v21  ;;  %v6333_v53 = vpop.f32.mrb[147].mxu0  ;;  %v17691_v17 = vld [vmem:[#allocation267_spill] sm:$0xff]  ;;  %v5141_v46 = vpop.permute.xlu1 %5140 }
 0xd44   :  { %v6528_v33 = vadd.f32 %v6332_v43, %v17688_v61  ;;  %v6655_v51 = vmax.f32 %v6527_v44, 0.0 }
 0xd46   :  { %v6656_v59 = vmax.f32 %v6528_v33, 0.0  ;;  %v5146_v33 = vpop.permute.xlu0 %5145 }
 0xd47   :  { %v6336_v23 = vpop.f32.mrb[148].mxu0 }
 0xd48   :  { %v15658_v31 = vpack.c.bf16 %v6656_v59, %v6655_v51  ;;  %v6337_v42 = vadd.f32 %v6336_v23, %v5131_v38  ;;  %v6338_v11 = vpop.f32.mrb[149].mxu0  ;;  %v17693_v59 = vld [vmem:[#allocation274_spill] sm:$0xff] }
 0xd49   :  { %v6339_v8 = vpop.f32.mrb[150].mxu0 }
 0xd4a   :  { %17689 = vst [vmem:[#allocation175_spill] sm:$0xff] %v15658_v31  ;;  %v6529_v34 = vadd.f32 %v6337_v42, %v17690_v35  ;;  %v6340_v55 = vadd.f32 %v6339_v8, %v5136_v13  ;;  %v6341_v49 = vpop.f32.mrb[151].mxu0  ;;  %v17694_v31 = vld [vmem:[#allocation275_spill] sm:$0xff]  ;;  %v5151_v35 = vpop.permute.xlu1 %5150 }
 0xd4c   :  { %v6530_v27 = vadd.f32 %v6340_v55, %v17691_v17  ;;  %v6657_v21 = vmax.f32 %v6529_v34, 0.0 }
 0xd4e   :  { %v6658_v16 = vmax.f32 %v6530_v27, 0.0  ;;  %v5156_v27 = vpop.permute.xlu0 %5155 }
 0xd4f   :  { %v6344_v61 = vpop.f32.mrb[152].mxu0 }
 0xd50   :  { %v15662_v44 = vpack.c.bf16 %v6658_v16, %v6657_v21  ;;  %v6345_v43 = vadd.f32 %v6344_v61, %v5141_v46  ;;  %v6346_v53 = vpop.f32.mrb[153].mxu0  ;;  %v17696_v16 = vld [vmem:[#allocation282_spill] sm:$0xff] }
 0xd51   :  { %v6347_v51 = vpop.f32.mrb[154].mxu0 }
 0xd52   :  { %17692 = vst [vmem:[#allocation111_spill] sm:$0xff] %v15662_v44  ;;  %v6531_v38 = vadd.f32 %v6345_v43, %v17693_v59  ;;  %v6348_v23 = vadd.f32 %v6347_v51, %v5146_v33  ;;  %v6349_v11 = vpop.f32.mrb[155].mxu0  ;;  %v17697_v44 = vld [vmem:[#allocation283_spill] sm:$0xff]  ;;  %v5161_v59 = vpop.permute.xlu1 %5160 }
 0xd54   :  { %v6532_v42 = vadd.f32 %v6348_v23, %v17694_v31  ;;  %v6659_v13 = vmax.f32 %v6531_v38, 0.0 }
 0xd56   :  { %v6660_v8 = vmax.f32 %v6532_v42, 0.0  ;;  %v5166_v42 = vpop.permute.xlu0 %5165 }
 0xd57   :  { %v6352_v17 = vpop.f32.mrb[156].mxu0 }
 0xd58   :  { %v15666_v34 = vpack.c.bf16 %v6660_v8, %v6659_v13  ;;  %v6353_v55 = vadd.f32 %v6352_v17, %v5151_v35  ;;  %v6354_v49 = vpop.f32.mrb[157].mxu0  ;;  %v17699_v8 = vld [vmem:[#allocation179_spill] sm:$0xff] }
 0xd59   :  { %v6355_v21 = vpop.f32.mrb[158].mxu0 }
 0xd5a   :  { %17695 = vst [vmem:[#allocation160_spill] sm:$0xff] %v15666_v34  ;;  %v6533_v46 = vadd.f32 %v6353_v55, %v17696_v16  ;;  %v6356_v61 = vadd.f32 %v6355_v21, %v5156_v27  ;;  %v6357_v53 = vpop.f32.mrb[159].mxu0  ;;  %v17700_v34 = vld [vmem:[#allocation229_spill] sm:$0xff]  ;;  %v5171_v16 = vpop.permute.xlu1 %5170 }
 0xd5c   :  { %v6534_v43 = vadd.f32 %v6356_v61, %v17697_v44  ;;  %v6661_v33 = vmax.f32 %v6533_v46, 0.0 }
 0xd5e   :  { %v6662_v51 = vmax.f32 %v6534_v43, 0.0  ;;  %v5176_v43 = vpop.permute.xlu0 %5175 }
 0xd5f   :  { %v6360_v31 = vpop.f32.mrb[160].mxu0 }
 0xd60   :  { %v15670_v38 = vpack.c.bf16 %v6662_v51, %v6661_v33  ;;  %v6361_v23 = vadd.f32 %v6360_v31, %v5161_v59  ;;  %v6362_v11 = vpop.f32.mrb[161].mxu0  ;;  %v17702_v51 = vld [vmem:[#allocation234_spill] sm:$0xff] }
 0xd61   :  { %v6363_v13 = vpop.f32.mrb[162].mxu0 }
 0xd62   :  { %17698 = vst [vmem:[#allocation248_spill] sm:$0xff] %v15670_v38  ;;  %v6535_v35 = vadd.f32 %v6361_v23, %v17699_v8  ;;  %v6364_v17 = vadd.f32 %v6363_v13, %v5166_v42  ;;  %v6365_v49 = vpop.f32.mrb[163].mxu0  ;;  %v17703_v38 = vld [vmem:[#allocation235_spill] sm:$0xff]  ;;  %v5181_v8 = vpop.permute.xlu1 %5180 }
 0xd64   :  { %v6536_v55 = vadd.f32 %v6364_v17, %v17700_v34  ;;  %v6663_v27 = vmax.f32 %v6535_v35, 0.0 }
 0xd66   :  { %v6664_v21 = vmax.f32 %v6536_v55, 0.0  ;;  %v5186_v55 = vpop.permute.xlu0 %5185 }
 0xd67   :  { %v6368_v44 = vpop.f32.mrb[164].mxu0 }
 0xd68   :  { %v15674_v46 = vpack.c.bf16 %v6664_v21, %v6663_v27  ;;  %v6369_v61 = vadd.f32 %v6368_v44, %v5171_v16  ;;  %v6370_v53 = vpop.f32.mrb[165].mxu0  ;;  %v17705_v21 = vld [vmem:[#allocation240_spill] sm:$0xff] }
 0xd69   :  { %v6371_v33 = vpop.f32.mrb[166].mxu0 }
 0xd6a   :  { %17701 = vst [vmem:[#allocation161_spill] sm:$0xff] %v15674_v46  ;;  %v6537_v59 = vadd.f32 %v6369_v61, %v17702_v51  ;;  %v6372_v31 = vadd.f32 %v6371_v33, %v5176_v43  ;;  %v6373_v11 = vpop.f32.mrb[167].mxu0  ;;  %v17706_v46 = vld [vmem:[#allocation241_spill] sm:$0xff]  ;;  %v5191_v51 = vpop.permute.xlu1 %5190 }
 0xd6c   :  { %v6538_v23 = vadd.f32 %v6372_v31, %v17703_v38  ;;  %v6665_v42 = vmax.f32 %v6537_v59, 0.0 }
 0xd6e   :  { %v6666_v13 = vmax.f32 %v6538_v23, 0.0  ;;  %v5196_v23 = vpop.permute.xlu0 %5195 }
 0xd6f   :  { %v6376_v34 = vpop.f32.mrb[168].mxu0 }
 0xd70   :  { %v15678_v35 = vpack.c.bf16 %v6666_v13, %v6665_v42  ;;  %v6377_v17 = vadd.f32 %v6376_v34, %v5181_v8  ;;  %v6378_v49 = vpop.f32.mrb[169].mxu0  ;;  %v17708_v13 = vld [vmem:[#allocation224_spill] sm:$0xff] }
 0xd71   :  { %v6379_v27 = vpop.f32.mrb[170].mxu0 }
 0xd72   :  { %17704 = vst [vmem:[#allocation250_spill] sm:$0xff] %v15678_v35  ;;  %v6539_v16 = vadd.f32 %v6377_v17, %v17705_v21  ;;  %v6380_v44 = vadd.f32 %v6379_v27, %v5186_v55  ;;  %v6381_v53 = vpop.f32.mrb[171].mxu0  ;;  %v17709_v35 = vld [vmem:[#allocation132_spill] sm:$0xff]  ;;  %v5201_v21 = vpop.permute.xlu1 %5200 }
 0xd74   :  { %v6540_v61 = vadd.f32 %v6380_v44, %v17706_v46  ;;  %v6667_v43 = vmax.f32 %v6539_v16, 0.0 }
 0xd76   :  { %v6668_v33 = vmax.f32 %v6540_v61, 0.0  ;;  %v5206_v61 = vpop.permute.xlu0 %5205 }
 0xd77   :  { %v6384_v38 = vpop.f32.mrb[172].mxu0 }
 0xd78   :  { %v15682_v59 = vpack.c.bf16 %v6668_v33, %v6667_v43  ;;  %v6385_v31 = vadd.f32 %v6384_v38, %v5191_v51  ;;  %v6386_v11 = vpop.f32.mrb[173].mxu0  ;;  %v17711_v33 = vld [vmem:[#allocation255_spill] sm:$0xff] }
 0xd79   :  { %v6387_v42 = vpop.f32.mrb[174].mxu0 }
 0xd7a   :  { %17707 = vst [vmem:[#allocation170_spill] sm:$0xff] %v15682_v59  ;;  %v6541_v8 = vadd.f32 %v6385_v31, %v17708_v13  ;;  %v6388_v34 = vadd.f32 %v6387_v42, %v5196_v23  ;;  %v6389_v49 = vpop.f32.mrb[175].mxu0  ;;  %v17712_v59 = vld [vmem:[#allocation256_spill] sm:$0xff]  ;;  %v5211_v13 = vpop.permute.xlu1 %5210 }
 0xd7c   :  { %v6542_v17 = vadd.f32 %v6388_v34, %v17709_v35  ;;  %v6669_v55 = vmax.f32 %v6541_v8, 0.0 }
 0xd7e   :  { %v6670_v27 = vmax.f32 %v6542_v17, 0.0  ;;  %v5216_v17 = vpop.permute.xlu0 %5215 }
 0xd7f   :  { %v6392_v46 = vpop.f32.mrb[176].mxu0 }
 0xd80   :  { %v15686_v16 = vpack.c.bf16 %v6670_v27, %v6669_v55  ;;  %v6393_v44 = vadd.f32 %v6392_v46, %v5201_v21  ;;  %v6394_v53 = vpop.f32.mrb[177].mxu0  ;;  %v17714_v27 = vld [vmem:[#allocation264_spill] sm:$0xff] }
 0xd81   :  { %v6395_v43 = vpop.f32.mrb[178].mxu0 }
 0xd82   :  { %17710 = vst [vmem:[#allocation254_spill] sm:$0xff] %v15686_v16  ;;  %v6543_v51 = vadd.f32 %v6393_v44, %v17711_v33  ;;  %v6396_v38 = vadd.f32 %v6395_v43, %v5206_v61  ;;  %v6397_v11 = vpop.f32.mrb[179].mxu0  ;;  %v17715_v16 = vld [vmem:[#allocation265_spill] sm:$0xff]  ;;  %v5221_v33 = vpop.permute.xlu1 %5220 }
 0xd84   :  { %v6544_v31 = vadd.f32 %v6396_v38, %v17712_v59  ;;  %v6671_v23 = vmax.f32 %v6543_v51, 0.0 }
 0xd86   :  { %v6672_v42 = vmax.f32 %v6544_v31, 0.0  ;;  %v5226_v31 = vpop.permute.xlu0 %5225 }
 0xd87   :  { %v6400_v35 = vpop.f32.mrb[180].mxu0 }
 0xd88   :  { %v15690_v8 = vpack.c.bf16 %v6672_v42, %v6671_v23  ;;  %v6401_v34 = vadd.f32 %v6400_v35, %v5211_v13  ;;  %v6402_v49 = vpop.f32.mrb[181].mxu0  ;;  %v17717_v42 = vld [vmem:[#allocation272_spill] sm:$0xff] }
 0xd89   :  { %v6403_v55 = vpop.f32.mrb[182].mxu0 }
 0xd8a   :  { %17713 = vst [vmem:[#allocation116_spill] sm:$0xff] %v15690_v8  ;;  %v6545_v21 = vadd.f32 %v6401_v34, %v17714_v27  ;;  %v6404_v46 = vadd.f32 %v6403_v55, %v5216_v17  ;;  %v6405_v53 = vpop.f32.mrb[183].mxu0  ;;  %v17718_v8 = vld [vmem:[#allocation273_spill] sm:$0xff]  ;;  %v5231_v27 = vpop.permute.xlu1 %5230 }
 0xd8c   :  { %v6546_v44 = vadd.f32 %v6404_v46, %v17715_v16  ;;  %v6673_v61 = vmax.f32 %v6545_v21, 0.0 }
 0xd8e   :  { %v6674_v43 = vmax.f32 %v6546_v44, 0.0  ;;  %v5236_v44 = vpop.permute.xlu0 %5235 }
 0xd8f   :  { %v6408_v59 = vpop.f32.mrb[184].mxu0 }
 0xd90   :  { %v15694_v51 = vpack.c.bf16 %v6674_v43, %v6673_v61  ;;  %v6409_v38 = vadd.f32 %v6408_v59, %v5221_v33  ;;  %v6410_v11 = vpop.f32.mrb[185].mxu0  ;;  %v17719_v43 = vld [vmem:[#allocation280_spill] sm:$0xff] }
 0xd91   :  { %v6411_v23 = vpop.f32.mrb[186].mxu0 }
 0xd92   :  { %17716 = vst [vmem:[#allocation257_spill] sm:$0xff] %v15694_v51  ;;  %v6547_v13 = vadd.f32 %v6409_v38, %v17717_v42  ;;  %v6412_v35 = vadd.f32 %v6411_v23, %v5226_v31  ;;  %v6413_v49 = vpop.f32.mrb[187].mxu0  ;;  %v17720_v51 = vld [vmem:[#allocation281_spill] sm:$0xff] }
 0xd94   :  { %v6548_v34 = vadd.f32 %v6412_v35, %v17718_v8  ;;  %v6675_v17 = vmax.f32 %v6547_v13, 0.0 }
 0xd96   :  { %v6676_v55 = vmax.f32 %v6548_v34, 0.0 }
 0xd97   :  { %v6416_v16 = vpop.f32.mrb[188].mxu0 }
 0xd98   :  { %v15698_v21 = vpack.c.bf16 %v6676_v55, %v6675_v17  ;;  %v6417_v46 = vadd.f32 %v6416_v16, %v5231_v27  ;;  %v6418_v53 = vpop.f32.mrb[189].mxu0 }
 0xd99   :  { %v6419_v61 = vpop.f32.mrb[190].mxu0 }
 0xd9a   :  { %v6549_v33 = vadd.f32 %v6417_v46, %v17719_v43  ;;  %v6420_v59 = vadd.f32 %v6419_v61, %v5236_v44  ;;  %v6421_v11 = vpop.f32.mrb[191].mxu0 }
 0xd9c   :  { %v6550_v38 = vadd.f32 %v6420_v59, %v17720_v51  ;;  %v6677_v31 = vmax.f32 %v6549_v33, 0.0 }
 0xd9e   :  { %v6678_v23 = vmax.f32 %v6550_v38, 0.0 }
 0xda0   :  { %v15702_v42 = vpack.c.bf16 %v6678_v23, %v6677_v31 }
 0xda1   :  { %11591 = dma.done.wait [#allocation3], 49152 }
 0xda2   :  { %11592 = vsyncadd [#allocation3], 4294918144  ;;  %7611 = vmatprep.subr.bf16.mxu0 %v17475_v62  ;;  %8029 = vmatpush1.bf16.msra.mxu1 %v15514_v6  ;;  %v17721_v8 = vld [vmem:[#allocation14_spill] sm:$0xff]  ;;  %v17722_v51 = vld [vmem:[#allocation16_spill] sm:$0xff]  ;;  %vm9279_vm2 = vcmask 15360  }
 0xda3   :  { %7612 = vmatpush1.bf16.msra.mxu0 %v15422_v58  ;;  %8030 = vmatprep.subr.bf16.mxu1 %v17475_v62  ;;  %v6750_v58 = vld [vmem:[#allocation2 + $0x18] sm:$0xff]  ;;  %v17723_v6 = vld [vmem:[#allocation15_spill] sm:$0xff]  ;;  %v17753_v34 = vld [vmem:[#allocation46_spill] sm:$0xff] }
 0xda4   :  { %7613 = vmatprep.subr.bf16.mxu0 %v17475_v62  ;;  %11519 = vset.pattern.permute.xlu0 %v17475_v62  ;;  %v17724_v13 = vld [vmem:[#allocation17_spill] sm:$0xff]  ;;  %v17750_v49 = vld [vmem:[#allocation43_spill] sm:$0xff]  ;;  %v17755_v55 = vld [vmem:[#allocation48_spill] sm:$0xff] }
 0xda5   :  { %11520 = vset.pattern.permute.xlu1 %v17475_v62  ;;  %7133 = vperm.xlu0 %11519, %v17721_v8   ;;  %v6758_v35 = vld [vmem:[#allocation2 + $0x58] sm:$0xff]  ;;  %v17754_v17 = vld [vmem:[#allocation47_spill] sm:$0xff]  ;;  %v17757_v27 = vld [vmem:[#allocation50_spill] sm:$0xff] }
 0xda6   :  { %7143 = vperm.xlu1 %11520, %v17722_v51   ;;  %8031 = vmatpush1.bf16.msra.mxu1 %v15518_v36  ;;  %v17725_v36 = vld [vmem:[#allocation18_spill] sm:$0xff]  ;;  %v6765_v16 = vld [vmem:[#allocation2 + $0x90] sm:$0xff]  ;;  %v17758_v46 = vld [vmem:[#allocation51_spill] sm:$0xff] }
 0xda7   :  { %7614 = vmatpush1.bf16.msra.mxu0 %v15428_v25  ;;  %8032 = vmatprep.subr.bf16.mxu1 %v17475_v62  ;;  %v17726_v25 = vld [vmem:[#allocation19_spill] sm:$0xff]  ;;  %v17759_v53 = vld [vmem:[#allocation52_spill] sm:$0xff]  ;;  %v17761_v44 = vld [vmem:[#allocation54_spill] sm:$0xff] }
 0xda8   :  { %7615 = vmatprep.subr.bf16.mxu0 %v17475_v62  ;;  %8060 = vmatprep.mubr.bf16.mxu1 %v6750_v58  ;;  %v6773_v61 = vld [vmem:[#allocation2 + $0xd0] sm:$0xff]  ;;  %v17762_v43 = vld [vmem:[#allocation55_spill] sm:$0xff]  ;;  %v17765_v59 = vld [vmem:[#allocation58_spill] sm:$0xff] }
 0xda9   :  { %7138 = vperm.xlu0 %11519, %v17723_v6   ;;  %v17763_v33 = vld [vmem:[#allocation56_spill] sm:$0xff]  ;;  %v17766_v38 = vld [vmem:[#allocation59_spill] sm:$0xff]  ;;  %v17770_v8 = vld [vmem:[#allocation62_spill] sm:$0xff] }
 0xdaa   :  { %8033 = vmatpush1.bf16.msra.mxu1 %v15522_v39  ;;  %7148 = vperm.xlu1 %11520, %v17724_v13   ;;  %v17727_v39 = vld [vmem:[#allocation20_spill] sm:$0xff]  ;;  %v17771_v58 = vld [vmem:[#allocation118_spill] sm:$0xff]  ;;  %v17772_v6 = vld [vmem:[#allocation63_spill] sm:$0xff] }
 0xdab   :  { %7616 = vmatpush1.bf16.msra.mxu0 %v15434_v40  ;;  %8034 = vmatprep.subr.bf16.mxu1 %v17475_v62  ;;  %v17728_v40 = vld [vmem:[#allocation21_spill] sm:$0xff]  ;;  %v6781_v11 = vld [vmem:[#allocation2 + $0x110] sm:$0xff] }
 0xdac   :  { %7617 = vmatprep.subr.bf16.mxu0 %v17475_v62  ;;  %v17767_v31 = vld [vmem:[#allocation60_spill] sm:$0xff] }
 0xdad   :  { %7153 = vperm.xlu0 %11519, %v17725_v36   ;;  %v17768_v23 = vld [vmem:[#allocation220_spill] sm:$0xff] }
 0xdae   :  { %8035 = vmatpush1.bf16.msra.mxu1 %v15526_v3  ;;  %7158 = vperm.xlu1 %11520, %v17726_v25   ;;  %v17729_v3 = vld [vmem:[#allocation22_spill] sm:$0xff]  ;;  %v6789_v51 = vld [vmem:[#allocation2 + $0x150] sm:$0xff]  ;;  %v17775_v25 = vld [vmem:[#allocation65_spill] sm:$0xff] }
 0xdaf   :  { %7618 = vmatpush1.bf16.msra.mxu0 %v15440_v56  ;;  %8036 = vmatprep.subr.bf16.mxu1 %v17475_v62  ;;  %v17730_v56 = vld [vmem:[#allocation23_spill] sm:$0xff]  ;;  %v17773_v13 = vld [vmem:[#allocation64_spill] sm:$0xff] }
 0xdb0   :  { %7619 = vmatprep.subr.bf16.mxu0 %v17475_v62  ;;  %v17774_v36 = vld [vmem:[#allocation136_spill] sm:$0xff] }
 0xdb1   :  { %7163 = vperm.xlu0 %11519, %v17727_v39   ;;  %v17776_v39 = vld [vmem:[#allocation66_spill] sm:$0xff] }
 0xdb2   :  { %8037 = vmatpush1.bf16.msra.mxu1 %v15530_v18  ;;  %7168 = vperm.xlu1 %11520, %v17728_v40   ;;  %v17731_v18 = vld [vmem:[#allocation24_spill] sm:$0xff] }
 0xdb3   :  { %7620 = vmatpush1.bf16.msra.mxu0 %v15446_v9  ;;  %8038 = vmatprep.subr.bf16.mxu1 %v17475_v62  ;;  %v17732_v9 = vld [vmem:[#allocation25_spill] sm:$0xff]  ;;  %v6797_v40 = vld [vmem:[#allocation2 + $0x190] sm:$0xff] }
 0xdb4   :  { %7621 = vmatprep.subr.bf16.mxu0 %v17475_v62 }
 0xdb5   :  { %7173 = vperm.xlu0 %11519, %v17729_v3   ;;  %v17777_v3 = vld [vmem:[#allocation249_spill] sm:$0xff] }
 0xdb6   :  { %8039 = vmatpush1.bf16.msra.mxu1 %v15534_v5  ;;  %7178 = vperm.xlu1 %11520, %v17730_v56   ;;  %v17733_v5 = vld [vmem:[#allocation26_spill] sm:$0xff]  ;;  %v6806_v56 = vld [vmem:[#allocation2 + $0x1d8] sm:$0xff] }
 0xdb7   :  { %7622 = vmatpush1.bf16.msra.mxu0 %v15452_v47  ;;  %8040 = vmatprep.subr.bf16.mxu1 %v17475_v62  ;;  %v17734_v47 = vld [vmem:[#allocation27_spill] sm:$0xff] }
 0xdb8   :  { %7623 = vmatprep.subr.bf16.mxu0 %v17475_v62 }
 0xdb9   :  { %7183 = vperm.xlu0 %11519, %v17731_v18   ;;  %v17778_v18 = vld [vmem:[#allocation67_spill] sm:$0xff] }
 0xdba   :  { %8041 = vmatpush1.bf16.msra.mxu1 %v15538_v54  ;;  %7188 = vperm.xlu1 %11520, %v17732_v9   ;;  %v17735_v54 = vld [vmem:[#allocation28_spill] sm:$0xff] }
 0xdbb   :  { %7624 = vmatpush1.bf16.msra.mxu0 %v15458_v0  ;;  %8042 = vmatprep.subr.bf16.mxu1 %v17475_v62  ;;  %v17736_v0 = vld [vmem:[#allocation29_spill] sm:$0xff]  ;;  %v17779_v9 = vld [vmem:[#allocation68_spill] sm:$0xff] }
 0xdbc   :  { %7625 = vmatprep.subr.bf16.mxu0 %v17475_v62 }
 0xdbd   :  { %7193 = vperm.xlu0 %11519, %v17733_v5   ;;  %v17780_v5 = vld [vmem:[#allocation242_spill] sm:$0xff] }
 0xdbe   :  { %8043 = vmatpush1.bf16.msra.mxu1 %v15542_v32  ;;  %7198 = vperm.xlu1 %11520, %v17734_v47   ;;  %v17737_v32 = vld [vmem:[#allocation30_spill] sm:$0xff]  ;;  %v17781_v47 = vld [vmem:[#allocation69_spill] sm:$0xff] }
 0xdbf   :  { %7626 = vmatpush1.bf16.msra.mxu0 %v15464_v60  ;;  %8044 = vmatprep.subr.bf16.mxu1 %v17475_v62  ;;  %v17738_v60 = vld [vmem:[#allocation31_spill] sm:$0xff] }
 0xdc0   :  { %7627 = vmatprep.subr.bf16.mxu0 %v17475_v62 }
 0xdc1   :  { %7203 = vperm.xlu0 %11519, %v17735_v54   ;;  %v17782_v54 = vld [vmem:[#allocation70_spill] sm:$0xff] }
 0xdc2   :  { %8045 = vmatpush1.bf16.msra.mxu1 %v15546_v24  ;;  %7208 = vperm.xlu1 %11520, %v17736_v0   ;;  %v17739_v24 = vld [vmem:[#allocation32_spill] sm:$0xff] }
 0xdc3   :  { %7628 = vmatpush1.bf16.msra.mxu0 %v15470_v7  ;;  %8046 = vmatprep.subr.bf16.mxu1 %v17475_v62  ;;  %v17740_v7 = vld [vmem:[#allocation33_spill] sm:$0xff]  ;;  %v6805_v0 = vld [vmem:[#allocation2 + $0x1d0] sm:$0xff] }
 0xdc4   :  { %7629 = vmatprep.subr.bf16.mxu0 %v17475_v62 }
 0xdc5   :  { %7213 = vperm.xlu0 %11519, %v17737_v32   ;;  %v17783_v32 = vld [vmem:[#allocation120_spill] sm:$0xff] }
 0xdc6   :  { %8047 = vmatpush1.bf16.msra.mxu1 %v15550_v63  ;;  %7218 = vperm.xlu1 %11520, %v17738_v60   ;;  %v17741_v63 = vld [vmem:[#allocation34_spill] sm:$0xff]  ;;  %v6814_v60 = vld [vmem:[#allocation2 + $0x218] sm:$0xff] }
 0xdc7   :  { %7630 = vmatpush1.bf16.msra.mxu0 %v15476_v12  ;;  %8048 = vmatprep.subr.bf16.mxu1 %v17475_v62  ;;  %v17742_v12 = vld [vmem:[#allocation35_spill] sm:$0xff] }
 0xdc8   :  { %7631 = vmatprep.subr.bf16.mxu0 %v17475_v62 }
 0xdc9   :  { %7223 = vperm.xlu0 %11519, %v17739_v24   ;;  %v17784_v24 = vld [vmem:[#allocation71_spill] sm:$0xff] }
 0xdca   :  { %8049 = vmatpush1.bf16.msra.mxu1 %v15554_v2  ;;  %7228 = vperm.xlu1 %11520, %v17740_v7   ;;  %v17743_v2 = vld [vmem:[#allocation36_spill] sm:$0xff] }
 0xdcb   :  { %7632 = vmatpush1.bf16.msra.mxu0 %v15482_v48  ;;  %8050 = vmatprep.subr.bf16.mxu1 %v17475_v62  ;;  %v17744_v48 = vld [vmem:[#allocation37_spill] sm:$0xff]  ;;  %v17785_v7 = vld [vmem:[#allocation72_spill] sm:$0xff] }
 0xdcc   :  { %7633 = vmatprep.subr.bf16.mxu0 %v17475_v62 }
 0xdcd   :  { %7233 = vperm.xlu0 %11519, %v17741_v63   ;;  %v17786_v63 = vld [vmem:[#allocation112_spill] sm:$0xff] }
 0xdce   :  { %8051 = vmatpush1.bf16.msra.mxu1 %v15558_v20  ;;  %7238 = vperm.xlu1 %11520, %v17742_v12   ;;  %v17745_v20 = vld [vmem:[#allocation38_spill] sm:$0xff]  ;;  %v17787_v12 = vld [vmem:[#allocation73_spill] sm:$0xff] }
 0xdcf   :  { %7634 = vmatpush1.bf16.msra.mxu0 %v15488_v15  ;;  %8052 = vmatprep.subr.bf16.mxu1 %v17475_v62  ;;  %v17746_v15 = vld [vmem:[#allocation39_spill] sm:$0xff] }
 0xdd0   :  { %7635 = vmatprep.subr.bf16.mxu0 %v17475_v62 }
 0xdd1   :  { %7243 = vperm.xlu0 %11519, %v17743_v2   ;;  %v17788_v2 = vld [vmem:[#allocation74_spill] sm:$0xff] }
 0xdd2   :  { %8053 = vmatpush1.bf16.msra.mxu1 %v15562_v28  ;;  %7248 = vperm.xlu1 %11520, %v17744_v48   ;;  %v17747_v28 = vld [vmem:[#allocation40_spill] sm:$0xff] }
 0xdd3   :  { %7636 = vmatpush1.bf16.msra.mxu0 %v15494_v14  ;;  %8054 = vmatprep.subr.bf16.mxu1 %v17475_v62  ;;  %v17748_v14 = vld [vmem:[#allocation41_spill] sm:$0xff]  ;;  %v6813_v48 = vld [vmem:[#allocation2 + $0x210] sm:$0xff] }
 0xdd4   :  { %7637 = vmatprep.subr.bf16.mxu0 %v17475_v62 }
 0xdd5   :  { %7253 = vperm.xlu0 %11519, %v17745_v20   ;;  %v17789_v20 = vld [vmem:[#allocation251_spill] sm:$0xff] }
 0xdd6   :  { %8055 = vmatpush1.bf16.msra.mxu1 %v15566_v1  ;;  %7258 = vperm.xlu1 %11520, %v17746_v15   ;;  %v17749_v1 = vld [vmem:[#allocation42_spill] sm:$0xff]  ;;  %v6822_v15 = vld [vmem:[#allocation2 + $0x258] sm:$0xff] }
 0xdd7   :  { %7638 = vmatpush1.bf16.msra.mxu0 %v15500_v57  ;;  %8056 = vmatprep.subr.bf16.mxu1 %v17475_v62  ;;  %v6749_v57 = vld [vmem:[#allocation2 + $0x10] sm:$0xff] }
 0xdd8   :  { %7639 = vmatprep.subr.bf16.mxu0 %v17475_v62 }
 0xdd9   :  { %7263 = vperm.xlu0 %11519, %v17747_v28   ;;  %v17790_v28 = vld [vmem:[#allocation75_spill] sm:$0xff] }
 0xdda   :  { %8057 = vmatpush1.bf16.msra.mxu1 %v15570_v45  ;;  %7268 = vperm.xlu1 %11520, %v17748_v14   ;;  %v17752_v45 = vld [vmem:[#allocation45_spill] sm:$0xff]  ;;  %v17791_v14 = vld [vmem:[#allocation76_spill] sm:$0xff] }
 0xddb   :  { %7640 = vmatpush1.bf16.msra.mxu0 %v15506_v22  ;;  %8058 = vmatprep.subr.bf16.mxu1 %v17475_v62  ;;  %v17751_v22 = vld [vmem:[#allocation44_spill] sm:$0xff] }
 0xddc   :  { %7641 = vmatprep.subr.bf16.mxu0 %v17475_v62 }
 0xddd   :  { %7273 = vperm.xlu0 %11519, %v17749_v1   ;;  %v17792_v1 = vld [vmem:[#allocation77_spill] sm:$0xff] }
 0xdde   :  { %8059 = vmatpush1.bf16.msra.mxu1 %v15574_v26  ;;  %7278 = vperm.xlu1 %11520, %v17750_v49   ;;  %v6757_v26 = vld [vmem:[#allocation2 + $0x50] sm:$0xff]  ;;  %v6830_v49 = vld [vmem:[#allocation2 + $0x298] sm:$0xff] }
 0xddf   :  { %7642 = vmatpush1.bf16.msra.mxu0 %v15510_v37  ;;  %8445 = vmatprep.subr.bf16.mxu1 %v17475_v62  ;;  %v6766_v37 = vld [vmem:[#allocation2 + $0x98] sm:$0xff] }
 0xde1   :  { %8061 = vmatmul.mubr.bf16.vlgmr.msra.gmra.mrb[64].mxu1 %v6749_v57  ;;  %7283 = vperm.xlu0 %11519, %v17751_v22   ;;  %v17793_v57 = vld [vmem:[#allocation78_spill] sm:$0xff]  ;;  %v17794_v22 = vld [vmem:[#allocation79_spill] sm:$0xff] }
 0xde2   :  { %8446 = vmatpush1.bf16.msra.mxu1 %v15578_v52  ;;  %8068 = vmatprep.mubr.bf16.mxu1 %v6758_v35  ;;  %v17756_v52 = vld [vmem:[#allocation49_spill] sm:$0xff]  ;;  %v6821_v35 = vld [vmem:[#allocation2 + $0x250] sm:$0xff] }
 0xde3   :  { %8447 = vmatprep.subr.bf16.mxu1 %v17475_v62  ;;  %7288 = vperm.xlu1 %11520, %v17752_v45   ;;  %v17795_v45 = vld [vmem:[#allocation80_spill] sm:$0xff] }
 0xde5   :  { %7293 = vperm.xlu0 %11519, %v17753_v34   ;;  %v17796_v34 = vld [vmem:[#allocation81_spill] sm:$0xff] }
 0xde6   :  { %8448 = vmatpush1.bf16.msra.mxu1 %v15582_v10  ;;  %v6774_v10 = vld [vmem:[#allocation2 + $0xd8] sm:$0xff] }
 0xde7   :  { %8449 = vmatprep.subr.bf16.mxu1 %v17475_v62  ;;  %7298 = vperm.xlu1 %11520, %v17754_v17   ;;  %v6838_v17 = vld [vmem:[#allocation2 + $0x2d8] sm:$0xff] }
 0xde9   :  { %8069 = vmatmul.mubr.bf16.gmra.mrb[68].mxu1 %v6757_v26  ;;  %7303 = vperm.xlu0 %11519, %v17755_v55   ;;  %v17797_v26 = vld [vmem:[#allocation82_spill] sm:$0xff]  ;;  %v17798_v55 = vld [vmem:[#allocation83_spill] sm:$0xff] }
 0xdea   :  { %8076 = vmatprep.mubr.bf16.mxu1 %v6766_v37  ;;  %8450 = vmatpush1.bf16.msra.mxu1 %v15586_v30  ;;  %v17760_v30 = vld [vmem:[#allocation53_spill] sm:$0xff]  ;;  %v6829_v37 = vld [vmem:[#allocation2 + $0x290] sm:$0xff] }
 0xdeb   :  { %8451 = vmatprep.subr.bf16.mxu1 %v17475_v62  ;;  %7308 = vperm.xlu1 %11520, %v17756_v52   ;;  %v17799_v52 = vld [vmem:[#allocation84_spill] sm:$0xff] }
 0xded   :  { %7313 = vperm.xlu0 %11519, %v17757_v27   ;;  %v17800_v27 = vld [vmem:[#allocation85_spill] sm:$0xff] }
 0xdee   :  { %8452 = vmatpush1.bf16.msra.mxu1 %v15590_v50  ;;  %v6782_v50 = vld [vmem:[#allocation2 + $0x118] sm:$0xff] }
 0xdef   :  { %8453 = vmatprep.subr.bf16.mxu1 %v17475_v62  ;;  %7318 = vperm.xlu1 %11520, %v17758_v46   ;;  %v6846_v46 = vld [vmem:[#allocation2 + $0x318] sm:$0xff] }
 0xdf1   :  { %8077 = vmatmul.mubr.bf16.gmra.mrb[72].mxu1 %v6765_v16  ;;  %7323 = vperm.xlu0 %11519, %v17759_v53   ;;  %v17801_v16 = vld [vmem:[#allocation86_spill] sm:$0xff]  ;;  %v17802_v53 = vld [vmem:[#allocation87_spill] sm:$0xff] }
 0xdf2   :  { %8084 = vmatprep.mubr.bf16.mxu1 %v6774_v10  ;;  %8454 = vmatpush1.bf16.msra.mxu1 %v15594_v19  ;;  %v17764_v19 = vld [vmem:[#allocation57_spill] sm:$0xff]  ;;  %v6837_v10 = vld [vmem:[#allocation2 + $0x2d0] sm:$0xff] }
 0xdf3   :  { %8455 = vmatprep.subr.bf16.mxu1 %v17475_v62  ;;  %7328 = vperm.xlu1 %11520, %v17760_v30   ;;  %v17803_v30 = vld [vmem:[#allocation88_spill] sm:$0xff] }
 0xdf5   :  { %7333 = vperm.xlu0 %11519, %v17761_v44   ;;  %v17804_v44 = vld [vmem:[#allocation89_spill] sm:$0xff] }
 0xdf6   :  { %8456 = vmatpush1.bf16.msra.mxu1 %v15598_v4  ;;  %v6790_v4 = vld [vmem:[#allocation2 + $0x158] sm:$0xff] }
 0xdf7   :  { %8457 = vmatprep.subr.bf16.mxu1 %v17475_v62  ;;  %7338 = vperm.xlu1 %11520, %v17762_v43   ;;  %v6854_v43 = vld [vmem:[#allocation2 + $0x358] sm:$0xff] }
 0xdf9   :  { %8085 = vmatmul.mubr.bf16.gmra.mrb[76].mxu1 %v6773_v61  ;;  %7343 = vperm.xlu0 %11519, %v17763_v33   ;;  %v17805_v61 = vld [vmem:[#allocation90_spill] sm:$0xff]  ;;  %v17806_v33 = vld [vmem:[#allocation91_spill] sm:$0xff] }
 0xdfa   :  { %8092 = vmatprep.mubr.bf16.mxu1 %v6782_v50  ;;  %8458 = vmatpush1.bf16.msra.mxu1 %v15602_v41  ;;  %v17769_v41 = vld [vmem:[#allocation61_spill] sm:$0xff]  ;;  %v6845_v50 = vld [vmem:[#allocation2 + $0x310] sm:$0xff] }
 0xdfb   :  { %8459 = vmatprep.subr.bf16.mxu1 %v17475_v62  ;;  %7348 = vperm.xlu1 %11520, %v17764_v19   ;;  %v17807_v19 = vld [vmem:[#allocation92_spill] sm:$0xff] }
 0xdfd   :  { %7353 = vperm.xlu0 %11519, %v17765_v59   ;;  %v17808_v59 = vld [vmem:[#allocation93_spill] sm:$0xff] }
 0xdfe   :  { %8460 = vmatpush1.bf16.msra.mxu1 %v15606_v29  ;;  %v6798_v29 = vld [vmem:[#allocation2 + $0x198] sm:$0xff] }
 0xdff   :  { %8461 = vmatprep.subr.bf16.mxu1 %v17475_v62  ;;  %7358 = vperm.xlu1 %11520, %v17766_v38   ;;  %v6862_v38 = vld [vmem:[#allocation2 + $0x398] sm:$0xff] }
 0xe01   :  { %8093 = vmatmul.mubr.bf16.gmra.mrb[80].mxu1 %v6781_v11  ;;  %7363 = vperm.xlu0 %11519, %v17767_v31   ;;  %v17809_v11 = vld [vmem:[#allocation94_spill] sm:$0xff]  ;;  %v17810_v31 = vld [vmem:[#allocation95_spill] sm:$0xff] }
 0xe02   :  { %8100 = vmatprep.mubr.bf16.mxu1 %v6790_v4  ;;  %8462 = vmatpush1.bf16.msra.mxu1 %v17768_v23  ;;  %v6853_v4 = vld [vmem:[#allocation2 + $0x350] sm:$0xff] }
 0xe03   :  { %8463 = vmatprep.subr.bf16.mxu1 %v17475_v62  ;;  %7368 = vperm.xlu1 %11520, %v17769_v41   ;;  %v17811_v23 = vld [vmem:[#allocation96_spill] sm:$0xff]  ;;  %v17812_v41 = vld [vmem:[#allocation97_spill] sm:$0xff] }
 0xe05   :  { %7373 = vperm.xlu0 %11519, %v17770_v8   ;;  %v17813_v8 = vld [vmem:[#allocation98_spill] sm:$0xff] }
 0xe06   :  { %8464 = vmatpush1.bf16.msra.mxu1 %v17771_v58  ;;  %v6870_v58 = vld [vmem:[#allocation2 + $0x3d8] sm:$0xff] }
 0xe07   :  { %8465 = vmatprep.subr.bf16.mxu1 %v17475_v62  ;;  %7378 = vperm.xlu1 %11520, %v17772_v6   ;;  %v17815_v6 = vld [vmem:[#allocation100_spill] sm:$0xff] }
 0xe09   :  { %8101 = vmatmul.mubr.bf16.gmra.mrb[84].mxu1 %v6789_v51  ;;  %7383 = vperm.xlu0 %11519, %v17773_v13   ;;  %v6861_v51 = vld [vmem:[#allocation2 + $0x390] sm:$0xff]  ;;  %v17816_v13 = vld [vmem:[#allocation101_spill] sm:$0xff] }
 0xe0a   :  { %8108 = vmatprep.mubr.bf16.mxu1 %v6798_v29  ;;  %8466 = vmatpush1.bf16.msra.mxu1 %v17774_v36  ;;  %v17814_v29 = vld [vmem:[#allocation99_spill] sm:$0xff]  ;;  %v17817_v36 = vld [vmem:[#allocation102_spill] sm:$0xff] }
 0xe0b   :  { %8467 = vmatprep.subr.bf16.mxu1 %v17475_v62  ;;  %7388 = vperm.xlu1 %11520, %v17775_v25   ;;  %v6869_v25 = vld [vmem:[#allocation2 + $0x3d0] sm:$0xff] }
 0xe0d   :  { %7393 = vperm.xlu0 %11519, %v17776_v39   ;;  %v6878_v39 = vld [vmem:[#allocation2 + $0x418] sm:$0xff] }
 0xe0e   :  { %8468 = vmatpush1.bf16.msra.mxu1 %v17777_v3  ;;  %v17819_v3 = vld [vmem:[#allocation104_spill] sm:$0xff] }
 0xe0f   :  { %8469 = vmatprep.subr.bf16.mxu1 %v17475_v62  ;;  %7398 = vperm.xlu1 %11520, %v17778_v18   ;;  %v17821_v18 = vld [vmem:[#allocation106_spill] sm:$0xff] }
 0xe11   :  { %8109 = vmatmul.mubr.bf16.gmra.mrb[88].mxu1 %v6797_v40  ;;  %7403 = vperm.xlu0 %11519, %v17779_v9   ;;  %v17818_v40 = vld [vmem:[#allocation103_spill] sm:$0xff]  ;;  %v6877_v9 = vld [vmem:[#allocation2 + $0x410] sm:$0xff] }
 0xe12   :  { %8116 = vmatprep.mubr.bf16.mxu1 %v6806_v56  ;;  %8470 = vmatpush1.bf16.msra.mxu1 %v17780_v5  ;;  %v17820_v56 = vld [vmem:[#allocation105_spill] sm:$0xff] }
 0xe13   :  { %8471 = vmatprep.subr.bf16.mxu1 %v17475_v62  ;;  %7408 = vperm.xlu1 %11520, %v17781_v47   ;;  %v6886_v5 = vld [vmem:[#allocation2 + $0x458] sm:$0xff]  ;;  %v17822_v47 = vld [vmem:[#allocation107_spill] sm:$0xff] }
 0xe15   :  { %7413 = vperm.xlu0 %11519, %v17782_v54   ;;  %v17823_v54 = vld [vmem:[#allocation108_spill] sm:$0xff] }
 0xe16   :  { %8472 = vmatpush1.bf16.msra.mxu1 %v17783_v32  ;;  %v6885_v32 = vld [vmem:[#allocation2 + $0x450] sm:$0xff] }
 0xe17   :  { %8473 = vmatprep.subr.bf16.mxu1 %v17475_v62  ;;  %7418 = vperm.xlu1 %11520, %v17784_v24   ;;  %v6893_v24 = vld [vmem:[#allocation2 + $0x490] sm:$0xff] }
 0xe19   :  { %8117 = vmatmul.mubr.bf16.gmra.mrb[92].mxu1 %v6805_v0  ;;  %7423 = vperm.xlu0 %11519, %v17785_v7   ;;  %v17824_v0 = vld [vmem:[#allocation109_spill] sm:$0xff] }
 0xe1a   :  { %8124 = vmatprep.mubr.bf16.mxu1 %v6814_v60  ;;  %8474 = vmatpush1.bf16.msra.mxu1 %v17786_v63  ;;  %v6894_v60 = vld [vmem:[#allocation2 + $0x498] sm:$0xff]  ;;  %v6901_v63 = vld [vmem:[#allocation2 + $0x4d0] sm:$0xff] }
 0xe1b   :  { %8475 = vmatprep.subr.bf16.mxu1 %v17475_v62  ;;  %7428 = vperm.xlu1 %11520, %v17787_v12   ;;  %v6902_v7 = vld [vmem:[#allocation2 + $0x4d8] sm:$0xff] }
 0xe1c   :  { %v6910_v12 = vld [vmem:[#allocation2 + $0x518] sm:$0xff] }
 0xe1d   :  { %7433 = vperm.xlu0 %11519, %v17788_v2   ;;  %v6909_v2 = vld [vmem:[#allocation2 + $0x510] sm:$0xff] }
 0xe1e   :  { %8476 = vmatpush1.bf16.msra.mxu1 %v17789_v20  ;;  %v6917_v20 = vld [vmem:[#allocation2 + $0x550] sm:$0xff] }
 0xe1f   :  { %8862 = vmatprep.subr.bf16.mxu1 %v17475_v62  ;;  %7438 = vperm.xlu1 %11520, %v17790_v28   ;;  %v6925_v28 = vld [vmem:[#allocation2 + $0x590] sm:$0xff] }
 0xe21   :  { %8125 = vmatmul.mubr.bf16.gmra.mrb[96].mxu1 %v6813_v48  ;;  %7443 = vperm.xlu0 %11519, %v17791_v14   ;;  %v6918_v48 = vld [vmem:[#allocation2 + $0x558] sm:$0xff] }
 0xe22   :  { %8132 = vmatprep.mubr.bf16.mxu1 %v6822_v15  ;;  %v6926_v15 = vld [vmem:[#allocation2 + $0x598] sm:$0xff] }
 0xe23   :  { %7448 = vperm.xlu1 %11520, %v17792_v1   ;;  %v6934_v14 = vld [vmem:[#allocation2 + $0x5d8] sm:$0xff]  ;;  %v6933_v1 = vld [vmem:[#allocation2 + $0x5d0] sm:$0xff] }
 0xe25   :  { %7453 = vperm.xlu0 %11519, %v17793_v57   ;;  %v6942_v57 = vld [vmem:[#allocation2 + $0x618] sm:$0xff] }
 0xe27   :  { %7458 = vperm.xlu1 %11520, %v17794_v22   ;;  %v6949_v22 = vld [vmem:[#allocation2 + $0x650] sm:$0xff] }
 0xe29   :  { %8133 = vmatmul.mubr.bf16.gmra.mrb[100].mxu1 %v6821_v35  ;;  %7463 = vperm.xlu0 %11519, %v17795_v45   ;;  %v6941_v35 = vld [vmem:[#allocation2 + $0x610] sm:$0xff]  ;;  %v6958_v45 = vld [vmem:[#allocation2 + $0x698] sm:$0xff] }
 0xe2a   :  { %8140 = vmatprep.mubr.bf16.mxu1 %v6830_v49  ;;  %v6950_v49 = vld [vmem:[#allocation2 + $0x658] sm:$0xff] }
 0xe2b   :  { %7468 = vperm.xlu1 %11520, %v17796_v34   ;;  %v6957_v34 = vld [vmem:[#allocation2 + $0x690] sm:$0xff] }
 0xe2d   :  { %7473 = vperm.xlu0 %11519, %v17797_v26   ;;  %v6966_v26 = vld [vmem:[#allocation2 + $0x6d8] sm:$0xff] }
 0xe2f   :  { %7478 = vperm.xlu1 %11520, %v17798_v55   ;;  %v6973_v55 = vld [vmem:[#allocation2 + $0x710] sm:$0xff] }
 0xe31   :  { %8141 = vmatmul.mubr.bf16.gmra.mrb[104].mxu1 %v6829_v37  ;;  %7483 = vperm.xlu0 %11519, %v17799_v52   ;;  %v6965_v37 = vld [vmem:[#allocation2 + $0x6d0] sm:$0xff]  ;;  %v6982_v52 = vld [vmem:[#allocation2 + $0x758] sm:$0xff] }
 0xe32   :  { %8148 = vmatprep.mubr.bf16.mxu1 %v6838_v17  ;;  %v6974_v17 = vld [vmem:[#allocation2 + $0x718] sm:$0xff] }
 0xe33   :  { %7488 = vperm.xlu1 %11520, %v17800_v27   ;;  %v6981_v27 = vld [vmem:[#allocation2 + $0x750] sm:$0xff] }
 0xe35   :  { %7493 = vperm.xlu0 %11519, %v17801_v16   ;;  %v6990_v16 = vld [vmem:[#allocation2 + $0x798] sm:$0xff] }
 0xe37   :  { %7498 = vperm.xlu1 %11520, %v17802_v53   ;;  %v6997_v53 = vld [vmem:[#allocation2 + $0x7d0] sm:$0xff] }
 0xe39   :  { %8149 = vmatmul.mubr.bf16.gmra.mrb[108].mxu1 %v6837_v10  ;;  %7503 = vperm.xlu0 %11519, %v17803_v30   ;;  %v6989_v10 = vld [vmem:[#allocation2 + $0x790] sm:$0xff]  ;;  %v7006_v30 = vld [vmem:[#allocation2 + $0x818] sm:$0xff] }
 0xe3a   :  { %8156 = vmatprep.mubr.bf16.mxu1 %v6846_v46  ;;  %v6998_v46 = vld [vmem:[#allocation2 + $0x7d8] sm:$0xff] }
 0xe3b   :  { %7508 = vperm.xlu1 %11520, %v17804_v44   ;;  %v7005_v44 = vld [vmem:[#allocation2 + $0x810] sm:$0xff] }
 0xe3d   :  { %7513 = vperm.xlu0 %11519, %v17805_v61   ;;  %v7014_v61 = vld [vmem:[#allocation2 + $0x858] sm:$0xff] }
 0xe3f   :  { %7518 = vperm.xlu1 %11520, %v17806_v33   ;;  %v7021_v33 = vld [vmem:[#allocation2 + $0x890] sm:$0xff] }
 0xe41   :  { %8157 = vmatmul.mubr.bf16.gmra.mrb[112].mxu1 %v6845_v50  ;;  %7523 = vperm.xlu0 %11519, %v17807_v19   ;;  %v7013_v50 = vld [vmem:[#allocation2 + $0x850] sm:$0xff]  ;;  %v7030_v19 = vld [vmem:[#allocation2 + $0x8d8] sm:$0xff] }
 0xe42   :  { %8164 = vmatprep.mubr.bf16.mxu1 %v6854_v43  ;;  %v7022_v43 = vld [vmem:[#allocation2 + $0x898] sm:$0xff] }
 0xe43   :  { %7528 = vperm.xlu1 %11520, %v17808_v59   ;;  %v7029_v59 = vld [vmem:[#allocation2 + $0x8d0] sm:$0xff] }
 0xe45   :  { %7533 = vperm.xlu0 %11519, %v17809_v11   ;;  %v7038_v11 = vld [vmem:[#allocation2 + $0x918] sm:$0xff] }
 0xe47   :  { %7538 = vperm.xlu1 %11520, %v17810_v31   ;;  %v7045_v31 = vld [vmem:[#allocation2 + $0x950] sm:$0xff] }
 0xe49   :  { %8165 = vmatmul.mubr.bf16.gmra.mrb[116].mxu1 %v6853_v4  ;;  %7543 = vperm.xlu0 %11519, %v17811_v23   ;;  %v7037_v4 = vld [vmem:[#allocation2 + $0x910] sm:$0xff]  ;;  %v7054_v23 = vld [vmem:[#allocation2 + $0x998] sm:$0xff] }
 0xe4a   :  { %8172 = vmatprep.mubr.bf16.mxu1 %v6862_v38  ;;  %v7046_v38 = vld [vmem:[#allocation2 + $0x958] sm:$0xff] }
 0xe4b   :  { %7548 = vperm.xlu1 %11520, %v17812_v41   ;;  %v7053_v41 = vld [vmem:[#allocation2 + $0x990] sm:$0xff] }
 0xe4d   :  { %7553 = vperm.xlu0 %11519, %v17813_v8   ;;  %v7062_v8 = vld [vmem:[#allocation2 + $0x9d8] sm:$0xff] }
 0xe4f   :  { %7558 = vperm.xlu1 %11520, %v17814_v29   ;;  %v7069_v29 = vld [vmem:[#allocation2 + $0xa10] sm:$0xff] }
 0xe51   :  { %8173 = vmatmul.mubr.bf16.gmra.mrb[120].mxu1 %v6861_v51  ;;  %7563 = vperm.xlu0 %11519, %v17815_v6   ;;  %v7061_v51 = vld [vmem:[#allocation2 + $0x9d0] sm:$0xff]  ;;  %v7078_v6 = vld [vmem:[#allocation2 + $0xa58] sm:$0xff] }
 0xe52   :  { %8180 = vmatprep.mubr.bf16.mxu1 %v6870_v58  ;;  %v7070_v58 = vld [vmem:[#allocation2 + $0xa18] sm:$0xff] }
 0xe53   :  { %7568 = vperm.xlu1 %11520, %v17816_v13   ;;  %v7077_v13 = vld [vmem:[#allocation2 + $0xa50] sm:$0xff] }
 0xe55   :  { %7573 = vperm.xlu0 %11519, %v17817_v36   ;;  %v7086_v36 = vld [vmem:[#allocation2 + $0xa98] sm:$0xff] }
 0xe57   :  { %7578 = vperm.xlu1 %11520, %v17818_v40   ;;  %v7093_v40 = vld [vmem:[#allocation2 + $0xad0] sm:$0xff] }
 0xe59   :  { %8181 = vmatmul.mubr.bf16.gmra.mrb[124].mxu1 %v6869_v25  ;;  %7583 = vperm.xlu0 %11519, %v17819_v3   ;;  %v7085_v25 = vld [vmem:[#allocation2 + $0xa90] sm:$0xff]  ;;  %v7102_v3 = vld [vmem:[#allocation2 + $0xb18] sm:$0xff] }
 0xe5a   :  { %8188 = vmatprep.mubr.bf16.mxu1 %v6878_v39  ;;  %v7094_v39 = vld [vmem:[#allocation2 + $0xad8] sm:$0xff] }
 0xe5b   :  { %7588 = vperm.xlu1 %11520, %v17820_v56   ;;  %v7101_v56 = vld [vmem:[#allocation2 + $0xb10] sm:$0xff] }
 0xe5d   :  { %7593 = vperm.xlu0 %11519, %v17821_v18   ;;  %v7110_v18 = vld [vmem:[#allocation2 + $0xb58] sm:$0xff] }
 0xe5f   :  { %7598 = vperm.xlu1 %11520, %v17822_v47   ;;  %v7117_v47 = vld [vmem:[#allocation2 + $0xb90] sm:$0xff] }
 0xe61   :  { %8189 = vmatmul.mubr.bf16.gmra.mrb[128].mxu1 %v6877_v9  ;;  %7603 = vperm.xlu0 %11519, %v17823_v54   ;;  %v7109_v9 = vld [vmem:[#allocation2 + $0xb50] sm:$0xff]  ;;  %v7126_v54 = vld [vmem:[#allocation2 + $0xbd8] sm:$0xff] }
 0xe62   :  { %8196 = vmatprep.mubr.bf16.mxu1 %v6886_v5  ;;  %v7118_v5 = vld [vmem:[#allocation2 + $0xb98] sm:$0xff] }
 0xe63   :  { %7608 = vperm.xlu1 %11520, %v17824_v0   ;;  %v7125_v0 = vld [vmem:[#allocation2 + $0xbd0] sm:$0xff] }
 0xe69   :  { %8197 = vmatmul.mubr.bf16.gmra.mrb[132].mxu1 %v6885_v32  ;;  %v6752_v32 = vld [vmem:[#allocation2 + $0x28] sm:$0xff] }
 0xe6a   :  { %8204 = vmatprep.mubr.bf16.mxu1 %v6894_v60  ;;  %v6751_v60 = vld [vmem:[#allocation2 + $0x20] sm:$0xff] }
 0xe71   :  { %8205 = vmatmul.mubr.bf16.gmra.mrb[136].mxu1 %v6893_v24  ;;  %v6760_v24 = vld [vmem:[#allocation2 + $0x68] sm:$0xff] }
 0xe72   :  { %8212 = vmatprep.mubr.bf16.mxu1 %v6902_v7  ;;  %v17825_v7 = vld [vmem:[#allocation244_spill] sm:$0xff] }
 0xe79   :  { %8213 = vmatmul.mubr.bf16.gmra.mrb[140].mxu1 %v6901_v63  ;;  %v6759_v63 = vld [vmem:[#allocation2 + $0x60] sm:$0xff] }
 0xe7a   :  { %8220 = vmatprep.mubr.bf16.mxu1 %v6910_v12  ;;  %v17826_v12 = vld [vmem:[#allocation178_spill] sm:$0xff] }
 0xe81   :  { %8221 = vmatmul.mubr.bf16.gmra.mrb[144].mxu1 %v6909_v2  ;;  %v6768_v2 = vld [vmem:[#allocation2 + $0xa8] sm:$0xff] }
 0xe82   :  { %8228 = vmatprep.mubr.bf16.mxu1 %v6918_v48  ;;  %v17827_v48 = vld [vmem:[#allocation110_spill] sm:$0xff] }
 0xe89   :  { %8229 = vmatmul.mubr.bf16.gmra.mrb[148].mxu1 %v6917_v20  ;;  %v6767_v20 = vld [vmem:[#allocation2 + $0xa0] sm:$0xff] }
 0xe8a   :  { %8236 = vmatprep.mubr.bf16.mxu1 %v6926_v15  ;;  %v17828_v15 = vld [vmem:[#allocation246_spill] sm:$0xff] }
 0xe91   :  { %8237 = vmatmul.mubr.bf16.gmra.mrb[152].mxu1 %v6925_v28  ;;  %v6776_v28 = vld [vmem:[#allocation2 + $0xe8] sm:$0xff] }
 0xe92   :  { %8244 = vmatprep.mubr.bf16.mxu1 %v6934_v14  ;;  %v17829_v14 = vld [vmem:[#allocation175_spill] sm:$0xff] }
 0xe99   :  { %8245 = vmatmul.mubr.bf16.gmra.mrb[156].mxu1 %v6933_v1  ;;  %v6775_v1 = vld [vmem:[#allocation2 + $0xe0] sm:$0xff] }
 0xe9a   :  { %8252 = vmatprep.mubr.bf16.mxu1 %v6942_v57  ;;  %v17830_v57 = vld [vmem:[#allocation111_spill] sm:$0xff] }
 0xea1   :  { %8253 = vmatmul.mubr.bf16.gmra.mrb[160].mxu1 %v6941_v35  ;;  %v6784_v35 = vld [vmem:[#allocation2 + $0x128] sm:$0xff] }
 0xea2   :  { %8260 = vmatprep.mubr.bf16.mxu1 %v6950_v49  ;;  %v17831_v49 = vld [vmem:[#allocation160_spill] sm:$0xff] }
 0xea9   :  { %8261 = vmatmul.mubr.bf16.gmra.mrb[164].mxu1 %v6949_v22  ;;  %v6783_v22 = vld [vmem:[#allocation2 + $0x120] sm:$0xff] }
 0xeaa   :  { %8268 = vmatprep.mubr.bf16.mxu1 %v6958_v45  ;;  %v17832_v45 = vld [vmem:[#allocation248_spill] sm:$0xff] }
 0xeb1   :  { %8269 = vmatmul.mubr.bf16.gmra.mrb[168].mxu1 %v6957_v34  ;;  %v6792_v34 = vld [vmem:[#allocation2 + $0x168] sm:$0xff] }
 0xeb2   :  { %8276 = vmatprep.mubr.bf16.mxu1 %v6966_v26  ;;  %v17833_v26 = vld [vmem:[#allocation161_spill] sm:$0xff] }
 0xeb9   :  { %8277 = vmatmul.mubr.bf16.gmra.mrb[172].mxu1 %v6965_v37  ;;  %v6791_v37 = vld [vmem:[#allocation2 + $0x160] sm:$0xff] }
 0xeba   :  { %8284 = vmatprep.mubr.bf16.mxu1 %v6974_v17  ;;  %v17834_v17 = vld [vmem:[#allocation250_spill] sm:$0xff] }
 0xec1   :  { %8285 = vmatmul.mubr.bf16.gmra.mrb[176].mxu1 %v6973_v55  ;;  %v6800_v55 = vld [vmem:[#allocation2 + $0x1a8] sm:$0xff] }
 0xec2   :  { %8292 = vmatprep.mubr.bf16.mxu1 %v6982_v52  ;;  %v17835_v52 = vld [vmem:[#allocation170_spill] sm:$0xff] }
 0xec9   :  { %8293 = vmatmul.mubr.bf16.gmra.mrb[180].mxu1 %v6981_v27  ;;  %v6799_v27 = vld [vmem:[#allocation2 + $0x1a0] sm:$0xff] }
 0xeca   :  { %8300 = vmatprep.mubr.bf16.mxu1 %v6990_v16  ;;  %v17836_v16 = vld [vmem:[#allocation254_spill] sm:$0xff] }
 0xed1   :  { %8301 = vmatmul.mubr.bf16.gmra.mrb[184].mxu1 %v6989_v10  ;;  %v6808_v10 = vld [vmem:[#allocation2 + $0x1e8] sm:$0xff] }
 0xed2   :  { %8308 = vmatprep.mubr.bf16.mxu1 %v6998_v46  ;;  %v17837_v46 = vld [vmem:[#allocation116_spill] sm:$0xff] }
 0xed9   :  { %8309 = vmatmul.mubr.bf16.gmra.mrb[188].mxu1 %v6997_v53  ;;  %v6807_v53 = vld [vmem:[#allocation2 + $0x1e0] sm:$0xff] }
 0xeda   :  { %8316 = vmatprep.mubr.bf16.mxu1 %v7006_v30  ;;  %v17838_v30 = vld [vmem:[#allocation257_spill] sm:$0xff] }
 0xee1   :  { %8317 = vmatmul.mubr.bf16.gmra.mrb[192].mxu1 %v7005_v44  ;;  %v6816_v44 = vld [vmem:[#allocation2 + $0x228] sm:$0xff] }
 0xee2   :  { %8324 = vmatprep.mubr.bf16.mxu1 %v7014_v61  ;;  %v6815_v61 = vld [vmem:[#allocation2 + $0x220] sm:$0xff] }
 0xee9   :  { %8325 = vmatmul.mubr.bf16.gmra.mrb[196].mxu1 %v7013_v50  ;;  %v6824_v50 = vld [vmem:[#allocation2 + $0x268] sm:$0xff] }
 0xeea   :  { %8332 = vmatprep.mubr.bf16.mxu1 %v7022_v43  ;;  %v6748_v43 = vld [vmem:[#allocation2 + $0x8] sm:$0xff] }
 0xeeb   :  { %7643 = vmatprep.mubr.bf16.mxu0 %v6748_v43  ;;  %v6876_v43 = vld [vmem:[#allocation2 + $0x408] sm:$0xff] }
 0xef1   :  { %8333 = vmatmul.mubr.bf16.gmra.mrb[200].mxu1 %v7021_v33  ;;  %v6747_v33 = vld [vmem:[#allocation2] sm:$0xff] }
 0xef2   :  { %8340 = vmatprep.mubr.bf16.mxu1 %v7030_v19  ;;  %7644 = vmatmul.mubr.bf16.vlgmr.msra.gmra.mrb[192].mxu0 %v6747_v33  ;;  %v6823_v19 = vld [vmem:[#allocation2 + $0x260] sm:$0xff] }
 0xef3   :  { %v6875_v33 = vld [vmem:[#allocation2 + $0x400] sm:$0xff] }
 0xef9   :  { %8341 = vmatmul.mubr.bf16.gmra.mrb[204].mxu1 %v7029_v59  ;;  %v6832_v59 = vld [vmem:[#allocation2 + $0x2a8] sm:$0xff] }
 0xefa   :  { %8348 = vmatprep.mubr.bf16.mxu1 %v7038_v11  ;;  %v6756_v11 = vld [vmem:[#allocation2 + $0x48] sm:$0xff] }
 0xefb   :  { %7651 = vmatprep.mubr.bf16.mxu0 %v6756_v11  ;;  %v6884_v11 = vld [vmem:[#allocation2 + $0x448] sm:$0xff] }
 0xf01   :  { %8349 = vmatmul.mubr.bf16.gmra.mrb[208].mxu1 %v7037_v4  ;;  %v6755_v4 = vld [vmem:[#allocation2 + $0x40] sm:$0xff] }
 0xf02   :  { %8356 = vmatprep.mubr.bf16.mxu1 %v7046_v38  ;;  %7652 = vmatmul.mubr.bf16.gmra.mrb[196].mxu0 %v6755_v4  ;;  %v6764_v38 = vld [vmem:[#allocation2 + $0x88] sm:$0xff]  ;;  %v6883_v4 = vld [vmem:[#allocation2 + $0x440] sm:$0xff] }
 0xf03   :  { %7659 = vmatprep.mubr.bf16.mxu0 %v6764_v38  ;;  %v6892_v38 = vld [vmem:[#allocation2 + $0x488] sm:$0xff] }
 0xf09   :  { %8357 = vmatmul.mubr.bf16.gmra.mrb[212].mxu1 %v7045_v31  ;;  %v6839_v31 = vld [vmem:[#allocation2 + $0x2e0] sm:$0xff] }
 0xf0a   :  { %8364 = vmatprep.mubr.bf16.mxu1 %v7054_v23  ;;  %v6848_v23 = vld [vmem:[#allocation2 + $0x328] sm:$0xff] }
 0xf11   :  { %8365 = vmatmul.mubr.bf16.gmra.mrb[216].mxu1 %v7053_v41  ;;  %v6772_v41 = vld [vmem:[#allocation2 + $0xc8] sm:$0xff] }
 0xf12   :  { %8372 = vmatprep.mubr.bf16.mxu1 %v7062_v8  ;;  %v6771_v8 = vld [vmem:[#allocation2 + $0xc0] sm:$0xff] }
 0xf19   :  { %8373 = vmatmul.mubr.bf16.gmra.mrb[220].mxu1 %v7061_v51  ;;  %v6847_v51 = vld [vmem:[#allocation2 + $0x320] sm:$0xff] }
 0xf1a   :  { %8380 = vmatprep.mubr.bf16.mxu1 %v7070_v58  ;;  %v6856_v58 = vld [vmem:[#allocation2 + $0x368] sm:$0xff] }
 0xf21   :  { %8381 = vmatmul.mubr.bf16.gmra.mrb[224].mxu1 %v7069_v29  ;;  %v6780_v29 = vld [vmem:[#allocation2 + $0x108] sm:$0xff] }
 0xf22   :  { %8388 = vmatprep.mubr.bf16.mxu1 %v7078_v6  ;;  %v6779_v6 = vld [vmem:[#allocation2 + $0x100] sm:$0xff] }
 0xf29   :  { %8389 = vmatmul.mubr.bf16.gmra.mrb[228].mxu1 %v7077_v13  ;;  %v6855_v13 = vld [vmem:[#allocation2 + $0x360] sm:$0xff] }
 0xf2a   :  { %8396 = vmatprep.mubr.bf16.mxu1 %v7086_v36  ;;  %v6864_v36 = vld [vmem:[#allocation2 + $0x3a8] sm:$0xff] }
 0xf31   :  { %8397 = vmatmul.mubr.bf16.gmra.mrb[232].mxu1 %v7085_v25  ;;  %v6788_v25 = vld [vmem:[#allocation2 + $0x148] sm:$0xff] }
 0xf32   :  { %8404 = vmatprep.mubr.bf16.mxu1 %v7094_v39  ;;  %v6787_v39 = vld [vmem:[#allocation2 + $0x140] sm:$0xff] }
 0xf39   :  { %8405 = vmatmul.mubr.bf16.gmra.mrb[236].mxu1 %v7093_v40  ;;  %v6863_v40 = vld [vmem:[#allocation2 + $0x3a0] sm:$0xff] }
 0xf3a   :  { %8412 = vmatprep.mubr.bf16.mxu1 %v7102_v3  ;;  %v6872_v3 = vld [vmem:[#allocation2 + $0x3e8] sm:$0xff] }
 0xf41   :  { %8413 = vmatmul.mubr.bf16.gmra.mrb[240].mxu1 %v7101_v56  ;;  %v6796_v56 = vld [vmem:[#allocation2 + $0x188] sm:$0xff] }
 0xf42   :  { %8420 = vmatprep.mubr.bf16.mxu1 %v7110_v18  ;;  %v6795_v18 = vld [vmem:[#allocation2 + $0x180] sm:$0xff] }
 0xf49   :  { %8421 = vmatmul.mubr.bf16.gmra.mrb[244].mxu1 %v7109_v9  ;;  %v6871_v9 = vld [vmem:[#allocation2 + $0x3e0] sm:$0xff] }
 0xf4a   :  { %8428 = vmatprep.mubr.bf16.mxu1 %v7118_v5  ;;  %v6880_v5 = vld [vmem:[#allocation2 + $0x428] sm:$0xff] }
 0xf51   :  { %8429 = vmatmul.mubr.bf16.gmra.mrb[248].mxu1 %v7117_v47  ;;  %v6804_v47 = vld [vmem:[#allocation2 + $0x1c8] sm:$0xff] }
 0xf52   :  { %8436 = vmatprep.mubr.bf16.mxu1 %v7126_v54  ;;  %v6803_v54 = vld [vmem:[#allocation2 + $0x1c0] sm:$0xff] }
 0xf59   :  { %8437 = vmatmul.mubr.bf16.gmra.mrb[252].mxu1 %v7125_v0  ;;  %v6879_v0 = vld [vmem:[#allocation2 + $0x420] sm:$0xff] }
 0xf5a   :  { %8477 = vmatprep.mubr.bf16.mxu1 %v6752_v32  ;;  %v6888_v32 = vld [vmem:[#allocation2 + $0x468] sm:$0xff] }
 0xf61   :  { %8478 = vmatmul.mubr.bf16.vlgmr.msra.gmra.mrb[64].mxu1 %v6751_v60  ;;  %v6812_v60 = vld [vmem:[#allocation2 + $0x208] sm:$0xff] }
 0xf62   :  { %8863 = vmatpush1.bf16.msra.mxu1 %v17825_v7  ;;  %8485 = vmatprep.mubr.bf16.mxu1 %v6760_v24  ;;  %v6811_v24 = vld [vmem:[#allocation2 + $0x200] sm:$0xff] }
 0xf63   :  { %8864 = vmatprep.subr.bf16.mxu1 %v17475_v62  ;;  %v6887_v7 = vld [vmem:[#allocation2 + $0x460] sm:$0xff] }
 0xf66   :  { %8865 = vmatpush1.bf16.msra.mxu1 %v17826_v12  ;;  %v6820_v12 = vld [vmem:[#allocation2 + $0x248] sm:$0xff] }
 0xf67   :  { %8866 = vmatprep.subr.bf16.mxu1 %v17475_v62 }
 0xf69   :  { %8486 = vmatmul.mubr.bf16.gmra.mrb[68].mxu1 %v6759_v63  ;;  %v6896_v63 = vld [vmem:[#allocation2 + $0x4a8] sm:$0xff] }
 0xf6a   :  { %8493 = vmatprep.mubr.bf16.mxu1 %v6768_v2  ;;  %8867 = vmatpush1.bf16.msra.mxu1 %v17827_v48  ;;  %v6819_v2 = vld [vmem:[#allocation2 + $0x240] sm:$0xff] }
 0xf6b   :  { %8868 = vmatprep.subr.bf16.mxu1 %v17475_v62  ;;  %v6895_v48 = vld [vmem:[#allocation2 + $0x4a0] sm:$0xff] }
 0xf6e   :  { %8869 = vmatpush1.bf16.msra.mxu1 %v17828_v15  ;;  %v6828_v15 = vld [vmem:[#allocation2 + $0x288] sm:$0xff] }
 0xf6f   :  { %8870 = vmatprep.subr.bf16.mxu1 %v17475_v62 }
 0xf71   :  { %8494 = vmatmul.mubr.bf16.gmra.mrb[72].mxu1 %v6767_v20  ;;  %v6904_v20 = vld [vmem:[#allocation2 + $0x4e8] sm:$0xff] }
 0xf72   :  { %8501 = vmatprep.mubr.bf16.mxu1 %v6776_v28  ;;  %8871 = vmatpush1.bf16.msra.mxu1 %v17829_v14  ;;  %v6827_v28 = vld [vmem:[#allocation2 + $0x280] sm:$0xff] }
 0xf73   :  { %8872 = vmatprep.subr.bf16.mxu1 %v17475_v62  ;;  %v6903_v14 = vld [vmem:[#allocation2 + $0x4e0] sm:$0xff] }
 0xf76   :  { %8873 = vmatpush1.bf16.msra.mxu1 %v17830_v57  ;;  %v6836_v57 = vld [vmem:[#allocation2 + $0x2c8] sm:$0xff] }
 0xf77   :  { %8874 = vmatprep.subr.bf16.mxu1 %v17475_v62 }
 0xf79   :  { %8502 = vmatmul.mubr.bf16.gmra.mrb[76].mxu1 %v6775_v1  ;;  %v6912_v1 = vld [vmem:[#allocation2 + $0x528] sm:$0xff] }
 0xf7a   :  { %8509 = vmatprep.mubr.bf16.mxu1 %v6784_v35  ;;  %8875 = vmatpush1.bf16.msra.mxu1 %v17831_v49  ;;  %v6835_v35 = vld [vmem:[#allocation2 + $0x2c0] sm:$0xff] }
 0xf7b   :  { %8876 = vmatprep.subr.bf16.mxu1 %v17475_v62  ;;  %v6911_v49 = vld [vmem:[#allocation2 + $0x520] sm:$0xff] }
 0xf7e   :  { %8877 = vmatpush1.bf16.msra.mxu1 %v17832_v45  ;;  %v6844_v45 = vld [vmem:[#allocation2 + $0x308] sm:$0xff] }
 0xf7f   :  { %8878 = vmatprep.subr.bf16.mxu1 %v17475_v62 }
 0xf81   :  { %8510 = vmatmul.mubr.bf16.gmra.mrb[80].mxu1 %v6783_v22  ;;  %v6920_v22 = vld [vmem:[#allocation2 + $0x568] sm:$0xff] }
 0xf82   :  { %8517 = vmatprep.mubr.bf16.mxu1 %v6792_v34  ;;  %8879 = vmatpush1.bf16.msra.mxu1 %v17833_v26  ;;  %v6843_v34 = vld [vmem:[#allocation2 + $0x300] sm:$0xff] }
 0xf83   :  { %8880 = vmatprep.subr.bf16.mxu1 %v17475_v62  ;;  %v6919_v26 = vld [vmem:[#allocation2 + $0x560] sm:$0xff] }
 0xf86   :  { %8881 = vmatpush1.bf16.msra.mxu1 %v17834_v17  ;;  %v6852_v17 = vld [vmem:[#allocation2 + $0x348] sm:$0xff] }
 0xf87   :  { %8882 = vmatprep.subr.bf16.mxu1 %v17475_v62 }
 0xf89   :  { %8518 = vmatmul.mubr.bf16.gmra.mrb[84].mxu1 %v6791_v37  ;;  %v6928_v37 = vld [vmem:[#allocation2 + $0x5a8] sm:$0xff] }
 0xf8a   :  { %8525 = vmatprep.mubr.bf16.mxu1 %v6800_v55  ;;  %8883 = vmatpush1.bf16.msra.mxu1 %v17835_v52  ;;  %v6851_v55 = vld [vmem:[#allocation2 + $0x340] sm:$0xff] }
 0xf8b   :  { %8884 = vmatprep.subr.bf16.mxu1 %v17475_v62  ;;  %v6927_v52 = vld [vmem:[#allocation2 + $0x5a0] sm:$0xff] }
 0xf8e   :  { %8885 = vmatpush1.bf16.msra.mxu1 %v17836_v16  ;;  %v6860_v16 = vld [vmem:[#allocation2 + $0x388] sm:$0xff] }
 0xf8f   :  { %8886 = vmatprep.subr.bf16.mxu1 %v17475_v62 }
 0xf91   :  { %8526 = vmatmul.mubr.bf16.gmra.mrb[88].mxu1 %v6799_v27  ;;  %v6936_v27 = vld [vmem:[#allocation2 + $0x5e8] sm:$0xff] }
 0xf92   :  { %8533 = vmatprep.mubr.bf16.mxu1 %v6808_v10  ;;  %8887 = vmatpush1.bf16.msra.mxu1 %v17837_v46  ;;  %v6859_v10 = vld [vmem:[#allocation2 + $0x380] sm:$0xff] }
 0xf93   :  { %8888 = vmatprep.subr.bf16.mxu1 %v17475_v62  ;;  %v6935_v46 = vld [vmem:[#allocation2 + $0x5e0] sm:$0xff] }
 0xf96   :  { %8889 = vmatpush1.bf16.msra.mxu1 %v17838_v30  ;;  %v6868_v30 = vld [vmem:[#allocation2 + $0x3c8] sm:$0xff] }
 0xf97   :  { %8890 = vmatprep.subr.bf16.mxu1 %v17475_v62 }
 0xf99   :  { %8534 = vmatmul.mubr.bf16.gmra.mrb[92].mxu1 %v6807_v53  ;;  %v6944_v53 = vld [vmem:[#allocation2 + $0x628] sm:$0xff] }
 0xf9a   :  { %8541 = vmatprep.mubr.bf16.mxu1 %v6816_v44  ;;  %8891 = vmatpush1.bf16.msra.mxu1 %v15698_v21  ;;  %v6831_v21 = vld [vmem:[#allocation2 + $0x2a0] sm:$0xff] }
 0xf9b   :  { %8892 = vmatprep.subr.bf16.mxu1 %v17475_v62  ;;  %v6840_v62 = vld [vmem:[#allocation2 + $0x2e8] sm:$0xff]  ;;  %v6867_v44 = vld [vmem:[#allocation2 + $0x3c0] sm:$0xff] }
 0xf9e   :  { %8893 = vmatpush1.bf16.msra.mxu1 %v15702_v42  ;;  %v6763_v42 = vld [vmem:[#allocation2 + $0x80] sm:$0xff] }
 0xf9f   :  { %7660 = vmatmul.mubr.bf16.gmra.mrb[200].mxu0 %v6763_v42  ;;  %v6891_v42 = vld [vmem:[#allocation2 + $0x480] sm:$0xff] }
 0xfa0   :  { %7667 = vmatprep.mubr.bf16.mxu0 %v6772_v41  ;;  %v6900_v41 = vld [vmem:[#allocation2 + $0x4c8] sm:$0xff] }
 0xfa1   :  { %8542 = vmatmul.mubr.bf16.gmra.mrb[96].mxu1 %v6815_v61  ;;  %v6943_v61 = vld [vmem:[#allocation2 + $0x620] sm:$0xff] }
 0xfa2   :  { %8549 = vmatprep.mubr.bf16.mxu1 %v6824_v50  ;;  %v6952_v50 = vld [vmem:[#allocation2 + $0x668] sm:$0xff] }
 0xfa7   :  { %7668 = vmatmul.mubr.bf16.gmra.mrb[204].mxu0 %v6771_v8  ;;  %v6899_v8 = vld [vmem:[#allocation2 + $0x4c0] sm:$0xff] }
 0xfa8   :  { %7675 = vmatprep.mubr.bf16.mxu0 %v6780_v29  ;;  %v6908_v29 = vld [vmem:[#allocation2 + $0x508] sm:$0xff] }
 0xfa9   :  { %8550 = vmatmul.mubr.bf16.gmra.mrb[100].mxu1 %v6823_v19  ;;  %v6951_v19 = vld [vmem:[#allocation2 + $0x660] sm:$0xff] }
 0xfaa   :  { %8557 = vmatprep.mubr.bf16.mxu1 %v6832_v59  ;;  %v6960_v59 = vld [vmem:[#allocation2 + $0x6a8] sm:$0xff] }
 0xfaf   :  { %7676 = vmatmul.mubr.bf16.gmra.mrb[208].mxu0 %v6779_v6  ;;  %v6907_v6 = vld [vmem:[#allocation2 + $0x500] sm:$0xff] }
 0xfb0   :  { %7683 = vmatprep.mubr.bf16.mxu0 %v6788_v25  ;;  %v6916_v25 = vld [vmem:[#allocation2 + $0x548] sm:$0xff] }
 0xfb1   :  { %8558 = vmatmul.mubr.bf16.gmra.mrb[104].mxu1 %v6831_v21  ;;  %v6959_v21 = vld [vmem:[#allocation2 + $0x6a0] sm:$0xff] }
 0xfb2   :  { %8565 = vmatprep.mubr.bf16.mxu1 %v6840_v62  ;;  %v6968_v62 = vld [vmem:[#allocation2 + $0x6e8] sm:$0xff] }
 0xfb7   :  { %7684 = vmatmul.mubr.bf16.gmra.mrb[212].mxu0 %v6787_v39  ;;  %v6915_v39 = vld [vmem:[#allocation2 + $0x540] sm:$0xff] }
 0xfb8   :  { %7691 = vmatprep.mubr.bf16.mxu0 %v6796_v56  ;;  %v6924_v56 = vld [vmem:[#allocation2 + $0x588] sm:$0xff] }
 0xfb9   :  { %8566 = vmatmul.mubr.bf16.gmra.mrb[108].mxu1 %v6839_v31  ;;  %v6967_v31 = vld [vmem:[#allocation2 + $0x6e0] sm:$0xff] }
 0xfba   :  { %8573 = vmatprep.mubr.bf16.mxu1 %v6848_v23  ;;  %v6976_v23 = vld [vmem:[#allocation2 + $0x728] sm:$0xff] }
 0xfbf   :  { %7692 = vmatmul.mubr.bf16.gmra.mrb[216].mxu0 %v6795_v18  ;;  %v6923_v18 = vld [vmem:[#allocation2 + $0x580] sm:$0xff] }
 0xfc0   :  { %7699 = vmatprep.mubr.bf16.mxu0 %v6804_v47  ;;  %v6932_v47 = vld [vmem:[#allocation2 + $0x5c8] sm:$0xff] }
 0xfc1   :  { %8574 = vmatmul.mubr.bf16.gmra.mrb[112].mxu1 %v6847_v51  ;;  %v6975_v51 = vld [vmem:[#allocation2 + $0x720] sm:$0xff] }
 0xfc2   :  { %8581 = vmatprep.mubr.bf16.mxu1 %v6856_v58  ;;  %v6984_v58 = vld [vmem:[#allocation2 + $0x768] sm:$0xff] }
 0xfc7   :  { %7700 = vmatmul.mubr.bf16.gmra.mrb[220].mxu0 %v6803_v54  ;;  %v6931_v54 = vld [vmem:[#allocation2 + $0x5c0] sm:$0xff] }
 0xfc8   :  { %7707 = vmatprep.mubr.bf16.mxu0 %v6812_v60  ;;  %v6940_v60 = vld [vmem:[#allocation2 + $0x608] sm:$0xff] }
 0xfc9   :  { %8582 = vmatmul.mubr.bf16.gmra.mrb[116].mxu1 %v6855_v13  ;;  %v6983_v13 = vld [vmem:[#allocation2 + $0x760] sm:$0xff] }
 0xfca   :  { %8589 = vmatprep.mubr.bf16.mxu1 %v6864_v36  ;;  %v6992_v36 = vld [vmem:[#allocation2 + $0x7a8] sm:$0xff] }
 0xfcf   :  { %7708 = vmatmul.mubr.bf16.gmra.mrb[224].mxu0 %v6811_v24  ;;  %v6939_v24 = vld [vmem:[#allocation2 + $0x600] sm:$0xff] }
 0xfd0   :  { %7715 = vmatprep.mubr.bf16.mxu0 %v6820_v12  ;;  %v6948_v12 = vld [vmem:[#allocation2 + $0x648] sm:$0xff] }
 0xfd1   :  { %8590 = vmatmul.mubr.bf16.gmra.mrb[120].mxu1 %v6863_v40  ;;  %v6991_v40 = vld [vmem:[#allocation2 + $0x7a0] sm:$0xff] }
 0xfd2   :  { %8597 = vmatprep.mubr.bf16.mxu1 %v6872_v3  ;;  %v7000_v3 = vld [vmem:[#allocation2 + $0x7e8] sm:$0xff] }
 0xfd7   :  { %7716 = vmatmul.mubr.bf16.gmra.mrb[228].mxu0 %v6819_v2  ;;  %v6947_v2 = vld [vmem:[#allocation2 + $0x640] sm:$0xff] }
 0xfd8   :  { %7723 = vmatprep.mubr.bf16.mxu0 %v6828_v15  ;;  %v6956_v15 = vld [vmem:[#allocation2 + $0x688] sm:$0xff] }
 0xfd9   :  { %8598 = vmatmul.mubr.bf16.gmra.mrb[124].mxu1 %v6871_v9  ;;  %v6999_v9 = vld [vmem:[#allocation2 + $0x7e0] sm:$0xff] }
 0xfda   :  { %8605 = vmatprep.mubr.bf16.mxu1 %v6880_v5  ;;  %v7008_v5 = vld [vmem:[#allocation2 + $0x828] sm:$0xff] }
 0xfdf   :  { %7724 = vmatmul.mubr.bf16.gmra.mrb[232].mxu0 %v6827_v28  ;;  %v6955_v28 = vld [vmem:[#allocation2 + $0x680] sm:$0xff] }
 0xfe0   :  { %7731 = vmatprep.mubr.bf16.mxu0 %v6836_v57  ;;  %v6964_v57 = vld [vmem:[#allocation2 + $0x6c8] sm:$0xff] }
 0xfe1   :  { %8606 = vmatmul.mubr.bf16.gmra.mrb[128].mxu1 %v6879_v0  ;;  %v7007_v0 = vld [vmem:[#allocation2 + $0x820] sm:$0xff] }
 0xfe2   :  { %8613 = vmatprep.mubr.bf16.mxu1 %v6888_v32  ;;  %v7016_v32 = vld [vmem:[#allocation2 + $0x868] sm:$0xff] }
 0xfe7   :  { %7732 = vmatmul.mubr.bf16.gmra.mrb[236].mxu0 %v6835_v35  ;;  %v6963_v35 = vld [vmem:[#allocation2 + $0x6c0] sm:$0xff] }
 0xfe8   :  { %7739 = vmatprep.mubr.bf16.mxu0 %v6844_v45  ;;  %v6972_v45 = vld [vmem:[#allocation2 + $0x708] sm:$0xff] }
 0xfe9   :  { %8614 = vmatmul.mubr.bf16.gmra.mrb[132].mxu1 %v6887_v7  ;;  %v7015_v7 = vld [vmem:[#allocation2 + $0x860] sm:$0xff] }
 0xfea   :  { %8621 = vmatprep.mubr.bf16.mxu1 %v6896_v63  ;;  %v7024_v63 = vld [vmem:[#allocation2 + $0x8a8] sm:$0xff] }
 0xfef   :  { %7740 = vmatmul.mubr.bf16.gmra.mrb[240].mxu0 %v6843_v34  ;;  %v6971_v34 = vld [vmem:[#allocation2 + $0x700] sm:$0xff] }
 0xff0   :  { %7747 = vmatprep.mubr.bf16.mxu0 %v6852_v17  ;;  %v6980_v17 = vld [vmem:[#allocation2 + $0x748] sm:$0xff] }
 0xff1   :  { %8622 = vmatmul.mubr.bf16.gmra.mrb[136].mxu1 %v6895_v48  ;;  %v7023_v48 = vld [vmem:[#allocation2 + $0x8a0] sm:$0xff] }
 0xff2   :  { %8629 = vmatprep.mubr.bf16.mxu1 %v6904_v20  ;;  %v7032_v20 = vld [vmem:[#allocation2 + $0x8e8] sm:$0xff] }
 0xff7   :  { %7748 = vmatmul.mubr.bf16.gmra.mrb[244].mxu0 %v6851_v55  ;;  %v6979_v55 = vld [vmem:[#allocation2 + $0x740] sm:$0xff] }
 0xff8   :  { %7755 = vmatprep.mubr.bf16.mxu0 %v6860_v16  ;;  %v6988_v16 = vld [vmem:[#allocation2 + $0x788] sm:$0xff] }
 0xff9   :  { %8630 = vmatmul.mubr.bf16.gmra.mrb[140].mxu1 %v6903_v14  ;;  %v7031_v14 = vld [vmem:[#allocation2 + $0x8e0] sm:$0xff] }
 0xffa   :  { %8637 = vmatprep.mubr.bf16.mxu1 %v6912_v1  ;;  %v7040_v1 = vld [vmem:[#allocation2 + $0x928] sm:$0xff] }
 0xfff   :  { %7756 = vmatmul.mubr.bf16.gmra.mrb[248].mxu0 %v6859_v10  ;;  %v6987_v10 = vld [vmem:[#allocation2 + $0x780] sm:$0xff] }
0x1000   :  { %7763 = vmatprep.mubr.bf16.mxu0 %v6868_v30  ;;  %v6996_v30 = vld [vmem:[#allocation2 + $0x7c8] sm:$0xff] }
0x1001   :  { %8638 = vmatmul.mubr.bf16.gmra.mrb[144].mxu1 %v6911_v49  ;;  %v7039_v49 = vld [vmem:[#allocation2 + $0x920] sm:$0xff] }
0x1002   :  { %8645 = vmatprep.mubr.bf16.mxu1 %v6920_v22  ;;  %v7048_v22 = vld [vmem:[#allocation2 + $0x968] sm:$0xff] }
0x1007   :  { %7764 = vmatmul.mubr.bf16.gmra.mrb[252].mxu0 %v6867_v44  ;;  %v6995_v44 = vld [vmem:[#allocation2 + $0x7c0] sm:$0xff] }
0x1008   :  { %7771 = vmatprep.mubr.bf16.mxu0 %v6876_v43  ;;  %v7004_v43 = vld [vmem:[#allocation2 + $0x808] sm:$0xff] }
0x1009   :  { %8646 = vmatmul.mubr.bf16.gmra.mrb[148].mxu1 %v6919_v26  ;;  %v7047_v26 = vld [vmem:[#allocation2 + $0x960] sm:$0xff] }
0x100a   :  { %8653 = vmatprep.mubr.bf16.mxu1 %v6928_v37  ;;  %v7056_v37 = vld [vmem:[#allocation2 + $0x9a8] sm:$0xff] }
0x100f   :  { %7772 = vmatmul.mubr.bf16.gmra.mrb[0].mxu0 %v6875_v33  ;;  %v7003_v33 = vld [vmem:[#allocation2 + $0x800] sm:$0xff] }
0x1010   :  { %7779 = vmatprep.mubr.bf16.mxu0 %v6884_v11  ;;  %v7012_v11 = vld [vmem:[#allocation2 + $0x848] sm:$0xff] }
0x1011   :  { %8654 = vmatmul.mubr.bf16.gmra.mrb[152].mxu1 %v6927_v52  ;;  %v7055_v52 = vld [vmem:[#allocation2 + $0x9a0] sm:$0xff] }
0x1012   :  { %8661 = vmatprep.mubr.bf16.mxu1 %v6936_v27  ;;  %v7064_v27 = vld [vmem:[#allocation2 + $0x9e8] sm:$0xff] }
0x1017   :  { %7780 = vmatmul.mubr.bf16.gmra.mrb[4].mxu0 %v6883_v4  ;;  %v7011_v4 = vld [vmem:[#allocation2 + $0x840] sm:$0xff] }
0x1018   :  { %7787 = vmatprep.mubr.bf16.mxu0 %v6892_v38  ;;  %v7020_v38 = vld [vmem:[#allocation2 + $0x888] sm:$0xff] }
0x1019   :  { %8662 = vmatmul.mubr.bf16.gmra.mrb[156].mxu1 %v6935_v46  ;;  %v7063_v46 = vld [vmem:[#allocation2 + $0x9e0] sm:$0xff] }
0x101a   :  { %8669 = vmatprep.mubr.bf16.mxu1 %v6944_v53  ;;  %v7072_v53 = vld [vmem:[#allocation2 + $0xa28] sm:$0xff] }
0x101f   :  { %7788 = vmatmul.mubr.bf16.gmra.mrb[8].mxu0 %v6891_v42  ;;  %v7019_v42 = vld [vmem:[#allocation2 + $0x880] sm:$0xff] }
0x1020   :  { %7795 = vmatprep.mubr.bf16.mxu0 %v6900_v41  ;;  %v7028_v41 = vld [vmem:[#allocation2 + $0x8c8] sm:$0xff] }
0x1021   :  { %8670 = vmatmul.mubr.bf16.gmra.mrb[160].mxu1 %v6943_v61  ;;  %v7071_v61 = vld [vmem:[#allocation2 + $0xa20] sm:$0xff] }
0x1022   :  { %8677 = vmatprep.mubr.bf16.mxu1 %v6952_v50  ;;  %v7080_v50 = vld [vmem:[#allocation2 + $0xa68] sm:$0xff] }
0x1027   :  { %7796 = vmatmul.mubr.bf16.gmra.mrb[12].mxu0 %v6899_v8  ;;  %v7027_v8 = vld [vmem:[#allocation2 + $0x8c0] sm:$0xff] }
0x1028   :  { %7803 = vmatprep.mubr.bf16.mxu0 %v6908_v29  ;;  %v7036_v29 = vld [vmem:[#allocation2 + $0x908] sm:$0xff] }
0x1029   :  { %8678 = vmatmul.mubr.bf16.gmra.mrb[164].mxu1 %v6951_v19  ;;  %v7079_v19 = vld [vmem:[#allocation2 + $0xa60] sm:$0xff] }
0x102a   :  { %8685 = vmatprep.mubr.bf16.mxu1 %v6960_v59  ;;  %v7088_v59 = vld [vmem:[#allocation2 + $0xaa8] sm:$0xff] }
0x102f   :  { %7804 = vmatmul.mubr.bf16.gmra.mrb[16].mxu0 %v6907_v6  ;;  %v7035_v6 = vld [vmem:[#allocation2 + $0x900] sm:$0xff] }
0x1030   :  { %7811 = vmatprep.mubr.bf16.mxu0 %v6916_v25  ;;  %v7044_v25 = vld [vmem:[#allocation2 + $0x948] sm:$0xff] }
0x1031   :  { %8686 = vmatmul.mubr.bf16.gmra.mrb[168].mxu1 %v6959_v21  ;;  %v7087_v21 = vld [vmem:[#allocation2 + $0xaa0] sm:$0xff] }
0x1032   :  { %8693 = vmatprep.mubr.bf16.mxu1 %v6968_v62  ;;  %v7096_v62 = vld [vmem:[#allocation2 + $0xae8] sm:$0xff] }
0x1037   :  { %7812 = vmatmul.mubr.bf16.gmra.mrb[20].mxu0 %v6915_v39  ;;  %v7043_v39 = vld [vmem:[#allocation2 + $0x940] sm:$0xff] }
0x1038   :  { %7819 = vmatprep.mubr.bf16.mxu0 %v6924_v56  ;;  %v7052_v56 = vld [vmem:[#allocation2 + $0x988] sm:$0xff] }
0x1039   :  { %8694 = vmatmul.mubr.bf16.gmra.mrb[172].mxu1 %v6967_v31  ;;  %v7095_v31 = vld [vmem:[#allocation2 + $0xae0] sm:$0xff] }
0x103a   :  { %8701 = vmatprep.mubr.bf16.mxu1 %v6976_v23  ;;  %v7104_v23 = vld [vmem:[#allocation2 + $0xb28] sm:$0xff] }
0x103f   :  { %7820 = vmatmul.mubr.bf16.gmra.mrb[24].mxu0 %v6923_v18  ;;  %v7051_v18 = vld [vmem:[#allocation2 + $0x980] sm:$0xff] }
0x1040   :  { %7827 = vmatprep.mubr.bf16.mxu0 %v6932_v47  ;;  %v7060_v47 = vld [vmem:[#allocation2 + $0x9c8] sm:$0xff] }
0x1041   :  { %8702 = vmatmul.mubr.bf16.gmra.mrb[176].mxu1 %v6975_v51  ;;  %v7103_v51 = vld [vmem:[#allocation2 + $0xb20] sm:$0xff] }
0x1042   :  { %8709 = vmatprep.mubr.bf16.mxu1 %v6984_v58  ;;  %v7112_v58 = vld [vmem:[#allocation2 + $0xb68] sm:$0xff] }
0x1047   :  { %7828 = vmatmul.mubr.bf16.gmra.mrb[28].mxu0 %v6931_v54  ;;  %v7059_v54 = vld [vmem:[#allocation2 + $0x9c0] sm:$0xff] }
0x1048   :  { %7835 = vmatprep.mubr.bf16.mxu0 %v6940_v60  ;;  %v7068_v60 = vld [vmem:[#allocation2 + $0xa08] sm:$0xff] }
0x1049   :  { %8710 = vmatmul.mubr.bf16.gmra.mrb[180].mxu1 %v6983_v13  ;;  %v7111_v13 = vld [vmem:[#allocation2 + $0xb60] sm:$0xff] }
0x104a   :  { %8717 = vmatprep.mubr.bf16.mxu1 %v6992_v36  ;;  %v7120_v36 = vld [vmem:[#allocation2 + $0xba8] sm:$0xff] }
0x104f   :  { %7836 = vmatmul.mubr.bf16.gmra.mrb[32].mxu0 %v6939_v24  ;;  %v7067_v24 = vld [vmem:[#allocation2 + $0xa00] sm:$0xff] }
0x1050   :  { %7843 = vmatprep.mubr.bf16.mxu0 %v6948_v12  ;;  %v7076_v12 = vld [vmem:[#allocation2 + $0xa48] sm:$0xff] }
0x1051   :  { %8718 = vmatmul.mubr.bf16.gmra.mrb[184].mxu1 %v6991_v40  ;;  %v7119_v40 = vld [vmem:[#allocation2 + $0xba0] sm:$0xff] }
0x1052   :  { %8725 = vmatprep.mubr.bf16.mxu1 %v7000_v3  ;;  %v7128_v3 = vld [vmem:[#allocation2 + $0xbe8] sm:$0xff] }
0x1057   :  { %7844 = vmatmul.mubr.bf16.gmra.mrb[36].mxu0 %v6947_v2  ;;  %v7075_v2 = vld [vmem:[#allocation2 + $0xa40] sm:$0xff] }
0x1058   :  { %7851 = vmatprep.mubr.bf16.mxu0 %v6956_v15  ;;  %v7084_v15 = vld [vmem:[#allocation2 + $0xa88] sm:$0xff] }
0x1059   :  { %8726 = vmatmul.mubr.bf16.gmra.mrb[188].mxu1 %v6999_v9  ;;  %v7127_v9 = vld [vmem:[#allocation2 + $0xbe0] sm:$0xff] }
0x105a   :  { %8733 = vmatprep.mubr.bf16.mxu1 %v7008_v5  ;;  %v6754_v5 = vld [vmem:[#allocation2 + $0x38] sm:$0xff] }
0x105f   :  { %7852 = vmatmul.mubr.bf16.gmra.mrb[40].mxu0 %v6955_v28  ;;  %v7083_v28 = vld [vmem:[#allocation2 + $0xa80] sm:$0xff] }
0x1060   :  { %7859 = vmatprep.mubr.bf16.mxu0 %v6964_v57  ;;  %v7092_v57 = vld [vmem:[#allocation2 + $0xac8] sm:$0xff] }
0x1061   :  { %8734 = vmatmul.mubr.bf16.gmra.mrb[192].mxu1 %v7007_v0  ;;  %v6753_v0 = vld [vmem:[#allocation2 + $0x30] sm:$0xff] }
0x1062   :  { %8741 = vmatprep.mubr.bf16.mxu1 %v7016_v32  ;;  %v6762_v32 = vld [vmem:[#allocation2 + $0x78] sm:$0xff] }
0x1067   :  { %7860 = vmatmul.mubr.bf16.gmra.mrb[44].mxu0 %v6963_v35  ;;  %v7091_v35 = vld [vmem:[#allocation2 + $0xac0] sm:$0xff] }
0x1068   :  { %7867 = vmatprep.mubr.bf16.mxu0 %v6972_v45  ;;  %v7100_v45 = vld [vmem:[#allocation2 + $0xb08] sm:$0xff] }
0x1069   :  { %8742 = vmatmul.mubr.bf16.gmra.mrb[196].mxu1 %v7015_v7  ;;  %v6761_v7 = vld [vmem:[#allocation2 + $0x70] sm:$0xff] }
0x106a   :  { %8749 = vmatprep.mubr.bf16.mxu1 %v7024_v63  ;;  %v6770_v63 = vld [vmem:[#allocation2 + $0xb8] sm:$0xff] }
0x106f   :  { %7868 = vmatmul.mubr.bf16.gmra.mrb[48].mxu0 %v6971_v34  ;;  %v7099_v34 = vld [vmem:[#allocation2 + $0xb00] sm:$0xff] }
0x1070   :  { %7875 = vmatprep.mubr.bf16.mxu0 %v6980_v17  ;;  %v7108_v17 = vld [vmem:[#allocation2 + $0xb48] sm:$0xff] }
0x1071   :  { %8750 = vmatmul.mubr.bf16.gmra.mrb[200].mxu1 %v7023_v48  ;;  %v6769_v48 = vld [vmem:[#allocation2 + $0xb0] sm:$0xff] }
0x1072   :  { %8757 = vmatprep.mubr.bf16.mxu1 %v7032_v20  ;;  %v6778_v20 = vld [vmem:[#allocation2 + $0xf8] sm:$0xff] }
0x1077   :  { %7876 = vmatmul.mubr.bf16.gmra.mrb[52].mxu0 %v6979_v55  ;;  %v7107_v55 = vld [vmem:[#allocation2 + $0xb40] sm:$0xff] }
0x1078   :  { %7883 = vmatprep.mubr.bf16.mxu0 %v6988_v16  ;;  %v7116_v16 = vld [vmem:[#allocation2 + $0xb88] sm:$0xff] }
0x1079   :  { %8758 = vmatmul.mubr.bf16.gmra.mrb[204].mxu1 %v7031_v14  ;;  %v6777_v14 = vld [vmem:[#allocation2 + $0xf0] sm:$0xff] }
0x107a   :  { %8765 = vmatprep.mubr.bf16.mxu1 %v7040_v1  ;;  %v6786_v1 = vld [vmem:[#allocation2 + $0x138] sm:$0xff] }
0x107f   :  { %7884 = vmatmul.mubr.bf16.gmra.mrb[56].mxu0 %v6987_v10  ;;  %v7115_v10 = vld [vmem:[#allocation2 + $0xb80] sm:$0xff] }
0x1080   :  { %7891 = vmatprep.mubr.bf16.mxu0 %v6996_v30  ;;  %v7124_v30 = vld [vmem:[#allocation2 + $0xbc8] sm:$0xff] }
0x1081   :  { %8766 = vmatmul.mubr.bf16.gmra.mrb[208].mxu1 %v7039_v49  ;;  %v6785_v49 = vld [vmem:[#allocation2 + $0x130] sm:$0xff] }
0x1082   :  { %8773 = vmatprep.mubr.bf16.mxu1 %v7048_v22  ;;  %v6794_v22 = vld [vmem:[#allocation2 + $0x178] sm:$0xff] }
0x1087   :  { %7892 = vmatmul.mubr.bf16.gmra.mrb[60].mxu0 %v6995_v44  ;;  %v7123_v44 = vld [vmem:[#allocation2 + $0xbc0] sm:$0xff] }
0x1088   :  { %7899 = vmatprep.mubr.bf16.mxu0 %v7004_v43  ;;  %v6825_v43 = vld [vmem:[#allocation2 + $0x270] sm:$0xff] }
0x1089   :  { %8774 = vmatmul.mubr.bf16.gmra.mrb[212].mxu1 %v7047_v26  ;;  %v6793_v26 = vld [vmem:[#allocation2 + $0x170] sm:$0xff] }
0x108a   :  { %8781 = vmatprep.mubr.bf16.mxu1 %v7056_v37  ;;  %v6802_v37 = vld [vmem:[#allocation2 + $0x1b8] sm:$0xff] }
0x108f   :  { %7900 = vmatmul.mubr.bf16.gmra.mrb[64].mxu0 %v7003_v33  ;;  %v6834_v33 = vld [vmem:[#allocation2 + $0x2b8] sm:$0xff] }
0x1090   :  { %7907 = vmatprep.mubr.bf16.mxu0 %v7012_v11  ;;  %v6833_v11 = vld [vmem:[#allocation2 + $0x2b0] sm:$0xff] }
0x1091   :  { %8782 = vmatmul.mubr.bf16.gmra.mrb[216].mxu1 %v7055_v52  ;;  %v6801_v52 = vld [vmem:[#allocation2 + $0x1b0] sm:$0xff] }
0x1092   :  { %8789 = vmatprep.mubr.bf16.mxu1 %v7064_v27  ;;  %v6810_v27 = vld [vmem:[#allocation2 + $0x1f8] sm:$0xff] }
0x1097   :  { %7908 = vmatmul.mubr.bf16.gmra.mrb[68].mxu0 %v7011_v4  ;;  %v6842_v4 = vld [vmem:[#allocation2 + $0x2f8] sm:$0xff] }
0x1098   :  { %7915 = vmatprep.mubr.bf16.mxu0 %v7020_v38  ;;  %v6841_v38 = vld [vmem:[#allocation2 + $0x2f0] sm:$0xff] }
0x1099   :  { %8790 = vmatmul.mubr.bf16.gmra.mrb[220].mxu1 %v7063_v46  ;;  %v6809_v46 = vld [vmem:[#allocation2 + $0x1f0] sm:$0xff] }
0x109a   :  { %8797 = vmatprep.mubr.bf16.mxu1 %v7072_v53  ;;  %v6818_v53 = vld [vmem:[#allocation2 + $0x238] sm:$0xff] }
0x109f   :  { %7916 = vmatmul.mubr.bf16.gmra.mrb[72].mxu0 %v7019_v42 }
0x10a0   :  { %7923 = vmatprep.mubr.bf16.mxu0 %v7028_v41 }
0x10a1   :  { %8798 = vmatmul.mubr.bf16.gmra.mrb[224].mxu1 %v7071_v61  ;;  %v6817_v61 = vld [vmem:[#allocation2 + $0x230] sm:$0xff] }
0x10a2   :  { %8805 = vmatprep.mubr.bf16.mxu1 %v7080_v50  ;;  %v6826_v50 = vld [vmem:[#allocation2 + $0x278] sm:$0xff] }
0x10a7   :  { %7924 = vmatmul.mubr.bf16.gmra.mrb[76].mxu0 %v7027_v8 }
0x10a8   :  { %7931 = vmatprep.mubr.bf16.mxu0 %v7036_v29 }
0x10a9   :  { %8806 = vmatmul.mubr.bf16.gmra.mrb[228].mxu1 %v7079_v19  ;;  %v15930_v19 = vpop.f32.mrb[192].mxu0 }
0x10aa   :  { %8813 = vmatprep.mubr.bf16.mxu1 %v7088_v59  ;;  %v7647_v59 = vpop.f32.mrb[193].mxu0 }
0x10af   :  { %7932 = vmatmul.mubr.bf16.gmra.mrb[80].mxu0 %v7035_v6  ;;  %v6849_v6 = vld [vmem:[#allocation2 + $0x330] sm:$0xff] }
0x10b0   :  { %7939 = vmatprep.mubr.bf16.mxu0 %v7044_v25 }
0x10b1   :  { %8814 = vmatmul.mubr.bf16.gmra.mrb[232].mxu1 %v7087_v21  ;;  %v15932_v21 = vpop.f32.mrb[194].mxu0 }
0x10b2   :  { %8821 = vmatprep.mubr.bf16.mxu1 %v7096_v62  ;;  %v7650_v62 = vpop.f32.mrb[195].mxu0 }
0x10b3   :  { %v15934_v42 = vpop.f32.mrb[196].mxu0  ;;  %v6898_v62 = vld [vmem:[#allocation2 + $0x4b8] sm:$0xff] }
0x10b7   :  { %7940 = vmatmul.mubr.bf16.gmra.mrb[84].mxu0 %v7043_v39 }
0x10b8   :  { %7947 = vmatprep.mubr.bf16.mxu0 %v7052_v56 }
0x10b9   :  { %8822 = vmatmul.mubr.bf16.gmra.mrb[236].mxu1 %v7095_v31  ;;  %v6850_v31 = vld [vmem:[#allocation2 + $0x338] sm:$0xff] }
0x10ba   :  { %8829 = vmatprep.mubr.bf16.mxu1 %v7104_v23  ;;  %v7655_v23 = vpop.f32.mrb[197].mxu0 }
0x10bb   :  { %v15936_v41 = vpop.f32.mrb[198].mxu0 }
0x10bc   :  { %v7658_v8 = vpop.f32.mrb[199].mxu0 }
0x10bf   :  { %7948 = vmatmul.mubr.bf16.gmra.mrb[88].mxu0 %v7051_v18 }
0x10c0   :  { %7955 = vmatprep.mubr.bf16.mxu0 %v7060_v47 }
0x10c1   :  { %8830 = vmatmul.mubr.bf16.gmra.mrb[240].mxu1 %v7103_v51  ;;  %v15938_v51 = vpop.f32.mrb[200].mxu0 }
0x10c2   :  { %8837 = vmatprep.mubr.bf16.mxu1 %v7112_v58  ;;  %v7663_v58 = vpop.f32.mrb[201].mxu0 }
0x10c3   :  { %v15940_v29 = vpop.f32.mrb[202].mxu0 }
0x10c7   :  { %7956 = vmatmul.mubr.bf16.gmra.mrb[92].mxu0 %v7059_v54  ;;  %v6866_v54 = vld [vmem:[#allocation2 + $0x3b8] sm:$0xff] }
0x10c8   :  { %7963 = vmatprep.mubr.bf16.mxu0 %v7068_v60 }
0x10c9   :  { %8838 = vmatmul.mubr.bf16.gmra.mrb[244].mxu1 %v7111_v13  ;;  %v7666_v13 = vpop.f32.mrb[203].mxu0 }
0x10ca   :  { %8845 = vmatprep.mubr.bf16.mxu1 %v7120_v36  ;;  %v6858_v36 = vld [vmem:[#allocation2 + $0x378] sm:$0xff]  ;;  %v15942_v25 = vpop.f32.mrb[204].mxu0 }
0x10cb   :  { %v7671_v39 = vpop.f32.mrb[205].mxu0 }
0x10cf   :  { %7964 = vmatmul.mubr.bf16.gmra.mrb[96].mxu0 %v7067_v24 }
0x10d0   :  { %7971 = vmatprep.mubr.bf16.mxu0 %v7076_v12 }
0x10d1   :  { %8846 = vmatmul.mubr.bf16.gmra.mrb[248].mxu1 %v7119_v40  ;;  %v15944_v40 = vpop.f32.mrb[206].mxu0 }
0x10d2   :  { %8853 = vmatprep.mubr.bf16.mxu1 %v7128_v3  ;;  %v7674_v3 = vpop.f32.mrb[207].mxu0 }
0x10d3   :  { %v15946_v56 = vpop.f32.mrb[208].mxu0  ;;  %v6906_v3 = vld [vmem:[#allocation2 + $0x4f8] sm:$0xff] }
0x10d4   :  { %v7679_v18 = vpop.f32.mrb[209].mxu0 }
0x10d7   :  { %7972 = vmatmul.mubr.bf16.gmra.mrb[100].mxu0 %v7075_v2  ;;  %v6865_v2 = vld [vmem:[#allocation2 + $0x3b0] sm:$0xff] }
0x10d8   :  { %7979 = vmatprep.mubr.bf16.mxu0 %v7084_v15 }
0x10d9   :  { %8854 = vmatmul.mubr.bf16.gmra.mrb[252].mxu1 %v7127_v9  ;;  %v15948_v9 = vpop.f32.mrb[210].mxu0 }
0x10da   :  { %8894 = vmatprep.mubr.bf16.mxu1 %v6754_v5  ;;  %v6857_v5 = vld [vmem:[#allocation2 + $0x370] sm:$0xff]  ;;  %v7682_v47 = vpop.f32.mrb[211].mxu0 }
0x10df   :  { %7980 = vmatmul.mubr.bf16.gmra.mrb[104].mxu0 %v7083_v28 }
0x10e0   :  { %7987 = vmatprep.mubr.bf16.mxu0 %v7092_v57 }
0x10e1   :  { %8895 = vmatmul.mubr.bf16.vlgmr.msra.gmra.mrb[64].mxu1 %v6753_v0  ;;  %v15950_v0 = vpop.f32.mrb[212].mxu0 }
0x10e2   :  { %8902 = vmatprep.mubr.bf16.mxu1 %v6762_v32  ;;  %v7687_v32 = vpop.f32.mrb[213].mxu0 }
0x10e3   :  { %v15952_v60 = vpop.f32.mrb[214].mxu0 }
0x10e4   :  { %v7690_v24 = vpop.f32.mrb[215].mxu0 }
0x10e7   :  { %7988 = vmatmul.mubr.bf16.gmra.mrb[108].mxu0 %v7091_v35 }
0x10e8   :  { %7995 = vmatprep.mubr.bf16.mxu0 %v7100_v45 }
0x10e9   :  { %8903 = vmatmul.mubr.bf16.gmra.mrb[68].mxu1 %v6761_v7  ;;  %v15954_v7 = vpop.f32.mrb[216].mxu0 }
0x10ea   :  { %8910 = vmatprep.mubr.bf16.mxu1 %v6770_v63  ;;  %v7695_v63 = vpop.f32.mrb[217].mxu0 }
0x10eb   :  { %v15956_v12 = vpop.f32.mrb[218].mxu0 }
0x10ef   :  { %7996 = vmatmul.mubr.bf16.gmra.mrb[112].mxu0 %v7099_v34  ;;  %v6882_v34 = vld [vmem:[#allocation2 + $0x438] sm:$0xff] }
0x10f0   :  { %8003 = vmatprep.mubr.bf16.mxu0 %v7108_v17 }
0x10f1   :  { %8911 = vmatmul.mubr.bf16.gmra.mrb[72].mxu1 %v6769_v48  ;;  %v7698_v48 = vpop.f32.mrb[219].mxu0 }
0x10f2   :  { %8918 = vmatprep.mubr.bf16.mxu1 %v6778_v20  ;;  %v6874_v20 = vld [vmem:[#allocation2 + $0x3f8] sm:$0xff]  ;;  %v15958_v15 = vpop.f32.mrb[220].mxu0 }
0x10f3   :  { %v7703_v28 = vpop.f32.mrb[221].mxu0 }
0x10f7   :  { %8004 = vmatmul.mubr.bf16.gmra.mrb[116].mxu0 %v7107_v55 }
0x10f8   :  { %8011 = vmatprep.mubr.bf16.mxu0 %v7116_v16 }
0x10f9   :  { %8919 = vmatmul.mubr.bf16.gmra.mrb[76].mxu1 %v6777_v14  ;;  %v15960_v14 = vpop.f32.mrb[222].mxu0 }
0x10fa   :  { %8926 = vmatprep.mubr.bf16.mxu1 %v6786_v1  ;;  %v7706_v1 = vpop.f32.mrb[223].mxu0 }
0x10fb   :  { %v15962_v57 = vpop.f32.mrb[224].mxu0 }
0x10fc   :  { %v7711_v35 = vpop.f32.mrb[225].mxu0 }
0x10ff   :  { %8012 = vmatmul.mubr.bf16.gmra.mrb[120].mxu0 %v7115_v10  ;;  %v6881_v10 = vld [vmem:[#allocation2 + $0x430] sm:$0xff] }
0x1100   :  { %8019 = vmatprep.mubr.bf16.mxu0 %v7124_v30 }
0x1101   :  { %8927 = vmatmul.mubr.bf16.gmra.mrb[80].mxu1 %v6785_v49  ;;  %v15964_v49 = vpop.f32.mrb[226].mxu0 }
0x1102   :  { %8934 = vmatprep.mubr.bf16.mxu1 %v6794_v22  ;;  %v6873_v22 = vld [vmem:[#allocation2 + $0x3f0] sm:$0xff]  ;;  %v7714_v45 = vpop.f32.mrb[227].mxu0 }
0x1107   :  { %8020 = vmatmul.mubr.bf16.gmra.mrb[124].mxu0 %v7123_v44 }
0x1109   :  { %8935 = vmatmul.mubr.bf16.gmra.mrb[84].mxu1 %v6793_v26  ;;  %v15966_v26 = vpop.f32.mrb[228].mxu0 }
0x110a   :  { %8942 = vmatprep.mubr.bf16.mxu1 %v6802_v37  ;;  %v7719_v37 = vpop.f32.mrb[229].mxu0 }
0x110b   :  { %v15968_v17 = vpop.f32.mrb[230].mxu0 }
0x110c   :  { %v7722_v55 = vpop.f32.mrb[231].mxu0 }
0x110d   :  { %v6913_v55 = vld [vmem:[#allocation2 + $0x530] sm:$0xff] }
0x1111   :  { %8943 = vmatmul.mubr.bf16.gmra.mrb[88].mxu1 %v6801_v52  ;;  %v15970_v52 = vpop.f32.mrb[232].mxu0 }
0x1112   :  { %8950 = vmatprep.mubr.bf16.mxu1 %v6810_v27  ;;  %v7727_v27 = vpop.f32.mrb[233].mxu0 }
0x1113   :  { %v15972_v16 = vpop.f32.mrb[234].mxu0 }
0x1119   :  { %8951 = vmatmul.mubr.bf16.gmra.mrb[92].mxu1 %v6809_v46  ;;  %v7730_v46 = vpop.f32.mrb[235].mxu0 }
0x111a   :  { %8958 = vmatprep.mubr.bf16.mxu1 %v6818_v53  ;;  %v6890_v53 = vld [vmem:[#allocation2 + $0x478] sm:$0xff]  ;;  %v15974_v30 = vpop.f32.mrb[236].mxu0 }
0x111b   :  { %v7735_v44 = vpop.f32.mrb[237].mxu0 }
0x1121   :  { %8959 = vmatmul.mubr.bf16.gmra.mrb[96].mxu1 %v6817_v61  ;;  %v15976_v61 = vpop.f32.mrb[238].mxu0 }
0x1122   :  { %8966 = vmatprep.mubr.bf16.mxu1 %v6826_v50  ;;  %v7738_v50 = vpop.f32.mrb[239].mxu0 }
0x1129   :  { %8967 = vmatmul.mubr.bf16.gmra.mrb[100].mxu1 %v6825_v43  ;;  %v15978_v43 = vpop.f32.mrb[240].mxu0 }
0x112a   :  { %8974 = vmatprep.mubr.bf16.mxu1 %v6834_v33  ;;  %v7743_v33 = vpop.f32.mrb[241].mxu0 }
0x112b   :  { %v15980_v59 = vpop.f32.mrb[242].mxu0 }
0x1131   :  { %8975 = vmatmul.mubr.bf16.gmra.mrb[104].mxu1 %v6833_v11  ;;  %v6889_v11 = vld [vmem:[#allocation2 + $0x470] sm:$0xff] }
0x1132   :  { %8982 = vmatprep.mubr.bf16.mxu1 %v6842_v4  ;;  %v7746_v4 = vpop.f32.mrb[243].mxu0 }
0x1139   :  { %8983 = vmatmul.mubr.bf16.gmra.mrb[108].mxu1 %v6841_v38  ;;  %v15982_v38 = vpop.f32.mrb[244].mxu0 }
0x113a   :  { %8990 = vmatprep.mubr.bf16.mxu1 %v6850_v31  ;;  %v7751_v31 = vpop.f32.mrb[245].mxu0 }
0x113b   :  { %v15984_v23 = vpop.f32.mrb[246].mxu0 }
0x113c   :  { %v7754_v8 = vpop.f32.mrb[247].mxu0 }
0x113d   :  { %v15986_v58 = vpop.f32.mrb[248].mxu0  ;;  %v6930_v8 = vld [vmem:[#allocation2 + $0x5b8] sm:$0xff] }
0x1141   :  { %8991 = vmatmul.mubr.bf16.gmra.mrb[112].mxu1 %v6849_v6  ;;  %v7759_v6 = vpop.f32.mrb[249].mxu0 }
0x1142   :  { %8998 = vmatprep.mubr.bf16.mxu1 %v6858_v36  ;;  %v15988_v13 = vpop.f32.mrb[250].mxu0  ;;  %v6897_v36 = vld [vmem:[#allocation2 + $0x4b0] sm:$0xff] }
0x1143   :  { %v7762_v39 = vpop.f32.mrb[251].mxu0 }
0x1144   :  { %v15990_v18 = vpop.f32.mrb[252].mxu0 }
0x1149   :  { %8999 = vmatmul.mubr.bf16.gmra.mrb[116].mxu1 %v6857_v5  ;;  %v7767_v5 = vpop.f32.mrb[253].mxu0 }
0x114a   :  { %9006 = vmatprep.mubr.bf16.mxu1 %v6866_v54  ;;  %v15992_v47 = vpop.f32.mrb[254].mxu0 }
0x114b   :  { %v7770_v54 = vpop.f32.mrb[255].mxu0 }
0x114c   :  { %v15994_v32 = vpop.f32.mrb[0].mxu0 }
0x114d   :  { %v7775_v24 = vpop.f32.mrb[1].mxu0 }
0x114e   :  { %v15996_v63 = vpop.f32.mrb[2].mxu0 }
0x114f   :  { %v7778_v48 = vpop.f32.mrb[3].mxu0 }
0x1150   :  { %v15998_v28 = vpop.f32.mrb[4].mxu0 }
0x1151   :  { %9007 = vmatmul.mubr.bf16.gmra.mrb[120].mxu1 %v6865_v2  ;;  %v6905_v2 = vld [vmem:[#allocation2 + $0x4f0] sm:$0xff]  ;;  %v7783_v1 = vpop.f32.mrb[5].mxu0 }
0x1152   :  { %9014 = vmatprep.mubr.bf16.mxu1 %v6874_v20  ;;  %v6914_v20 = vld [vmem:[#allocation2 + $0x538] sm:$0xff]  ;;  %v16000_v35 = vpop.f32.mrb[6].mxu0 }
0x1159   :  { %9015 = vmatmul.mubr.bf16.gmra.mrb[124].mxu1 %v6873_v22  ;;  %v7786_v22 = vpop.f32.mrb[7].mxu0 }
0x115a   :  { %9022 = vmatprep.mubr.bf16.mxu1 %v6882_v34  ;;  %v16002_v45 = vpop.f32.mrb[8].mxu0 }
0x115b   :  { %v7791_v34 = vpop.f32.mrb[9].mxu0 }
0x115c   :  { %v16004_v37 = vpop.f32.mrb[10].mxu0 }
0x115d   :  { %v7794_v27 = vpop.f32.mrb[11].mxu0 }
0x115e   :  { %v16006_v46 = vpop.f32.mrb[12].mxu0 }
0x1161   :  { %9023 = vmatmul.mubr.bf16.gmra.mrb[128].mxu1 %v6881_v10  ;;  %v6922_v10 = vld [vmem:[#allocation2 + $0x578] sm:$0xff] }
0x1162   :  { %9030 = vmatprep.mubr.bf16.mxu1 %v6890_v53  ;;  %v7799_v53 = vpop.f32.mrb[13].mxu0 }
0x1163   :  { %v16008_v44 = vpop.f32.mrb[14].mxu0 }
0x1164   :  { %v7802_v50 = vpop.f32.mrb[15].mxu0 }
0x1165   :  { %v16010_v33 = vpop.f32.mrb[16].mxu0  ;;  %v6937_v50 = vld [vmem:[#allocation2 + $0x5f0] sm:$0xff] }
0x1169   :  { %9031 = vmatmul.mubr.bf16.gmra.mrb[132].mxu1 %v6889_v11  ;;  %v7807_v11 = vpop.f32.mrb[17].mxu0 }
0x116a   :  { %9038 = vmatprep.mubr.bf16.mxu1 %v6898_v62  ;;  %v16012_v4 = vpop.f32.mrb[18].mxu0  ;;  %v6921_v62 = vld [vmem:[#allocation2 + $0x570] sm:$0xff] }
0x116b   :  { %v7810_v31 = vpop.f32.mrb[19].mxu0 }
0x116c   :  { %v16014_v6 = vpop.f32.mrb[20].mxu0 }
0x1171   :  { %9039 = vmatmul.mubr.bf16.gmra.mrb[136].mxu1 %v6897_v36  ;;  %v7815_v36 = vpop.f32.mrb[21].mxu0 }
0x1172   :  { %9046 = vmatprep.mubr.bf16.mxu1 %v6906_v3  ;;  %v16016_v39 = vpop.f32.mrb[22].mxu0 }
0x1173   :  { %v7818_v3 = vpop.f32.mrb[23].mxu0 }
0x1174   :  { %v16018_v5 = vpop.f32.mrb[24].mxu0 }
0x1175   :  { %v7823_v54 = vpop.f32.mrb[25].mxu0 }
0x1176   :  { %v16020_v24 = vpop.f32.mrb[26].mxu0 }
0x1177   :  { %v7826_v48 = vpop.f32.mrb[27].mxu0 }
0x1178   :  { %v16022_v1 = vpop.f32.mrb[28].mxu0 }
0x1179   :  { %9047 = vmatmul.mubr.bf16.gmra.mrb[140].mxu1 %v6905_v2  ;;  %v6929_v2 = vld [vmem:[#allocation2 + $0x5b0] sm:$0xff]  ;;  %v7831_v22 = vpop.f32.mrb[29].mxu0 }
0x117a   :  { %9054 = vmatprep.mubr.bf16.mxu1 %v6914_v20  ;;  %v6938_v20 = vld [vmem:[#allocation2 + $0x5f8] sm:$0xff]  ;;  %v16024_v34 = vpop.f32.mrb[30].mxu0 }
0x1181   :  { %9055 = vmatmul.mubr.bf16.gmra.mrb[144].mxu1 %v6913_v55  ;;  %v7834_v55 = vpop.f32.mrb[31].mxu0 }
0x1182   :  { %9062 = vmatprep.mubr.bf16.mxu1 %v6922_v10  ;;  %v16026_v27 = vpop.f32.mrb[32].mxu0  ;;  %v6954_v55 = vld [vmem:[#allocation2 + $0x678] sm:$0xff] }
0x1183   :  { %17839 = vst [vmem:[#allocation119_spill] sm:$0xff] %v16026_v27  ;;  %v7839_v10 = vpop.f32.mrb[33].mxu0 }
0x1184   :  { %v16028_v53 = vpop.f32.mrb[34].mxu0 }
0x1185   :  { %17840 = vst [vmem:[#allocation184_spill] sm:$0xff] %v16028_v53  ;;  %v7842_v11 = vpop.f32.mrb[35].mxu0 }
0x1186   :  { %v16030_v31 = vpop.f32.mrb[36].mxu0 }
0x1187   :  { %17841 = vst [vmem:[#allocation185_spill] sm:$0xff] %v16030_v31 }
0x1189   :  { %9063 = vmatmul.mubr.bf16.gmra.mrb[148].mxu1 %v6921_v62  ;;  %v6946_v62 = vld [vmem:[#allocation2 + $0x638] sm:$0xff] }
0x118a   :  { %9070 = vmatprep.mubr.bf16.mxu1 %v6930_v8  ;;  %v7847_v8 = vpop.f32.mrb[37].mxu0 }
0x118b   :  { %v16032_v36 = vpop.f32.mrb[38].mxu0 }
0x118c   :  { %17842 = vst [vmem:[#allocation188_spill] sm:$0xff] %v16032_v36  ;;  %v7850_v3 = vpop.f32.mrb[39].mxu0  ;;  %v6962_v36 = vld [vmem:[#allocation2 + $0x6b8] sm:$0xff] }
0x118d   :  { %v16034_v54 = vpop.f32.mrb[40].mxu0 }
0x118e   :  { %17843 = vst [vmem:[#allocation189_spill] sm:$0xff] %v16034_v54  ;;  %v6953_v54 = vld [vmem:[#allocation2 + $0x670] sm:$0xff] }
0x1191   :  { %9071 = vmatmul.mubr.bf16.gmra.mrb[152].mxu1 %v6929_v2  ;;  %v7855_v2 = vpop.f32.mrb[41].mxu0 }
0x1192   :  { %9078 = vmatprep.mubr.bf16.mxu1 %v6938_v20  ;;  %v16036_v48 = vpop.f32.mrb[42].mxu0  ;;  %v6945_v20 = vld [vmem:[#allocation2 + $0x630] sm:$0xff] }
0x1193   :  { %17844 = vst [vmem:[#allocation192_spill] sm:$0xff] %v16036_v48  ;;  %v7858_v22 = vpop.f32.mrb[43].mxu0 }
0x1194   :  { %v16038_v10 = vpop.f32.mrb[44].mxu0 }
0x1195   :  { %17845 = vst [vmem:[#allocation193_spill] sm:$0xff] %v16038_v10  ;;  %v7863_v11 = vpop.f32.mrb[45].mxu0 }
0x1196   :  { %v16040_v53 = vpop.f32.mrb[46].mxu0 }
0x1197   :  { %17846 = vst [vmem:[#allocation196_spill] sm:$0xff] %v16040_v53 }
0x1199   :  { %9079 = vmatmul.mubr.bf16.gmra.mrb[156].mxu1 %v6937_v50  ;;  %v7866_v50 = vpop.f32.mrb[47].mxu0 }
0x119a   :  { %9086 = vmatprep.mubr.bf16.mxu1 %v6946_v62  ;;  %v16042_v8 = vpop.f32.mrb[48].mxu0 }
0x119b   :  { %17847 = vst [vmem:[#allocation215_spill] sm:$0xff] %v16042_v8  ;;  %v7871_v62 = vpop.f32.mrb[49].mxu0 }
0x119c   :  { %v16044_v3 = vpop.f32.mrb[50].mxu0  ;;  %v6961_v62 = vld [vmem:[#allocation2 + $0x6b0] sm:$0xff] }
0x119d   :  { %17848 = vst [vmem:[#allocation197_spill] sm:$0xff] %v16044_v3  ;;  %v7874_v2 = vpop.f32.mrb[51].mxu0  ;;  %v6970_v3 = vld [vmem:[#allocation2 + $0x6f8] sm:$0xff] }
0x119e   :  { %v16046_v48 = vpop.f32.mrb[52].mxu0 }
0x119f   :  { %17849 = vst [vmem:[#allocation156_spill] sm:$0xff] %v16046_v48  ;;  %v7879_v22 = vpop.f32.mrb[53].mxu0 }
0x11a0   :  { %v16048_v31 = vpop.f32.mrb[54].mxu0 }
0x11a1   :  { %9087 = vmatmul.mubr.bf16.gmra.mrb[160].mxu1 %v6945_v20  ;;  %17850 = vst [vmem:[#allocation200_spill] sm:$0xff] %v16048_v31  ;;  %v7882_v20 = vpop.f32.mrb[55].mxu0  ;;  %v7144_v31 = vpop.permute.xlu1 %7143 }
0x11a2   :  { %9094 = vmatprep.mubr.bf16.mxu1 %v6954_v55  ;;  %v16050_v11 = vpop.f32.mrb[56].mxu0  ;;  %v7134_v55 = vpop.permute.xlu0 %7133 }
0x11a3   :  { %17851 = vst [vmem:[#allocation214_spill] sm:$0xff] %v16050_v11  ;;  %v7887_v50 = vpop.f32.mrb[57].mxu0  ;;  %v7646_v48 = vadd.f32 %v15930_v19, %v7134_v55  ;;  %v6978_v55 = vld [vmem:[#allocation2 + $0x738] sm:$0xff] }
0x11a4   :  { %v16052_v53 = vpop.f32.mrb[58].mxu0 }
0x11a5   :  { %17852 = vst [vmem:[#allocation201_spill] sm:$0xff] %v16052_v53  ;;  %v7890_v8 = vpop.f32.mrb[59].mxu0 }
0x11a6   :  { %v16054_v10 = vpop.f32.mrb[60].mxu0  ;;  %v7139_v22 = vpop.permute.xlu0 %7138 }
0x11a7   :  { %17853 = vst [vmem:[#allocation221_spill] sm:$0xff] %v16054_v10  ;;  %v7895_v2 = vpop.f32.mrb[61].mxu0  ;;  %v7649_v53 = vadd.f32 %v15932_v21, %v7139_v22  ;;  %v7654_v21 = vadd.f32 %v15934_v42, %v7144_v31 }
0x11a8   :  { %v6969_v2 = vld [vmem:[#allocation2 + $0x6f0] sm:$0xff] }
0x11a9   :  { %9095 = vmatmul.mubr.bf16.gmra.mrb[164].mxu1 %v6953_v54  ;;  %v16057_v54 = vpop.f32.mrb[62].mxu0 }
0x11aa   :  { %9102 = vmatprep.mubr.bf16.mxu1 %v6962_v36  ;;  %v7898_v36 = vpop.f32.mrb[63].mxu0 }
0x11ab   :  { %v16059_v20 = vpop.f32.mrb[64].mxu0 }
0x11ac   :  { %17854 = vst [vmem:[#allocation204_spill] sm:$0xff] %v16059_v20  ;;  %v7903_v50 = vpop.f32.mrb[65].mxu0 }
0x11b1   :  { %9103 = vmatmul.mubr.bf16.gmra.mrb[168].mxu1 %v6961_v62  ;;  %v16066_v62 = vpop.f32.mrb[66].mxu0 }
0x11b2   :  { %9110 = vmatprep.mubr.bf16.mxu1 %v6970_v3  ;;  %17855 = vst [vmem:[#allocation157_spill] sm:$0xff] %v16066_v62  ;;  %v7906_v36 = vpop.f32.mrb[67].mxu0 }
0x11b4   :  { %v8896_v11 = vpop.f32.mrb[64].mxu1 }
0x11b5   :  { %v10414_v8 = vadd.f32 %v8896_v11, %v7646_v48  ;;  %v8898_v27 = vpop.f32.mrb[65].mxu1  ;;  %v7149_v11 = vpop.permute.xlu1 %7148 }
0x11b6   :  { %v8899_v10 = vpop.f32.mrb[66].mxu1  ;;  %v16073_v27 = vpop.f32.mrb[68].mxu0  ;;  %v7657_v50 = vadd.f32 %v15936_v41, %v7149_v11 }
0x11b7   :  { %9280 = vst.msk [vmem:[%s16607_s5] sm:$0xff] %vm9279_vm2, %v10414_v8  ;;  %v10416_v19 = vadd.f32 %v8899_v10, %v7649_v53  ;;  %v8901_v3 = vpop.f32.mrb[67].mxu1  ;;  %v7911_v48 = vpop.f32.mrb[69].mxu0 }
0x11b8   :  { %v16075_v22 = vpop.f32.mrb[70].mxu0 }
0x11b9   :  { %9281 = vst.msk [vmem:[%s16607_s5 + $0x8] sm:$0xff] %vm9279_vm2, %v10416_v19  ;;  %9111 = vmatmul.mubr.bf16.gmra.mrb[172].mxu1 %v6969_v2  ;;  %v7914_v10 = vpop.f32.mrb[71].mxu0  ;;  %v6977_v19 = vld [vmem:[#allocation2 + $0x730] sm:$0xff]  ;;  %v6986_v2 = vld [vmem:[#allocation2 + $0x778] sm:$0xff] }
0x11ba   :  { %9118 = vmatprep.mubr.bf16.mxu1 %v6978_v55  ;;  %v16078_v36 = vpop.f32.mrb[72].mxu0  ;;  %v7154_v55 = vpop.permute.xlu0 %7153 }
0x11bb   :  { %v7919_v20 = vpop.f32.mrb[73].mxu0  ;;  %v7662_v41 = vadd.f32 %v15938_v51, %v7154_v55 }
0x11bc   :  { %v8904_v53 = vpop.f32.mrb[68].mxu1  ;;  %v16084_v48 = vpop.f32.mrb[74].mxu0 }
0x11bd   :  { %v10418_v8 = vadd.f32 %v8904_v53, %v7654_v21  ;;  %v8906_v3 = vpop.f32.mrb[69].mxu1  ;;  %v7922_v20 = vpop.f32.mrb[75].mxu0 }
0x11be   :  { %v8907_v62 = vpop.f32.mrb[70].mxu1  ;;  %v16091_v21 = vpop.f32.mrb[76].mxu0 }
0x11bf   :  { %9282 = vst.msk [vmem:[%s16607_s5 + $0x10] sm:$0xff] %vm9279_vm2, %v10418_v8  ;;  %v10420_v42 = vadd.f32 %v8907_v62, %v7657_v50  ;;  %v8909_v31 = vpop.f32.mrb[71].mxu1  ;;  %17856 = vst [vmem:[#allocation205_spill] sm:$0xff] %v16091_v21  ;;  %v7927_v11 = vpop.f32.mrb[77].mxu0 }
0x11c0   :  { %v7159_v53 = vpop.permute.xlu1 %7158  ;;  %v16094_v3 = vpop.f32.mrb[78].mxu0  ;;  %v6985_v31 = vld [vmem:[#allocation2 + $0x770] sm:$0xff] }
0x11c1   :  { %9283 = vst.msk [vmem:[%s16607_s5 + $0x18] sm:$0xff] %vm9279_vm2, %v10420_v42  ;;  %9119 = vmatmul.mubr.bf16.gmra.mrb[176].mxu1 %v6977_v19  ;;  %v7665_v10 = vadd.f32 %v15940_v29, %v7159_v53  ;;  %v7930_v55 = vpop.f32.mrb[79].mxu0  ;;  %v7164_v11 = vpop.permute.xlu0 %7163 }
0x11c2   :  { %9126 = vmatprep.mubr.bf16.mxu1 %v6986_v2  ;;  %v6994_v2 = vld [vmem:[#allocation2 + $0x7b8] sm:$0xff]  ;;  %v16100_v20 = vpop.f32.mrb[80].mxu0  ;;  %v7670_v29 = vadd.f32 %v15942_v25, %v7164_v11 }
0x11c3   :  { %v7935_v21 = vpop.f32.mrb[81].mxu0 }
0x11c4   :  { %v8912_v62 = vpop.f32.mrb[72].mxu1 }
0x11c5   :  { %v10422_v50 = vadd.f32 %v8912_v62, %v7662_v41  ;;  %v8914_v8 = vpop.f32.mrb[73].mxu1  ;;  %v16107_v41 = vpop.f32.mrb[82].mxu0 }
0x11c6   :  { %v8915_v51 = vpop.f32.mrb[74].mxu1  ;;  %v7938_v53 = vpop.f32.mrb[83].mxu0 }
0x11c7   :  { %9284 = vst.msk [vmem:[%s16607_s5 + $0x20] sm:$0xff] %vm9279_vm2, %v10422_v50  ;;  %v10424_v19 = vadd.f32 %v8915_v51, %v7665_v10  ;;  %v8917_v42 = vpop.f32.mrb[75].mxu1  ;;  %v7169_v62 = vpop.permute.xlu1 %7168 }
0x11c8   :  { %v16109_v10 = vpop.f32.mrb[84].mxu0  ;;  %v7673_v51 = vadd.f32 %v15944_v40, %v7169_v62  ;;  %v6993_v42 = vld [vmem:[#allocation2 + $0x7b0] sm:$0xff]  ;;  %v7174_v53 = vpop.permute.xlu0 %7173 }
0x11c9   :  { %9285 = vst.msk [vmem:[%s16607_s5 + $0x28] sm:$0xff] %vm9279_vm2, %v10424_v19  ;;  %9127 = vmatmul.mubr.bf16.gmra.mrb[180].mxu1 %v6985_v31  ;;  %17857 = vst [vmem:[#allocation219_spill] sm:$0xff] %v16109_v10  ;;  %v7943_v8 = vpop.f32.mrb[85].mxu0 }
0x11ca   :  { %9134 = vmatprep.mubr.bf16.mxu1 %v6994_v2  ;;  %v7002_v2 = vld [vmem:[#allocation2 + $0x7f8] sm:$0xff]  ;;  %v16116_v11 = vpop.f32.mrb[86].mxu0  ;;  %v7678_v8 = vadd.f32 %v15946_v56, %v7174_v53  ;;  %v7001_v53 = vld [vmem:[#allocation2 + $0x7f0] sm:$0xff] }
0x11cb   :  { %17858 = vst [vmem:[#allocation208_spill] sm:$0xff] %v16116_v11  ;;  %v7946_v10 = vpop.f32.mrb[87].mxu0  ;;  %v7179_v62 = vpop.permute.xlu1 %7178 }
0x11cc   :  { %v8920_v50 = vpop.f32.mrb[76].mxu1  ;;  %v16123_v40 = vpop.f32.mrb[88].mxu0 }
0x11cd   :  { %v10426_v21 = vadd.f32 %v8920_v50, %v7670_v29  ;;  %v8922_v55 = vpop.f32.mrb[77].mxu1  ;;  %v7951_v29 = vpop.f32.mrb[89].mxu0 }
0x11ce   :  { %v8923_v25 = vpop.f32.mrb[78].mxu1  ;;  %v16125_v50 = vpop.f32.mrb[90].mxu0  ;;  %v7681_v55 = vadd.f32 %v15948_v9, %v7179_v62 }
0x11cf   :  { %9286 = vst.msk [vmem:[%s16607_s5 + $0x30] sm:$0xff] %vm9279_vm2, %v10426_v21  ;;  %v10428_v31 = vadd.f32 %v8923_v25, %v7673_v51  ;;  %v8925_v19 = vpop.f32.mrb[79].mxu1  ;;  %17859 = vst [vmem:[#allocation167_spill] sm:$0xff] %v16125_v50  ;;  %v7954_v21 = vpop.f32.mrb[91].mxu0 }
0x11d0   :  { %v16128_v56 = vpop.f32.mrb[92].mxu0  ;;  %v7184_v29 = vpop.permute.xlu0 %7183 }
0x11d1   :  { %9287 = vst.msk [vmem:[%s16607_s5 + $0x38] sm:$0xff] %vm9279_vm2, %v10428_v31  ;;  %9135 = vmatmul.mubr.bf16.gmra.mrb[184].mxu1 %v6993_v42  ;;  %v7959_v11 = vpop.f32.mrb[93].mxu0  ;;  %v7686_v9 = vadd.f32 %v15950_v0, %v7184_v29 }
0x11d2   :  { %9142 = vmatprep.mubr.bf16.mxu1 %v7002_v2  ;;  %v7010_v2 = vld [vmem:[#allocation2 + $0x838] sm:$0xff]  ;;  %v16134_v50 = vpop.f32.mrb[94].mxu0 }
0x11d3   :  { %v7962_v11 = vpop.f32.mrb[95].mxu0 }
0x11d4   :  { %v8928_v51 = vpop.f32.mrb[80].mxu1 }
0x11d5   :  { %v10430_v10 = vadd.f32 %v8928_v51, %v7678_v8  ;;  %v8930_v25 = vpop.f32.mrb[81].mxu1  ;;  %v16141_v8 = vpop.f32.mrb[96].mxu0 }
0x11d6   :  { %v8931_v19 = vpop.f32.mrb[82].mxu1  ;;  %17860 = vst [vmem:[#allocation209_spill] sm:$0xff] %v16141_v8  ;;  %v7967_v62 = vpop.f32.mrb[97].mxu0 }
0x11d7   :  { %9288 = vst.msk [vmem:[%s16607_s5 + $0x40] sm:$0xff] %vm9279_vm2, %v10430_v10  ;;  %v10432_v42 = vadd.f32 %v8931_v19, %v7681_v55  ;;  %v8933_v31 = vpop.f32.mrb[83].mxu1  ;;  %v7189_v51 = vpop.permute.xlu1 %7188 }
0x11d8   :  { %v7689_v55 = vadd.f32 %v15952_v60, %v7189_v51  ;;  %v16144_v19 = vpop.f32.mrb[98].mxu0  ;;  %v7009_v31 = vld [vmem:[#allocation2 + $0x830] sm:$0xff]  ;;  %v7194_v62 = vpop.permute.xlu0 %7193 }
0x11d9   :  { %9289 = vst.msk [vmem:[%s16607_s5 + $0x48] sm:$0xff] %vm9279_vm2, %v10432_v42  ;;  %9143 = vmatmul.mubr.bf16.gmra.mrb[188].mxu1 %v7001_v53  ;;  %v7970_v29 = vpop.f32.mrb[99].mxu0  ;;  %v7694_v60 = vadd.f32 %v15954_v7, %v7194_v62 }
0x11da   :  { %9150 = vmatprep.mubr.bf16.mxu1 %v7010_v2  ;;  %v7018_v2 = vld [vmem:[#allocation2 + $0x878] sm:$0xff]  ;;  %v16150_v11 = vpop.f32.mrb[100].mxu0 }
0x11db   :  { %v7975_v8 = vpop.f32.mrb[101].mxu0 }
0x11dc   :  { %v8936_v21 = vpop.f32.mrb[84].mxu1 }
0x11dd   :  { %v10434_v10 = vadd.f32 %v8936_v21, %v7686_v9  ;;  %v8938_v25 = vpop.f32.mrb[85].mxu1  ;;  %v16157_v9 = vpop.f32.mrb[102].mxu0 }
0x11de   :  { %v8939_v0 = vpop.f32.mrb[86].mxu1  ;;  %v7978_v51 = vpop.f32.mrb[103].mxu0 }
0x11df   :  { %9290 = vst.msk [vmem:[%s16607_s5 + $0x50] sm:$0xff] %vm9279_vm2, %v10434_v10  ;;  %v10436_v53 = vadd.f32 %v8939_v0, %v7689_v55  ;;  %v8941_v42 = vpop.f32.mrb[87].mxu1  ;;  %v7199_v21 = vpop.permute.xlu1 %7198 }
0x11e0   :  { %v16159_v55 = vpop.f32.mrb[104].mxu0  ;;  %v7697_v0 = vadd.f32 %v15956_v12, %v7199_v21  ;;  %v7017_v42 = vld [vmem:[#allocation2 + $0x870] sm:$0xff]  ;;  %v7204_v51 = vpop.permute.xlu0 %7203 }
0x11e1   :  { %9291 = vst.msk [vmem:[%s16607_s5 + $0x58] sm:$0xff] %vm9279_vm2, %v10436_v53  ;;  %9151 = vmatmul.mubr.bf16.gmra.mrb[192].mxu1 %v7009_v31  ;;  %17861 = vst [vmem:[#allocation218_spill] sm:$0xff] %v16159_v55  ;;  %v7983_v25 = vpop.f32.mrb[105].mxu0 }
0x11e2   :  { %9158 = vmatprep.mubr.bf16.mxu1 %v7018_v2  ;;  %v7026_v2 = vld [vmem:[#allocation2 + $0x8b8] sm:$0xff]  ;;  %v16166_v62 = vpop.f32.mrb[106].mxu0  ;;  %v7702_v25 = vadd.f32 %v15958_v15, %v7204_v51  ;;  %v7025_v51 = vld [vmem:[#allocation2 + $0x8b0] sm:$0xff] }
0x11e3   :  { %17862 = vst [vmem:[#allocation212_spill] sm:$0xff] %v16166_v62  ;;  %v7986_v55 = vpop.f32.mrb[107].mxu0  ;;  %v7209_v21 = vpop.permute.xlu1 %7208 }
0x11e4   :  { %v8944_v10 = vpop.f32.mrb[88].mxu1  ;;  %v16173_v12 = vpop.f32.mrb[108].mxu0 }
0x11e5   :  { %v10438_v8 = vadd.f32 %v8944_v10, %v7694_v60  ;;  %v8946_v29 = vpop.f32.mrb[89].mxu1  ;;  %v7991_v60 = vpop.f32.mrb[109].mxu0 }
0x11e6   :  { %v8947_v7 = vpop.f32.mrb[90].mxu1  ;;  %v16175_v10 = vpop.f32.mrb[110].mxu0  ;;  %v7705_v29 = vadd.f32 %v15960_v14, %v7209_v21 }
0x11e7   :  { %9292 = vst.msk [vmem:[%s16607_s5 + $0x60] sm:$0xff] %vm9279_vm2, %v10438_v8  ;;  %v10440_v31 = vadd.f32 %v8947_v7, %v7697_v0  ;;  %v8949_v53 = vpop.f32.mrb[91].mxu1  ;;  %17863 = vst [vmem:[#allocation172_spill] sm:$0xff] %v16175_v10  ;;  %v7994_v8 = vpop.f32.mrb[111].mxu0 }
0x11e8   :  { %v16178_v15 = vpop.f32.mrb[112].mxu0  ;;  %v7214_v60 = vpop.permute.xlu0 %7213 }
0x11e9   :  { %9293 = vst.msk [vmem:[%s16607_s5 + $0x68] sm:$0xff] %vm9279_vm2, %v10440_v31  ;;  %9159 = vmatmul.mubr.bf16.gmra.mrb[196].mxu1 %v7017_v42  ;;  %v7999_v62 = vpop.f32.mrb[113].mxu0  ;;  %v7710_v14 = vadd.f32 %v15962_v57, %v7214_v60 }
0x11ea   :  { %9166 = vmatprep.mubr.bf16.mxu1 %v7026_v2  ;;  %v7034_v2 = vld [vmem:[#allocation2 + $0x8f8] sm:$0xff]  ;;  %v16184_v10 = vpop.f32.mrb[114].mxu0 }
0x11eb   :  { %v8002_v62 = vpop.f32.mrb[115].mxu0 }
0x11ec   :  { %v8952_v0 = vpop.f32.mrb[92].mxu1 }
0x11ed   :  { %v10442_v55 = vadd.f32 %v8952_v0, %v7702_v25  ;;  %v8954_v7 = vpop.f32.mrb[93].mxu1  ;;  %v16191_v25 = vpop.f32.mrb[116].mxu0 }
0x11ee   :  { %v8955_v53 = vpop.f32.mrb[94].mxu1  ;;  %17864 = vst [vmem:[#allocation213_spill] sm:$0xff] %v16191_v25  ;;  %v8007_v21 = vpop.f32.mrb[117].mxu0 }
0x11ef   :  { %9294 = vst.msk [vmem:[%s16607_s5 + $0x70] sm:$0xff] %vm9279_vm2, %v10442_v55  ;;  %v10444_v42 = vadd.f32 %v8955_v53, %v7705_v29  ;;  %v8957_v31 = vpop.f32.mrb[95].mxu1  ;;  %v7219_v0 = vpop.permute.xlu1 %7218 }
0x11f0   :  { %v7713_v29 = vadd.f32 %v15964_v49, %v7219_v0  ;;  %v16194_v53 = vpop.f32.mrb[118].mxu0  ;;  %v7033_v31 = vld [vmem:[#allocation2 + $0x8f0] sm:$0xff]  ;;  %v7224_v21 = vpop.permute.xlu0 %7223 }
0x11f1   :  { %9295 = vst.msk [vmem:[%s16607_s5 + $0x78] sm:$0xff] %vm9279_vm2, %v10444_v42  ;;  %9167 = vmatmul.mubr.bf16.gmra.mrb[200].mxu1 %v7025_v51  ;;  %v8010_v60 = vpop.f32.mrb[119].mxu0  ;;  %v7718_v49 = vadd.f32 %v15966_v26, %v7224_v21 }
0x11f2   :  { %9174 = vmatprep.mubr.bf16.mxu1 %v7034_v2  ;;  %v7042_v2 = vld [vmem:[#allocation2 + $0x938] sm:$0xff]  ;;  %v16200_v62 = vpop.f32.mrb[120].mxu0 }
0x11f3   :  { %v8015_v25 = vpop.f32.mrb[121].mxu0 }
0x11f4   :  { %v8960_v8 = vpop.f32.mrb[96].mxu1 }
0x11f5   :  { %v10446_v55 = vadd.f32 %v8960_v8, %v7710_v14  ;;  %v8962_v7 = vpop.f32.mrb[97].mxu1  ;;  %v16207_v14 = vpop.f32.mrb[122].mxu0 }
0x11f6   :  { %v8963_v57 = vpop.f32.mrb[98].mxu1  ;;  %v8018_v0 = vpop.f32.mrb[123].mxu0 }
0x11f7   :  { %9296 = vst.msk [vmem:[%s16607_s5 + $0x80] sm:$0xff] %vm9279_vm2, %v10446_v55  ;;  %v10448_v51 = vadd.f32 %v8963_v57, %v7713_v29  ;;  %v8965_v42 = vpop.f32.mrb[99].mxu1  ;;  %v7229_v8 = vpop.permute.xlu1 %7228 }
0x11f8   :  { %v16209_v29 = vpop.f32.mrb[124].mxu0  ;;  %v7721_v57 = vadd.f32 %v15968_v17, %v7229_v8  ;;  %v7041_v42 = vld [vmem:[#allocation2 + $0x930] sm:$0xff]  ;;  %v7234_v0 = vpop.permute.xlu0 %7233 }
0x11f9   :  { %9297 = vst.msk [vmem:[%s16607_s5 + $0x88] sm:$0xff] %vm9279_vm2, %v10448_v51  ;;  %9175 = vmatmul.mubr.bf16.gmra.mrb[204].mxu1 %v7033_v31  ;;  %17865 = vst [vmem:[#allocation134_spill] sm:$0xff] %v16209_v29  ;;  %v8023_v7 = vpop.f32.mrb[125].mxu0 }
0x11fa   :  { %9182 = vmatprep.mubr.bf16.mxu1 %v7042_v2  ;;  %v7050_v2 = vld [vmem:[#allocation2 + $0x978] sm:$0xff]  ;;  %v16216_v21 = vpop.f32.mrb[126].mxu0  ;;  %v7726_v7 = vadd.f32 %v15970_v52, %v7234_v0 }
0x11fb   :  { %v8026_v29 = vpop.f32.mrb[127].mxu0  ;;  %v7239_v17 = vpop.permute.xlu1 %7238 }
0x11fc   :  { %v8968_v55 = vpop.f32.mrb[100].mxu1  ;;  %v7729_v8 = vadd.f32 %v15972_v16, %v7239_v17 }
0x11fd   :  { %v10450_v25 = vadd.f32 %v8968_v55, %v7718_v49  ;;  %v8970_v60 = vpop.f32.mrb[101].mxu1 }
0x11fe   :  { %v8971_v26 = vpop.f32.mrb[102].mxu1  ;;  %v7049_v60 = vld [vmem:[#allocation2 + $0x970] sm:$0xff] }
0x11ff   :  { %9298 = vst.msk [vmem:[%s16607_s5 + $0x90] sm:$0xff] %vm9279_vm2, %v10450_v25  ;;  %v10452_v31 = vadd.f32 %v8971_v26, %v7721_v57  ;;  %v8973_v51 = vpop.f32.mrb[103].mxu1  ;;  %v7058_v26 = vld [vmem:[#allocation2 + $0x9b8] sm:$0xff]  ;;  %v7249_v16 = vpop.permute.xlu1 %7248 }
0x1200   :  { %v7244_v51 = vpop.permute.xlu0 %7243 }
0x1201   :  { %9299 = vst.msk [vmem:[%s16607_s5 + $0x98] sm:$0xff] %vm9279_vm2, %v10452_v31  ;;  %9183 = vmatmul.mubr.bf16.gmra.mrb[208].mxu1 %v7041_v42  ;;  %v7734_v42 = vadd.f32 %v15974_v30, %v7244_v51 }
0x1202   :  { %9190 = vmatprep.mubr.bf16.mxu1 %v7050_v2  ;;  %v7737_v2 = vadd.f32 %v15976_v61, %v7249_v16 }
0x1203   :  { %v7259_v61 = vpop.permute.xlu1 %7258 }
0x1204   :  { %v8976_v49 = vpop.f32.mrb[104].mxu1 }
0x1205   :  { %v10454_v55 = vadd.f32 %v8976_v49, %v7726_v7  ;;  %v8978_v57 = vpop.f32.mrb[105].mxu1  ;;  %v7057_v49 = vld [vmem:[#allocation2 + $0x9b0] sm:$0xff] }
0x1206   :  { %v8979_v25 = vpop.f32.mrb[106].mxu1  ;;  %v7254_v57 = vpop.permute.xlu0 %7253 }
0x1207   :  { %9300 = vst.msk [vmem:[%s16607_s5 + $0xa0] sm:$0xff] %vm9279_vm2, %v10454_v55  ;;  %v10456_v52 = vadd.f32 %v8979_v25, %v7729_v8  ;;  %v8981_v29 = vpop.f32.mrb[107].mxu1  ;;  %v7066_v55 = vld [vmem:[#allocation2 + $0x9f8] sm:$0xff]  ;;  %v7742_v25 = vadd.f32 %v15978_v43, %v7254_v57 }
0x1209   :  { %9301 = vst.msk [vmem:[%s16607_s5 + $0xa8] sm:$0xff] %vm9279_vm2, %v10456_v52  ;;  %9191 = vmatmul.mubr.bf16.gmra.mrb[212].mxu1 %v7049_v60  ;;  %v7745_v52 = vadd.f32 %v15980_v59, %v7259_v61  ;;  %v7269_v59 = vpop.permute.xlu1 %7268 }
0x120a   :  { %9198 = vmatprep.mubr.bf16.mxu1 %v7058_v26 }
0x120c   :  { %v8984_v31 = vpop.f32.mrb[108].mxu1 }
0x120d   :  { %v10458_v0 = vadd.f32 %v8984_v31, %v7734_v42  ;;  %v8986_v7 = vpop.f32.mrb[109].mxu1  ;;  %v7065_v42 = vld [vmem:[#allocation2 + $0x9f0] sm:$0xff]  ;;  %v7074_v31 = vld [vmem:[#allocation2 + $0xa38] sm:$0xff] }
0x120e   :  { %v8987_v17 = vpop.f32.mrb[110].mxu1 }
0x120f   :  { %9302 = vst.msk [vmem:[%s16607_s5 + $0xb0] sm:$0xff] %vm9279_vm2, %v10458_v0  ;;  %v10460_v30 = vadd.f32 %v8987_v17, %v7737_v2  ;;  %v8989_v8 = vpop.f32.mrb[111].mxu1  ;;  %v7264_v2 = vpop.permute.xlu0 %7263  ;;  %v7753_v17 = vadd.f32 %v15984_v23, %v7269_v59 }
0x1210   :  { %v7750_v0 = vadd.f32 %v15982_v38, %v7264_v2  ;;  %v7279_v23 = vpop.permute.xlu1 %7278 }
0x1211   :  { %9303 = vst.msk [vmem:[%s16607_s5 + $0xb8] sm:$0xff] %vm9279_vm2, %v10460_v30  ;;  %9199 = vmatmul.mubr.bf16.gmra.mrb[216].mxu1 %v7057_v49 }
0x1212   :  { %9206 = vmatprep.mubr.bf16.mxu1 %v7066_v55  ;;  %v7073_v55 = vld [vmem:[#allocation2 + $0xa30] sm:$0xff] }
0x1213   :  { %v7274_v61 = vpop.permute.xlu0 %7273 }
0x1214   :  { %v8992_v60 = vpop.f32.mrb[112].mxu1 }
0x1215   :  { %v10462_v29 = vadd.f32 %v8992_v60, %v7742_v25  ;;  %v8994_v26 = vpop.f32.mrb[113].mxu1  ;;  %v7082_v25 = vld [vmem:[#allocation2 + $0xa78] sm:$0xff]  ;;  %v7758_v60 = vadd.f32 %v15986_v58, %v7274_v61 }
0x1216   :  { %v8995_v51 = vpop.f32.mrb[114].mxu1 }
0x1217   :  { %9304 = vst.msk [vmem:[%s16607_s5 + $0xc0] sm:$0xff] %vm9279_vm2, %v10462_v29  ;;  %v10464_v43 = vadd.f32 %v8995_v51, %v7745_v52  ;;  %v8997_v16 = vpop.f32.mrb[115].mxu1  ;;  %v7761_v29 = vadd.f32 %v15988_v13, %v7279_v23  ;;  %v7284_v2 = vpop.permute.xlu0 %7283 }
0x1218   :  { %v7289_v13 = vpop.permute.xlu1 %7288 }
0x1219   :  { %9305 = vst.msk [vmem:[%s16607_s5 + $0xc8] sm:$0xff] %vm9279_vm2, %v10464_v43  ;;  %9207 = vmatmul.mubr.bf16.gmra.mrb[220].mxu1 %v7065_v42  ;;  %v7081_v43 = vld [vmem:[#allocation2 + $0xa70] sm:$0xff] }
0x121a   :  { %9214 = vmatprep.mubr.bf16.mxu1 %v7074_v31  ;;  %v7090_v31 = vld [vmem:[#allocation2 + $0xab8] sm:$0xff] }
0x121c   :  { %v9000_v7 = vpop.f32.mrb[116].mxu1 }
0x121d   :  { %v10466_v49 = vadd.f32 %v9000_v7, %v7750_v0  ;;  %v9002_v30 = vpop.f32.mrb[117].mxu1  ;;  %v7766_v0 = vadd.f32 %v15990_v18, %v7284_v2  ;;  %v7769_v7 = vadd.f32 %v15992_v47, %v7289_v13  ;;  %v7299_v47 = vpop.permute.xlu1 %7298 }
0x121e   :  { %v9003_v8 = vpop.f32.mrb[118].mxu1 }
0x121f   :  { %9306 = vst.msk [vmem:[%s16607_s5 + $0xd0] sm:$0xff] %vm9279_vm2, %v10466_v49  ;;  %v10468_v38 = vadd.f32 %v9003_v8, %v7753_v17  ;;  %v9005_v57 = vpop.f32.mrb[119].mxu1  ;;  %v7089_v8 = vld [vmem:[#allocation2 + $0xab0] sm:$0xff] }
0x1220   :  { %v7294_v57 = vpop.permute.xlu0 %7293 }
0x1221   :  { %9307 = vst.msk [vmem:[%s16607_s5 + $0xd8] sm:$0xff] %vm9279_vm2, %v10468_v38  ;;  %9215 = vmatmul.mubr.bf16.gmra.mrb[224].mxu1 %v7073_v55  ;;  %v7098_v38 = vld [vmem:[#allocation2 + $0xaf8] sm:$0xff] }
0x1222   :  { %9222 = vmatprep.mubr.bf16.mxu1 %v7082_v25  ;;  %v7774_v25 = vadd.f32 %v15994_v32, %v7294_v57 }
0x1224   :  { %v9008_v52 = vpop.f32.mrb[120].mxu1 }
0x1225   :  { %v10470_v26 = vadd.f32 %v9008_v52, %v7758_v60  ;;  %v9010_v51 = vpop.f32.mrb[121].mxu1  ;;  %v7777_v60 = vadd.f32 %v15996_v63, %v7299_v47  ;;  %v7309_v63 = vpop.permute.xlu1 %7308 }
0x1226   :  { %v9011_v42 = vpop.f32.mrb[122].mxu1 }
0x1227   :  { %9308 = vst.msk [vmem:[%s16607_s5 + $0xe0] sm:$0xff] %vm9279_vm2, %v10470_v26  ;;  %v10472_v58 = vadd.f32 %v9011_v42, %v7761_v29  ;;  %v9013_v16 = vpop.f32.mrb[123].mxu1  ;;  %v7097_v26 = vld [vmem:[#allocation2 + $0xaf0] sm:$0xff]  ;;  %v7106_v42 = vld [vmem:[#allocation2 + $0xb38] sm:$0xff] }
0x1229   :  { %9309 = vst.msk [vmem:[%s16607_s5 + $0xe8] sm:$0xff] %vm9279_vm2, %v10472_v58  ;;  %9223 = vmatmul.mubr.bf16.gmra.mrb[228].mxu1 %v7081_v43  ;;  %v7304_v43 = vpop.permute.xlu0 %7303 }
0x122a   :  { %9230 = vmatprep.mubr.bf16.mxu1 %v7090_v31  ;;  %v7782_v58 = vadd.f32 %v15998_v28, %v7304_v43  ;;  %v7785_v31 = vadd.f32 %v16000_v35, %v7309_v63  ;;  %v7319_v35 = vpop.permute.xlu1 %7318 }
0x122c   :  { %v9016_v59 = vpop.f32.mrb[124].mxu1 }
0x122d   :  { %v10474_v17 = vadd.f32 %v9016_v59, %v7766_v0  ;;  %v9018_v49 = vpop.f32.mrb[125].mxu1  ;;  %v7105_v59 = vld [vmem:[#allocation2 + $0xb30] sm:$0xff] }
0x122e   :  { %v9019_v30 = vpop.f32.mrb[126].mxu1  ;;  %v7314_v49 = vpop.permute.xlu0 %7313 }
0x122f   :  { %9310 = vst.msk [vmem:[%s16607_s5 + $0xf0] sm:$0xff] %vm9279_vm2, %v10474_v17  ;;  %v10476_v18 = vadd.f32 %v9019_v30, %v7769_v7  ;;  %v9021_v55 = vpop.f32.mrb[127].mxu1  ;;  %v7114_v17 = vld [vmem:[#allocation2 + $0xb78] sm:$0xff]  ;;  %v7790_v30 = vadd.f32 %v16002_v45, %v7314_v49 }
0x1231   :  { %9311 = vst.msk [vmem:[%s16607_s5 + $0xf8] sm:$0xff] %vm9279_vm2, %v10476_v18  ;;  %9231 = vmatmul.mubr.bf16.gmra.mrb[232].mxu1 %v7089_v8  ;;  %v7793_v18 = vadd.f32 %v16004_v37, %v7319_v35  ;;  %v7329_v37 = vpop.permute.xlu1 %7328 }
0x1232   :  { %9238 = vmatprep.mubr.bf16.mxu1 %v7098_v38 }
0x1234   :  { %v9024_v61 = vpop.f32.mrb[128].mxu1 }
0x1235   :  { %v10478_v23 = vadd.f32 %v9024_v61, %v7774_v25  ;;  %v9026_v52 = vpop.f32.mrb[129].mxu1  ;;  %v7113_v25 = vld [vmem:[#allocation2 + $0xb70] sm:$0xff]  ;;  %v7122_v61 = vld [vmem:[#allocation2 + $0xbb8] sm:$0xff] }
0x1236   :  { %v9027_v29 = vpop.f32.mrb[130].mxu1 }
0x1237   :  { %9312 = vst.msk [vmem:[%s16607_s5 + $0x100] sm:$0xff] %vm9279_vm2, %v10478_v23  ;;  %v10480_v32 = vadd.f32 %v9027_v29, %v7777_v60  ;;  %v9029_v51 = vpop.f32.mrb[131].mxu1  ;;  %v7324_v60 = vpop.permute.xlu0 %7323  ;;  %v7801_v29 = vadd.f32 %v16008_v44, %v7329_v37 }
0x1238   :  { %v7798_v23 = vadd.f32 %v16006_v46, %v7324_v60  ;;  %v7339_v44 = vpop.permute.xlu1 %7338 }
0x1239   :  { %9313 = vst.msk [vmem:[%s16607_s5 + $0x108] sm:$0xff] %vm9279_vm2, %v10480_v32  ;;  %9239 = vmatmul.mubr.bf16.gmra.mrb[236].mxu1 %v7097_v26 }
0x123a   :  { %9246 = vmatprep.mubr.bf16.mxu1 %v7106_v42  ;;  %v7121_v42 = vld [vmem:[#allocation2 + $0xbb0] sm:$0xff] }
0x123b   :  { %v7334_v63 = vpop.permute.xlu0 %7333 }
0x123c   :  { %v9032_v16 = vpop.f32.mrb[132].mxu1 }
0x123d   :  { %v10482_v2 = vadd.f32 %v9032_v16, %v7782_v58  ;;  %v9034_v0 = vpop.f32.mrb[133].mxu1  ;;  %v7130_v58 = vld [vmem:[#allocation2 + $0xbf8] sm:$0xff]  ;;  %v7806_v16 = vadd.f32 %v16010_v33, %v7334_v63  ;;  %v17866_v63 = vld [vmem:[#allocation119_spill] sm:$0xff] }
0x123e   :  { %v9035_v13 = vpop.f32.mrb[134].mxu1 }
0x123f   :  { %9314 = vst.msk [vmem:[%s16607_s5 + $0x110] sm:$0xff] %vm9279_vm2, %v10482_v2  ;;  %v10484_v28 = vadd.f32 %v9035_v13, %v7785_v31  ;;  %v9037_v7 = vpop.f32.mrb[135].mxu1  ;;  %v7809_v2 = vadd.f32 %v16012_v4, %v7339_v44  ;;  %v7349_v4 = vpop.permute.xlu1 %7348 }
0x1240   :  { %v7817_v35 = vadd.f32 %v16016_v39, %v7349_v4 }
0x1241   :  { %9315 = vst.msk [vmem:[%s16607_s5 + $0x118] sm:$0xff] %vm9279_vm2, %v10484_v28  ;;  %9247 = vmatmul.mubr.bf16.gmra.mrb[240].mxu1 %v7105_v59  ;;  %v7129_v28 = vld [vmem:[#allocation2 + $0xbf0] sm:$0xff] }
0x1242   :  { %9254 = vmatprep.mubr.bf16.mxu1 %v7114_v17  ;;  %v7344_v17 = vpop.permute.xlu0 %7343 }
0x1243   :  { %v7814_v49 = vadd.f32 %v16014_v6, %v7344_v17  ;;  %v17868_v17 = vld [vmem:[#allocation185_spill] sm:$0xff] }
0x1244   :  { %v9040_v8 = vpop.f32.mrb[136].mxu1 }
0x1245   :  { %v10486_v55 = vadd.f32 %v9040_v8, %v7790_v30  ;;  %v9042_v38 = vpop.f32.mrb[137].mxu1 }
0x1246   :  { %v9043_v57 = vpop.f32.mrb[138].mxu1 }
0x1247   :  { %9316 = vst.msk [vmem:[%s16607_s5 + $0x120] sm:$0xff] %vm9279_vm2, %v10486_v55  ;;  %v10488_v45 = vadd.f32 %v9043_v57, %v7793_v18  ;;  %v9045_v47 = vpop.f32.mrb[139].mxu1  ;;  %v7354_v57 = vpop.permute.xlu0 %7353 }
0x1249   :  { %9317 = vst.msk [vmem:[%s16607_s5 + $0x128] sm:$0xff] %vm9279_vm2, %v10488_v45  ;;  %9255 = vmatmul.mubr.bf16.gmra.mrb[244].mxu1 %v7113_v25  ;;  %v7822_v25 = vadd.f32 %v16018_v5, %v7354_v57  ;;  %v7359_v45 = vpop.permute.xlu1 %7358 }
0x124a   :  { %9262 = vmatprep.mubr.bf16.mxu1 %v7122_v61  ;;  %v7825_v47 = vadd.f32 %v16020_v24, %v7359_v45  ;;  %v17870_v45 = vld [vmem:[#allocation189_spill] sm:$0xff] }
0x124b   :  { %v7364_v5 = vpop.permute.xlu0 %7363 }
0x124c   :  { %v9048_v52 = vpop.f32.mrb[140].mxu1 }
0x124d   :  { %v10490_v26 = vadd.f32 %v9048_v52, %v7798_v23  ;;  %v9050_v32 = vpop.f32.mrb[141].mxu1 }
0x124e   :  { %v9051_v51 = vpop.f32.mrb[142].mxu1 }
0x124f   :  { %9318 = vst.msk [vmem:[%s16607_s5 + $0x130] sm:$0xff] %vm9279_vm2, %v10490_v26  ;;  %v10492_v46 = vadd.f32 %v9051_v51, %v7801_v29  ;;  %v9053_v43 = vpop.f32.mrb[143].mxu1  ;;  %v7830_v29 = vadd.f32 %v16022_v1, %v7364_v5  ;;  %v7369_v26 = vpop.permute.xlu1 %7368 }
0x1250   :  { %v7833_v32 = vadd.f32 %v16024_v34, %v7369_v26  ;;  %v7374_v1 = vpop.permute.xlu0 %7373 }
0x1251   :  { %9319 = vst.msk [vmem:[%s16607_s5 + $0x138] sm:$0xff] %vm9279_vm2, %v10492_v46  ;;  %9263 = vmatmul.mubr.bf16.gmra.mrb[248].mxu1 %v7121_v42 }
0x1252   :  { %9270 = vmatprep.mubr.bf16.mxu1 %v7130_v58 }
0x1253   :  { %v7379_v44 = vpop.permute.xlu1 %7378 }
0x1254   :  { %v9056_v31 = vpop.f32.mrb[144].mxu1 }
0x1255   :  { %v10494_v0 = vadd.f32 %v9056_v31, %v7806_v16  ;;  %v9058_v13 = vpop.f32.mrb[145].mxu1  ;;  %v7838_v16 = vadd.f32 %v17866_v63, %v7374_v1  ;;  %v17867_v31 = vld [vmem:[#allocation184_spill] sm:$0xff] }
0x1256   :  { %v9059_v59 = vpop.f32.mrb[146].mxu1 }
0x1257   :  { %9320 = vst.msk [vmem:[%s16607_s5 + $0x140] sm:$0xff] %vm9279_vm2, %v10494_v0  ;;  %v10496_v33 = vadd.f32 %v9059_v59, %v7809_v2  ;;  %v9061_v7 = vpop.f32.mrb[147].mxu1  ;;  %v7841_v2 = vadd.f32 %v17867_v31, %v7379_v44  ;;  %v7389_v4 = vpop.permute.xlu1 %7388 }
0x1258   :  { %v7384_v7 = vpop.permute.xlu0 %7383 }
0x1259   :  { %9321 = vst.msk [vmem:[%s16607_s5 + $0x148] sm:$0xff] %vm9279_vm2, %v10496_v33  ;;  %9271 = vmatmul.mubr.bf16.gmra.mrb[252].mxu1 %v7129_v28 }
0x125c   :  { %v9064_v30 = vpop.f32.mrb[148].mxu1 }
0x125d   :  { %v10498_v8 = vadd.f32 %v9064_v30, %v7814_v49  ;;  %v9066_v18 = vpop.f32.mrb[149].mxu1  ;;  %v7846_v49 = vadd.f32 %v17868_v17, %v7384_v7 }
0x125e   :  { %v9067_v55 = vpop.f32.mrb[150].mxu1 }
0x125f   :  { %9322 = vst.msk [vmem:[%s16607_s5 + $0x150] sm:$0xff] %vm9279_vm2, %v10498_v8  ;;  %v10500_v38 = vadd.f32 %v9067_v55, %v7817_v35  ;;  %v9069_v6 = vpop.f32.mrb[151].mxu1  ;;  %v17869_v35 = vld [vmem:[#allocation188_spill] sm:$0xff] }
0x1260   :  { %v7849_v8 = vadd.f32 %v17869_v35, %v7389_v4 }
0x1261   :  { %9323 = vst.msk [vmem:[%s16607_s5 + $0x158] sm:$0xff] %vm9279_vm2, %v10500_v38 }
0x1264   :  { %v9072_v39 = vpop.f32.mrb[152].mxu1 }
0x1265   :  { %v10502_v61 = vadd.f32 %v9072_v39, %v7822_v25  ;;  %v9074_v60 = vpop.f32.mrb[153].mxu1  ;;  %v7394_v25 = vpop.permute.xlu0 %7393 }
0x1266   :  { %v9075_v23 = vpop.f32.mrb[154].mxu1  ;;  %v7854_v39 = vadd.f32 %v17870_v45, %v7394_v25  ;;  %v17871_v60 = vld [vmem:[#allocation192_spill] sm:$0xff] }
0x1267   :  { %9324 = vst.msk [vmem:[%s16607_s5 + $0x160] sm:$0xff] %vm9279_vm2, %v10502_v61  ;;  %v10504_v37 = vadd.f32 %v9075_v23, %v7825_v47  ;;  %v9077_v52 = vpop.f32.mrb[155].mxu1  ;;  %v7399_v47 = vpop.permute.xlu1 %7398 }
0x1268   :  { %v7857_v23 = vadd.f32 %v17871_v60, %v7399_v47 }
0x1269   :  { %9325 = vst.msk [vmem:[%s16607_s5 + $0x168] sm:$0xff] %vm9279_vm2, %v10504_v37 }
0x126c   :  { %v9080_v24 = vpop.f32.mrb[156].mxu1 }
0x126d   :  { %v10506_v51 = vadd.f32 %v9080_v24, %v7830_v29  ;;  %v9082_v42 = vpop.f32.mrb[157].mxu1  ;;  %v7404_v24 = vpop.permute.xlu0 %7403 }
0x126e   :  { %v9083_v46 = vpop.f32.mrb[158].mxu1  ;;  %v7409_v42 = vpop.permute.xlu1 %7408 }
0x126f   :  { %9326 = vst.msk [vmem:[%s16607_s5 + $0x170] sm:$0xff] %vm9279_vm2, %v10506_v51  ;;  %v10508_v43 = vadd.f32 %v9083_v46, %v7833_v32  ;;  %v9085_v58 = vpop.f32.mrb[159].mxu1  ;;  %v17872_v32 = vld [vmem:[#allocation193_spill] sm:$0xff] }
0x1270   :  { %v7862_v51 = vadd.f32 %v17872_v32, %v7404_v24 }
0x1271   :  { %9327 = vst.msk [vmem:[%s16607_s5 + $0x178] sm:$0xff] %vm9279_vm2, %v10508_v43  ;;  %v17873_v43 = vld [vmem:[#allocation196_spill] sm:$0xff]  ;;  %v7414_v31 = vpop.permute.xlu0 %7413 }
0x1272   :  { %v7865_v58 = vadd.f32 %v17873_v43, %v7409_v42 }
0x1274   :  { %v9088_v34 = vpop.f32.mrb[160].mxu1 }
0x1275   :  { %v10510_v0 = vadd.f32 %v9088_v34, %v7838_v16  ;;  %v9090_v13 = vpop.f32.mrb[161].mxu1  ;;  %v7424_v35 = vpop.permute.xlu0 %7423 }
0x1276   :  { %v9091_v59 = vpop.f32.mrb[162].mxu1  ;;  %v7419_v13 = vpop.permute.xlu1 %7418 }
0x1277   :  { %9328 = vst.msk [vmem:[%s16607_s5 + $0x180] sm:$0xff] %vm9279_vm2, %v10510_v0  ;;  %v10512_v28 = vadd.f32 %v9091_v59, %v7841_v2  ;;  %v9093_v33 = vpop.f32.mrb[163].mxu1  ;;  %v17874_v2 = vld [vmem:[#allocation215_spill] sm:$0xff] }
0x1278   :  { %v7870_v0 = vadd.f32 %v17874_v2, %v7414_v31 }
0x1279   :  { %9329 = vst.msk [vmem:[%s16607_s5 + $0x188] sm:$0xff] %vm9279_vm2, %v10512_v28  ;;  %v17875_v28 = vld [vmem:[#allocation197_spill] sm:$0xff]  ;;  %v7434_v60 = vpop.permute.xlu0 %7433 }
0x127a   :  { %v7873_v33 = vadd.f32 %v17875_v28, %v7419_v13  ;;  %v17881_v28 = vld [vmem:[#allocation204_spill] sm:$0xff] }
0x127c   :  { %v9096_v30 = vpop.f32.mrb[164].mxu1 }
0x127d   :  { %v10514_v18 = vadd.f32 %v9096_v30, %v7846_v49  ;;  %v9098_v55 = vpop.f32.mrb[165].mxu1  ;;  %v7444_v43 = vpop.permute.xlu0 %7443 }
0x127e   :  { %v9099_v38 = vpop.f32.mrb[166].mxu1  ;;  %v7429_v55 = vpop.permute.xlu1 %7428 }
0x127f   :  { %9330 = vst.msk [vmem:[%s16607_s5 + $0x190] sm:$0xff] %vm9279_vm2, %v10514_v18  ;;  %v10516_v6 = vadd.f32 %v9099_v38, %v7849_v8  ;;  %v9101_v57 = vpop.f32.mrb[167].mxu1  ;;  %v17876_v8 = vld [vmem:[#allocation156_spill] sm:$0xff] }
0x1280   :  { %v7878_v18 = vadd.f32 %v17876_v8, %v7424_v35 }
0x1281   :  { %9331 = vst.msk [vmem:[%s16607_s5 + $0x198] sm:$0xff] %vm9279_vm2, %v10516_v6  ;;  %v17877_v6 = vld [vmem:[#allocation200_spill] sm:$0xff] }
0x1282   :  { %v7881_v57 = vadd.f32 %v17877_v6, %v7429_v55 }
0x1284   :  { %v9104_v61 = vpop.f32.mrb[168].mxu1 }
0x1285   :  { %v10518_v37 = vadd.f32 %v9104_v61, %v7854_v39  ;;  %v9106_v52 = vpop.f32.mrb[169].mxu1 }
0x1286   :  { %v9107_v5 = vpop.f32.mrb[170].mxu1  ;;  %v7439_v52 = vpop.permute.xlu1 %7438 }
0x1287   :  { %9332 = vst.msk [vmem:[%s16607_s5 + $0x1a0] sm:$0xff] %vm9279_vm2, %v10518_v37  ;;  %v10520_v29 = vadd.f32 %v9107_v5, %v7857_v23  ;;  %v9109_v26 = vpop.f32.mrb[171].mxu1  ;;  %v17878_v23 = vld [vmem:[#allocation214_spill] sm:$0xff] }
0x1288   :  { %v7886_v37 = vadd.f32 %v17878_v23, %v7434_v60 }
0x1289   :  { %9333 = vst.msk [vmem:[%s16607_s5 + $0x1a8] sm:$0xff] %vm9279_vm2, %v10520_v29  ;;  %v17879_v29 = vld [vmem:[#allocation201_spill] sm:$0xff] }
0x128a   :  { %v7889_v26 = vadd.f32 %v17879_v29, %v7439_v52 }
0x128c   :  { %v9112_v46 = vpop.f32.mrb[172].mxu1 }
0x128d   :  { %v10522_v1 = vadd.f32 %v9112_v46, %v7862_v51  ;;  %v9114_v63 = vpop.f32.mrb[173].mxu1 }
0x128e   :  { %v9115_v16 = vpop.f32.mrb[174].mxu1  ;;  %v7449_v63 = vpop.permute.xlu1 %7448 }
0x128f   :  { %9334 = vst.msk [vmem:[%s16607_s5 + $0x1b0] sm:$0xff] %vm9279_vm2, %v10522_v1  ;;  %v10524_v44 = vadd.f32 %v9115_v16, %v7865_v58  ;;  %v9117_v34 = vpop.f32.mrb[175].mxu1  ;;  %v17880_v58 = vld [vmem:[#allocation221_spill] sm:$0xff] }
0x1290   :  { %v7894_v1 = vadd.f32 %v17880_v58, %v7444_v43 }
0x1291   :  { %9335 = vst.msk [vmem:[%s16607_s5 + $0x1b8] sm:$0xff] %vm9279_vm2, %v10524_v44  ;;  %v7897_v44 = vadd.f32 %v16057_v54, %v7449_v63 }
0x1294   :  { %v9120_v59 = vpop.f32.mrb[176].mxu1 }
0x1295   :  { %v10526_v7 = vadd.f32 %v9120_v59, %v7870_v0  ;;  %v9122_v17 = vpop.f32.mrb[177].mxu1  ;;  %v7454_v59 = vpop.permute.xlu0 %7453 }
0x1296   :  { %v9123_v49 = vpop.f32.mrb[178].mxu1  ;;  %v17882_v17 = vld [vmem:[#allocation157_spill] sm:$0xff] }
0x1297   :  { %9336 = vst.msk [vmem:[%s16607_s5 + $0x1c0] sm:$0xff] %vm9279_vm2, %v10526_v7  ;;  %v10528_v4 = vadd.f32 %v9123_v49, %v7873_v33  ;;  %v9125_v30 = vpop.f32.mrb[179].mxu1  ;;  %v7902_v33 = vadd.f32 %v17881_v28, %v7454_v59  ;;  %v7459_v7 = vpop.permute.xlu1 %7458 }
0x1298   :  { %v7905_v49 = vadd.f32 %v17882_v17, %v7459_v7 }
0x1299   :  { %9337 = vst.msk [vmem:[%s16607_s5 + $0x1c8] sm:$0xff] %vm9279_vm2, %v10528_v4  ;;  %v7464_v55 = vpop.permute.xlu0 %7463 }
0x129b   :  { %v7469_v6 = vpop.permute.xlu1 %7468 }
0x129c   :  { %v9128_v38 = vpop.f32.mrb[180].mxu1 }
0x129d   :  { %v10530_v25 = vadd.f32 %v9128_v38, %v7878_v18  ;;  %v9130_v45 = vpop.f32.mrb[181].mxu1  ;;  %v7910_v38 = vadd.f32 %v16073_v27, %v7464_v55  ;;  %v7474_v27 = vpop.permute.xlu0 %7473 }
0x129e   :  { %v9131_v39 = vpop.f32.mrb[182].mxu1  ;;  %v7918_v23 = vadd.f32 %v16078_v36, %v7474_v27 }
0x129f   :  { %9338 = vst.msk [vmem:[%s16607_s5 + $0x1d0] sm:$0xff] %vm9279_vm2, %v10530_v25  ;;  %v10532_v47 = vadd.f32 %v9131_v39, %v7881_v57  ;;  %v9133_v61 = vpop.f32.mrb[183].mxu1  ;;  %v7913_v25 = vadd.f32 %v16075_v22, %v7469_v6 }
0x12a1   :  { %9339 = vst.msk [vmem:[%s16607_s5 + $0x1d8] sm:$0xff] %vm9279_vm2, %v10532_v47  ;;  %v7484_v36 = vpop.permute.xlu0 %7483 }
0x12a4   :  { %v9136_v5 = vpop.f32.mrb[184].mxu1 }
0x12a5   :  { %v10534_v24 = vadd.f32 %v9136_v5, %v7886_v37  ;;  %v9138_v32 = vpop.f32.mrb[185].mxu1  ;;  %v7479_v37 = vpop.permute.xlu1 %7478 }
0x12a6   :  { %v9139_v51 = vpop.f32.mrb[186].mxu1  ;;  %v7921_v52 = vadd.f32 %v16084_v48, %v7479_v37 }
0x12a7   :  { %9340 = vst.msk [vmem:[%s16607_s5 + $0x1e0] sm:$0xff] %vm9279_vm2, %v10534_v24  ;;  %v10536_v42 = vadd.f32 %v9139_v51, %v7889_v26  ;;  %v9141_v46 = vpop.f32.mrb[187].mxu1  ;;  %v17883_v51 = vld [vmem:[#allocation205_spill] sm:$0xff] }
0x12a9   :  { %9341 = vst.msk [vmem:[%s16607_s5 + $0x1e8] sm:$0xff] %vm9279_vm2, %v10536_v42  ;;  %v7926_v42 = vadd.f32 %v17883_v51, %v7484_v36  ;;  %v7489_v46 = vpop.permute.xlu1 %7488 }
0x12aa   :  { %v7929_v43 = vadd.f32 %v16094_v3, %v7489_v46 }
0x12ac   :  { %v9144_v16 = vpop.f32.mrb[188].mxu1 }
0x12ad   :  { %v10538_v34 = vadd.f32 %v9144_v16, %v7894_v1  ;;  %v9146_v31 = vpop.f32.mrb[189].mxu1 }
0x12ae   :  { %v9147_v2 = vpop.f32.mrb[190].mxu1 }
0x12af   :  { %9342 = vst.msk [vmem:[%s16607_s5 + $0x1f0] sm:$0xff] %vm9279_vm2, %v10538_v34  ;;  %v10540_v0 = vadd.f32 %v9147_v2, %v7897_v44  ;;  %v9149_v13 = vpop.f32.mrb[191].mxu1  ;;  %v7494_v34 = vpop.permute.xlu0 %7493 }
0x12b0   :  { %v7934_v31 = vadd.f32 %v16100_v20, %v7494_v34  ;;  %v7499_v2 = vpop.permute.xlu1 %7498 }
0x12b1   :  { %9343 = vst.msk [vmem:[%s16607_s5 + $0x1f8] sm:$0xff] %vm9279_vm2, %v10540_v0  ;;  %v7937_v0 = vadd.f32 %v16107_v41, %v7499_v2 }
0x12b3   :  { %v7504_v20 = vpop.permute.xlu0 %7503 }
0x12b4   :  { %v9152_v54 = vpop.f32.mrb[192].mxu1 }
0x12b5   :  { %v10542_v4 = vadd.f32 %v9152_v54, %v7902_v33  ;;  %v9154_v30 = vpop.f32.mrb[193].mxu1  ;;  %v17884_v54 = vld [vmem:[#allocation219_spill] sm:$0xff] }
0x12b6   :  { %v9155_v35 = vpop.f32.mrb[194].mxu1  ;;  %v7942_v17 = vadd.f32 %v17884_v54, %v7504_v20 }
0x12b7   :  { %9344 = vst.msk [vmem:[%s16607_s5 + $0x200] sm:$0xff] %vm9279_vm2, %v10542_v4  ;;  %v10544_v8 = vadd.f32 %v9155_v35, %v7905_v49  ;;  %v9157_v18 = vpop.f32.mrb[195].mxu1  ;;  %v7509_v49 = vpop.permute.xlu1 %7508  ;;  %v17885_v4 = vld [vmem:[#allocation208_spill] sm:$0xff] }
0x12b8   :  { %v7945_v30 = vadd.f32 %v17885_v4, %v7509_v49  ;;  %v7514_v6 = vpop.permute.xlu0 %7513 }
0x12b9   :  { %9345 = vst.msk [vmem:[%s16607_s5 + $0x208] sm:$0xff] %vm9279_vm2, %v10544_v8 }
0x12bc   :  { %v9160_v57 = vpop.f32.mrb[196].mxu1 }
0x12bd   :  { %v10546_v45 = vadd.f32 %v9160_v57, %v7910_v38  ;;  %v9162_v39 = vpop.f32.mrb[197].mxu1  ;;  %v7950_v57 = vadd.f32 %v16123_v40, %v7514_v6  ;;  %v7524_v40 = vpop.permute.xlu0 %7523 }
0x12be   :  { %v9163_v47 = vpop.f32.mrb[198].mxu1  ;;  %v17886_v39 = vld [vmem:[#allocation167_spill] sm:$0xff] }
0x12bf   :  { %9346 = vst.msk [vmem:[%s16607_s5 + $0x210] sm:$0xff] %vm9279_vm2, %v10546_v45  ;;  %v10548_v61 = vadd.f32 %v9163_v47, %v7913_v25  ;;  %v9165_v60 = vpop.f32.mrb[199].mxu1  ;;  %v7519_v25 = vpop.permute.xlu1 %7518 }
0x12c0   :  { %v7953_v47 = vadd.f32 %v17886_v39, %v7519_v25 }
0x12c1   :  { %9347 = vst.msk [vmem:[%s16607_s5 + $0x218] sm:$0xff] %vm9279_vm2, %v10548_v61 }
0x12c4   :  { %v9168_v22 = vpop.f32.mrb[200].mxu1 }
0x12c5   :  { %v10550_v5 = vadd.f32 %v9168_v22, %v7918_v23  ;;  %v9170_v29 = vpop.f32.mrb[201].mxu1  ;;  %v7958_v22 = vadd.f32 %v16128_v56, %v7524_v40  ;;  %v7534_v56 = vpop.permute.xlu0 %7533 }
0x12c6   :  { %v9171_v26 = vpop.f32.mrb[202].mxu1 }
0x12c7   :  { %9348 = vst.msk [vmem:[%s16607_s5 + $0x220] sm:$0xff] %vm9279_vm2, %v10550_v5  ;;  %v10552_v24 = vadd.f32 %v9171_v26, %v7921_v52  ;;  %v9173_v32 = vpop.f32.mrb[203].mxu1  ;;  %v7529_v52 = vpop.permute.xlu1 %7528 }
0x12c8   :  { %v7961_v29 = vadd.f32 %v16134_v50, %v7529_v52 }
0x12c9   :  { %9349 = vst.msk [vmem:[%s16607_s5 + $0x228] sm:$0xff] %vm9279_vm2, %v10552_v24  ;;  %v7544_v34 = vpop.permute.xlu0 %7543 }
0x12cc   :  { %v9176_v48 = vpop.f32.mrb[204].mxu1 }
0x12cd   :  { %v10554_v58 = vadd.f32 %v9176_v48, %v7926_v42  ;;  %v9178_v1 = vpop.f32.mrb[205].mxu1  ;;  %v17887_v42 = vld [vmem:[#allocation209_spill] sm:$0xff]  ;;  %v7539_v48 = vpop.permute.xlu1 %7538 }
0x12ce   :  { %v9179_v63 = vpop.f32.mrb[206].mxu1  ;;  %v7966_v46 = vadd.f32 %v17887_v42, %v7534_v56 }
0x12cf   :  { %9350 = vst.msk [vmem:[%s16607_s5 + $0x230] sm:$0xff] %vm9279_vm2, %v10554_v58  ;;  %v10556_v16 = vadd.f32 %v9179_v63, %v7929_v43  ;;  %v9181_v44 = vpop.f32.mrb[207].mxu1  ;;  %v7969_v43 = vadd.f32 %v16144_v19, %v7539_v48 }
0x12d1   :  { %9351 = vst.msk [vmem:[%s16607_s5 + $0x238] sm:$0xff] %vm9279_vm2, %v10556_v16  ;;  %v7549_v2 = vpop.permute.xlu1 %7548 }
0x12d4   :  { %v9184_v3 = vpop.f32.mrb[208].mxu1 }
0x12d5   :  { %v10558_v13 = vadd.f32 %v9184_v3, %v7934_v31  ;;  %v9186_v59 = vpop.f32.mrb[209].mxu1  ;;  %v7974_v31 = vadd.f32 %v16150_v11, %v7544_v34  ;;  %v7977_v3 = vadd.f32 %v16157_v9, %v7549_v2  ;;  %v7554_v11 = vpop.permute.xlu0 %7553 }
0x12d6   :  { %v9187_v28 = vpop.f32.mrb[210].mxu1  ;;  %v7559_v54 = vpop.permute.xlu1 %7558 }
0x12d7   :  { %9352 = vst.msk [vmem:[%s16607_s5 + $0x240] sm:$0xff] %vm9279_vm2, %v10558_v13  ;;  %v10560_v33 = vadd.f32 %v9187_v28, %v7937_v0  ;;  %v9189_v7 = vpop.f32.mrb[211].mxu1 }
0x12d8   :  { %v17888_v7 = vld [vmem:[#allocation218_spill] sm:$0xff] }
0x12d9   :  { %9353 = vst.msk [vmem:[%s16607_s5 + $0x248] sm:$0xff] %vm9279_vm2, %v10560_v33  ;;  %v7982_v20 = vadd.f32 %v17888_v7, %v7554_v11 }
0x12dc   :  { %v9192_v41 = vpop.f32.mrb[212].mxu1 }
0x12dd   :  { %v10562_v35 = vadd.f32 %v9192_v41, %v7942_v17  ;;  %v9194_v8 = vpop.f32.mrb[213].mxu1  ;;  %v17889_v17 = vld [vmem:[#allocation212_spill] sm:$0xff] }
0x12de   :  { %v9195_v18 = vpop.f32.mrb[214].mxu1  ;;  %v7985_v49 = vadd.f32 %v17889_v17, %v7559_v54 }
0x12df   :  { %9354 = vst.msk [vmem:[%s16607_s5 + $0x250] sm:$0xff] %vm9279_vm2, %v10562_v35  ;;  %v10564_v55 = vadd.f32 %v9195_v18, %v7945_v30  ;;  %v9197_v38 = vpop.f32.mrb[215].mxu1  ;;  %v7564_v18 = vpop.permute.xlu0 %7563 }
0x12e0   :  { %v7569_v38 = vpop.permute.xlu1 %7568 }
0x12e1   :  { %9355 = vst.msk [vmem:[%s16607_s5 + $0x258] sm:$0xff] %vm9279_vm2, %v10564_v55  ;;  %v7990_v55 = vadd.f32 %v16173_v12, %v7564_v18 }
0x12e3   :  { %v7574_v12 = vpop.permute.xlu0 %7573 }
0x12e4   :  { %v9200_v45 = vpop.f32.mrb[216].mxu1 }
0x12e5   :  { %v10566_v61 = vadd.f32 %v9200_v45, %v7950_v57  ;;  %v9202_v60 = vpop.f32.mrb[217].mxu1  ;;  %v17890_v57 = vld [vmem:[#allocation172_spill] sm:$0xff] }
0x12e6   :  { %v9203_v27 = vpop.f32.mrb[218].mxu1  ;;  %v7993_v25 = vadd.f32 %v17890_v57, %v7569_v38 }
0x12e7   :  { %9356 = vst.msk [vmem:[%s16607_s5 + $0x260] sm:$0xff] %vm9279_vm2, %v10566_v61  ;;  %v10568_v23 = vadd.f32 %v9203_v27, %v7953_v47  ;;  %v9205_v37 = vpop.f32.mrb[219].mxu1  ;;  %v7998_v27 = vadd.f32 %v16178_v15, %v7574_v12  ;;  %v7584_v15 = vpop.permute.xlu0 %7583 }
0x12e9   :  { %9357 = vst.msk [vmem:[%s16607_s5 + $0x268] sm:$0xff] %vm9279_vm2, %v10568_v23  ;;  %v7579_v23 = vpop.permute.xlu1 %7578 }
0x12ea   :  { %v8001_v40 = vadd.f32 %v16184_v10, %v7579_v23 }
0x12ec   :  { %v9208_v5 = vpop.f32.mrb[220].mxu1 }
0x12ed   :  { %v10570_v26 = vadd.f32 %v9208_v5, %v7958_v22  ;;  %v9210_v24 = vpop.f32.mrb[221].mxu1 }
0x12ee   :  { %v9211_v32 = vpop.f32.mrb[222].mxu1  ;;  %v17891_v24 = vld [vmem:[#allocation213_spill] sm:$0xff] }
0x12ef   :  { %9358 = vst.msk [vmem:[%s16607_s5 + $0x270] sm:$0xff] %vm9279_vm2, %v10570_v26  ;;  %v10572_v36 = vadd.f32 %v9211_v32, %v7961_v29  ;;  %v9213_v51 = vpop.f32.mrb[223].mxu1  ;;  %v8006_v32 = vadd.f32 %v17891_v24, %v7584_v15 }
0x12f1   :  { %9359 = vst.msk [vmem:[%s16607_s5 + $0x278] sm:$0xff] %vm9279_vm2, %v10572_v36  ;;  %v7589_v36 = vpop.permute.xlu1 %7588 }
0x12f2   :  { %v8009_v51 = vadd.f32 %v16194_v53, %v7589_v36 }
0x12f4   :  { %v9216_v50 = vpop.f32.mrb[224].mxu1 }
0x12f5   :  { %v10574_v58 = vadd.f32 %v9216_v50, %v7966_v46  ;;  %v9218_v1 = vpop.f32.mrb[225].mxu1 }
0x12f6   :  { %v9219_v63 = vpop.f32.mrb[226].mxu1  ;;  %v7599_v1 = vpop.permute.xlu1 %7598 }
0x12f7   :  { %9360 = vst.msk [vmem:[%s16607_s5 + $0x280] sm:$0xff] %vm9279_vm2, %v10574_v58  ;;  %v10576_v16 = vadd.f32 %v9219_v63, %v7969_v43  ;;  %v9221_v44 = vpop.f32.mrb[227].mxu1  ;;  %v7594_v43 = vpop.permute.xlu0 %7593  ;;  %v8017_v63 = vadd.f32 %v16207_v14, %v7599_v1 }
0x12f8   :  { %v8014_v58 = vadd.f32 %v16200_v62, %v7594_v43 }
0x12f9   :  { %9361 = vst.msk [vmem:[%s16607_s5 + $0x288] sm:$0xff] %vm9279_vm2, %v10576_v16 }
0x12fa   :  { %v7609_v62 = vpop.permute.xlu1 %7608 }
0x12fc   :  { %v9224_v19 = vpop.f32.mrb[228].mxu1 }
0x12fd   :  { %v10578_v0 = vadd.f32 %v9224_v19, %v7974_v31  ;;  %v9226_v13 = vpop.f32.mrb[229].mxu1  ;;  %v7604_v19 = vpop.permute.xlu0 %7603 }
0x12fe   :  { %v9227_v59 = vpop.f32.mrb[230].mxu1  ;;  %v8025_v13 = vadd.f32 %v16216_v21, %v7609_v62 }
0x12ff   :  { %9362 = vst.msk [vmem:[%s16607_s5 + $0x290] sm:$0xff] %vm9279_vm2, %v10578_v0  ;;  %v10580_v28 = vadd.f32 %v9227_v59, %v7977_v3  ;;  %v9229_v33 = vpop.f32.mrb[231].mxu1  ;;  %v17892_v3 = vld [vmem:[#allocation134_spill] sm:$0xff] }
0x1300   :  { %v8022_v0 = vadd.f32 %v17892_v3, %v7604_v19 }
0x1301   :  { %9363 = vst.msk [vmem:[%s16607_s5 + $0x298] sm:$0xff] %vm9279_vm2, %v10580_v28 }
0x1304   :  { %v9232_v9 = vpop.f32.mrb[232].mxu1 }
0x1305   :  { %v10582_v41 = vadd.f32 %v9232_v9, %v7982_v20  ;;  %v9234_v4 = vpop.f32.mrb[233].mxu1 }
0x1306   :  { %v9235_v30 = vpop.f32.mrb[234].mxu1 }
0x1307   :  { %9364 = vst.msk [vmem:[%s16607_s5 + $0x2a0] sm:$0xff] %vm9279_vm2, %v10582_v41  ;;  %v10584_v35 = vadd.f32 %v9235_v30, %v7985_v49  ;;  %v9237_v8 = vpop.f32.mrb[235].mxu1 }
0x1309   :  { %9365 = vst.msk [vmem:[%s16607_s5 + $0x2a8] sm:$0xff] %vm9279_vm2, %v10584_v35 }
0x130c   :  { %v9240_v6 = vpop.f32.mrb[236].mxu1 }
0x130d   :  { %v10586_v45 = vadd.f32 %v9240_v6, %v7990_v55  ;;  %v9242_v39 = vpop.f32.mrb[237].mxu1 }
0x130e   :  { %v9243_v47 = vpop.f32.mrb[238].mxu1 }
0x130f   :  { %9366 = vst.msk [vmem:[%s16607_s5 + $0x2b0] sm:$0xff] %vm9279_vm2, %v10586_v45  ;;  %v10588_v61 = vadd.f32 %v9243_v47, %v7993_v25  ;;  %v9245_v60 = vpop.f32.mrb[239].mxu1 }
0x1311   :  { %9367 = vst.msk [vmem:[%s16607_s5 + $0x2b8] sm:$0xff] %vm9279_vm2, %v10588_v61 }
0x1314   :  { %v9248_v37 = vpop.f32.mrb[240].mxu1 }
0x1315   :  { %v10590_v22 = vadd.f32 %v9248_v37, %v7998_v27  ;;  %v9250_v52 = vpop.f32.mrb[241].mxu1 }
0x1316   :  { %v9251_v5 = vpop.f32.mrb[242].mxu1 }
0x1317   :  { %9368 = vst.msk [vmem:[%s16607_s5 + $0x2c0] sm:$0xff] %vm9279_vm2, %v10590_v22  ;;  %v10592_v29 = vadd.f32 %v9251_v5, %v8001_v40  ;;  %v9253_v26 = vpop.f32.mrb[243].mxu1 }
0x1319   :  { %9369 = vst.msk [vmem:[%s16607_s5 + $0x2c8] sm:$0xff] %vm9279_vm2, %v10592_v29 }
0x131c   :  { %v9256_v10 = vpop.f32.mrb[244].mxu1 }
0x131d   :  { %v10594_v56 = vadd.f32 %v9256_v10, %v8006_v32  ;;  %v9258_v42 = vpop.f32.mrb[245].mxu1 }
0x131e   :  { %v9259_v46 = vpop.f32.mrb[246].mxu1 }
0x131f   :  { %9370 = vst.msk [vmem:[%s16607_s5 + $0x2d0] sm:$0xff] %vm9279_vm2, %v10594_v56  ;;  %v10596_v48 = vadd.f32 %v9259_v46, %v8009_v51  ;;  %v9261_v50 = vpop.f32.mrb[247].mxu1 }
0x1321   :  { %9371 = vst.msk [vmem:[%s16607_s5 + $0x2d8] sm:$0xff] %vm9279_vm2, %v10596_v48 }
0x1324   :  { %v9264_v53 = vpop.f32.mrb[248].mxu1 }
0x1325   :  { %v10598_v16 = vadd.f32 %v9264_v53, %v8014_v58  ;;  %v9266_v44 = vpop.f32.mrb[249].mxu1 }
0x1326   :  { %v9267_v34 = vpop.f32.mrb[250].mxu1 }
0x1327   :  { %9372 = vst.msk [vmem:[%s16607_s5 + $0x2e0] sm:$0xff] %vm9279_vm2, %v10598_v16  ;;  %v10600_v31 = vadd.f32 %v9267_v34, %v8017_v63  ;;  %v9269_v2 = vpop.f32.mrb[251].mxu1 }
0x1329   :  { %9373 = vst.msk [vmem:[%s16607_s5 + $0x2e8] sm:$0xff] %vm9279_vm2, %v10600_v31 }
0x132c   :  { %v9272_v14 = vpop.f32.mrb[252].mxu1 }
0x132d   :  { %v10602_v59 = vadd.f32 %v9272_v14, %v8022_v0  ;;  %v9274_v28 = vpop.f32.mrb[253].mxu1 }
0x132e   :  { %v9275_v33 = vpop.f32.mrb[254].mxu1 }
0x132f   :  { %9374 = vst.msk [vmem:[%s16607_s5 + $0x2f0] sm:$0xff] %vm9279_vm2, %v10602_v59  ;;  %v10604_v11 = vadd.f32 %v9275_v33, %v8025_v13  ;;  %v9277_v7 = vpop.f32.mrb[255].mxu1 }
0x1331   :  { %9375 = vst.msk [vmem:[%s16607_s5 + $0x2f8] sm:$0xff] %vm9279_vm2, %v10604_v11 }
0x1332   :  { %9380 = vsyncpa [#allocation5], 1 }
0x1333   :  { %9381 = vsyncpa [#allocation7], 1 }
0x1334   :  { %9382 = vsyncmov [#allocation3] }
0x1337   :  { %s9383_s4 = vpop.sfrf %9382 }
0x1338   :  { %p9646_p10 = scmp.ne.s32.totalorder %s9383_s4, 0 }
0x133a   :  { %9387 = shalt.err (%p9646_p10)  }

</bundles_post_ra>
